<compile_context>
chip_gen: v5e
topology: v5e:2x2
jax: 0.10.0
libtpu: 0.0.40
codegen_flags: <defaults>
</compile_context>

<pallas_src>
import functools

import jax
import jax.numpy as jnp
import numpy as np
from jax import lax
from jax.experimental import pallas as pl
from jax.experimental.pallas import tpu as pltpu


def _round_up(x, m):
    return (x + m - 1) // m * m


# -----------------------------------------------------------------------------
# Pallas kernel
# -----------------------------------------------------------------------------
def encoder_kernel(src_ref,        # (T*Bp, 1)    int32 token ids (batch padded)
                   tokgates_ref,   # (Vp, 8*Hp)   bf16: emb@W_ih^T + b, [fwd|bwd], gates [i,f,o,g]
                   whh_ref,        # (2*Hp, 8*Hp) bf16: block-diag recurrent weights
                   fcw_ref,        # (2*Hp, Hp)   f32
                   fcb_ref,        # (1, Hp)      f32
                   out_ref,        # (T, Bp, 2*Hp) f32: [:,:, :Hp]=fwd h, [:,:, Hp:]=bwd h
                   hc_ref,         # (2, Bp, Hp)   f32: [h_n ; c_n] after fc
                   gin_ref,        # scratch (T, Bp, 8*Hp) f32
                   *, unroll=True):
    T, Bp, two_hp = out_ref.shape
    Hp = two_hp // 2
    G = 4 * Hp
    Vp = tokgates_ref.shape[0]
    TB = src_ref.shape[0]

    # ---- Prologue: fused embedding gather + input projection (both dirs) ----
    # one_hot(src) @ (emb_table @ W_ih^T + b)  --  a single MXU matmul.
    ids = src_ref[...]                                           # (T*Bp, 1) i32
    iota = lax.broadcasted_iota(jnp.int32, (TB, Vp), 1)
    onehot = (iota == ids).astype(jnp.bfloat16)                  # (T*Bp, Vp)
    gin = jnp.dot(onehot, tokgates_ref[...],
                  preferred_element_type=jnp.float32)            # (T*Bp, 8*Hp)
    gin_ref[...] = gin.reshape(T, Bp, 2 * G)                     # single store pass

    whh = whh_ref[...]                                           # (2Hp, 8Hp) bf16

    # ---- Fused fwd+bwd recurrence: ONE block-diag matmul per step ----
    def body(step, carry):
        h_cat, c_st = carry              # (Bp, 2Hp) f32, (2Bp, Hp) f32
        tf = step
        tb = T - 1 - step
        rec = jnp.dot(h_cat.astype(jnp.bfloat16), whh,
                      preferred_element_type=jnp.float32)        # (Bp, 8Hp)
        pre_f = gin_ref[tf, :, 0:G] + rec[:, 0:G]                # (Bp, 4Hp)
        pre_b = gin_ref[tb, :, G:2 * G] + rec[:, G:2 * G]        # (Bp, 4Hp)
        pre = jnp.concatenate([pre_f, pre_b], axis=0)            # (2Bp, 4Hp) [i,f,o,g]
        sig = jax.nn.sigmoid(pre[:, 0:3 * Hp])                   # one wide EUP op
        i_g = sig[:, 0:Hp]
        f_g = sig[:, Hp:2 * Hp]
        o_g = sig[:, 2 * Hp:3 * Hp]
        g_g = jnp.tanh(pre[:, 3 * Hp:4 * Hp])
        c_st = f_g * c_st + i_g * g_g                            # (2Bp, Hp)
        h_st = o_g * jnp.tanh(c_st)                              # (2Bp, Hp)
        h_f = h_st[0:Bp]
        h_b = h_st[Bp:2 * Bp]
        out_ref[tf, :, 0:Hp] = h_f                               # lane-aligned stores
        out_ref[tb, :, Hp:2 * Hp] = h_b
        h_cat = jnp.concatenate([h_f, h_b], axis=-1)             # (Bp, 2Hp)
        return h_cat, c_st

    h0 = jnp.zeros((Bp, 2 * Hp), jnp.float32)
    c0 = jnp.zeros((2 * Bp, Hp), jnp.float32)
    h_cat, c_st = lax.fori_loop(0, T, body, (h0, c0), unroll=unroll)

    # ---- Epilogue: fc on [h_fwd||h_bwd ; c_fwd||c_bwd] as one matmul ----
    c_cat = jnp.concatenate([c_st[0:Bp], c_st[Bp:2 * Bp]], axis=-1)   # (Bp, 2Hp)
    hc = jnp.concatenate([h_cat, c_cat], axis=0)                      # (2Bp, 2Hp)
    res = jnp.dot(hc, fcw_ref[...],
                  preferred_element_type=jnp.float32) + fcb_ref[...]
    hc_ref[...] = res.reshape(2, Bp, Hp)


# -----------------------------------------------------------------------------
# Parameters (nn.Embedding / nn.LSTM(bidirectional) / nn.Linear shapes)
# -----------------------------------------------------------------------------
def init_encoder_params(key, input_dim, emb_dim, hid_dim):
    ks = jax.random.split(key, 12)
    H, E = hid_dim, emb_dim
    s = 0.1
    return {
        "emb":    jax.random.normal(ks[0], (input_dim, E), jnp.float32) * s,
        # forward direction (PyTorch gate order [i, f, g, o])
        "w_ih_f": jax.random.normal(ks[1], (4 * H, E), jnp.float32) * s,
        "w_hh_f": jax.random.normal(ks[2], (4 * H, H), jnp.float32) * s,
        "b_ih_f": jax.random.normal(ks[3], (4 * H,), jnp.float32) * s,
        "b_hh_f": jax.random.normal(ks[4], (4 * H,), jnp.float32) * s,
        # backward direction
        "w_ih_b": jax.random.normal(ks[5], (4 * H, E), jnp.float32) * s,
        "w_hh_b": jax.random.normal(ks[6], (4 * H, H), jnp.float32) * s,
        "b_ih_b": jax.random.normal(ks[7], (4 * H,), jnp.float32) * s,
        "b_hh_b": jax.random.normal(ks[8], (4 * H,), jnp.float32) * s,
        # fc: Linear(2H -> H)
        "fc_w":   jax.random.normal(ks[9], (H, 2 * H), jnp.float32) * s,
        "fc_b":   jax.random.normal(ks[10], (H,), jnp.float32) * s,
    }


# -----------------------------------------------------------------------------
# One-time weight preparation (hoisted out of the per-call path)
# -----------------------------------------------------------------------------
def prepare_encoder_params(params):
    """Gate reorder/pad, fold embedding+biases into W_ih, block-diag W_hh, bf16."""
    H = params["fc_b"].shape[0]
    V = params["emb"].shape[0]
    Hp = _round_up(max(H, 128), 128)
    Vp = _round_up(max(V, 128), 128)
    hp = lax.Precision.HIGHEST

    def reorder_pad(w):
        # (..., 4*H) stacked [i,f,g,o] -> (..., 4*Hp) stacked [i,f,o,g], zero-padded.
        lead = w.shape[:-1]
        w4 = w.reshape(lead + (4, H))
        w4 = jnp.stack([w4[..., 0, :], w4[..., 1, :], w4[..., 3, :], w4[..., 2, :]],
                       axis=-2)
        w4 = jnp.pad(w4, [(0, 0)] * len(lead) + [(0, 0), (0, Hp - H)])
        return w4.reshape(lead + (4 * Hp,))

    def prep_dir(wih, whh, bih, bhh):
        # Token -> gate pre-activation matrix (valid because each one-hot row
        # in the kernel sums to exactly 1, so the bias folds in linearly).
        tg = jnp.dot(params["emb"], wih.T, precision=hp) + (bih + bhh)[None, :]
        tg = reorder_pad(tg)                                   # (V, 4Hp)
        whh_rp = reorder_pad(whh.T)                            # (H, 4Hp)
        whh_rp = jnp.pad(whh_rp, ((0, Hp - H), (0, 0)))        # (Hp, 4Hp)
        return tg, whh_rp

    tg_f, whh_f = prep_dir(params["w_ih_f"], params["w_hh_f"],
                           params["b_ih_f"], params["b_hh_f"])
    tg_b, whh_b = prep_dir(params["w_ih_b"], params["w_hh_b"],
                           params["b_ih_b"], params["b_hh_b"])

    tokgates = jnp.concatenate([tg_f, tg_b], axis=1)           # (V, 8Hp)
    tokgates = jnp.pad(tokgates, ((0, Vp - V), (0, 0))).astype(jnp.bfloat16)

    whh_bd = jnp.zeros((2 * Hp, 8 * Hp), jnp.float32)          # block-diagonal
    whh_bd = whh_bd.at[0:Hp, 0:4 * Hp].set(whh_f)
    whh_bd = whh_bd.at[Hp:2 * Hp, 4 * Hp:8 * Hp].set(whh_b)
    whh_bd = whh_bd.astype(jnp.bfloat16)

    fcwT = params["fc_w"].T                                    # (2H, H)
    fcw = jnp.zeros((2 * Hp, Hp), jnp.float32)
    fcw = fcw.at[0:H, 0:H].set(fcwT[0:H])
    fcw = fcw.at[Hp:Hp + H, 0:H].set(fcwT[H:2 * H])
    fcb = jnp.pad(params["fc_b"], (0, Hp - H)).reshape(1, Hp)

    return {"tokgates": tokgates, "whh": whh_bd, "fcw": fcw, "fcb": fcb}


# -----------------------------------------------------------------------------
# Per-call wrapper: pad src, pallas_call, slice outputs
# -----------------------------------------------------------------------------
@functools.partial(jax.jit, static_argnames=("hid_dim",))
def encoder_forward(src, prep, *, hid_dim):
    T, B = src.shape
    H = hid_dim
    Hp = prep["fcw"].shape[1]
    Vp = prep["tokgates"].shape[0]
    Bp = _round_up(max(B, 8), 8)

    src_p = jnp.pad(src.astype(jnp.int32), ((0, 0), (0, Bp - B)))
    src_p = src_p.reshape(T * Bp, 1)

    vmem = pl.BlockSpec(memory_space=pltpu.MemorySpace.VMEM)

    def nbytes(shape, itemsize=4):
        n = itemsize
        for s in shape:
            n *= int(s)
        return n

    buf_bytes = (nbytes((T * Bp, 1)) + nbytes((Vp, 8 * Hp), 2)
                 + nbytes((2 * Hp, 8 * Hp), 2) + nbytes((2 * Hp, Hp))
                 + nbytes((1, Hp)) + nbytes((T, Bp, 2 * Hp))
                 + nbytes((2, Bp, Hp)) + nbytes((T, Bp, 8 * Hp)))
    # No grid -> no double buffering; just headroom for Mosaic internal scratch.
    vmem_limit = int(min(buf_bytes + (8 << 20), 48 << 20))

    kernel = functools.partial(encoder_kernel,
                               unroll=(T if T <= 16 else 8))

    out, hc = pl.pallas_call(
        kernel,
        out_shape=(
            jax.ShapeDtypeStruct((T, Bp, 2 * Hp), jnp.float32),   # per-step hidden
            jax.ShapeDtypeStruct((2, Bp, Hp), jnp.float32),       # [h_n ; c_n]
        ),
        in_specs=[vmem] * 5,
        out_specs=(vmem, vmem),
        scratch_shapes=[pltpu.VMEM((T, Bp, 8 * Hp), jnp.float32)],
        compiler_params=pltpu.CompilerParams(vmem_limit_bytes=vmem_limit),
    )(src_p, prep["tokgates"], prep["whh"], prep["fcw"], prep["fcb"])

    # Un-pad.  (The slice-concat only remains because H < 128 here; it becomes
    # a pure slice when H is a multiple of 128.)
    outputs = jnp.concatenate([out[:, :B, :H], out[:, :B, Hp:Hp + H]], axis=-1)
    h_n = hc[0:1, :B, :H]
    c_n = hc[1:2, :B, :H]
    return outputs, (h_n, c_n)


# -----------------------------------------------------------------------------
# Pure-JAX reference (matches PyTorch bidirectional LSTM + fc semantics)
# -----------------------------------------------------------------------------
def reference_forward(src, params):
    emb = jnp.take(params["emb"], src, axis=0)               # (T, B, E)
    H = params["fc_b"].shape[0]
    hp = lax.Precision.HIGHEST

    def run_dir(xs, wih, whh, bih, bhh):
        B = xs.shape[1]

        def step(carry, x):
            h, c = carry
            gates = (jnp.dot(x, wih.T, precision=hp)
                     + jnp.dot(h, whh.T, precision=hp) + bih + bhh)
            i = jax.nn.sigmoid(gates[:, 0 * H:1 * H])
            f = jax.nn.sigmoid(gates[:, 1 * H:2 * H])
            g = jnp.tanh(gates[:, 2 * H:3 * H])
            o = jax.nn.sigmoid(gates[:, 3 * H:4 * H])
            c = f * c + i * g
            h = o * jnp.tanh(c)
            return (h, c), h

        init = (jnp.zeros((B, H), jnp.float32), jnp.zeros((B, H), jnp.float32))
        (h, c), outs = lax.scan(step, init, xs)
        return outs, h, c

    outs_f, hf, cf = run_dir(emb, params["w_ih_f"], params["w_hh_f"],
                             params["b_ih_f"], params["b_hh_f"])
    outs_b_rev, hb, cb = run_dir(emb[::-1], params["w_ih_b"], params["w_hh_b"],
                                 params["b_ih_b"], params["b_hh_b"])
    outs_b = outs_b_rev[::-1]
    outputs = jnp.concatenate([outs_f, outs_b], axis=-1)

    def fc(x):
        return jnp.dot(x, params["fc_w"].T, precision=hp) + params["fc_b"]

    h_n = fc(jnp.concatenate([hf, hb], axis=-1))[None]
    c_n = fc(jnp.concatenate([cf, cb], axis=-1))[None]
    return outputs, (h_n, c_n)


if __name__ == "__main__":
    # Small shapes consistent with the module: vocab=50, emb=32, hid=32, T=8, B=2
    INPUT_DIM, EMB_DIM, HID_DIM = 50, 32, 32
    T, B = 8, 2

    key = jax.random.PRNGKey(0)
    k_params, k_src = jax.random.split(key)
    params = init_encoder_params(k_params, INPUT_DIM, EMB_DIM, HID_DIM)
    src = jax.random.randint(k_src, (T, B), 0, INPUT_DIM, dtype=jnp.int32)

    prep = prepare_encoder_params(params)      # one-time weight prep (hoisted)

    outputs, (h_n, c_n) = encoder_forward(src, prep, hid_dim=HID_DIM)
    jax.block_until_ready((outputs, h_n, c_n))

    assert outputs.shape == (T, B, 2 * HID_DIM)
    assert h_n.shape == (1, B, HID_DIM)
    assert c_n.shape == (1, B, HID_DIM)

    ref_out, (ref_h, ref_c) = reference_forward(src, params)
    np.testing.assert_allclose(np.asarray(outputs), np.asarray(ref_out),
                               rtol=2e-3, atol=2e-3)
    np.testing.assert_allclose(np.asarray(h_n), np.asarray(ref_h),
                               rtol=2e-3, atol=2e-3)
    np.testing.assert_allclose(np.asarray(c_n), np.asarray(ref_c),
                               rtol=2e-3, atol=2e-3)

    print("KERNEL_OK")
</pallas_src>

<mosaic_0001>
module attributes {stable_mosaic.version = 11 : i64} {
  func.func @encoder_kernel(%arg0: memref<64x1xi32, #tpu.memory_space<vmem>>, %arg1: memref<128x1024xbf16, #tpu.memory_space<vmem>>, %arg2: memref<256x1024xbf16, #tpu.memory_space<vmem>>, %arg3: memref<256x128xf32, #tpu.memory_space<vmem>>, %arg4: memref<1x128xf32, #tpu.memory_space<vmem>>, %arg5: memref<8x8x256xf32, #tpu.memory_space<vmem>>, %arg6: memref<2x8x128xf32, #tpu.memory_space<vmem>>, %arg7: memref<8x8x1024xf32, #tpu.memory_space<vmem>>) attributes {dimension_semantics = [], scalar_prefetch = 0 : i64, scratch_operands = 1 : i64, tpu.core_type = #tpu.core_type<tc>} {
    %c0 = arith.constant 0 : index
    %c0_0 = arith.constant 0 : index
    %0 = vector.load %arg0[%c0, %c0_0] : memref<64x1xi32, #tpu.memory_space<vmem>>, vector<64x1xi32>
    %1 = tpu.iota {dimensions = array<i32: 1>} : vector<64x128xi32>
    %2 = vector.broadcast %0 : vector<64x1xi32> to vector<64x128xi32>
    %3 = arith.cmpi eq, %1, %2 : vector<64x128xi32>
    %4 = arith.extui %3 : vector<64x128xi1> to vector<64x128xi32>
    %5 = arith.sitofp %4 : vector<64x128xi32> to vector<64x128xf32>
    %6 = arith.truncf %5 : vector<64x128xf32> to vector<64x128xbf16>
    %c0_1 = arith.constant 0 : index
    %c0_2 = arith.constant 0 : index
    %7 = vector.load %arg1[%c0_1, %c0_2] : memref<128x1024xbf16, #tpu.memory_space<vmem>>, vector<128x1024xbf16>
    %cst = arith.constant dense<0.000000e+00> : vector<64x1024xf32>
    %8 = tpu.matmul %6, %7, %cst {dimension_numbers = #tpu.dot_dimension_numbers<[1], [0], [0], [1], [0, 0, 1, 1], [], []>} : vector<64x128xbf16>, vector<128x1024xbf16>, vector<64x1024xf32> -> vector<64x1024xf32>
    %9 = vector.shape_cast %8 : vector<64x1024xf32> to vector<8x8x1024xf32>
    %c0_3 = arith.constant 0 : index
    %c0_4 = arith.constant 0 : index
    %c0_5 = arith.constant 0 : index
    %10 = vector.load %arg7[%c0_3, %c0_4, %c0_5] : memref<8x8x1024xf32, #tpu.memory_space<vmem>>, vector<8x8x1024xf32>
    tpu.vector_store %arg7[%c0_3, %c0_4, %c0_5], %9 {strides = array<i32>} : memref<8x8x1024xf32, #tpu.memory_space<vmem>>, vector<8x8x1024xf32>,
    %c0_6 = arith.constant 0 : index
    %c0_7 = arith.constant 0 : index
    %11 = vector.load %arg2[%c0_6, %c0_7] : memref<256x1024xbf16, #tpu.memory_space<vmem>>, vector<256x1024xbf16>
    %cst_8 = arith.constant 0.000000e+00 : f32
    %12 = vector.broadcast %cst_8 : f32 to vector<8x256xf32>
    %cst_9 = arith.constant 0.000000e+00 : f32
    %13 = vector.broadcast %cst_9 : f32 to vector<16x128xf32>
    %c0_i32 = arith.constant 0 : i32
    %c7_i32 = arith.constant 7 : i32
    %14 = arith.subi %c7_i32, %c0_i32 : i32
    %15 = arith.truncf %12 : vector<8x256xf32> to vector<8x256xbf16>
    %cst_10 = arith.constant dense<0.000000e+00> : vector<8x1024xf32>
    %16 = tpu.matmul %15, %11, %cst_10 {dimension_numbers = #tpu.dot_dimension_numbers<[1], [0], [0], [1], [0, 0, 1, 1], [], []>} : vector<8x256xbf16>, vector<256x1024xbf16>, vector<8x1024xf32> -> vector<8x1024xf32>
    %17 = arith.index_cast %c0_i32 : i32 to index
    %c0_11 = arith.constant 0 : index
    %c0_12 = arith.constant 0 : index
    %18 = vector.load %arg7[%17, %c0_11, %c0_12] : memref<8x8x1024xf32, #tpu.memory_space<vmem>>, vector<1x8x512xf32>
    %19 = vector.shape_cast %18 : vector<1x8x512xf32> to vector<8x512xf32>
    %20 = vector.extract_strided_slice %16 {offsets = [0, 0], sizes = [8, 512], strides = [1, 1]} : vector<8x1024xf32> to vector<8x512xf32>
    %21 = arith.addf %19, %20 : vector<8x512xf32>
    %22 = arith.index_cast %14 : i32 to index
    %c0_13 = arith.constant 0 : index
    %c512 = arith.constant 512 : index
    %23 = vector.load %arg7[%22, %c0_13, %c512] : memref<8x8x1024xf32, #tpu.memory_space<vmem>>, vector<1x8x512xf32>
    %24 = vector.shape_cast %23 : vector<1x8x512xf32> to vector<8x512xf32>
    %25 = vector.extract_strided_slice %16 {offsets = [0, 512], sizes = [8, 512], strides = [1, 1]} : vector<8x1024xf32> to vector<8x512xf32>
    %26 = arith.addf %24, %25 : vector<8x512xf32>
    %27 = tpu.concatenate %21, %26 in 0 : vector<8x512xf32>, vector<8x512xf32> -> vector<16x512xf32>
    %28 = vector.extract_strided_slice %27 {offsets = [0, 0], sizes = [16, 384], strides = [1, 1]} : vector<16x512xf32> to vector<16x384xf32>
    %29 = arith.negf %28 : vector<16x384xf32>
    %30 = math.exp %29 : vector<16x384xf32>
    %cst_14 = arith.constant 1.000000e+00 : f32
    %31 = vector.broadcast %cst_14 : f32 to vector<16x384xf32>
    %32 = arith.addf %31, %30 : vector<16x384xf32>
    %33 = arith.divf %31, %32 : vector<16x384xf32>
    %34 = vector.extract_strided_slice %33 {offsets = [0, 0], sizes = [16, 128], strides = [1, 1]} : vector<16x384xf32> to vector<16x128xf32>
    %35 = vector.extract_strided_slice %33 {offsets = [0, 128], sizes = [16, 128], strides = [1, 1]} : vector<16x384xf32> to vector<16x128xf32>
    %36 = vector.extract_strided_slice %33 {offsets = [0, 256], sizes = [16, 128], strides = [1, 1]} : vector<16x384xf32> to vector<16x128xf32>
    %37 = vector.extract_strided_slice %27 {offsets = [0, 384], sizes = [16, 128], strides = [1, 1]} : vector<16x512xf32> to vector<16x128xf32>
    %38 = math.tanh %37 : vector<16x128xf32>
    %39 = arith.mulf %35, %13 : vector<16x128xf32>
    %40 = arith.mulf %34, %38 : vector<16x128xf32>
    %41 = arith.addf %39, %40 : vector<16x128xf32>
    %42 = math.tanh %41 : vector<16x128xf32>
    %43 = arith.mulf %36, %42 : vector<16x128xf32>
    %44 = vector.extract_strided_slice %43 {offsets = [0, 0], sizes = [8, 128], strides = [1, 1]} : vector<16x128xf32> to vector<8x128xf32>
    %45 = vector.extract_strided_slice %43 {offsets = [8, 0], sizes = [8, 128], strides = [1, 1]} : vector<16x128xf32> to vector<8x128xf32>
    %46 = arith.index_cast %c0_i32 : i32 to index
    %c0_15 = arith.constant 0 : index
    %c0_16 = arith.constant 0 : index
    %47 = vector.load %arg5[%46, %c0_15, %c0_16] : memref<8x8x256xf32, #tpu.memory_space<vmem>>, vector<1x8x128xf32>
    %48 = vector.shape_cast %47 : vector<1x8x128xf32> to vector<8x128xf32>
    %49 = vector.shape_cast %44 : vector<8x128xf32> to vector<1x8x128xf32>
    tpu.vector_store %arg5[%46, %c0_15, %c0_16], %49 {strides = array<i32>} : memref<8x8x256xf32, #tpu.memory_space<vmem>>, vector<1x8x128xf32>,
    %50 = arith.index_cast %14 : i32 to index
    %c0_17 = arith.constant 0 : index
    %c128 = arith.constant 128 : index
    %51 = vector.load %arg5[%50, %c0_17, %c128] : memref<8x8x256xf32, #tpu.memory_space<vmem>>, vector<1x8x128xf32>
    %52 = vector.shape_cast %51 : vector<1x8x128xf32> to vector<8x128xf32>
    %53 = vector.shape_cast %45 : vector<8x128xf32> to vector<1x8x128xf32>
    tpu.vector_store %arg5[%50, %c0_17, %c128], %53 {strides = array<i32>} : memref<8x8x256xf32, #tpu.memory_space<vmem>>, vector<1x8x128xf32>,
    %54 = tpu.concatenate %44, %45 in 1 : vector<8x128xf32>, vector<8x128xf32> -> vector<8x256xf32>
    %c1_i32 = arith.constant 1 : i32
    %c7_i32_18 = arith.constant 7 : i32
    %55 = arith.subi %c7_i32_18, %c1_i32 : i32
    %56 = arith.truncf %54 : vector<8x256xf32> to vector<8x256xbf16>
    %cst_19 = arith.constant dense<0.000000e+00> : vector<8x1024xf32>
    %57 = tpu.matmul %56, %11, %cst_19 {dimension_numbers = #tpu.dot_dimension_numbers<[1], [0], [0], [1], [0, 0, 1, 1], [], []>} : vector<8x256xbf16>, vector<256x1024xbf16>, vector<8x1024xf32> -> vector<8x1024xf32>
    %58 = arith.index_cast %c1_i32 : i32 to index
    %c0_20 = arith.constant 0 : index
    %c0_21 = arith.constant 0 : index
    %59 = vector.load %arg7[%58, %c0_20, %c0_21] : memref<8x8x1024xf32, #tpu.memory_space<vmem>>, vector<1x8x512xf32>
    %60 = vector.shape_cast %59 : vector<1x8x512xf32> to vector<8x512xf32>
    %61 = vector.extract_strided_slice %57 {offsets = [0, 0], sizes = [8, 512], strides = [1, 1]} : vector<8x1024xf32> to vector<8x512xf32>
    %62 = arith.addf %60, %61 : vector<8x512xf32>
    %63 = arith.index_cast %55 : i32 to index
    %c0_22 = arith.constant 0 : index
    %c512_23 = arith.constant 512 : index
    %64 = vector.load %arg7[%63, %c0_22, %c512_23] : memref<8x8x1024xf32, #tpu.memory_space<vmem>>, vector<1x8x512xf32>
    %65 = vector.shape_cast %64 : vector<1x8x512xf32> to vector<8x512xf32>
    %66 = vector.extract_strided_slice %57 {offsets = [0, 512], sizes = [8, 512], strides = [1, 1]} : vector<8x1024xf32> to vector<8x512xf32>
    %67 = arith.addf %65, %66 : vector<8x512xf32>
    %68 = tpu.concatenate %62, %67 in 0 : vector<8x512xf32>, vector<8x512xf32> -> vector<16x512xf32>
    %69 = vector.extract_strided_slice %68 {offsets = [0, 0], sizes = [16, 384], strides = [1, 1]} : vector<16x512xf32> to vector<16x384xf32>
    %70 = arith.negf %69 : vector<16x384xf32>
    %71 = math.exp %70 : vector<16x384xf32>
    %cst_24 = arith.constant 1.000000e+00 : f32
    %72 = vector.broadcast %cst_24 : f32 to vector<16x384xf32>
    %73 = arith.addf %72, %71 : vector<16x384xf32>
    %74 = arith.divf %72, %73 : vector<16x384xf32>
    %75 = vector.extract_strided_slice %74 {offsets = [0, 0], sizes = [16, 128], strides = [1, 1]} : vector<16x384xf32> to vector<16x128xf32>
    %76 = vector.extract_strided_slice %74 {offsets = [0, 128], sizes = [16, 128], strides = [1, 1]} : vector<16x384xf32> to vector<16x128xf32>
    %77 = vector.extract_strided_slice %74 {offsets = [0, 256], sizes = [16, 128], strides = [1, 1]} : vector<16x384xf32> to vector<16x128xf32>
    %78 = vector.extract_strided_slice %68 {offsets = [0, 384], sizes = [16, 128], strides = [1, 1]} : vector<16x512xf32> to vector<16x128xf32>
    %79 = math.tanh %78 : vector<16x128xf32>
    %80 = arith.mulf %76, %41 : vector<16x128xf32>
    %81 = arith.mulf %75, %79 : vector<16x128xf32>
    %82 = arith.addf %80, %81 : vector<16x128xf32>
    %83 = math.tanh %82 : vector<16x128xf32>
    %84 = arith.mulf %77, %83 : vector<16x128xf32>
    %85 = vector.extract_strided_slice %84 {offsets = [0, 0], sizes = [8, 128], strides = [1, 1]} : vector<16x128xf32> to vector<8x128xf32>
    %86 = vector.extract_strided_slice %84 {offsets = [8, 0], sizes = [8, 128], strides = [1, 1]} : vector<16x128xf32> to vector<8x128xf32>
    %87 = arith.index_cast %c1_i32 : i32 to index
    %c0_25 = arith.constant 0 : index
    %c0_26 = arith.constant 0 : index
    %88 = vector.load %arg5[%87, %c0_25, %c0_26] : memref<8x8x256xf32, #tpu.memory_space<vmem>>, vector<1x8x128xf32>
    %89 = vector.shape_cast %88 : vector<1x8x128xf32> to vector<8x128xf32>
    %90 = vector.shape_cast %85 : vector<8x128xf32> to vector<1x8x128xf32>
    tpu.vector_store %arg5[%87, %c0_25, %c0_26], %90 {strides = array<i32>} : memref<8x8x256xf32, #tpu.memory_space<vmem>>, vector<1x8x128xf32>,
    %91 = arith.index_cast %55 : i32 to index
    %c0_27 = arith.constant 0 : index
    %c128_28 = arith.constant 128 : index
    %92 = vector.load %arg5[%91, %c0_27, %c128_28] : memref<8x8x256xf32, #tpu.memory_space<vmem>>, vector<1x8x128xf32>
    %93 = vector.shape_cast %92 : vector<1x8x128xf32> to vector<8x128xf32>
    %94 = vector.shape_cast %86 : vector<8x128xf32> to vector<1x8x128xf32>
    tpu.vector_store %arg5[%91, %c0_27, %c128_28], %94 {strides = array<i32>} : memref<8x8x256xf32, #tpu.memory_space<vmem>>, vector<1x8x128xf32>,
    %95 = tpu.concatenate %85, %86 in 1 : vector<8x128xf32>, vector<8x128xf32> -> vector<8x256xf32>
    %c2_i32 = arith.constant 2 : i32
    %c7_i32_29 = arith.constant 7 : i32
    %96 = arith.subi %c7_i32_29, %c2_i32 : i32
    %97 = arith.truncf %95 : vector<8x256xf32> to vector<8x256xbf16>
    %cst_30 = arith.constant dense<0.000000e+00> : vector<8x1024xf32>
    %98 = tpu.matmul %97, %11, %cst_30 {dimension_numbers = #tpu.dot_dimension_numbers<[1], [0], [0], [1], [0, 0, 1, 1], [], []>} : vector<8x256xbf16>, vector<256x1024xbf16>, vector<8x1024xf32> -> vector<8x1024xf32>
    %99 = arith.index_cast %c2_i32 : i32 to index
    %c0_31 = arith.constant 0 : index
    %c0_32 = arith.constant 0 : index
    %100 = vector.load %arg7[%99, %c0_31, %c0_32] : memref<8x8x1024xf32, #tpu.memory_space<vmem>>, vector<1x8x512xf32>
    %101 = vector.shape_cast %100 : vector<1x8x512xf32> to vector<8x512xf32>
    %102 = vector.extract_strided_slice %98 {offsets = [0, 0], sizes = [8, 512], strides = [1, 1]} : vector<8x1024xf32> to vector<8x512xf32>
    %103 = arith.addf %101, %102 : vector<8x512xf32>
    %104 = arith.index_cast %96 : i32 to index
    %c0_33 = arith.constant 0 : index
    %c512_34 = arith.constant 512 : index
    %105 = vector.load %arg7[%104, %c0_33, %c512_34] : memref<8x8x1024xf32, #tpu.memory_space<vmem>>, vector<1x8x512xf32>
    %106 = vector.shape_cast %105 : vector<1x8x512xf32> to vector<8x512xf32>
    %107 = vector.extract_strided_slice %98 {offsets = [0, 512], sizes = [8, 512], strides = [1, 1]} : vector<8x1024xf32> to vector<8x512xf32>
    %108 = arith.addf %106, %107 : vector<8x512xf32>
    %109 = tpu.concatenate %103, %108 in 0 : vector<8x512xf32>, vector<8x512xf32> -> vector<16x512xf32>
    %110 = vector.extract_strided_slice %109 {offsets = [0, 0], sizes = [16, 384], strides = [1, 1]} : vector<16x512xf32> to vector<16x384xf32>
    %111 = arith.negf %110 : vector<16x384xf32>
    %112 = math.exp %111 : vector<16x384xf32>
    %cst_35 = arith.constant 1.000000e+00 : f32
    %113 = vector.broadcast %cst_35 : f32 to vector<16x384xf32>
    %114 = arith.addf %113, %112 : vector<16x384xf32>
    %115 = arith.divf %113, %114 : vector<16x384xf32>
    %116 = vector.extract_strided_slice %115 {offsets = [0, 0], sizes = [16, 128], strides = [1, 1]} : vector<16x384xf32> to vector<16x128xf32>
    %117 = vector.extract_strided_slice %115 {offsets = [0, 128], sizes = [16, 128], strides = [1, 1]} : vector<16x384xf32> to vector<16x128xf32>
    %118 = vector.extract_strided_slice %115 {offsets = [0, 256], sizes = [16, 128], strides = [1, 1]} : vector<16x384xf32> to vector<16x128xf32>
    %119 = vector.extract_strided_slice %109 {offsets = [0, 384], sizes = [16, 128], strides = [1, 1]} : vector<16x512xf32> to vector<16x128xf32>
    %120 = math.tanh %119 : vector<16x128xf32>
    %121 = arith.mulf %117, %82 : vector<16x128xf32>
    %122 = arith.mulf %116, %120 : vector<16x128xf32>
    %123 = arith.addf %121, %122 : vector<16x128xf32>
    %124 = math.tanh %123 : vector<16x128xf32>
    %125 = arith.mulf %118, %124 : vector<16x128xf32>
    %126 = vector.extract_strided_slice %125 {offsets = [0, 0], sizes = [8, 128], strides = [1, 1]} : vector<16x128xf32> to vector<8x128xf32>
    %127 = vector.extract_strided_slice %125 {offsets = [8, 0], sizes = [8, 128], strides = [1, 1]} : vector<16x128xf32> to vector<8x128xf32>
    %128 = arith.index_cast %c2_i32 : i32 to index
    %c0_36 = arith.constant 0 : index
    %c0_37 = arith.constant 0 : index
    %129 = vector.load %arg5[%128, %c0_36, %c0_37] : memref<8x8x256xf32, #tpu.memory_space<vmem>>, vector<1x8x128xf32>
    %130 = vector.shape_cast %129 : vector<1x8x128xf32> to vector<8x128xf32>
    %131 = vector.shape_cast %126 : vector<8x128xf32> to vector<1x8x128xf32>
    tpu.vector_store %arg5[%128, %c0_36, %c0_37], %131 {strides = array<i32>} : memref<8x8x256xf32, #tpu.memory_space<vmem>>, vector<1x8x128xf32>,
    %132 = arith.index_cast %96 : i32 to index
    %c0_38 = arith.constant 0 : index
    %c128_39 = arith.constant 128 : index
    %133 = vector.load %arg5[%132, %c0_38, %c128_39] : memref<8x8x256xf32, #tpu.memory_space<vmem>>, vector<1x8x128xf32>
    %134 = vector.shape_cast %133 : vector<1x8x128xf32> to vector<8x128xf32>
    %135 = vector.shape_cast %127 : vector<8x128xf32> to vector<1x8x128xf32>
    tpu.vector_store %arg5[%132, %c0_38, %c128_39], %135 {strides = array<i32>} : memref<8x8x256xf32, #tpu.memory_space<vmem>>, vector<1x8x128xf32>,
    %136 = tpu.concatenate %126, %127 in 1 : vector<8x128xf32>, vector<8x128xf32> -> vector<8x256xf32>
    %c3_i32 = arith.constant 3 : i32
    %c7_i32_40 = arith.constant 7 : i32
    %137 = arith.subi %c7_i32_40, %c3_i32 : i32
    %138 = arith.truncf %136 : vector<8x256xf32> to vector<8x256xbf16>
    %cst_41 = arith.constant dense<0.000000e+00> : vector<8x1024xf32>
    %139 = tpu.matmul %138, %11, %cst_41 {dimension_numbers = #tpu.dot_dimension_numbers<[1], [0], [0], [1], [0, 0, 1, 1], [], []>} : vector<8x256xbf16>, vector<256x1024xbf16>, vector<8x1024xf32> -> vector<8x1024xf32>
    %140 = arith.index_cast %c3_i32 : i32 to index
    %c0_42 = arith.constant 0 : index
    %c0_43 = arith.constant 0 : index
    %141 = vector.load %arg7[%140, %c0_42, %c0_43] : memref<8x8x1024xf32, #tpu.memory_space<vmem>>, vector<1x8x512xf32>
    %142 = vector.shape_cast %141 : vector<1x8x512xf32> to vector<8x512xf32>
    %143 = vector.extract_strided_slice %139 {offsets = [0, 0], sizes = [8, 512], strides = [1, 1]} : vector<8x1024xf32> to vector<8x512xf32>
    %144 = arith.addf %142, %143 : vector<8x512xf32>
    %145 = arith.index_cast %137 : i32 to index
    %c0_44 = arith.constant 0 : index
    %c512_45 = arith.constant 512 : index
    %146 = vector.load %arg7[%145, %c0_44, %c512_45] : memref<8x8x1024xf32, #tpu.memory_space<vmem>>, vector<1x8x512xf32>
    %147 = vector.shape_cast %146 : vector<1x8x512xf32> to vector<8x512xf32>
    %148 = vector.extract_strided_slice %139 {offsets = [0, 512], sizes = [8, 512], strides = [1, 1]} : vector<8x1024xf32> to vector<8x512xf32>
    %149 = arith.addf %147, %148 : vector<8x512xf32>
    %150 = tpu.concatenate %144, %149 in 0 : vector<8x512xf32>, vector<8x512xf32> -> vector<16x512xf32>
    %151 = vector.extract_strided_slice %150 {offsets = [0, 0], sizes = [16, 384], strides = [1, 1]} : vector<16x512xf32> to vector<16x384xf32>
    %152 = arith.negf %151 : vector<16x384xf32>
    %153 = math.exp %152 : vector<16x384xf32>
    %cst_46 = arith.constant 1.000000e+00 : f32
    %154 = vector.broadcast %cst_46 : f32 to vector<16x384xf32>
    %155 = arith.addf %154, %153 : vector<16x384xf32>
    %156 = arith.divf %154, %155 : vector<16x384xf32>
    %157 = vector.extract_strided_slice %156 {offsets = [0, 0], sizes = [16, 128], strides = [1, 1]} : vector<16x384xf32> to vector<16x128xf32>
    %158 = vector.extract_strided_slice %156 {offsets = [0, 128], sizes = [16, 128], strides = [1, 1]} : vector<16x384xf32> to vector<16x128xf32>
    %159 = vector.extract_strided_slice %156 {offsets = [0, 256], sizes = [16, 128], strides = [1, 1]} : vector<16x384xf32> to vector<16x128xf32>
    %160 = vector.extract_strided_slice %150 {offsets = [0, 384], sizes = [16, 128], strides = [1, 1]} : vector<16x512xf32> to vector<16x128xf32>
    %161 = math.tanh %160 : vector<16x128xf32>
    %162 = arith.mulf %158, %123 : vector<16x128xf32>
    %163 = arith.mulf %157, %161 : vector<16x128xf32>
    %164 = arith.addf %162, %163 : vector<16x128xf32>
    %165 = math.tanh %164 : vector<16x128xf32>
    %166 = arith.mulf %159, %165 : vector<16x128xf32>
    %167 = vector.extract_strided_slice %166 {offsets = [0, 0], sizes = [8, 128], strides = [1, 1]} : vector<16x128xf32> to vector<8x128xf32>
    %168 = vector.extract_strided_slice %166 {offsets = [8, 0], sizes = [8, 128], strides = [1, 1]} : vector<16x128xf32> to vector<8x128xf32>
    %169 = arith.index_cast %c3_i32 : i32 to index
    %c0_47 = arith.constant 0 : index
    %c0_48 = arith.constant 0 : index
    %170 = vector.load %arg5[%169, %c0_47, %c0_48] : memref<8x8x256xf32, #tpu.memory_space<vmem>>, vector<1x8x128xf32>
    %171 = vector.shape_cast %170 : vector<1x8x128xf32> to vector<8x128xf32>
    %172 = vector.shape_cast %167 : vector<8x128xf32> to vector<1x8x128xf32>
    tpu.vector_store %arg5[%169, %c0_47, %c0_48], %172 {strides = array<i32>} : memref<8x8x256xf32, #tpu.memory_space<vmem>>, vector<1x8x128xf32>,
    %173 = arith.index_cast %137 : i32 to index
    %c0_49 = arith.constant 0 : index
    %c128_50 = arith.constant 128 : index
    %174 = vector.load %arg5[%173, %c0_49, %c128_50] : memref<8x8x256xf32, #tpu.memory_space<vmem>>, vector<1x8x128xf32>
    %175 = vector.shape_cast %174 : vector<1x8x128xf32> to vector<8x128xf32>
    %176 = vector.shape_cast %168 : vector<8x128xf32> to vector<1x8x128xf32>
    tpu.vector_store %arg5[%173, %c0_49, %c128_50], %176 {strides = array<i32>} : memref<8x8x256xf32, #tpu.memory_space<vmem>>, vector<1x8x128xf32>,
    %177 = tpu.concatenate %167, %168 in 1 : vector<8x128xf32>, vector<8x128xf32> -> vector<8x256xf32>
    %c4_i32 = arith.constant 4 : i32
    %c7_i32_51 = arith.constant 7 : i32
    %178 = arith.subi %c7_i32_51, %c4_i32 : i32
    %179 = arith.truncf %177 : vector<8x256xf32> to vector<8x256xbf16>
    %cst_52 = arith.constant dense<0.000000e+00> : vector<8x1024xf32>
    %180 = tpu.matmul %179, %11, %cst_52 {dimension_numbers = #tpu.dot_dimension_numbers<[1], [0], [0], [1], [0, 0, 1, 1], [], []>} : vector<8x256xbf16>, vector<256x1024xbf16>, vector<8x1024xf32> -> vector<8x1024xf32>
    %181 = arith.index_cast %c4_i32 : i32 to index
    %c0_53 = arith.constant 0 : index
    %c0_54 = arith.constant 0 : index
    %182 = vector.load %arg7[%181, %c0_53, %c0_54] : memref<8x8x1024xf32, #tpu.memory_space<vmem>>, vector<1x8x512xf32>
    %183 = vector.shape_cast %182 : vector<1x8x512xf32> to vector<8x512xf32>
    %184 = vector.extract_strided_slice %180 {offsets = [0, 0], sizes = [8, 512], strides = [1, 1]} : vector<8x1024xf32> to vector<8x512xf32>
    %185 = arith.addf %183, %184 : vector<8x512xf32>
    %186 = arith.index_cast %178 : i32 to index
    %c0_55 = arith.constant 0 : index
    %c512_56 = arith.constant 512 : index
    %187 = vector.load %arg7[%186, %c0_55, %c512_56] : memref<8x8x1024xf32, #tpu.memory_space<vmem>>, vector<1x8x512xf32>
    %188 = vector.shape_cast %187 : vector<1x8x512xf32> to vector<8x512xf32>
    %189 = vector.extract_strided_slice %180 {offsets = [0, 512], sizes = [8, 512], strides = [1, 1]} : vector<8x1024xf32> to vector<8x512xf32>
    %190 = arith.addf %188, %189 : vector<8x512xf32>
    %191 = tpu.concatenate %185, %190 in 0 : vector<8x512xf32>, vector<8x512xf32> -> vector<16x512xf32>
    %192 = vector.extract_strided_slice %191 {offsets = [0, 0], sizes = [16, 384], strides = [1, 1]} : vector<16x512xf32> to vector<16x384xf32>
    %193 = arith.negf %192 : vector<16x384xf32>
    %194 = math.exp %193 : vector<16x384xf32>
    %cst_57 = arith.constant 1.000000e+00 : f32
    %195 = vector.broadcast %cst_57 : f32 to vector<16x384xf32>
    %196 = arith.addf %195, %194 : vector<16x384xf32>
    %197 = arith.divf %195, %196 : vector<16x384xf32>
    %198 = vector.extract_strided_slice %197 {offsets = [0, 0], sizes = [16, 128], strides = [1, 1]} : vector<16x384xf32> to vector<16x128xf32>
    %199 = vector.extract_strided_slice %197 {offsets = [0, 128], sizes = [16, 128], strides = [1, 1]} : vector<16x384xf32> to vector<16x128xf32>
    %200 = vector.extract_strided_slice %197 {offsets = [0, 256], sizes = [16, 128], strides = [1, 1]} : vector<16x384xf32> to vector<16x128xf32>
    %201 = vector.extract_strided_slice %191 {offsets = [0, 384], sizes = [16, 128], strides = [1, 1]} : vector<16x512xf32> to vector<16x128xf32>
    %202 = math.tanh %201 : vector<16x128xf32>
    %203 = arith.mulf %199, %164 : vector<16x128xf32>
    %204 = arith.mulf %198, %202 : vector<16x128xf32>
    %205 = arith.addf %203, %204 : vector<16x128xf32>
    %206 = math.tanh %205 : vector<16x128xf32>
    %207 = arith.mulf %200, %206 : vector<16x128xf32>
    %208 = vector.extract_strided_slice %207 {offsets = [0, 0], sizes = [8, 128], strides = [1, 1]} : vector<16x128xf32> to vector<8x128xf32>
    %209 = vector.extract_strided_slice %207 {offsets = [8, 0], sizes = [8, 128], strides = [1, 1]} : vector<16x128xf32> to vector<8x128xf32>
    %210 = arith.index_cast %c4_i32 : i32 to index
    %c0_58 = arith.constant 0 : index
    %c0_59 = arith.constant 0 : index
    %211 = vector.load %arg5[%210, %c0_58, %c0_59] : memref<8x8x256xf32, #tpu.memory_space<vmem>>, vector<1x8x128xf32>
    %212 = vector.shape_cast %211 : vector<1x8x128xf32> to vector<8x128xf32>
    %213 = vector.shape_cast %208 : vector<8x128xf32> to vector<1x8x128xf32>
    tpu.vector_store %arg5[%210, %c0_58, %c0_59], %213 {strides = array<i32>} : memref<8x8x256xf32, #tpu.memory_space<vmem>>, vector<1x8x128xf32>,
    %214 = arith.index_cast %178 : i32 to index
    %c0_60 = arith.constant 0 : index
    %c128_61 = arith.constant 128 : index
    %215 = vector.load %arg5[%214, %c0_60, %c128_61] : memref<8x8x256xf32, #tpu.memory_space<vmem>>, vector<1x8x128xf32>
    %216 = vector.shape_cast %215 : vector<1x8x128xf32> to vector<8x128xf32>
    %217 = vector.shape_cast %209 : vector<8x128xf32> to vector<1x8x128xf32>
    tpu.vector_store %arg5[%214, %c0_60, %c128_61], %217 {strides = array<i32>} : memref<8x8x256xf32, #tpu.memory_space<vmem>>, vector<1x8x128xf32>,
    %218 = tpu.concatenate %208, %209 in 1 : vector<8x128xf32>, vector<8x128xf32> -> vector<8x256xf32>
    %c5_i32 = arith.constant 5 : i32
    %c7_i32_62 = arith.constant 7 : i32
    %219 = arith.subi %c7_i32_62, %c5_i32 : i32
    %220 = arith.truncf %218 : vector<8x256xf32> to vector<8x256xbf16>
    %cst_63 = arith.constant dense<0.000000e+00> : vector<8x1024xf32>
    %221 = tpu.matmul %220, %11, %cst_63 {dimension_numbers = #tpu.dot_dimension_numbers<[1], [0], [0], [1], [0, 0, 1, 1], [], []>} : vector<8x256xbf16>, vector<256x1024xbf16>, vector<8x1024xf32> -> vector<8x1024xf32>
    %222 = arith.index_cast %c5_i32 : i32 to index
    %c0_64 = arith.constant 0 : index
    %c0_65 = arith.constant 0 : index
    %223 = vector.load %arg7[%222, %c0_64, %c0_65] : memref<8x8x1024xf32, #tpu.memory_space<vmem>>, vector<1x8x512xf32>
    %224 = vector.shape_cast %223 : vector<1x8x512xf32> to vector<8x512xf32>
    %225 = vector.extract_strided_slice %221 {offsets = [0, 0], sizes = [8, 512], strides = [1, 1]} : vector<8x1024xf32> to vector<8x512xf32>
    %226 = arith.addf %224, %225 : vector<8x512xf32>
    %227 = arith.index_cast %219 : i32 to index
    %c0_66 = arith.constant 0 : index
    %c512_67 = arith.constant 512 : index
    %228 = vector.load %arg7[%227, %c0_66, %c512_67] : memref<8x8x1024xf32, #tpu.memory_space<vmem>>, vector<1x8x512xf32>
    %229 = vector.shape_cast %228 : vector<1x8x512xf32> to vector<8x512xf32>
    %230 = vector.extract_strided_slice %221 {offsets = [0, 512], sizes = [8, 512], strides = [1, 1]} : vector<8x1024xf32> to vector<8x512xf32>
    %231 = arith.addf %229, %230 : vector<8x512xf32>
    %232 = tpu.concatenate %226, %231 in 0 : vector<8x512xf32>, vector<8x512xf32> -> vector<16x512xf32>
    %233 = vector.extract_strided_slice %232 {offsets = [0, 0], sizes = [16, 384], strides = [1, 1]} : vector<16x512xf32> to vector<16x384xf32>
    %234 = arith.negf %233 : vector<16x384xf32>
    %235 = math.exp %234 : vector<16x384xf32>
    %cst_68 = arith.constant 1.000000e+00 : f32
    %236 = vector.broadcast %cst_68 : f32 to vector<16x384xf32>
    %237 = arith.addf %236, %235 : vector<16x384xf32>
    %238 = arith.divf %236, %237 : vector<16x384xf32>
    %239 = vector.extract_strided_slice %238 {offsets = [0, 0], sizes = [16, 128], strides = [1, 1]} : vector<16x384xf32> to vector<16x128xf32>
    %240 = vector.extract_strided_slice %238 {offsets = [0, 128], sizes = [16, 128], strides = [1, 1]} : vector<16x384xf32> to vector<16x128xf32>
    %241 = vector.extract_strided_slice %238 {offsets = [0, 256], sizes = [16, 128], strides = [1, 1]} : vector<16x384xf32> to vector<16x128xf32>
    %242 = vector.extract_strided_slice %232 {offsets = [0, 384], sizes = [16, 128], strides = [1, 1]} : vector<16x512xf32> to vector<16x128xf32>
    %243 = math.tanh %242 : vector<16x128xf32>
    %244 = arith.mulf %240, %205 : vector<16x128xf32>
    %245 = arith.mulf %239, %243 : vector<16x128xf32>
    %246 = arith.addf %244, %245 : vector<16x128xf32>
    %247 = math.tanh %246 : vector<16x128xf32>
    %248 = arith.mulf %241, %247 : vector<16x128xf32>
    %249 = vector.extract_strided_slice %248 {offsets = [0, 0], sizes = [8, 128], strides = [1, 1]} : vector<16x128xf32> to vector<8x128xf32>
    %250 = vector.extract_strided_slice %248 {offsets = [8, 0], sizes = [8, 128], strides = [1, 1]} : vector<16x128xf32> to vector<8x128xf32>
    %251 = arith.index_cast %c5_i32 : i32 to index
    %c0_69 = arith.constant 0 : index
    %c0_70 = arith.constant 0 : index
    %252 = vector.load %arg5[%251, %c0_69, %c0_70] : memref<8x8x256xf32, #tpu.memory_space<vmem>>, vector<1x8x128xf32>
    %253 = vector.shape_cast %252 : vector<1x8x128xf32> to vector<8x128xf32>
    %254 = vector.shape_cast %249 : vector<8x128xf32> to vector<1x8x128xf32>
    tpu.vector_store %arg5[%251, %c0_69, %c0_70], %254 {strides = array<i32>} : memref<8x8x256xf32, #tpu.memory_space<vmem>>, vector<1x8x128xf32>,
    %255 = arith.index_cast %219 : i32 to index
    %c0_71 = arith.constant 0 : index
    %c128_72 = arith.constant 128 : index
    %256 = vector.load %arg5[%255, %c0_71, %c128_72] : memref<8x8x256xf32, #tpu.memory_space<vmem>>, vector<1x8x128xf32>
    %257 = vector.shape_cast %256 : vector<1x8x128xf32> to vector<8x128xf32>
    %258 = vector.shape_cast %250 : vector<8x128xf32> to vector<1x8x128xf32>
    tpu.vector_store %arg5[%255, %c0_71, %c128_72], %258 {strides = array<i32>} : memref<8x8x256xf32, #tpu.memory_space<vmem>>, vector<1x8x128xf32>,
    %259 = tpu.concatenate %249, %250 in 1 : vector<8x128xf32>, vector<8x128xf32> -> vector<8x256xf32>
    %c6_i32 = arith.constant 6 : i32
    %c7_i32_73 = arith.constant 7 : i32
    %260 = arith.subi %c7_i32_73, %c6_i32 : i32
    %261 = arith.truncf %259 : vector<8x256xf32> to vector<8x256xbf16>
    %cst_74 = arith.constant dense<0.000000e+00> : vector<8x1024xf32>
    %262 = tpu.matmul %261, %11, %cst_74 {dimension_numbers = #tpu.dot_dimension_numbers<[1], [0], [0], [1], [0, 0, 1, 1], [], []>} : vector<8x256xbf16>, vector<256x1024xbf16>, vector<8x1024xf32> -> vector<8x1024xf32>
    %263 = arith.index_cast %c6_i32 : i32 to index
    %c0_75 = arith.constant 0 : index
    %c0_76 = arith.constant 0 : index
    %264 = vector.load %arg7[%263, %c0_75, %c0_76] : memref<8x8x1024xf32, #tpu.memory_space<vmem>>, vector<1x8x512xf32>
    %265 = vector.shape_cast %264 : vector<1x8x512xf32> to vector<8x512xf32>
    %266 = vector.extract_strided_slice %262 {offsets = [0, 0], sizes = [8, 512], strides = [1, 1]} : vector<8x1024xf32> to vector<8x512xf32>
    %267 = arith.addf %265, %266 : vector<8x512xf32>
    %268 = arith.index_cast %260 : i32 to index
    %c0_77 = arith.constant 0 : index
    %c512_78 = arith.constant 512 : index
    %269 = vector.load %arg7[%268, %c0_77, %c512_78] : memref<8x8x1024xf32, #tpu.memory_space<vmem>>, vector<1x8x512xf32>
    %270 = vector.shape_cast %269 : vector<1x8x512xf32> to vector<8x512xf32>
    %271 = vector.extract_strided_slice %262 {offsets = [0, 512], sizes = [8, 512], strides = [1, 1]} : vector<8x1024xf32> to vector<8x512xf32>
    %272 = arith.addf %270, %271 : vector<8x512xf32>
    %273 = tpu.concatenate %267, %272 in 0 : vector<8x512xf32>, vector<8x512xf32> -> vector<16x512xf32>
    %274 = vector.extract_strided_slice %273 {offsets = [0, 0], sizes = [16, 384], strides = [1, 1]} : vector<16x512xf32> to vector<16x384xf32>
    %275 = arith.negf %274 : vector<16x384xf32>
    %276 = math.exp %275 : vector<16x384xf32>
    %cst_79 = arith.constant 1.000000e+00 : f32
    %277 = vector.broadcast %cst_79 : f32 to vector<16x384xf32>
    %278 = arith.addf %277, %276 : vector<16x384xf32>
    %279 = arith.divf %277, %278 : vector<16x384xf32>
    %280 = vector.extract_strided_slice %279 {offsets = [0, 0], sizes = [16, 128], strides = [1, 1]} : vector<16x384xf32> to vector<16x128xf32>
    %281 = vector.extract_strided_slice %279 {offsets = [0, 128], sizes = [16, 128], strides = [1, 1]} : vector<16x384xf32> to vector<16x128xf32>
    %282 = vector.extract_strided_slice %279 {offsets = [0, 256], sizes = [16, 128], strides = [1, 1]} : vector<16x384xf32> to vector<16x128xf32>
    %283 = vector.extract_strided_slice %273 {offsets = [0, 384], sizes = [16, 128], strides = [1, 1]} : vector<16x512xf32> to vector<16x128xf32>
    %284 = math.tanh %283 : vector<16x128xf32>
    %285 = arith.mulf %281, %246 : vector<16x128xf32>
    %286 = arith.mulf %280, %284 : vector<16x128xf32>
    %287 = arith.addf %285, %286 : vector<16x128xf32>
    %288 = math.tanh %287 : vector<16x128xf32>
    %289 = arith.mulf %282, %288 : vector<16x128xf32>
    %290 = vector.extract_strided_slice %289 {offsets = [0, 0], sizes = [8, 128], strides = [1, 1]} : vector<16x128xf32> to vector<8x128xf32>
    %291 = vector.extract_strided_slice %289 {offsets = [8, 0], sizes = [8, 128], strides = [1, 1]} : vector<16x128xf32> to vector<8x128xf32>
    %292 = arith.index_cast %c6_i32 : i32 to index
    %c0_80 = arith.constant 0 : index
    %c0_81 = arith.constant 0 : index
    %293 = vector.load %arg5[%292, %c0_80, %c0_81] : memref<8x8x256xf32, #tpu.memory_space<vmem>>, vector<1x8x128xf32>
    %294 = vector.shape_cast %293 : vector<1x8x128xf32> to vector<8x128xf32>
    %295 = vector.shape_cast %290 : vector<8x128xf32> to vector<1x8x128xf32>
    tpu.vector_store %arg5[%292, %c0_80, %c0_81], %295 {strides = array<i32>} : memref<8x8x256xf32, #tpu.memory_space<vmem>>, vector<1x8x128xf32>,
    %296 = arith.index_cast %260 : i32 to index
    %c0_82 = arith.constant 0 : index
    %c128_83 = arith.constant 128 : index
    %297 = vector.load %arg5[%296, %c0_82, %c128_83] : memref<8x8x256xf32, #tpu.memory_space<vmem>>, vector<1x8x128xf32>
    %298 = vector.shape_cast %297 : vector<1x8x128xf32> to vector<8x128xf32>
    %299 = vector.shape_cast %291 : vector<8x128xf32> to vector<1x8x128xf32>
    tpu.vector_store %arg5[%296, %c0_82, %c128_83], %299 {strides = array<i32>} : memref<8x8x256xf32, #tpu.memory_space<vmem>>, vector<1x8x128xf32>,
    %300 = tpu.concatenate %290, %291 in 1 : vector<8x128xf32>, vector<8x128xf32> -> vector<8x256xf32>
    %c7_i32_84 = arith.constant 7 : i32
    %c7_i32_85 = arith.constant 7 : i32
    %301 = arith.subi %c7_i32_85, %c7_i32_84 : i32
    %302 = arith.truncf %300 : vector<8x256xf32> to vector<8x256xbf16>
    %cst_86 = arith.constant dense<0.000000e+00> : vector<8x1024xf32>
    %303 = tpu.matmul %302, %11, %cst_86 {dimension_numbers = #tpu.dot_dimension_numbers<[1], [0], [0], [1], [0, 0, 1, 1], [], []>} : vector<8x256xbf16>, vector<256x1024xbf16>, vector<8x1024xf32> -> vector<8x1024xf32>
    %304 = arith.index_cast %c7_i32_84 : i32 to index
    %c0_87 = arith.constant 0 : index
    %c0_88 = arith.constant 0 : index
    %305 = vector.load %arg7[%304, %c0_87, %c0_88] : memref<8x8x1024xf32, #tpu.memory_space<vmem>>, vector<1x8x512xf32>
    %306 = vector.shape_cast %305 : vector<1x8x512xf32> to vector<8x512xf32>
    %307 = vector.extract_strided_slice %303 {offsets = [0, 0], sizes = [8, 512], strides = [1, 1]} : vector<8x1024xf32> to vector<8x512xf32>
    %308 = arith.addf %306, %307 : vector<8x512xf32>
    %309 = arith.index_cast %301 : i32 to index
    %c0_89 = arith.constant 0 : index
    %c512_90 = arith.constant 512 : index
    %310 = vector.load %arg7[%309, %c0_89, %c512_90] : memref<8x8x1024xf32, #tpu.memory_space<vmem>>, vector<1x8x512xf32>
    %311 = vector.shape_cast %310 : vector<1x8x512xf32> to vector<8x512xf32>
    %312 = vector.extract_strided_slice %303 {offsets = [0, 512], sizes = [8, 512], strides = [1, 1]} : vector<8x1024xf32> to vector<8x512xf32>
    %313 = arith.addf %311, %312 : vector<8x512xf32>
    %314 = tpu.concatenate %308, %313 in 0 : vector<8x512xf32>, vector<8x512xf32> -> vector<16x512xf32>
    %315 = vector.extract_strided_slice %314 {offsets = [0, 0], sizes = [16, 384], strides = [1, 1]} : vector<16x512xf32> to vector<16x384xf32>
    %316 = arith.negf %315 : vector<16x384xf32>
    %317 = math.exp %316 : vector<16x384xf32>
    %cst_91 = arith.constant 1.000000e+00 : f32
    %318 = vector.broadcast %cst_91 : f32 to vector<16x384xf32>
    %319 = arith.addf %318, %317 : vector<16x384xf32>
    %320 = arith.divf %318, %319 : vector<16x384xf32>
    %321 = vector.extract_strided_slice %320 {offsets = [0, 0], sizes = [16, 128], strides = [1, 1]} : vector<16x384xf32> to vector<16x128xf32>
    %322 = vector.extract_strided_slice %320 {offsets = [0, 128], sizes = [16, 128], strides = [1, 1]} : vector<16x384xf32> to vector<16x128xf32>
    %323 = vector.extract_strided_slice %320 {offsets = [0, 256], sizes = [16, 128], strides = [1, 1]} : vector<16x384xf32> to vector<16x128xf32>
    %324 = vector.extract_strided_slice %314 {offsets = [0, 384], sizes = [16, 128], strides = [1, 1]} : vector<16x512xf32> to vector<16x128xf32>
    %325 = math.tanh %324 : vector<16x128xf32>
    %326 = arith.mulf %322, %287 : vector<16x128xf32>
    %327 = arith.mulf %321, %325 : vector<16x128xf32>
    %328 = arith.addf %326, %327 : vector<16x128xf32>
    %329 = math.tanh %328 : vector<16x128xf32>
    %330 = arith.mulf %323, %329 : vector<16x128xf32>
    %331 = vector.extract_strided_slice %330 {offsets = [0, 0], sizes = [8, 128], strides = [1, 1]} : vector<16x128xf32> to vector<8x128xf32>
    %332 = vector.extract_strided_slice %330 {offsets = [8, 0], sizes = [8, 128], strides = [1, 1]} : vector<16x128xf32> to vector<8x128xf32>
    %333 = arith.index_cast %c7_i32_84 : i32 to index
    %c0_92 = arith.constant 0 : index
    %c0_93 = arith.constant 0 : index
    %334 = vector.load %arg5[%333, %c0_92, %c0_93] : memref<8x8x256xf32, #tpu.memory_space<vmem>>, vector<1x8x128xf32>
    %335 = vector.shape_cast %334 : vector<1x8x128xf32> to vector<8x128xf32>
    %336 = vector.shape_cast %331 : vector<8x128xf32> to vector<1x8x128xf32>
    tpu.vector_store %arg5[%333, %c0_92, %c0_93], %336 {strides = array<i32>} : memref<8x8x256xf32, #tpu.memory_space<vmem>>, vector<1x8x128xf32>,
    %337 = arith.index_cast %301 : i32 to index
    %c0_94 = arith.constant 0 : index
    %c128_95 = arith.constant 128 : index
    %338 = vector.load %arg5[%337, %c0_94, %c128_95] : memref<8x8x256xf32, #tpu.memory_space<vmem>>, vector<1x8x128xf32>
    %339 = vector.shape_cast %338 : vector<1x8x128xf32> to vector<8x128xf32>
    %340 = vector.shape_cast %332 : vector<8x128xf32> to vector<1x8x128xf32>
    tpu.vector_store %arg5[%337, %c0_94, %c128_95], %340 {strides = array<i32>} : memref<8x8x256xf32, #tpu.memory_space<vmem>>, vector<1x8x128xf32>,
    %341 = tpu.concatenate %331, %332 in 1 : vector<8x128xf32>, vector<8x128xf32> -> vector<8x256xf32>
    %c8_i32 = arith.constant 8 : i32
    %342 = vector.extract_strided_slice %328 {offsets = [0, 0], sizes = [8, 128], strides = [1, 1]} : vector<16x128xf32> to vector<8x128xf32>
    %343 = vector.extract_strided_slice %328 {offsets = [8, 0], sizes = [8, 128], strides = [1, 1]} : vector<16x128xf32> to vector<8x128xf32>
    %344 = tpu.concatenate %342, %343 in 1 : vector<8x128xf32>, vector<8x128xf32> -> vector<8x256xf32>
    %345 = tpu.concatenate %341, %344 in 0 : vector<8x256xf32>, vector<8x256xf32> -> vector<16x256xf32>
    %c0_96 = arith.constant 0 : index
    %c0_97 = arith.constant 0 : index
    %346 = vector.load %arg3[%c0_96, %c0_97] : memref<256x128xf32, #tpu.memory_space<vmem>>, vector<256x128xf32>
    %cst_98 = arith.constant dense<0.000000e+00> : vector<16x128xf32>
    %347 = tpu.matmul %345, %346, %cst_98 {dimension_numbers = #tpu.dot_dimension_numbers<[1], [0], [0], [1], [0, 0, 1, 1], [], []>} : vector<16x256xf32>, vector<256x128xf32>, vector<16x128xf32> -> vector<16x128xf32>
    %c0_99 = arith.constant 0 : index
    %c0_100 = arith.constant 0 : index
    %348 = vector.load %arg4[%c0_99, %c0_100] : memref<1x128xf32, #tpu.memory_space<vmem>>, vector<1x128xf32>
    %349 = vector.broadcast %348 : vector<1x128xf32> to vector<16x128xf32>
    %350 = arith.addf %347, %349 : vector<16x128xf32>
    %351 = vector.shape_cast %350 : vector<16x128xf32> to vector<2x8x128xf32>
    %c0_101 = arith.constant 0 : index
    %c0_102 = arith.constant 0 : index
    %c0_103 = arith.constant 0 : index
    %352 = vector.load %arg6[%c0_101, %c0_102, %c0_103] : memref<2x8x128xf32, #tpu.memory_space<vmem>>, vector<2x8x128xf32>
    tpu.vector_store %arg6[%c0_101, %c0_102, %c0_103], %351 {strides = array<i32>} : memref<2x8x128xf32, #tpu.memory_space<vmem>>, vector<2x8x128xf32>,
    return
  }
}

</mosaic_0001>

<bundles_post_ra>
// kernel: encoder_forward.1
= control target key start
LH: loop header
LB: loop body
LE: loop exit
PB: predicated region body
PF: predicated region fallthrough
CT: control target
= control target key end

     0   :  { %12 = vsyncpa [#allocation4], 0  ;;  %s8153_s0 = inlined_call_operand.vmem [shape: s32[64,1], index: 0, kind: input, shape index: {}]   ;;  %s8154_s1 = inlined_call_operand.hbm [shape: bf16[128,1024], index: 1, kind: input, shape index: {}]   ;;  %s8155_s2 = inlined_call_operand.hbm [shape: bf16[256,1024], index: 2, kind: input, shape index: {}]   ;;  %s8156_s3 = inlined_call_operand.hbm [shape: f32[256,128], index: 3, kind: input, shape index: {}]   ;;  %s8157_s4 = inlined_call_operand.vmem [shape: f32[1,128], index: 4, kind: input, shape index: {}]   ;;  %s8158_s5 = inlined_call_operand.vmem [shape: f32[8,8,256], index: 5, kind: output, shape index: {0}]   ;;  %s8159_s6 = inlined_call_operand.vmem [shape: f32[2,8,128], index: 6, kind: output, shape index: {1}]  }
   0x1   :  { %13 = vsyncpa [#allocation6], 0  ;;  %s33_s23 = sshll.u32 %s8155_s2, 4  ;;  %s5989_s24 = smov [#allocation5]   ;;  %s34_s23 = int_to_ptr.hbm [resolvable:$true] %s33_s23 }
   0x2   :  { %s35_s25 = sshll.u32 %s5989_s24, 4  ;;  %s20_s28 = sshll.u32 %s8154_s1, 4  ;;  %s36_s25 = int_to_ptr.vmem [resolvable:$true] %s35_s25  ;;  %s21_s28 = int_to_ptr.hbm [resolvable:$true] %s20_s28 }
   0x3   :  { %s5990_s29 = smov 512   ;;  %s5991_s30 = smov 32  }
   0x4   :  { %41 = dma.hbm_to_vmem [thread:$0]  %s34_s23, 16384, %s36_s25, [#allocation6], %s5990_s29, %s5990_s29, %s5991_s30  }
   0x5   :  { %s5992_s7 = smov [#allocation3]   ;;  %s46_s11 = sshll.u32 %s8156_s3, 4  ;;  %s47_s11 = int_to_ptr.hbm [resolvable:$true] %s46_s11 }
   0x6   :  { %s22_s8 = sshll.u32 %s5992_s7, 4  ;;  %s5993_s2 = smov [#allocation7]   ;;  %s23_s8 = int_to_ptr.vmem [resolvable:$true] %s22_s8 }
   0x7   :  { %28 = dma.hbm_to_vmem [thread:$0]  %s21_s28, 8192, %s23_s8, [#allocation4], %s5990_s29, %s5990_s29, %s5991_s30  }
   0x8   :  { %s48_s12 = sshll.u32 %s5993_s2, 4  ;;  %s5994_s13 = smov 128   ;;  %s49_s12 = int_to_ptr.vmem [resolvable:$true] %s48_s12 }
   0x9   :  { %s5995_s14 = smov 8  }
   0xa   :  { %54 = dma.hbm_to_vmem [thread:$0]  %s47_s11, 4096, %s49_s12, [#allocation6], %s5994_s13, %s5994_s13, %s5995_s14  }
   0xb   :  { %5985 = dma.done.wait [#allocation4], 8192  }
   0xc   :  { %5986 = vsyncadd [#allocation4], 4294959104 }
   0xd   :  { %5987 = dma.done.wait [#allocation6], 20480  }
   0xe   :  { %5988 = vsyncadd [#allocation6], 4294946816  ;;  %v8160_v0 = vmov 0   ;;  %v72_v1 = vld [vmem:[%s8153_s0 + $0x10] sm:$0xff]  ;;  %v70_v2 = vld [vmem:[%s8153_s0] sm:$0xff] }
   0xf   :  { %5654 = vset.pattern.permute.xlu1 %v8160_v0  ;;  %5653 = vset.pattern.permute.xlu0 %v8160_v0  ;;  %v74_v3 = vld [vmem:[%s8153_s0 + $0x20] sm:$0xff]  ;;  %v73_v8 = vld [vmem:[%s8153_s0 + $0x18] sm:$0xff]  ;;  %v71_v9 = vld [vmem:[%s8153_s0 + $0x8] sm:$0xff] }
  0x10   :  { %5655 = vset.pattern.permute.xlu2 %v8160_v0  ;;  %87 = vperm.xlu1 %5654, %v72_v1   ;;  %v4752_v4 = vld [vmem:[#allocation3 + $0x1c0] sm:$0xf]  ;;  %v5476_v6 = vld [vmem:[#allocation3 + $0x1c4] sm:$0xf]  ;;  %v4760_v12 = vld [vmem:[#allocation3 + $0x1c8] sm:$0xf] }
  0x11   :  { %81 = vperm.xlu0 %5653, %v70_v2   ;;  %93 = vperm.xlu2 %5655, %v74_v3   ;;  %v5480_v5 = vld [vmem:[#allocation3 + $0x1dc] sm:$0xf0]  ;;  %v4754_v7 = vld [vmem:[#allocation3 + $0x1e0] sm:$0xf0]  ;;  %v5481_v13 = vld [vmem:[#allocation3 + $0x1e4] sm:$0xf0] }
  0x12   :  { %v4753_v10 = vor.u32 %v5480_v5, %v4752_v4  ;;  %v4757_v11 = vor.u32 %v5476_v6, %v4754_v7  ;;  %v5477_v14 = vld [vmem:[#allocation3 + $0x1cc] sm:$0xf]  ;;  %v4761_v15 = vor.u32 %v5481_v13, %v4760_v12  ;;  %v4720_v17 = vld [vmem:[#allocation3 + $0x180] sm:$0xf]  ;;  %v5468_v22 = vld [vmem:[#allocation3 + $0x184] sm:$0xf] }
  0x13   :  { %v4762_v16 = vld [vmem:[#allocation3 + $0x1e8] sm:$0xf0]  ;;  %v5472_v18 = vld [vmem:[#allocation3 + $0x19c] sm:$0xf0]  ;;  %v4722_v23 = vld [vmem:[#allocation3 + $0x1a0] sm:$0xf0] }
  0x14   :  { %v75_v19 = vld [vmem:[%s8153_s0 + $0x28] sm:$0xff]  ;;  %516 = vmatpush.bf16.msra.mxu0 %v4753_v10  ;;  %545 = vmatpush.bf16.msra.mxu1 %v4757_v11  ;;  %v4765_v20 = vor.u32 %v5477_v14, %v4762_v16  ;;  %v4721_v21 = vor.u32 %v5472_v18, %v4720_v17  ;;  %v4725_v25 = vor.u32 %v5468_v22, %v4722_v23  ;;  %v4688_v31 = vld [vmem:[#allocation3 + $0x140] sm:$0xf]  ;;  %v5460_v33 = vld [vmem:[#allocation3 + $0x144] sm:$0xf] }
  0x15   :  { %v4728_v24 = vld [vmem:[#allocation3 + $0x188] sm:$0xf]  ;;  %574 = vmatpush.bf16.msra.mxu2 %v4761_v15  ;;  %v5469_v27 = vld [vmem:[#allocation3 + $0x18c] sm:$0xf]  ;;  %v5464_v32 = vld [vmem:[#allocation3 + $0x15c] sm:$0xf0] }
  0x16   :  { %v5473_v26 = vld [vmem:[#allocation3 + $0x1a4] sm:$0xf0]  ;;  %v4730_v28 = vld [vmem:[#allocation3 + $0x1a8] sm:$0xf0]  ;;  %603 = vmatpush.bf16.msra.mxu3 %v4765_v20  ;;  %v4690_v34 = vld [vmem:[#allocation3 + $0x160] sm:$0xf0]  ;;  %v4689_v37 = vor.u32 %v5464_v32, %v4688_v31 }
  0x17   :  { %v4729_v29 = vor.u32 %v5473_v26, %v4728_v24  ;;  %v4733_v30 = vor.u32 %v5469_v27, %v4730_v28  ;;  %v4696_v35 = vld [vmem:[#allocation3 + $0x148] sm:$0xf]  ;;  %v4693_v38 = vor.u32 %v5460_v33, %v4690_v34  ;;  %v5461_v39 = vld [vmem:[#allocation3 + $0x14c] sm:$0xf]  ;;  %v4656_v41 = vld [vmem:[#allocation3 + $0x100] sm:$0xf] }
  0x18   :  { %90 = vperm.xlu1 %5654, %v73_v8   ;;  %v5465_v36 = vld [vmem:[#allocation3 + $0x164] sm:$0xf0]  ;;  %517 = vmatpush.bf16.msra.mxu0 %v4721_v21  ;;  %v4698_v40 = vld [vmem:[#allocation3 + $0x168] sm:$0xf0]  ;;  %v5456_v43 = vld [vmem:[#allocation3 + $0x11c] sm:$0xf0] }
  0x19   :  { %84 = vperm.xlu0 %5653, %v71_v9   ;;  %546 = vmatpush.bf16.msra.mxu1 %v4725_v25  ;;  %v4697_v42 = vor.u32 %v5465_v36, %v4696_v35  ;;  %v5452_v44 = vld [vmem:[#allocation3 + $0x104] sm:$0xf]  ;;  %v4701_v46 = vor.u32 %v5461_v39, %v4698_v40  ;;  %v4664_v47 = vld [vmem:[#allocation3 + $0x108] sm:$0xf]  ;;  %v5453_v49 = vld [vmem:[#allocation3 + $0x10c] sm:$0xf]  ;;  %v4657_v53 = vor.u32 %v5456_v43, %v4656_v41  ;;  %v78_v43 = vlaneseq }
  0x1a   :  { %96 = vperm.xlu2 %5655, %v75_v19   ;;  %575 = vmatpush.bf16.msra.mxu2 %v4729_v29  ;;  %v4658_v45 = vld [vmem:[#allocation3 + $0x120] sm:$0xf0]  ;;  %v5457_v48 = vld [vmem:[#allocation3 + $0x124] sm:$0xf0]  ;;  %v4666_v50 = vld [vmem:[#allocation3 + $0x128] sm:$0xf0] }
  0x1b   :  { %604 = vmatpush.bf16.msra.mxu3 %v4733_v30  ;;  %v77_v51 = vld [vmem:[%s8153_s0 + $0x38] sm:$0xff]  ;;  %v76_v52 = vld [vmem:[%s8153_s0 + $0x30] sm:$0xff]  ;;  %v4661_v54 = vor.u32 %v5452_v44, %v4658_v45  ;;  %v4624_v55 = vld [vmem:[#allocation3 + $0xc0] sm:$0xf]  ;;  %v4665_v56 = vor.u32 %v5457_v48, %v4664_v47  ;;  %v4669_v60 = vor.u32 %v5453_v49, %v4666_v50  ;;  %v6069_v44 = vand.u32 127, %v78_v43 }
  0x1c   :  { %518 = vmatpush.bf16.msra.mxu0 %v4689_v37  ;;  %v5448_v57 = vld [vmem:[#allocation3 + $0xdc] sm:$0xf0]  ;;  %v5444_v58 = vld [vmem:[#allocation3 + $0xc4] sm:$0xf]  ;;  %v4632_v61 = vld [vmem:[#allocation3 + $0xc8] sm:$0xf] }
  0x1d   :  { %547 = vmatpush.bf16.msra.mxu1 %v4693_v38  ;;  %v4626_v59 = vld [vmem:[#allocation3 + $0xe0] sm:$0xf0]  ;;  %v5449_v62 = vld [vmem:[#allocation3 + $0xe4] sm:$0xf0]  ;;  %v5445_v63 = vld [vmem:[#allocation3 + $0xcc] sm:$0xf]  ;;  %v4625_v2 = vor.u32 %v5448_v57, %v4624_v55 }
  0x1e   :  { %576 = vmatpush.bf16.msra.mxu2 %v4697_v42  ;;  %v4634_v1 = vld [vmem:[#allocation3 + $0xe8] sm:$0xf0]  ;;  %v4629_v3 = vor.u32 %v5444_v58, %v4626_v59  ;;  %v4592_v4 = vld [vmem:[#allocation3 + $0x80] sm:$0xf]  ;;  %v4633_v5 = vor.u32 %v5449_v62, %v4632_v61  ;;  %v5436_v7 = vld [vmem:[#allocation3 + $0x84] sm:$0xf] }
  0x1f   :  { %605 = vmatpush.bf16.msra.mxu3 %v4701_v46  ;;  %v5440_v6 = vld [vmem:[#allocation3 + $0x9c] sm:$0xf0]  ;;  %v4594_v8 = vld [vmem:[#allocation3 + $0xa0] sm:$0xf0]  ;;  %v4637_v9 = vor.u32 %v5445_v63, %v4634_v1  ;;  %v4600_v10 = vld [vmem:[#allocation3 + $0x88] sm:$0xf] }
  0x20   :  { %102 = vperm.xlu1 %5654, %v77_v51   ;;  %519 = vmatpush.bf16.msra.mxu0 %v4657_v53  ;;  %v5441_v11 = vld [vmem:[#allocation3 + $0xa4] sm:$0xf0]  ;;  %v5437_v12 = vld [vmem:[#allocation3 + $0x8c] sm:$0xf]  ;;  %v4593_v14 = vor.u32 %v5440_v6, %v4592_v4  ;;  %v4597_v15 = vor.u32 %v5436_v7, %v4594_v8  ;;  %v4560_v18 = vld [vmem:[#allocation3 + $0x40] sm:$0xf] }
  0x21   :  { %99 = vperm.xlu0 %5653, %v76_v52   ;;  %548 = vmatpush.bf16.msra.mxu1 %v4661_v54  ;;  %v4602_v13 = vld [vmem:[#allocation3 + $0xa8] sm:$0xf0]  ;;  %v4601_v16 = vor.u32 %v5441_v11, %v4600_v10  ;;  %v5432_v19 = vld [vmem:[#allocation3 + $0x5c] sm:$0xf0]  ;;  %v5428_v20 = vld [vmem:[#allocation3 + $0x44] sm:$0xf] }
  0x22   :  { %577 = vmatpush.bf16.msra.mxu2 %v4665_v56  ;;  %v4605_v17 = vor.u32 %v5437_v12, %v4602_v13  ;;  %v4561_v21 = vor.u32 %v5432_v19, %v4560_v18  ;;  %v4562_v22 = vld [vmem:[#allocation3 + $0x60] sm:$0xf0]  ;;  %v4568_v23 = vld [vmem:[#allocation3 + $0x48] sm:$0xf]  ;;  %v5429_v27 = vld [vmem:[#allocation3 + $0x4c] sm:$0xf] }
  0x23   :  { %606 = vmatpush.bf16.msra.mxu3 %v4669_v60  ;;  %v5433_v24 = vld [vmem:[#allocation3 + $0x64] sm:$0xf0]  ;;  %v4565_v25 = vor.u32 %v5428_v20, %v4562_v22  ;;  %v4570_v28 = vld [vmem:[#allocation3 + $0x68] sm:$0xf0]  ;;  %v4528_v29 = vld [vmem:[#allocation3] sm:$0xf] }
  0x24   :  { %520 = vmatpush.bf16.msra.mxu0 %v4625_v2  ;;  %v4569_v26 = vor.u32 %v5433_v24, %v4568_v23  ;;  %v4573_v30 = vor.u32 %v5429_v27, %v4570_v28  ;;  %v5424_v31 = vld [vmem:[#allocation3 + $0x1c] sm:$0xf0]  ;;  %v5420_v32 = vld [vmem:[#allocation3 + $0x4] sm:$0xf]  ;;  %v4536_v36 = vld [vmem:[#allocation3 + $0x8] sm:$0xf] }
  0x25   :  { %549 = vmatpush.bf16.msra.mxu1 %v4629_v3  ;;  %v4530_v33 = vld [vmem:[#allocation3 + $0x20] sm:$0xf0]  ;;  %v4529_v34 = vor.u32 %v5424_v31, %v4528_v29  ;;  %v5425_v37 = vld [vmem:[#allocation3 + $0x24] sm:$0xf0]  ;;  %v5421_v38 = vld [vmem:[#allocation3 + $0xc] sm:$0xf] }
  0x26   :  { %578 = vmatpush.bf16.msra.mxu2 %v4633_v5  ;;  %v4533_v35 = vor.u32 %v5420_v32, %v4530_v33  ;;  %v4537_v39 = vor.u32 %v5425_v37, %v4536_v36  ;;  %v4538_v40 = vld [vmem:[#allocation3 + $0x28] sm:$0xf0]  ;;  %v4768_v47 = vld [vmem:[#allocation3 + $0x1d0] sm:$0xf]  ;;  %v8162_v50 = vmov 1.0|1.0  }
  0x27   :  { %607 = vmatpush.bf16.msra.mxu3 %v4637_v9  ;;  %v4541_v41 = vor.u32 %v5421_v38, %v4538_v40  ;;  %v5482_v48 = vld [vmem:[#allocation3 + $0x1ec] sm:$0xf0]  ;;  %v5478_v52 = vld [vmem:[#allocation3 + $0x1d4] sm:$0xf]  ;;  %v4776_v54 = vld [vmem:[#allocation3 + $0x1d8] sm:$0xf] }
  0x28   :  { %521 = vmatpush.bf16.msra.mxu0 %v4593_v14  ;;  %v4769_v51 = vor.u32 %v5482_v48, %v4768_v47  ;;  %v4770_v53 = vld [vmem:[#allocation3 + $0x1f0] sm:$0xf0]  ;;  %v5483_v56 = vld [vmem:[#allocation3 + $0x1f4] sm:$0xf0]  ;;  %v5479_v57 = vld [vmem:[#allocation3 + $0x1dc] sm:$0xf] }
  0x29   :  { %550 = vmatpush.bf16.msra.mxu1 %v4597_v15  ;;  %v4773_v55 = vor.u32 %v5478_v52, %v4770_v53  ;;  %v4778_v58 = vld [vmem:[#allocation3 + $0x1f8] sm:$0xf0]  ;;  %v4777_v59 = vor.u32 %v5483_v56, %v4776_v54  ;;  %v4736_v61 = vld [vmem:[#allocation3 + $0x190] sm:$0xf]  ;;  %v5470_v63 = vld [vmem:[#allocation3 + $0x194] sm:$0xf] }
  0x2a   :  { %579 = vmatpush.bf16.msra.mxu2 %v4601_v16  ;;  %v4781_v60 = vor.u32 %v5479_v57, %v4778_v58  ;;  %v5474_v62 = vld [vmem:[#allocation3 + $0x1ac] sm:$0xf0]  ;;  %v4738_v2 = vld [vmem:[#allocation3 + $0x1b0] sm:$0xf0]  ;;  %v4744_v3 = vld [vmem:[#allocation3 + $0x198] sm:$0xf] }
  0x2b   :  { %608 = vmatpush.bf16.msra.mxu3 %v4605_v17  ;;  %v4737_v1 = vor.u32 %v5474_v62, %v4736_v61  ;;  %v5475_v4 = vld [vmem:[#allocation3 + $0x1b4] sm:$0xf0]  ;;  %v4741_v5 = vor.u32 %v5470_v63, %v4738_v2  ;;  %v5471_v7 = vld [vmem:[#allocation3 + $0x19c] sm:$0xf]  ;;  %v4704_v9 = vld [vmem:[#allocation3 + $0x150] sm:$0xf] }
  0x2c   :  { %522 = vmatpush.bf16.msra.mxu0 %v4561_v21  ;;  %v4745_v6 = vor.u32 %v5475_v4, %v4744_v3  ;;  %v4746_v8 = vld [vmem:[#allocation3 + $0x1b8] sm:$0xf0]  ;;  %v5466_v11 = vld [vmem:[#allocation3 + $0x16c] sm:$0xf0]  ;;  %v5462_v12 = vld [vmem:[#allocation3 + $0x154] sm:$0xf] }
  0x2d   :  { %551 = vmatpush.bf16.msra.mxu1 %v4565_v25  ;;  %v4749_v10 = vor.u32 %v5471_v7, %v4746_v8  ;;  %v4706_v13 = vld [vmem:[#allocation3 + $0x170] sm:$0xf0]  ;;  %v4705_v14 = vor.u32 %v5466_v11, %v4704_v9  ;;  %v4712_v15 = vld [vmem:[#allocation3 + $0x158] sm:$0xf]  ;;  %v5463_v18 = vld [vmem:[#allocation3 + $0x15c] sm:$0xf] }
  0x2e   :  { %580 = vmatpush.bf16.msra.mxu2 %v4569_v26  ;;  %v5467_v16 = vld [vmem:[#allocation3 + $0x174] sm:$0xf0]  ;;  %v4709_v17 = vor.u32 %v5462_v12, %v4706_v13  ;;  %v4714_v19 = vld [vmem:[#allocation3 + $0x178] sm:$0xf0]  ;;  %v4672_v20 = vld [vmem:[#allocation3 + $0x110] sm:$0xf] }
  0x2f   :  { %609 = vmatpush.bf16.msra.mxu3 %v4573_v30  ;;  %v4713_v21 = vor.u32 %v5467_v16, %v4712_v15  ;;  %v4717_v22 = vor.u32 %v5463_v18, %v4714_v19  ;;  %v5458_v23 = vld [vmem:[#allocation3 + $0x12c] sm:$0xf0]  ;;  %v5454_v24 = vld [vmem:[#allocation3 + $0x114] sm:$0xf]  ;;  %v4680_v28 = vld [vmem:[#allocation3 + $0x118] sm:$0xf] }
  0x30   :  { %523 = vmatpush.bf16.msra.mxu0 %v4529_v34  ;;  %v4674_v25 = vld [vmem:[#allocation3 + $0x130] sm:$0xf0]  ;;  %v4673_v27 = vor.u32 %v5458_v23, %v4672_v20  ;;  %v5459_v30 = vld [vmem:[#allocation3 + $0x134] sm:$0xf0]  ;;  %v5455_v31 = vld [vmem:[#allocation3 + $0x11c] sm:$0xf] }
  0x31   :  { %552 = vmatpush.bf16.msra.mxu1 %v4533_v35  ;;  %v4677_v29 = vor.u32 %v5454_v24, %v4674_v25  ;;  %v4682_v32 = vld [vmem:[#allocation3 + $0x138] sm:$0xf0]  ;;  %v4681_v34 = vor.u32 %v5459_v30, %v4680_v28  ;;  %v4640_v37 = vld [vmem:[#allocation3 + $0xd0] sm:$0xf]  ;;  %v5451_v43 = vld [vmem:[#allocation3 + $0xf4] sm:$0xf0] }
  0x32   :  { %581 = vmatpush.bf16.msra.mxu2 %v4537_v39  ;;  %v4685_v35 = vor.u32 %v5455_v31, %v4682_v32  ;;  %v5450_v38 = vld [vmem:[#allocation3 + $0xec] sm:$0xf0]  ;;  %v5446_v39 = vld [vmem:[#allocation3 + $0xd4] sm:$0xf]  ;;  %v5447_v47 = vld [vmem:[#allocation3 + $0xdc] sm:$0xf] }
  0x33   :  { %610 = vmatpush.bf16.msra.mxu3 %v4541_v41  ;;  %v4641_v40 = vor.u32 %v5450_v38, %v4640_v37  ;;  %v4642_v41 = vld [vmem:[#allocation3 + $0xf0] sm:$0xf0]  ;;  %v4650_v48 = vld [vmem:[#allocation3 + $0xf8] sm:$0xf0]  ;;  %v5442_v53 = vld [vmem:[#allocation3 + $0xac] sm:$0xf0] }
  0x34   :  { %632 = vmatpush.bf16.msrb.mxu0 %v4769_v51  ;;  %v4653_v52 = vor.u32 %v5447_v47, %v4650_v48  ;;  %v5438_v54 = vld [vmem:[#allocation3 + $0x94] sm:$0xf]  ;;  %v4616_v58 = vld [vmem:[#allocation3 + $0x98] sm:$0xf]  ;;  %v4618_v61 = vld [vmem:[#allocation3 + $0xb8] sm:$0xf0] }
  0x35   :  { %661 = vmatpush.bf16.msrb.mxu1 %v4773_v55  ;;  %v4610_v55 = vld [vmem:[#allocation3 + $0xb0] sm:$0xf0]  ;;  %v4576_v62 = vld [vmem:[#allocation3 + $0x50] sm:$0xf]  ;;  %v5431_v9 = vld [vmem:[#allocation3 + $0x5c] sm:$0xf] }
  0x36   :  { %690 = vmatpush.bf16.msrb.mxu2 %v4777_v59  ;;  %v4613_v57 = vor.u32 %v5438_v54, %v4610_v55  ;;  %v5443_v59 = vld [vmem:[#allocation3 + $0xb4] sm:$0xf0]  ;;  %v5434_v63 = vld [vmem:[#allocation3 + $0x6c] sm:$0xf0]  ;;  %v4578_v2 = vld [vmem:[#allocation3 + $0x70] sm:$0xf0] }
  0x37   :  { %719 = vmatpush.bf16.msrb.mxu3 %v4781_v60  ;;  %v5439_v60 = vld [vmem:[#allocation3 + $0x9c] sm:$0xf]  ;;  %v4617_v3 = vor.u32 %v5443_v59, %v4616_v58  ;;  %v4577_v7 = vor.u32 %v5434_v63, %v4576_v62  ;;  %v4544_v11 = vld [vmem:[#allocation3 + $0x10] sm:$0xf]  ;;  %v5422_v13 = vld [vmem:[#allocation3 + $0x14] sm:$0xf] }
  0x38   :  { %633 = vmatpush.bf16.msrb.mxu0 %v4737_v1  ;;  %v5430_v1 = vld [vmem:[#allocation3 + $0x54] sm:$0xf]  ;;  %v4621_v4 = vor.u32 %v5439_v60, %v4618_v61  ;;  %v5426_v12 = vld [vmem:[#allocation3 + $0x2c] sm:$0xf0]  ;;  %v4552_v18 = vld [vmem:[#allocation3 + $0x18] sm:$0xf] }
  0x39   :  { %662 = vmatpush.bf16.msrb.mxu1 %v4741_v5  ;;  %v4584_v5 = vld [vmem:[#allocation3 + $0x58] sm:$0xf]  ;;  %v4581_v8 = vor.u32 %v5430_v1, %v4578_v2  ;;  %v4545_v19 = vor.u32 %v5426_v12, %v4544_v11  ;;  %v4554_v23 = vld [vmem:[#allocation3 + $0x38] sm:$0xf0]  ;;  %v5544_v28 = vld [vmem:[#allocation5 + $0x1dc] sm:$0xf0] }
  0x3a   :  { %691 = vmatpush.bf16.msrb.mxu2 %v4745_v6  ;;  %v5435_v6 = vld [vmem:[#allocation3 + $0x74] sm:$0xf0]  ;;  %v5608_v31 = vld [vmem:[#allocation5 + $0x3dc] sm:$0xf0]  ;;  %v5540_v32 = vld [vmem:[#allocation5 + $0x1c4] sm:$0xf] }
  0x3b   :  { %720 = vmatpush.bf16.msrb.mxu3 %v4749_v10  ;;  %v4586_v10 = vld [vmem:[#allocation3 + $0x78] sm:$0xf0]  ;;  %v4585_v16 = vor.u32 %v5435_v6, %v4584_v5  ;;  %v5604_v37 = vld [vmem:[#allocation5 + $0x3c4] sm:$0xf]  ;;  %v5008_v54 = vld [vmem:[#allocation5 + $0x140] sm:$0xf] }
  0x3c   :  { %634 = vmatpush.bf16.msrb.mxu0 %v4705_v14  ;;  %v4546_v14 = vld [vmem:[#allocation3 + $0x30] sm:$0xf0]  ;;  %v5330_v38 = vld [vmem:[#allocation5 + $0x3e0] sm:$0xf0]  ;;  %v5528_v55 = vld [vmem:[#allocation5 + $0x15c] sm:$0xf0] }
  0x3d   :  { %663 = vmatpush.bf16.msrb.mxu1 %v4709_v17  ;;  %v4589_v17 = vor.u32 %v5431_v9, %v4586_v10  ;;  %v4549_v20 = vor.u32 %v5422_v13, %v4546_v14  ;;  %v5532_v48 = vld [vmem:[#allocation5 + $0x184] sm:$0xf]  ;;  %v5592_v58 = vld [vmem:[#allocation5 + $0x35c] sm:$0xf0]  ;;  %v6152_v60 = vor.u32 %v5528_v55, %v5008_v54  ;;  %v4954_v0 = vld [vmem:[#allocation5 + $0xe8] sm:$0xf0] }
  0x3e   :  { %692 = vmatpush.bf16.msrb.mxu2 %v4713_v21  ;;  %v5427_v21 = vld [vmem:[#allocation3 + $0x34] sm:$0xf0]  ;;  %v5524_v59 = vld [vmem:[#allocation5 + $0x144] sm:$0xf]  ;;  %v5584_v10 = vld [vmem:[#allocation5 + $0x31c] sm:$0xf0] }
  0x3f   :  { %721 = vmatpush.bf16.msrb.mxu3 %v4717_v22  ;;  %v5423_v22 = vld [vmem:[#allocation3 + $0x1c] sm:$0xf]  ;;  %v4553_v24 = vor.u32 %v5427_v21, %v4552_v18  ;;  %8432 = vst [vmem:[#allocation18_spill] sm:$0xff] %v6152_v60  ;;  %v5010_v61 = vld [vmem:[#allocation5 + $0x160] sm:$0xf0] }
  0x40   :  { %635 = vmatpush.bf16.msrb.mxu0 %v4673_v27  ;;  %v4557_v25 = vor.u32 %v5423_v22, %v4554_v23  ;;  %v5072_v27 = vld [vmem:[#allocation5 + $0x1c0] sm:$0xf]  ;;  %v5588_v62 = vld [vmem:[#allocation5 + $0x344] sm:$0xf] }
  0x41   :  { %664 = vmatpush.bf16.msrb.mxu1 %v4677_v29  ;;  %v5328_v29 = vld [vmem:[#allocation5 + $0x3c0] sm:$0xf]  ;;  %v6131_v30 = vor.u32 %v5544_v28, %v5072_v27  ;;  %v5266_v63 = vld [vmem:[#allocation5 + $0x360] sm:$0xf0] }
  0x42   :  { %693 = vmatpush.bf16.msrb.mxu2 %v4681_v34  ;;  %v5074_v34 = vld [vmem:[#allocation5 + $0x1e0] sm:$0xf0]  ;;  %v6161_v5 = vor.u32 %v5588_v62, %v5266_v63  ;;  %v5576_v21 = vld [vmem:[#allocation5 + $0x2dc] sm:$0xf0] }
  0x43   :  { %722 = vmatpush.bf16.msrb.mxu3 %v4685_v35  ;;  %8424 = vst [vmem:[#allocation10_spill] sm:$0xff] %v6131_v30  ;;  %v6133_v35 = vor.u32 %v5608_v31, %v5328_v29  ;;  %v5516_v11 = vld [vmem:[#allocation5 + $0x104] sm:$0xf]  ;;  %v4912_v31 = vld [vmem:[#allocation5 + $0x80] sm:$0xf] }
  0x44   :  { %636 = vmatpush.bf16.msrb.mxu0 %v4641_v40  ;;  %v6138_v40 = vor.u32 %v5604_v37, %v5330_v38  ;;  %8435 = vst [vmem:[#allocation21_spill] sm:$0xff] %v6161_v5  ;;  %v4978_v12 = vld [vmem:[#allocation5 + $0x120] sm:$0xf0]  ;;  %v5168_v37 = vld [vmem:[#allocation5 + $0x280] sm:$0xf] }
  0x45   :  { %8425 = vst [vmem:[#allocation11_spill] sm:$0xff] %v6133_v35  ;;  %v6189_v14 = vor.u32 %v5516_v11, %v4978_v12  ;;  %v5572_v27 = vld [vmem:[#allocation5 + $0x2c4] sm:$0xf]  ;;  %v5568_v38 = vld [vmem:[#allocation5 + $0x29c] sm:$0xf0] }
  0x46   :  { %8427 = vst [vmem:[#allocation13_spill] sm:$0xff] %v6138_v40  ;;  %v5202_v29 = vld [vmem:[#allocation5 + $0x2e0] sm:$0xf0]  ;;  %v5496_v54 = vld [vmem:[#allocation5 + $0x5c] sm:$0xf0] }
  0x47   :  { %723 = vmatpush.bf16.msrb.mxu3 %v4653_v52  ;;  %8440 = vst [vmem:[#allocation24_spill] sm:$0xff] %v6189_v14  ;;  %v4882_v62 = vld [vmem:[#allocation5 + $0x60] sm:$0xf0]  ;;  %v5104_v11 = vld [vmem:[#allocation5 + $0x200] sm:$0xf] }
  0x48   :  { %v5556_v63 = vld [vmem:[#allocation5 + $0x244] sm:$0xf] }
  0x4b   :  { %724 = vmatpush.bf16.msrb.mxu3 %v4621_v4  ;;  %v6158_v4 = vor.u32 %v5524_v59, %v5010_v61  ;;  %v5560_v59 = vld [vmem:[#allocation5 + $0x25c] sm:$0xf0]  ;;  %v5492_v61 = vld [vmem:[#allocation5 + $0x44] sm:$0xf] }
  0x4d   :  { %8434 = vst [vmem:[#allocation20_spill] sm:$0xff] %v6158_v4 }
  0x4f   :  { %725 = vmatpush.bf16.msrb.mxu3 %v4589_v17  ;;  %v4944_v17 = vld [vmem:[#allocation5 + $0xc0] sm:$0xf] }
  0x53   :  { %726 = vmatpush.bf16.msrb.mxu3 %v4557_v25  ;;  %v4946_v25 = vld [vmem:[#allocation5 + $0xe0] sm:$0xf0] }
  0x6b   :  { %v6098_v36 = vpop.permute.xlu2 %93 }
  0x6c   :  { %vm108_vm6 = vcmp.eq.s32.totalorder %v6069_v44, %v6098_v36  ;;  %v6135_v36 = vor.u32 %v5540_v32, %v5074_v34  ;;  %v5504_v32 = vld [vmem:[#allocation5 + $0x9c] sm:$0xf0]  ;;  %v6203_v34 = vor.u32 %v5572_v27, %v5202_v29  ;;  %v5545_v27 = vld [vmem:[#allocation5 + $0x1e4] sm:$0xf0] }
  0x6d   :  { %v5336_v29 = vld [vmem:[#allocation5 + $0x3c8] sm:$0xf] }
  0x6e   :  { %8426 = vst [vmem:[#allocation12_spill] sm:$0xff] %v6135_v36 }
  0x6f   :  { %8445 = vst [vmem:[#allocation29_spill] sm:$0xff] %v6203_v34 }
  0x74   :  { %v97_v15 = vpop.permute.xlu2 %96 }
  0x75   :  { %vm109_vm7 = vcmp.eq.s32.totalorder %v6069_v44, %v97_v15  ;;  %v5580_v15 = vld [vmem:[#allocation5 + $0x304] sm:$0xf] }
  0x76   :  { %vm6115_vm8 = vmpackc.low %vm109_vm7, %vm108_vm6 }
  0x82   :  { %v6077_v49 = vpop.permute.xlu1 %87 }
  0x83   :  { %v82_v42 = vpop.permute.xlu0 %81  ;;  %vm106_vm3 = vcmp.eq.s32.totalorder %v6069_v44, %v6077_v49  ;;  %v4608_v49 = vld [vmem:[#allocation3 + $0x90] sm:$0xf] }
  0x84   :  { %vm104_vm1 = vcmp.eq.s32.totalorder %v6069_v44, %v82_v42  ;;  %v4648_v42 = vld [vmem:[#allocation3 + $0xd8] sm:$0xf]  ;;  %v4609_v56 = vor.u32 %v5442_v53, %v4608_v49  ;;  %v5042_v49 = vld [vmem:[#allocation5 + $0x1a0] sm:$0xf0] }
  0x85   :  { %v4649_v51 = vor.u32 %v5451_v43, %v4648_v42  ;;  %v5296_v42 = vld [vmem:[#allocation5 + $0x380] sm:$0xf]  ;;  %v6147_v52 = vor.u32 %v5532_v48, %v5042_v49  ;;  %v5298_v53 = vld [vmem:[#allocation5 + $0x3a0] sm:$0xf0]  ;;  %v6210_v49 = vor.u32 %v5568_v38, %v5168_v37  ;;  %v5541_v38 = vld [vmem:[#allocation5 + $0x1cc] sm:$0xf] }
  0x86   :  { %637 = vmatpush.bf16.msrb.mxu0 %v4609_v56  ;;  %v5600_v43 = vld [vmem:[#allocation5 + $0x39c] sm:$0xf0]  ;;  %v5170_v48 = vld [vmem:[#allocation5 + $0x2a0] sm:$0xf0] }
  0x87   :  { %694 = vmatpush.bf16.msrb.mxu2 %v4649_v51  ;;  %v6144_v47 = vor.u32 %v5600_v43, %v5296_v42  ;;  %v5596_v51 = vld [vmem:[#allocation5 + $0x384] sm:$0xf]  ;;  %8430 = vst [vmem:[#allocation16_spill] sm:$0xff] %v6147_v52 }
  0x88   :  { %v6149_v56 = vor.u32 %v5596_v51, %v5298_v53  ;;  %v4914_v42 = vld [vmem:[#allocation5 + $0xa0] sm:$0xf0]  ;;  %8447 = vst [vmem:[#allocation31_spill] sm:$0xff] %v6210_v49  ;;  %v4880_v53 = vld [vmem:[#allocation5 + $0x40] sm:$0xf] }
  0x89   :  { %8429 = vst [vmem:[#allocation15_spill] sm:$0xff] %v6144_v47  ;;  %v5564_v43 = vld [vmem:[#allocation5 + $0x284] sm:$0xf] }
  0x8a   :  { %v91_v26 = vpop.permute.xlu1 %90  ;;  %638 = vmatpush.bf16.msrb.mxu0 %v4577_v7  ;;  %8431 = vst [vmem:[#allocation17_spill] sm:$0xff] %v6149_v56  ;;  %v5520_v7 = vld [vmem:[#allocation5 + $0x11c] sm:$0xf0]  ;;  %v6215_v55 = vor.u32 %v5564_v43, %v5170_v48  ;;  %v5338_v48 = vld [vmem:[#allocation5 + $0x3e8] sm:$0xf0] }
  0x8b   :  { %v85_v45 = vpop.permute.xlu0 %84  ;;  %vm107_vm4 = vcmp.eq.s32.totalorder %v6069_v44, %v91_v26  ;;  %695 = vmatpush.bf16.msrb.mxu2 %v4617_v3  ;;  %v5088_v26 = vld [vmem:[#allocation5 + $0x1d0] sm:$0xf] }
  0x8c   :  { %vm105_vm0 = vcmp.eq.s32.totalorder %v6069_v44, %v85_v45  ;;  %vm6094_vm5 = vmpackc.low %vm107_vm4, %vm106_vm3  ;;  %v4645_v45 = vor.u32 %v5446_v39, %v4642_v41  ;;  %v5040_v39 = vld [vmem:[#allocation5 + $0x180] sm:$0xf]  ;;  %8449 = vst [vmem:[#allocation33_spill] sm:$0xff] %v6215_v55 }
  0x8d   :  { %vm6073_vm2 = vmpackc.low %vm105_vm0, %vm104_vm1  ;;  %v5536_v41 = vld [vmem:[#allocation5 + $0x19c] sm:$0xf0] }
  0x8e   :  { %4783 = vmatmul.msk.bf16.vlgmr.msra.gmra.mxu0 %vm6073_vm2, %v8162_v50  ;;  %4791 = vmatmul.msk.bf16.vlgmr.msra.gmra.mxu1 %vm6073_vm2, %v8162_v50 }
  0x8f   :  { %4799 = vmatmul.msk.bf16.vlgmr.msra.gmra.mxu2 %vm6073_vm2, %v8162_v50  ;;  %4807 = vmatmul.msk.bf16.vlgmr.msra.gmra.mxu3 %vm6073_vm2, %v8162_v50 }
  0x90   :  { %665 = vmatpush.bf16.msrb.mxu1 %v4645_v45  ;;  %696 = vmatpush.bf16.msrb.mxu2 %v4585_v16  ;;  %v6142_v45 = vor.u32 %v5536_v41, %v5040_v39  ;;  %v5234_v16 = vld [vmem:[#allocation5 + $0x320] sm:$0xf0]  ;;  %v6206_v41 = vor.u32 %v5504_v32, %v4912_v31  ;;  %v5609_v31 = vld [vmem:[#allocation5 + $0x3e4] sm:$0xf0] }
  0x91   :  { %639 = vmatpush.bf16.msrb.mxu0 %v4545_v19  ;;  %1619 = vmatpush.bf16.msra.mxu3 %v6138_v40  ;;  %v6192_v18 = vor.u32 %v5580_v15, %v5234_v16  ;;  %v5512_v19 = vld [vmem:[#allocation5 + $0xdc] sm:$0xf0]  ;;  %v5500_v39 = vld [vmem:[#allocation5 + $0x84] sm:$0xf]  ;;  %v6256_v37 = vor.u32 %v5609_v31, %v5336_v29  ;;  %v5525_v29 = vld [vmem:[#allocation5 + $0x14c] sm:$0xf] }
  0x92   :  { %8428 = vst [vmem:[#allocation14_spill] sm:$0xff] %v6142_v45  ;;  %v103_v1 = vpop.permute.xlu1 %102  ;;  %v6196_v22 = vor.u32 %v5512_v19, %v4944_v17  ;;  %v6212_v51 = vor.u32 %v5500_v39, %v4914_v42  ;;  %v5552_v15 = vld [vmem:[#allocation5 + $0x21c] sm:$0xf0]  ;;  %v5484_v16 = vld [vmem:[#allocation5 + $0x4] sm:$0xf] }
  0x93   :  { %v100_v2 = vpop.permute.xlu0 %99  ;;  %vm111_vm9 = vcmp.eq.s32.totalorder %v6069_v44, %v103_v1  ;;  %8441 = vst [vmem:[#allocation25_spill] sm:$0xff] %v6192_v18  ;;  %v5138_v1 = vld [vmem:[#allocation5 + $0x260] sm:$0xf0]  ;;  %v6246_v19 = vor.u32 %v5552_v15, %v5104_v11  ;;  %v5082_v39 = vld [vmem:[#allocation5 + $0x1e8] sm:$0xf0] }
  0x94   :  { %666 = vmatpush.bf16.msrb.mxu1 %v4613_v57  ;;  %697 = vmatpush.bf16.msrb.mxu2 %v4553_v24  ;;  %v5264_v57 = vld [vmem:[#allocation5 + $0x340] sm:$0xf]  ;;  %vm110_vm10 = vcmp.eq.s32.totalorder %v6069_v44, %v100_v2  ;;  %8442 = vst [vmem:[#allocation26_spill] sm:$0xff] %v6196_v22  ;;  %v5508_v24 = vld [vmem:[#allocation5 + $0xc4] sm:$0xf]  ;;  %v6258_v43 = vor.u32 %v5541_v38, %v5082_v39 }
  0x95   :  { %1580 = vmatpush.bf16.msra.mxu0 %v6131_v30  ;;  %v6156_v3 = vor.u32 %v5592_v58, %v5264_v57  ;;  %1620 = vmatpush.bf16.msra.mxu3 %v6149_v56  ;;  %vm6169_vm11 = vmpackc.low %vm111_vm9, %vm110_vm10  ;;  %v4976_v44 = vld [vmem:[#allocation5 + $0x100] sm:$0xf]  ;;  %v6201_v28 = vor.u32 %v5508_v24, %v4946_v25  ;;  %8446 = vst [vmem:[#allocation30_spill] sm:$0xff] %v6206_v41  ;;  %v4850_v17 = vld [vmem:[#allocation5 + $0x20] sm:$0xf0] }
  0x96   :  { %v6185_v9 = vor.u32 %v5520_v7, %v4976_v44  ;;  %8448 = vst [vmem:[#allocation32_spill] sm:$0xff] %v6212_v51  ;;  %v5136_v57 = vld [vmem:[#allocation5 + $0x240] sm:$0xf]  ;;  %v6218_v58 = vor.u32 %v5496_v54, %v4880_v53  ;;  %v6225_v44 = vor.u32 %v5492_v61, %v4882_v62  ;;  %v6228_v7 = vor.u32 %v5556_v63, %v5138_v1  ;;  %v5106_v24 = vld [vmem:[#allocation5 + $0x220] sm:$0xf0] }
  0x97   :  { %8433 = vst [vmem:[#allocation19_spill] sm:$0xff] %v6156_v3  ;;  %v6223_v2 = vor.u32 %v5560_v59, %v5136_v57  ;;  %v5080_v25 = vld [vmem:[#allocation5 + $0x1c8] sm:$0xf]  ;;  %v5605_v42 = vld [vmem:[#allocation5 + $0x3cc] sm:$0xf] }
  0x98   :  { %667 = vmatpush.bf16.msrb.mxu1 %v4581_v8  ;;  %1606 = vmatpush.bf16.msra.mxu2 %v6135_v36  ;;  %v5232_v8 = vld [vmem:[#allocation5 + $0x300] sm:$0xf]  ;;  %8438 = vst [vmem:[#allocation22_spill] sm:$0xff] %v6185_v9  ;;  %v6254_v32 = vor.u32 %v5545_v27, %v5080_v25  ;;  %v5048_v53 = vld [vmem:[#allocation5 + $0x188] sm:$0xf]  ;;  %v6262_v57 = vor.u32 %v5605_v42, %v5338_v48 }
  0x99   :  { %1581 = vmatpush.bf16.msra.mxu0 %v6142_v45  ;;  %1621 = vmatpush.bf16.msra.mxu3 %v6161_v5  ;;  %v6187_v13 = vor.u32 %v5584_v10, %v5232_v8  ;;  %8444 = vst [vmem:[#allocation28_spill] sm:$0xff] %v6201_v28  ;;  %v4848_v8 = vld [vmem:[#allocation5] sm:$0xf]  ;;  %v5537_v54 = vld [vmem:[#allocation5 + $0x1a4] sm:$0xf0] }
  0x9a   :  { %8450 = vst [vmem:[#allocation34_spill] sm:$0xff] %v6218_v58  ;;  %v5488_v10 = vld [vmem:[#allocation5 + $0x1c] sm:$0xf0]  ;;  %v5304_v59 = vld [vmem:[#allocation5 + $0x388] sm:$0xf]  ;;  %v6266_v63 = vor.u32 %v5537_v54, %v5048_v53 }
  0x9b   :  { %8439 = vst [vmem:[#allocation23_spill] sm:$0xff] %v6187_v13  ;;  %v6242_v12 = vor.u32 %v5488_v10, %v4848_v8  ;;  %v5601_v61 = vld [vmem:[#allocation5 + $0x3a4] sm:$0xf0]  ;;  %v5533_v62 = vld [vmem:[#allocation5 + $0x18c] sm:$0xf] }
  0x9c   :  { %668 = vmatpush.bf16.msrb.mxu1 %v4549_v20  ;;  %1607 = vmatpush.bf16.msra.mxu2 %v6147_v52  ;;  %v5200_v20 = vld [vmem:[#allocation5 + $0x2c0] sm:$0xf]  ;;  %8451 = vst [vmem:[#allocation35_spill] sm:$0xff] %v6223_v2  ;;  %v5050_v1 = vld [vmem:[#allocation5 + $0x1a8] sm:$0xf0]  ;;  %v6270_v11 = vor.u32 %v5601_v61, %v5304_v59 }
  0x9d   :  { %1582 = vmatpush.bf16.msra.mxu0 %v6152_v60  ;;  %v6198_v23 = vor.u32 %v5576_v21, %v5200_v20  ;;  %1622 = vmatpush.bf16.msra.mxu3 %v6192_v18  ;;  %8452 = vst [vmem:[#allocation36_spill] sm:$0xff] %v6225_v44  ;;  %v6248_v20 = vor.u32 %v5484_v16, %v4850_v17  ;;  %v5548_v21 = vld [vmem:[#allocation5 + $0x204] sm:$0xf]  ;;  %v5597_v8 = vld [vmem:[#allocation5 + $0x38c] sm:$0xf] }
  0x9e   :  { %4785 = vmatmul.msk.bf16.gmra.mxu0 %vm6094_vm5, %v8162_v50  ;;  %4793 = vmatmul.msk.bf16.gmra.mxu1 %vm6094_vm5, %v8162_v50  ;;  %8453 = vst [vmem:[#allocation37_spill] sm:$0xff] %v6228_v7  ;;  %v6252_v46 = vor.u32 %v5548_v21, %v5106_v24  ;;  %v5306_v10 = vld [vmem:[#allocation5 + $0x3a8] sm:$0xf0]  ;;  %v6272_v15 = vor.u32 %v5533_v62, %v5050_v1  ;;  %v5016_v16 = vld [vmem:[#allocation5 + $0x148] sm:$0xf] }
  0x9f   :  { %4801 = vmatmul.msk.bf16.gmra.mxu2 %vm6094_vm5, %v8162_v50  ;;  %4809 = vmatmul.msk.bf16.gmra.mxu3 %vm6094_vm5, %v8162_v50  ;;  %8443 = vst [vmem:[#allocation27_spill] sm:$0xff] %v6198_v23  ;;  %v5529_v17 = vld [vmem:[#allocation5 + $0x164] sm:$0xf0]  ;;  %v6275_v21 = vor.u32 %v5597_v8, %v5306_v10  ;;  %v5018_v31 = vld [vmem:[#allocation5 + $0x168] sm:$0xf0] }
  0xa0   :  { %1593 = vmatpush.bf16.msra.mxu1 %v6133_v35  ;;  %1608 = vmatpush.bf16.msra.mxu2 %v6158_v4  ;;  %8454 = vst [vmem:[#allocation38_spill] sm:$0xff] %v6242_v12  ;;  %v5272_v24 = vld [vmem:[#allocation5 + $0x348] sm:$0xf]  ;;  %v6278_v27 = vor.u32 %v5529_v17, %v5016_v16  ;;  %v5589_v38 = vld [vmem:[#allocation5 + $0x34c] sm:$0xf]  ;;  %v6285_v54 = vor.u32 %v5525_v29, %v5018_v31 }
  0xa1   :  { %1583 = vmatpush.bf16.msra.mxu0 %v6185_v9  ;;  %1623 = vmatpush.bf16.msra.mxu3 %v6203_v34  ;;  %8455 = vst [vmem:[#allocation39_spill] sm:$0xff] %v6246_v19  ;;  %v5593_v25 = vld [vmem:[#allocation5 + $0x364] sm:$0xf0]  ;;  %v5274_v39 = vld [vmem:[#allocation5 + $0x368] sm:$0xf0] }
  0xa2   :  { %8456 = vst [vmem:[#allocation40_spill] sm:$0xff] %v6248_v20  ;;  %v4984_v42 = vld [vmem:[#allocation5 + $0x108] sm:$0xf]  ;;  %v6283_v53 = vor.u32 %v5593_v25, %v5272_v24  ;;  %v6288_v61 = vor.u32 %v5589_v38, %v5274_v39  ;;  %v5517_v8 = vld [vmem:[#allocation5 + $0x10c] sm:$0xf] }
  0xa3   :  { %8457 = vst [vmem:[#allocation41_spill] sm:$0xff] %v6252_v46  ;;  %v5521_v48 = vld [vmem:[#allocation5 + $0x124] sm:$0xf0]  ;;  %v4986_v10 = vld [vmem:[#allocation5 + $0x128] sm:$0xf0] }
  0xa4   :  { %1594 = vmatpush.bf16.msra.mxu1 %v6144_v47  ;;  %1609 = vmatpush.bf16.msra.mxu2 %v6189_v14  ;;  %8458 = vst [vmem:[#allocation42_spill] sm:$0xff] %v6254_v32  ;;  %v5240_v59 = vld [vmem:[#allocation5 + $0x308] sm:$0xf]  ;;  %v6290_v62 = vor.u32 %v5521_v48, %v4984_v42  ;;  %v5581_v16 = vld [vmem:[#allocation5 + $0x30c] sm:$0xf]  ;;  %v6308_v31 = vor.u32 %v5517_v8, %v4986_v10 }
  0xa5   :  { %1584 = vmatpush.bf16.msra.mxu0 %v6196_v22  ;;  %1624 = vmatpush.bf16.msra.mxu3 %v6215_v55  ;;  %8459 = vst [vmem:[#allocation43_spill] sm:$0xff] %v6256_v37  ;;  %v5585_v1 = vld [vmem:[#allocation5 + $0x324] sm:$0xf0]  ;;  %v5242_v17 = vld [vmem:[#allocation5 + $0x328] sm:$0xf0] }
  0xa6   :  { %8460 = vst [vmem:[#allocation44_spill] sm:$0xff] %v6258_v43  ;;  %v4952_v24 = vld [vmem:[#allocation5 + $0xc8] sm:$0xf]  ;;  %v6306_v29 = vor.u32 %v5585_v1, %v5240_v59  ;;  %v6312_v42 = vor.u32 %v5581_v16, %v5242_v17  ;;  %v5509_v48 = vld [vmem:[#allocation5 + $0xcc] sm:$0xf] }
  0xa7   :  { %8461 = vst [vmem:[#allocation45_spill] sm:$0xff] %v6262_v57  ;;  %v5513_v25 = vld [vmem:[#allocation5 + $0xe4] sm:$0xf0]  ;;  %v6320_v1 = vor.u32 %v5509_v48, %v4954_v0  ;;  %v4890_v48 = vld [vmem:[#allocation5 + $0x68] sm:$0xf0] }
  0xa8   :  { %1595 = vmatpush.bf16.msra.mxu1 %v6156_v3  ;;  %1610 = vmatpush.bf16.msra.mxu2 %v6201_v28  ;;  %8462 = vst [vmem:[#allocation46_spill] sm:$0xff] %v6266_v63  ;;  %v5208_v38 = vld [vmem:[#allocation5 + $0x2c8] sm:$0xf]  ;;  %v6314_v33 = vor.u32 %v5513_v25, %v4952_v24  ;;  %v5501_v24 = vld [vmem:[#allocation5 + $0x8c] sm:$0xf] }
  0xa9   :  { %1585 = vmatpush.bf16.msra.mxu0 %v6206_v41  ;;  %1625 = vmatpush.bf16.msra.mxu3 %v6228_v7  ;;  %8463 = vst [vmem:[#allocation47_spill] sm:$0xff] %v6270_v11  ;;  %v5577_v39 = vld [vmem:[#allocation5 + $0x2e4] sm:$0xf0]  ;;  %v4922_v25 = vld [vmem:[#allocation5 + $0xa8] sm:$0xf0] }
  0xaa   :  { %8464 = vst [vmem:[#allocation48_spill] sm:$0xff] %v6272_v15  ;;  %v6318_v59 = vor.u32 %v5577_v39, %v5208_v38  ;;  %v5176_v8 = vld [vmem:[#allocation5 + $0x288] sm:$0xf]  ;;  %v6332_v38 = vor.u32 %v5501_v24, %v4922_v25  ;;  %v4858_v25 = vld [vmem:[#allocation5 + $0x28] sm:$0xf0] }
  0xab   :  { %8465 = vst [vmem:[#allocation49_spill] sm:$0xff] %v6275_v21  ;;  %v5569_v10 = vld [vmem:[#allocation5 + $0x2a4] sm:$0xf0] }
  0xac   :  { %1596 = vmatpush.bf16.msra.mxu1 %v6187_v13  ;;  %1611 = vmatpush.bf16.msra.mxu2 %v6212_v51  ;;  %8466 = vst [vmem:[#allocation50_spill] sm:$0xff] %v6278_v27  ;;  %v6330_v0 = vor.u32 %v5569_v10, %v5176_v8  ;;  %v5144_v39 = vld [vmem:[#allocation5 + $0x248] sm:$0xf] }
  0xad   :  { %1586 = vmatpush.bf16.msra.mxu0 %v6218_v58  ;;  %1626 = vmatpush.bf16.msra.mxu3 %v6252_v46  ;;  %8467 = vst [vmem:[#allocation51_spill] sm:$0xff] %v6283_v53  ;;  %v5112_v24 = vld [vmem:[#allocation5 + $0x208] sm:$0xf] }
  0xae   :  { %4787 = vmatmul.msk.bf16.gmra.mxu0 %vm6115_vm8, %v8162_v50  ;;  %4795 = vmatmul.msk.bf16.gmra.mxu1 %vm6115_vm8, %v8162_v50  ;;  %8468 = vst [vmem:[#allocation52_spill] sm:$0xff] %v6285_v54 }
  0xaf   :  { %4803 = vmatmul.msk.bf16.gmra.mxu2 %vm6115_vm8, %v8162_v50  ;;  %4811 = vmatmul.msk.bf16.gmra.mxu3 %vm6115_vm8, %v8162_v50  ;;  %8469 = vst [vmem:[#allocation53_spill] sm:$0xff] %v6288_v61 }
  0xb0   :  { %1597 = vmatpush.bf16.msra.mxu1 %v6198_v23  ;;  %1612 = vmatpush.bf16.msra.mxu2 %v6225_v44  ;;  %8470 = vst [vmem:[#allocation54_spill] sm:$0xff] %v6290_v62 }
  0xb1   :  { %1587 = vmatpush.bf16.msra.mxu0 %v6242_v12  ;;  %8471 = vst [vmem:[#allocation55_spill] sm:$0xff] %v6306_v29 }
  0xb2   :  { %8472 = vst [vmem:[#allocation56_spill] sm:$0xff] %v6308_v31 }
  0xb3   :  { %8473 = vst [vmem:[#allocation57_spill] sm:$0xff] %v6312_v42 }
  0xb4   :  { %1598 = vmatpush.bf16.msra.mxu1 %v6210_v49  ;;  %1613 = vmatpush.bf16.msra.mxu2 %v6248_v20  ;;  %8474 = vst [vmem:[#allocation58_spill] sm:$0xff] %v6314_v33 }
  0xb5   :  { %8475 = vst [vmem:[#allocation59_spill] sm:$0xff] %v6318_v59 }
  0xb6   :  { %8476 = vst [vmem:[#allocation60_spill] sm:$0xff] %v6320_v1 }
  0xb7   :  { %8479 = vst [vmem:[#allocation63_spill] sm:$0xff] %v6330_v0 }
  0xb8   :  { %1599 = vmatpush.bf16.msra.mxu1 %v6223_v2  ;;  %8480 = vst [vmem:[#allocation64_spill] sm:$0xff] %v6332_v38 }
  0xbc   :  { %1600 = vmatpush.bf16.msra.mxu1 %v6246_v19 }
  0xbe   :  { %4789 = vmatmul.msk.bf16.gmra.mxu0 %vm6169_vm11, %v8162_v50  ;;  %4797 = vmatmul.msk.bf16.gmra.mxu1 %vm6169_vm11, %v8162_v50 }
  0xbf   :  { %4805 = vmatmul.msk.bf16.gmra.mxu2 %vm6169_vm11, %v8162_v50  ;;  %4813 = vmatmul.msk.bf16.gmra.mxu3 %vm6169_vm11, %v8162_v50 }
  0xce   :  { %4815 = vmatmul.msk.bf16.vlgmr.msrb.gmra.mxu0 %vm6073_vm2, %v8162_v50  ;;  %4823 = vmatmul.msk.bf16.vlgmr.msrb.gmra.mxu1 %vm6073_vm2, %v8162_v50 }
  0xcf   :  { %4831 = vmatmul.msk.bf16.vlgmr.msrb.gmra.mxu2 %vm6073_vm2, %v8162_v50  ;;  %4839 = vmatmul.msk.bf16.vlgmr.msrb.gmra.mxu3 %vm6073_vm2, %v8162_v50 }
  0xd0   :  { %1632 = vmatpush.bf16.msrb.mxu0 %v6254_v32  ;;  %1645 = vmatpush.bf16.msrb.mxu1 %v6256_v37 }
  0xd1   :  { %1658 = vmatpush.bf16.msrb.mxu2 %v6258_v43  ;;  %1671 = vmatpush.bf16.msrb.mxu3 %v6262_v57 }
  0xd4   :  { %1633 = vmatpush.bf16.msrb.mxu0 %v6266_v63  ;;  %1646 = vmatpush.bf16.msrb.mxu1 %v6270_v11 }
  0xd5   :  { %1659 = vmatpush.bf16.msrb.mxu2 %v6272_v15  ;;  %1672 = vmatpush.bf16.msrb.mxu3 %v6275_v21 }
  0xd8   :  { %1634 = vmatpush.bf16.msrb.mxu0 %v6278_v27  ;;  %1647 = vmatpush.bf16.msrb.mxu1 %v6283_v53  ;;  %v5210_v53 = vld [vmem:[#allocation5 + $0x2e8] sm:$0xf0]  ;;  %v4920_v27 = vld [vmem:[#allocation5 + $0x88] sm:$0xf] }
  0xd9   :  { %1660 = vmatpush.bf16.msrb.mxu2 %v6285_v54  ;;  %1673 = vmatpush.bf16.msrb.mxu3 %v6288_v61  ;;  %v5505_v54 = vld [vmem:[#allocation5 + $0xa4] sm:$0xf0] }
  0xda   :  { %v6326_v17 = vor.u32 %v5505_v54, %v4920_v27  ;;  %v4888_v61 = vld [vmem:[#allocation5 + $0x48] sm:$0xf]  ;;  %v5493_v54 = vld [vmem:[#allocation5 + $0x4c] sm:$0xf] }
  0xdb   :  { %v6344_v10 = vor.u32 %v5493_v54, %v4890_v48  ;;  %v5344_v54 = vld [vmem:[#allocation5 + $0x3d0] sm:$0xf] }
  0xdc   :  { %1635 = vmatpush.bf16.msrb.mxu0 %v6290_v62  ;;  %1648 = vmatpush.bf16.msrb.mxu1 %v6306_v29  ;;  %8478 = vst [vmem:[#allocation62_spill] sm:$0xff] %v6326_v17  ;;  %v5565_v62 = vld [vmem:[#allocation5 + $0x28c] sm:$0xf]  ;;  %v5610_v48 = vld [vmem:[#allocation5 + $0x3ec] sm:$0xf0] }
  0xdd   :  { %1661 = vmatpush.bf16.msrb.mxu2 %v6308_v31  ;;  %1674 = vmatpush.bf16.msrb.mxu3 %v6312_v42  ;;  %v5178_v29 = vld [vmem:[#allocation5 + $0x2a8] sm:$0xf0]  ;;  %v5497_v31 = vld [vmem:[#allocation5 + $0x64] sm:$0xf0]  ;;  %8484 = vst [vmem:[#allocation68_spill] sm:$0xff] %v6344_v10 }
  0xde   :  { %4817 = vmatmul.msk.bf16.gmra.mxu0 %vm6094_vm5, %v8162_v50  ;;  %4825 = vmatmul.msk.bf16.gmra.mxu1 %vm6094_vm5, %v8162_v50  ;;  %v6338_v27 = vor.u32 %v5497_v31, %v4888_v61  ;;  %v4856_v42 = vld [vmem:[#allocation5 + $0x8] sm:$0xf]  ;;  %v5485_v31 = vld [vmem:[#allocation5 + $0xc] sm:$0xf] }
  0xdf   :  { %4833 = vmatmul.msk.bf16.gmra.mxu2 %vm6094_vm5, %v8162_v50  ;;  %4841 = vmatmul.msk.bf16.gmra.mxu3 %vm6094_vm5, %v8162_v50  ;;  %v5573_v50 = vld [vmem:[#allocation5 + $0x2cc] sm:$0xf] }
  0xe0   :  { %1636 = vmatpush.bf16.msrb.mxu0 %v6314_v33  ;;  %v6324_v16 = vor.u32 %v5573_v50, %v5210_v53  ;;  %1649 = vmatpush.bf16.msrb.mxu1 %v6318_v59  ;;  %v6336_v50 = vor.u32 %v5565_v62, %v5178_v29  ;;  %8482 = vst [vmem:[#allocation66_spill] sm:$0xff] %v6338_v27  ;;  %v5561_v53 = vld [vmem:[#allocation5 + $0x264] sm:$0xf0]  ;;  %v5557_v33 = vld [vmem:[#allocation5 + $0x24c] sm:$0xf] }
  0xe1   :  { %1662 = vmatpush.bf16.msrb.mxu2 %v6320_v1  ;;  %v5146_v59 = vld [vmem:[#allocation5 + $0x268] sm:$0xf0]  ;;  %v5489_v1 = vld [vmem:[#allocation5 + $0x24] sm:$0xf0]  ;;  %v6342_v8 = vor.u32 %v5561_v53, %v5144_v39 }
  0xe2   :  { %8477 = vst [vmem:[#allocation61_spill] sm:$0xff] %v6324_v16  ;;  %1675 = vmatpush.bf16.msrb.mxu3 %v6324_v16  ;;  %v6348_v61 = vor.u32 %v5557_v33, %v5146_v59  ;;  %v6350_v62 = vor.u32 %v5489_v1, %v4856_v42  ;;  %v5553_v29 = vld [vmem:[#allocation5 + $0x224] sm:$0xf0]  ;;  %v5549_v39 = vld [vmem:[#allocation5 + $0x20c] sm:$0xf]  ;;  %v6368_v33 = vor.u32 %v5485_v31, %v4858_v25 }
  0xe3   :  { %8481 = vst [vmem:[#allocation65_spill] sm:$0xff] %v6336_v50  ;;  %v5114_v53 = vld [vmem:[#allocation5 + $0x228] sm:$0xf0]  ;;  %v6366_v42 = vor.u32 %v5553_v29, %v5112_v24  ;;  %v5546_v1 = vld [vmem:[#allocation5 + $0x1ec] sm:$0xf0] }
  0xe4   :  { %1637 = vmatpush.bf16.msrb.mxu0 %v6326_v17  ;;  %1650 = vmatpush.bf16.msrb.mxu1 %v6330_v0  ;;  %8483 = vst [vmem:[#allocation67_spill] sm:$0xff] %v6342_v8  ;;  %v8487_v17 = vmov 1.0|1.0   ;;  %v6372_v59 = vor.u32 %v5549_v39, %v5114_v53  ;;  %v5542_v24 = vld [vmem:[#allocation5 + $0x1d4] sm:$0xf] }
  0xe5   :  { %1663 = vmatpush.bf16.msrb.mxu2 %v6332_v38  ;;  %8485 = vst [vmem:[#allocation69_spill] sm:$0xff] %v6348_v61  ;;  %v5090_v29 = vld [vmem:[#allocation5 + $0x1f0] sm:$0xf0] }
  0xe6   :  { %1676 = vmatpush.bf16.msrb.mxu3 %v6336_v50  ;;  %8486 = vst [vmem:[#allocation70_spill] sm:$0xff] %v6350_v62  ;;  %v5606_v31 = vld [vmem:[#allocation5 + $0x3d4] sm:$0xf]  ;;  %v6397_v6 = vor.u32 %v5542_v24, %v5090_v29 }
  0xe7   :  { %8488 = vst [vmem:[#allocation71_spill] sm:$0xff] %v6366_v42  ;;  %v5346_v25 = vld [vmem:[#allocation5 + $0x3f0] sm:$0xf0] }
  0xe8   :  { %1638 = vmatpush.bf16.msrb.mxu0 %v6338_v27  ;;  %1651 = vmatpush.bf16.msrb.mxu1 %v6342_v8  ;;  %8489 = vst [vmem:[#allocation72_spill] sm:$0xff] %v6368_v33  ;;  %v5602_v8 = vld [vmem:[#allocation5 + $0x3ac] sm:$0xf0]  ;;  %v8497_v27 = vmov 0   ;;  %v5598_v50 = vld [vmem:[#allocation5 + $0x394] sm:$0xf] }
  0xe9   :  { %1664 = vmatpush.bf16.msrb.mxu2 %v6344_v10  ;;  %8490 = vst [vmem:[#allocation73_spill] sm:$0xff] %v6372_v59  ;;  %v5534_v10 = vld [vmem:[#allocation5 + $0x194] sm:$0xf] }
  0xea   :  { %1677 = vmatpush.bf16.msrb.mxu3 %v6348_v61  ;;  %8495 = vst [vmem:[#allocation78_spill] sm:$0xff] %v6397_v6  ;;  %v5312_v61 = vld [vmem:[#allocation5 + $0x390] sm:$0xf]  ;;  %v5526_v0 = vld [vmem:[#allocation5 + $0x154] sm:$0xf] }
  0xeb   :  { %v5122_v16 = vld [vmem:[#allocation5 + $0x230] sm:$0xf0] }
  0xec   :  { %1639 = vmatpush.bf16.msrb.mxu0 %v6350_v62  ;;  %1652 = vmatpush.bf16.msrb.mxu1 %v6366_v42  ;;  %v6395_v42 = vor.u32 %v5610_v48, %v5344_v54  ;;  %v5538_v62 = vld [vmem:[#allocation5 + $0x1ac] sm:$0xf0] }
  0xed   :  { %1665 = vmatpush.bf16.msrb.mxu2 %v6368_v33  ;;  %v5056_v33 = vld [vmem:[#allocation5 + $0x190] sm:$0xf] }
  0xee   :  { %4819 = vmatmul.msk.bf16.gmra.mxu0 %vm6115_vm8, %v8487_v17  ;;  %4827 = vmatmul.msk.bf16.gmra.mxu1 %vm6115_vm8, %v8487_v17  ;;  %8494 = vst [vmem:[#allocation77_spill] sm:$0xff] %v6395_v42  ;;  %v5024_v54 = vld [vmem:[#allocation5 + $0x150] sm:$0xf] }
  0xef   :  { %4835 = vmatmul.msk.bf16.gmra.mxu2 %vm6115_vm8, %v8487_v17  ;;  %4843 = vmatmul.msk.bf16.gmra.mxu3 %vm6115_vm8, %v8487_v17  ;;  %v5530_v48 = vld [vmem:[#allocation5 + $0x16c] sm:$0xf0] }
  0xf0   :  { %1678 = vmatpush.bf16.msrb.mxu3 %v6372_v59  ;;  %v6393_v59 = vor.u32 %v5546_v1, %v5088_v26  ;;  %v6407_v26 = vor.u32 %v5538_v62, %v5056_v33  ;;  %v6409_v1 = vor.u32 %v5602_v8, %v5312_v61  ;;  %v5026_v62 = vld [vmem:[#allocation5 + $0x170] sm:$0xf0] }
  0xf1   :  { %v5590_v8 = vld [vmem:[#allocation5 + $0x354] sm:$0xf] }
  0xf2   :  { %8493 = vst [vmem:[#allocation76_spill] sm:$0xff] %v6393_v59  ;;  %v5282_v61 = vld [vmem:[#allocation5 + $0x370] sm:$0xf0] }
  0xf3   :  { %8498 = vst [vmem:[#allocation80_spill] sm:$0xff] %v6407_v26 }
  0xf4   :  { %8499 = vst [vmem:[#allocation81_spill] sm:$0xff] %v6409_v1 }
  0xfe   :  { %4821 = vmatmul.msk.bf16.gmra.mxu0 %vm6169_vm11, %v8487_v17  ;;  %4829 = vmatmul.msk.bf16.gmra.mxu1 %vm6169_vm11, %v8487_v17 }
  0xff   :  { %4837 = vmatmul.msk.bf16.gmra.mxu2 %vm6169_vm11, %v8487_v17  ;;  %4845 = vmatmul.msk.bf16.gmra.mxu3 %vm6169_vm11, %v8487_v17  ;;  %v6399_v17 = vor.u32 %v5606_v31, %v5346_v25  ;;  %v5280_v31 = vld [vmem:[#allocation5 + $0x350] sm:$0xf] }
 0x100   :  { %v5594_v25 = vld [vmem:[#allocation5 + $0x36c] sm:$0xf0] }
 0x101   :  { %8496 = vst [vmem:[#allocation79_spill] sm:$0xff] %v6399_v17 }
 0x10b   :  { %v6389_v39 = vpop.f32.mrf.mxu0  ;;  %v6391_v53 = vpop.f32.mrf.mxu1 }
 0x10c   :  { %8491 = vst [vmem:[#allocation74_spill] sm:$0xff] %v6389_v39  ;;  %v5058_v39 = vld [vmem:[#allocation5 + $0x1b0] sm:$0xf0] }
 0x10d   :  { %8492 = vst [vmem:[#allocation75_spill] sm:$0xff] %v6391_v53  ;;  %v5314_v53 = vld [vmem:[#allocation5 + $0x3b0] sm:$0xf0]  ;;  %v6413_v24 = vor.u32 %v5534_v10, %v5058_v39  ;;  %v6429_v10 = vor.u32 %v5594_v25, %v5280_v31  ;;  %v4992_v39 = vld [vmem:[#allocation5 + $0x110] sm:$0xf] }
 0x10e   :  { %1588 = vmatmul.bf16.vlgmr.msra.gmra.mxu0 %v8497_v27  ;;  %1601 = vmatmul.bf16.vlgmr.msra.gmra.mxu1 %v8497_v27  ;;  %v6415_v29 = vor.u32 %v5598_v50, %v5314_v53  ;;  %v6427_v50 = vor.u32 %v5530_v48, %v5024_v54  ;;  %v5522_v53 = vld [vmem:[#allocation5 + $0x12c] sm:$0xf0] }
 0x10f   :  { %1614 = vmatmul.bf16.vlgmr.msra.gmra.mxu2 %v8497_v27  ;;  %1627 = vmatmul.bf16.vlgmr.msra.gmra.mxu3 %v8497_v27  ;;  %8500 = vst [vmem:[#allocation82_spill] sm:$0xff] %v6413_v24  ;;  %v6439_v54 = vor.u32 %v5522_v53, %v4992_v39  ;;  %v4960_v31 = vld [vmem:[#allocation5 + $0xd0] sm:$0xf]  ;;  %v4962_v39 = vld [vmem:[#allocation5 + $0xf0] sm:$0xf0] }
 0x110   :  { %1684 = vmatpush.bf16.msra.mxu0 %v6393_v59  ;;  %1697 = vmatpush.bf16.msra.mxu1 %v6395_v42  ;;  %8501 = vst [vmem:[#allocation83_spill] sm:$0xff] %v6415_v29  ;;  %v5514_v25 = vld [vmem:[#allocation5 + $0xec] sm:$0xf0] }
 0x111   :  { %1710 = vmatpush.bf16.msra.mxu2 %v6397_v6  ;;  %1723 = vmatpush.bf16.msra.mxu3 %v6399_v17  ;;  %8506 = vst [vmem:[#allocation88_spill] sm:$0xff] %v6427_v50  ;;  %v6433_v17 = vor.u32 %v5526_v0, %v5026_v62  ;;  %v6435_v6 = vor.u32 %v5590_v8, %v5282_v61  ;;  %v5216_v8 = vld [vmem:[#allocation5 + $0x2d0] sm:$0xf] }
 0x112   :  { %v6417_v59 = vpop.f32.mrf.mxu2  ;;  %v6419_v42 = vpop.f32.mrf.mxu3  ;;  %8507 = vst [vmem:[#allocation89_spill] sm:$0xff] %v6429_v10  ;;  %v5578_v61 = vld [vmem:[#allocation5 + $0x2ec] sm:$0xf0] }
 0x113   :  { %8502 = vst [vmem:[#allocation84_spill] sm:$0xff] %v6417_v59  ;;  %v6421_v33 = vpop.f32.mrf.mxu0  ;;  %v6423_v38 = vpop.f32.mrf.mxu1  ;;  %v5582_v59 = vld [vmem:[#allocation5 + $0x314] sm:$0xf] }
 0x114   :  { %8503 = vst [vmem:[#allocation85_spill] sm:$0xff] %v6419_v42  ;;  %1685 = vmatpush.bf16.msra.mxu0 %v6407_v26  ;;  %1698 = vmatpush.bf16.msra.mxu1 %v6409_v1  ;;  %v5518_v42 = vld [vmem:[#allocation5 + $0x114] sm:$0xf] }
 0x115   :  { %8504 = vst [vmem:[#allocation86_spill] sm:$0xff] %v6421_v33  ;;  %1711 = vmatpush.bf16.msra.mxu2 %v6413_v24  ;;  %1724 = vmatpush.bf16.msra.mxu3 %v6415_v29  ;;  %v5248_v33 = vld [vmem:[#allocation5 + $0x310] sm:$0xf]  ;;  %v4994_v26 = vld [vmem:[#allocation5 + $0x130] sm:$0xf0] }
 0x116   :  { %8505 = vst [vmem:[#allocation87_spill] sm:$0xff] %v6423_v38  ;;  %v5586_v38 = vld [vmem:[#allocation5 + $0x32c] sm:$0xf0]  ;;  %v5250_v1 = vld [vmem:[#allocation5 + $0x330] sm:$0xf0]  ;;  %v6445_v0 = vor.u32 %v5518_v42, %v4994_v26  ;;  %v6459_v42 = vor.u32 %v5514_v25, %v4960_v31 }
 0x117   :  { %8508 = vst [vmem:[#allocation90_spill] sm:$0xff] %v6433_v17  ;;  %v6441_v48 = vor.u32 %v5586_v38, %v5248_v33  ;;  %v6447_v62 = vor.u32 %v5582_v59, %v5250_v1  ;;  %v5510_v29 = vld [vmem:[#allocation5 + $0xd4] sm:$0xf]  ;;  %v6461_v59 = vor.u32 %v5578_v61, %v5216_v8  ;;  %v4928_v26 = vld [vmem:[#allocation5 + $0x90] sm:$0xf] }
 0x118   :  { %8509 = vst [vmem:[#allocation91_spill] sm:$0xff] %v6435_v6  ;;  %1686 = vmatpush.bf16.msra.mxu0 %v6427_v50  ;;  %1699 = vmatpush.bf16.msra.mxu1 %v6429_v10  ;;  %v5574_v38 = vld [vmem:[#allocation5 + $0x2d4] sm:$0xf]  ;;  %v5506_v1 = vld [vmem:[#allocation5 + $0xac] sm:$0xf0] }
 0x119   :  { %8510 = vst [vmem:[#allocation92_spill] sm:$0xff] %v6439_v54  ;;  %1712 = vmatpush.bf16.msra.mxu2 %v6433_v17  ;;  %1725 = vmatpush.bf16.msra.mxu3 %v6435_v6  ;;  %v5218_v33 = vld [vmem:[#allocation5 + $0x2f0] sm:$0xf0] }
 0x11a   :  { %8511 = vst [vmem:[#allocation93_spill] sm:$0xff] %v6441_v48  ;;  %v6449_v50 = vpop.f32.mrf.mxu2  ;;  %v6451_v10 = vpop.f32.mrf.mxu3  ;;  %v5502_v6 = vld [vmem:[#allocation5 + $0x94] sm:$0xf] }
 0x11b   :  { %8512 = vst [vmem:[#allocation94_spill] sm:$0xff] %v6445_v0  ;;  %v6453_v53 = vpop.f32.mrf.mxu0  ;;  %v6455_v24 = vpop.f32.mrf.mxu1  ;;  %v4930_v31 = vld [vmem:[#allocation5 + $0xb0] sm:$0xf0] }
 0x11c   :  { %8513 = vst [vmem:[#allocation95_spill] sm:$0xff] %v6447_v62  ;;  %1687 = vmatpush.bf16.msra.mxu0 %v6439_v54  ;;  %1700 = vmatpush.bf16.msra.mxu1 %v6441_v48  ;;  %v5566_v25 = vld [vmem:[#allocation5 + $0x294] sm:$0xf]  ;;  %v5152_v48 = vld [vmem:[#allocation5 + $0x250] sm:$0xf] }
 0x11d   :  { %8514 = vst [vmem:[#allocation96_spill] sm:$0xff] %v6449_v50  ;;  %1713 = vmatpush.bf16.msra.mxu2 %v6445_v0  ;;  %1726 = vmatpush.bf16.msra.mxu3 %v6447_v62  ;;  %v6467_v50 = vor.u32 %v5574_v38, %v5218_v33  ;;  %v5186_v8 = vld [vmem:[#allocation5 + $0x2b0] sm:$0xf0]  ;;  %v5498_v38 = vld [vmem:[#allocation5 + $0x6c] sm:$0xf0]  ;;  %v6481_v33 = vor.u32 %v5502_v6, %v4930_v31 }
 0x11e   :  { %8515 = vst [vmem:[#allocation97_spill] sm:$0xff] %v6451_v10  ;;  %v6465_v10 = vor.u32 %v5510_v29, %v4962_v39  ;;  %1640 = vmatmul.bf16.vlgmr.msrb.gmra.mxu0 %v8497_v27  ;;  %1653 = vmatmul.bf16.vlgmr.msrb.gmra.mxu1 %v8497_v27  ;;  %v6475_v29 = vor.u32 %v5506_v1, %v4928_v26  ;;  %v4896_v39 = vld [vmem:[#allocation5 + $0x50] sm:$0xf]  ;;  %v5494_v54 = vld [vmem:[#allocation5 + $0x54] sm:$0xf] }
 0x11f   :  { %8516 = vst [vmem:[#allocation98_spill] sm:$0xff] %v6453_v53  ;;  %v5184_v53 = vld [vmem:[#allocation5 + $0x290] sm:$0xf]  ;;  %1666 = vmatmul.bf16.vlgmr.msrb.gmra.mxu2 %v8497_v27  ;;  %1679 = vmatmul.bf16.vlgmr.msrb.gmra.mxu3 %v8497_v27  ;;  %v6483_v62 = vor.u32 %v5566_v25, %v5186_v8  ;;  %v4898_v26 = vld [vmem:[#allocation5 + $0x70] sm:$0xf0]  ;;  %v6495_v6 = vor.u32 %v5498_v38, %v4896_v39 }
 0x120   :  { %8517 = vst [vmem:[#allocation99_spill] sm:$0xff] %v6455_v24  ;;  %v5570_v24 = vld [vmem:[#allocation5 + $0x2ac] sm:$0xf0]  ;;  %1688 = vmatpush.bf16.msra.mxu0 %v6459_v42  ;;  %1701 = vmatpush.bf16.msra.mxu1 %v6461_v59  ;;  %v5547_v39 = vld [vmem:[#allocation5 + $0x1f4] sm:$0xf0] }
 0x121   :  { %8518 = vst [vmem:[#allocation100_spill] sm:$0xff] %v6459_v42  ;;  %v6477_v61 = vor.u32 %v5570_v24, %v5184_v53  ;;  %1714 = vmatpush.bf16.msra.mxu2 %v6465_v10  ;;  %1727 = vmatpush.bf16.msra.mxu3 %v6467_v50  ;;  %v5562_v0 = vld [vmem:[#allocation5 + $0x26c] sm:$0xf0]  ;;  %v5558_v24 = vld [vmem:[#allocation5 + $0x254] sm:$0xf] }
 0x122   :  { %8519 = vst [vmem:[#allocation101_spill] sm:$0xff] %v6461_v59  ;;  %v6485_v42 = vpop.f32.mrf.mxu2  ;;  %v6487_v59 = vpop.f32.mrf.mxu3  ;;  %v5154_v53 = vld [vmem:[#allocation5 + $0x270] sm:$0xf0]  ;;  %v6497_v31 = vor.u32 %v5562_v0, %v5152_v48  ;;  %v5490_v25 = vld [vmem:[#allocation5 + $0x2c] sm:$0xf0] }
 0x123   :  { %8520 = vst [vmem:[#allocation102_spill] sm:$0xff] %v6465_v10  ;;  %v6489_v1 = vpop.f32.mrf.mxu0  ;;  %v6491_v17 = vpop.f32.mrf.mxu1  ;;  %v4864_v10 = vld [vmem:[#allocation5 + $0x10] sm:$0xf]  ;;  %v5352_v38 = vld [vmem:[#allocation5 + $0x3d8] sm:$0xf] }
 0x124   :  { %8521 = vst [vmem:[#allocation103_spill] sm:$0xff] %v6467_v50  ;;  %1689 = vmatpush.bf16.msra.mxu0 %v6475_v29  ;;  %1702 = vmatpush.bf16.msra.mxu1 %v6477_v61  ;;  %v5120_v8 = vld [vmem:[#allocation5 + $0x210] sm:$0xf]  ;;  %v4866_v50 = vld [vmem:[#allocation5 + $0x30] sm:$0xf0] }
 0x125   :  { %8522 = vst [vmem:[#allocation104_spill] sm:$0xff] %v6475_v29  ;;  %1715 = vmatpush.bf16.msra.mxu2 %v6481_v33  ;;  %1728 = vmatpush.bf16.msra.mxu3 %v6483_v62  ;;  %v5550_v29 = vld [vmem:[#allocation5 + $0x214] sm:$0xf]  ;;  %v5611_v48 = vld [vmem:[#allocation5 + $0x3f4] sm:$0xf0] }
 0x126   :  { %8523 = vst [vmem:[#allocation105_spill] sm:$0xff] %v6477_v61  ;;  %v5096_v61 = vld [vmem:[#allocation5 + $0x1d8] sm:$0xf]  ;;  %v5543_v0 = vld [vmem:[#allocation5 + $0x1dc] sm:$0xf]  ;;  %v6515_v21 = vor.u32 %v5550_v29, %v5122_v16 }
 0x127   :  { %8524 = vst [vmem:[#allocation106_spill] sm:$0xff] %v6481_v33  ;;  %v6507_v33 = vor.u32 %v5490_v25, %v4864_v10  ;;  %v6523_v10 = vor.u32 %v5611_v48, %v5352_v38  ;;  %v5539_v25 = vld [vmem:[#allocation5 + $0x1b4] sm:$0xf0]  ;;  %v5535_v29 = vld [vmem:[#allocation5 + $0x19c] sm:$0xf] }
 0x128   :  { %8525 = vst [vmem:[#allocation107_spill] sm:$0xff] %v6483_v62  ;;  %1690 = vmatpush.bf16.msra.mxu0 %v6495_v6  ;;  %1703 = vmatpush.bf16.msra.mxu1 %v6497_v31  ;;  %v5320_v16 = vld [vmem:[#allocation5 + $0x398] sm:$0xf]  ;;  %v5322_v38 = vld [vmem:[#allocation5 + $0x3b8] sm:$0xf0] }
 0x129   :  { %8526 = vst [vmem:[#allocation108_spill] sm:$0xff] %v6485_v42  ;;  %v5554_v42 = vld [vmem:[#allocation5 + $0x22c] sm:$0xf0] }
 0x12a   :  { %8527 = vst [vmem:[#allocation109_spill] sm:$0xff] %v6487_v59  ;;  %v6501_v59 = vor.u32 %v5494_v54, %v4898_v26  ;;  %v6509_v62 = vor.u32 %v5554_v42, %v5120_v8  ;;  %v5098_v54 = vld [vmem:[#allocation5 + $0x1f8] sm:$0xf0]  ;;  %v6517_v11 = vpop.f32.mrf.mxu2  ;;  %v5064_v42 = vld [vmem:[#allocation5 + $0x198] sm:$0xf] }
 0x12b   :  { %8528 = vst [vmem:[#allocation110_spill] sm:$0xff] %v6489_v1  ;;  %v6503_v1 = vor.u32 %v5558_v24, %v5154_v53  ;;  %v5607_v26 = vld [vmem:[#allocation5 + $0x3dc] sm:$0xf]  ;;  %v6525_v8 = vpop.f32.mrf.mxu0  ;;  %v6527_v15 = vpop.f32.mrf.mxu1  ;;  %v6539_v48 = vor.u32 %v5539_v25, %v5064_v42 }
 0x12c   :  { %8529 = vst [vmem:[#allocation111_spill] sm:$0xff] %v6491_v17  ;;  %v5486_v17 = vld [vmem:[#allocation5 + $0x14] sm:$0xf]  ;;  %v5354_v24 = vld [vmem:[#allocation5 + $0x3f8] sm:$0xf0]  ;;  %1716 = vmatpush.bf16.msra.mxu2 %v6501_v59  ;;  %1691 = vmatpush.bf16.msra.mxu0 %v6507_v33 }
 0x12d   :  { %8530 = vst [vmem:[#allocation112_spill] sm:$0xff] %v6495_v6  ;;  %1729 = vmatpush.bf16.msra.mxu3 %v6503_v1  ;;  %v6513_v53 = vor.u32 %v5486_v17, %v4866_v50  ;;  %v6519_v6 = vpop.f32.mrf.mxu3  ;;  %v6531_v17 = vor.u32 %v5607_v26, %v5354_v24  ;;  %v5603_v50 = vld [vmem:[#allocation5 + $0x3b4] sm:$0xf0]  ;;  %1704 = vmatpush.bf16.msra.mxu1 %v6509_v62  ;;  %v5034_v42 = vld [vmem:[#allocation5 + $0x178] sm:$0xf0] }
 0x12e   :  { %8531 = vst [vmem:[#allocation113_spill] sm:$0xff] %v6497_v31  ;;  %v6521_v31 = vor.u32 %v5547_v39, %v5096_v61  ;;  %v5066_v61 = vld [vmem:[#allocation5 + $0x1b8] sm:$0xf0]  ;;  %v5531_v26 = vld [vmem:[#allocation5 + $0x174] sm:$0xf0] }
 0x12f   :  { %8532 = vst [vmem:[#allocation114_spill] sm:$0xff] %v6501_v59  ;;  %v6529_v59 = vor.u32 %v5543_v0, %v5098_v54  ;;  %v5599_v39 = vld [vmem:[#allocation5 + $0x39c] sm:$0xf]  ;;  %v6541_v0 = vor.u32 %v5603_v50, %v5320_v16  ;;  %v5032_v54 = vld [vmem:[#allocation5 + $0x158] sm:$0xf]  ;;  %v6545_v24 = vor.u32 %v5535_v29, %v5066_v61  ;;  %1692 = vmatmul.bf16.vlgmr.msra.gmra.mxu0 %v8497_v27 }
 0x130   :  { %8533 = vst [vmem:[#allocation115_spill] sm:$0xff] %v6503_v1  ;;  %1717 = vmatpush.bf16.msra.mxu2 %v6513_v53  ;;  %1736 = vmatpush.bf16.msrb.mxu0 %v6521_v31  ;;  %v5591_v25 = vld [vmem:[#allocation5 + $0x35c] sm:$0xf]  ;;  %v6559_v61 = vor.u32 %v5531_v26, %v5032_v54 }
 0x131   :  { %8534 = vst [vmem:[#allocation116_spill] sm:$0xff] %v6509_v62  ;;  %1730 = vmatpush.bf16.msra.mxu3 %v6515_v21  ;;  %1749 = vmatpush.bf16.msrb.mxu1 %v6523_v10  ;;  %v5290_v16 = vld [vmem:[#allocation5 + $0x378] sm:$0xf0] }
 0x132   :  { %8535 = vst [vmem:[#allocation117_spill] sm:$0xff] %v6515_v21  ;;  %1705 = vmatmul.bf16.vlgmr.msra.gmra.mxu1 %v8497_v27  ;;  %v6555_v50 = vpop.f32.mrf.mxu2  ;;  %v5519_v54 = vld [vmem:[#allocation5 + $0x11c] sm:$0xf] }
 0x133   :  { %8536 = vst [vmem:[#allocation118_spill] sm:$0xff] %v6517_v11  ;;  %v5527_v11 = vld [vmem:[#allocation5 + $0x15c] sm:$0xf]  ;;  %1718 = vmatmul.bf16.vlgmr.msra.gmra.mxu2 %v8497_v27  ;;  %v6567_v21 = vpop.f32.mrf.mxu1 }
 0x134   :  { %8537 = vst [vmem:[#allocation119_spill] sm:$0xff] %v6519_v6  ;;  %1762 = vmatpush.bf16.msrb.mxu2 %v6529_v59  ;;  %v5595_v6 = vld [vmem:[#allocation5 + $0x374] sm:$0xf0]  ;;  %1731 = vmatmul.bf16.vlgmr.msra.gmra.mxu3 %v8497_v27  ;;  %v6569_v62 = vor.u32 %v5527_v11, %v5034_v42  ;;  %v5002_v26 = vld [vmem:[#allocation5 + $0x138] sm:$0xf0] }
 0x135   :  { %8538 = vst [vmem:[#allocation120_spill] sm:$0xff] %v6523_v10  ;;  %1775 = vmatpush.bf16.msrb.mxu3 %v6531_v17  ;;  %1737 = vmatpush.bf16.msrb.mxu0 %v6539_v48  ;;  %v6557_v29 = vpop.f32.mrf.mxu3  ;;  %v6565_v10 = vpop.f32.mrf.mxu0  ;;  %v6581_v11 = vor.u32 %v5519_v54, %v5002_v26  ;;  %v4936_v54 = vld [vmem:[#allocation5 + $0x98] sm:$0xf] }
 0x136   :  { %8539 = vst [vmem:[#allocation121_spill] sm:$0xff] %v6525_v8  ;;  %v5288_v8 = vld [vmem:[#allocation5 + $0x358] sm:$0xf]  ;;  %1750 = vmatpush.bf16.msrb.mxu1 %v6541_v0 }
 0x137   :  { %8540 = vst [vmem:[#allocation122_spill] sm:$0xff] %v6527_v15  ;;  %v6547_v15 = vor.u32 %v5599_v39, %v5322_v38  ;;  %v6561_v39 = vor.u32 %v5595_v6, %v5288_v8  ;;  %v5000_v38 = vld [vmem:[#allocation5 + $0x118] sm:$0xf]  ;;  %v5583_v6 = vld [vmem:[#allocation5 + $0x31c] sm:$0xf] }
 0x138   :  { %8541 = vst [vmem:[#allocation123_spill] sm:$0xff] %v6531_v17  ;;  %v5523_v17 = vld [vmem:[#allocation5 + $0x134] sm:$0xf0]  ;;  %1763 = vmatpush.bf16.msrb.mxu2 %v6545_v24  ;;  %v5258_v8 = vld [vmem:[#allocation5 + $0x338] sm:$0xf0] }
 0x139   :  { %8542 = vst [vmem:[#allocation124_spill] sm:$0xff] %v6539_v48  ;;  %1776 = vmatpush.bf16.msrb.mxu3 %v6547_v15  ;;  %1738 = vmatpush.bf16.msrb.mxu0 %v6559_v61  ;;  %v6575_v1 = vor.u32 %v5523_v17, %v5000_v38  ;;  %v6583_v42 = vor.u32 %v5583_v6, %v5258_v8  ;;  %v5575_v48 = vld [vmem:[#allocation5 + $0x2dc] sm:$0xf]  ;;  %v5507_v26 = vld [vmem:[#allocation5 + $0xb4] sm:$0xf0] }
 0x13a   :  { %8543 = vst [vmem:[#allocation125_spill] sm:$0xff] %v6541_v0  ;;  %v6571_v0 = vor.u32 %v5591_v25, %v5290_v16  ;;  %1751 = vmatpush.bf16.msrb.mxu1 %v6561_v39  ;;  %v5224_v25 = vld [vmem:[#allocation5 + $0x2d8] sm:$0xf]  ;;  %v6587_v17 = vpop.f32.mrf.mxu2 }
 0x13b   :  { %8544 = vst [vmem:[#allocation126_spill] sm:$0xff] %v6545_v24  ;;  %v5579_v16 = vld [vmem:[#allocation5 + $0x2f4] sm:$0xf0]  ;;  %v5511_v24 = vld [vmem:[#allocation5 + $0xdc] sm:$0xf]  ;;  %v6599_v8 = vpop.f32.mrf.mxu1 }
 0x13c   :  { %8545 = vst [vmem:[#allocation127_spill] sm:$0xff] %v6547_v15  ;;  %1764 = vmatpush.bf16.msrb.mxu2 %v6569_v62  ;;  %v6593_v38 = vor.u32 %v5579_v16, %v5224_v25  ;;  %v5567_v25 = vld [vmem:[#allocation5 + $0x29c] sm:$0xf] }
 0x13d   :  { %8546 = vst [vmem:[#allocation128_spill] sm:$0xff] %v6555_v50  ;;  %v5256_v50 = vld [vmem:[#allocation5 + $0x318] sm:$0xf]  ;;  %1777 = vmatpush.bf16.msrb.mxu3 %v6571_v0  ;;  %1739 = vmatpush.bf16.msrb.mxu0 %v6575_v1  ;;  %v6597_v6 = vpop.f32.mrf.mxu0  ;;  %v5194_v16 = vld [vmem:[#allocation5 + $0x2b8] sm:$0xf0] }
 0x13e   :  { %8547 = vst [vmem:[#allocation129_spill] sm:$0xff] %v6557_v29  ;;  %v5587_v29 = vld [vmem:[#allocation5 + $0x334] sm:$0xf0] }
 0x13f   :  { %8548 = vst [vmem:[#allocation130_spill] sm:$0xff] %v6559_v61  ;;  %v6577_v15 = vor.u32 %v5587_v29, %v5256_v50  ;;  %v4970_v61 = vld [vmem:[#allocation5 + $0xf8] sm:$0xf0]  ;;  %v6589_v50 = vpop.f32.mrf.mxu3 }
 0x140   :  { %8549 = vst [vmem:[#allocation131_spill] sm:$0xff] %v6561_v39  ;;  %v5226_v39 = vld [vmem:[#allocation5 + $0x2f8] sm:$0xf0]  ;;  %1765 = vmatpush.bf16.msrb.mxu2 %v6581_v11 }
 0x141   :  { %8550 = vst [vmem:[#allocation132_spill] sm:$0xff] %v6565_v10  ;;  %v4968_v10 = vld [vmem:[#allocation5 + $0xd8] sm:$0xf]  ;;  %1752 = vmatpush.bf16.msrb.mxu1 %v6577_v15  ;;  %1778 = vmatpush.bf16.msrb.mxu3 %v6583_v42 }
 0x142   :  { %8551 = vst [vmem:[#allocation133_spill] sm:$0xff] %v6567_v21  ;;  %v5515_v21 = vld [vmem:[#allocation5 + $0xf4] sm:$0xf0] }
 0x143   :  { %8552 = vst [vmem:[#allocation134_spill] sm:$0xff] %v6569_v62  ;;  %v6591_v29 = vor.u32 %v5515_v21, %v4968_v10  ;;  %v5503_v21 = vld [vmem:[#allocation5 + $0x9c] sm:$0xf] }
 0x144   :  { %8553 = vst [vmem:[#allocation135_spill] sm:$0xff] %v6571_v0  ;;  %v6601_v0 = vor.u32 %v5511_v24, %v4970_v61  ;;  %v4938_v10 = vld [vmem:[#allocation5 + $0xb8] sm:$0xf0]  ;;  %v6615_v24 = vor.u32 %v5567_v25, %v5194_v16  ;;  %v5160_v61 = vld [vmem:[#allocation5 + $0x258] sm:$0xf]  ;;  %v6631_v16 = vpop.f32.mrf.mxu1 }
 0x145   :  { %8554 = vst [vmem:[#allocation136_spill] sm:$0xff] %v6575_v1  ;;  %1740 = vmatpush.bf16.msrb.mxu0 %v6591_v29  ;;  %1753 = vmatpush.bf16.msrb.mxu1 %v6593_v38  ;;  %v5495_v1 = vld [vmem:[#allocation5 + $0x5c] sm:$0xf]  ;;  %v6629_v25 = vpop.f32.mrf.mxu0 }
 0x146   :  { %8555 = vst [vmem:[#allocation137_spill] sm:$0xff] %v6577_v15  ;;  %v6603_v15 = vor.u32 %v5575_v48, %v5226_v39  ;;  %1766 = vmatpush.bf16.msrb.mxu2 %v6601_v0  ;;  %v6613_v48 = vor.u32 %v5503_v21, %v4938_v10  ;;  %v5563_v39 = vld [vmem:[#allocation5 + $0x274] sm:$0xf0]  ;;  %v5559_v62 = vld [vmem:[#allocation5 + $0x25c] sm:$0xf] }
 0x147   :  { %8556 = vst [vmem:[#allocation138_spill] sm:$0xff] %v6581_v11  ;;  %v6607_v11 = vor.u32 %v5507_v26, %v4936_v54  ;;  %v6625_v26 = vor.u32 %v5563_v39, %v5160_v61  ;;  %v4872_v21 = vld [vmem:[#allocation5 + $0x18] sm:$0xf]  ;;  %v5551_v61 = vld [vmem:[#allocation5 + $0x21c] sm:$0xf] }
 0x148   :  { %8557 = vst [vmem:[#allocation139_spill] sm:$0xff] %v6583_v42  ;;  %1779 = vmatpush.bf16.msrb.mxu3 %v6603_v15  ;;  %v5491_v10 = vld [vmem:[#allocation5 + $0x34] sm:$0xf0]  ;;  %v5130_v39 = vld [vmem:[#allocation5 + $0x238] sm:$0xf0] }
 0x149   :  { %8558 = vst [vmem:[#allocation140_spill] sm:$0xff] %v6587_v17  ;;  %v5192_v17 = vld [vmem:[#allocation5 + $0x298] sm:$0xf]  ;;  %1741 = vmatpush.bf16.msrb.mxu0 %v6607_v11 }
 0x14a   :  { %8559 = vst [vmem:[#allocation141_spill] sm:$0xff] %v6589_v50  ;;  %v5571_v50 = vld [vmem:[#allocation5 + $0x2b4] sm:$0xf0]  ;;  %1767 = vmatpush.bf16.msrb.mxu2 %v6613_v48 }
 0x14b   :  { %8560 = vst [vmem:[#allocation142_spill] sm:$0xff] %v6591_v29  ;;  %v6609_v42 = vor.u32 %v5571_v50, %v5192_v17  ;;  %v4906_v29 = vld [vmem:[#allocation5 + $0x78] sm:$0xf0]  ;;  %v6619_v17 = vpop.f32.mrf.mxu2  ;;  %v6621_v50 = vpop.f32.mrf.mxu3 }
 0x14c   :  { %8561 = vst [vmem:[#allocation143_spill] sm:$0xff] %v6593_v38  ;;  %v5162_v38 = vld [vmem:[#allocation5 + $0x278] sm:$0xf0]  ;;  %1780 = vmatpush.bf16.msrb.mxu3 %v6615_v24 }
 0x14d   :  { %8562 = vst [vmem:[#allocation144_spill] sm:$0xff] %v6597_v6  ;;  %v4904_v6 = vld [vmem:[#allocation5 + $0x58] sm:$0xf]  ;;  %1754 = vmatpush.bf16.msrb.mxu1 %v6609_v42 }
 0x14e   :  { %8563 = vst [vmem:[#allocation145_spill] sm:$0xff] %v6599_v8  ;;  %v5499_v8 = vld [vmem:[#allocation5 + $0x74] sm:$0xf0] }
 0x14f   :  { %8564 = vst [vmem:[#allocation146_spill] sm:$0xff] %v6603_v15  ;;  %v6623_v54 = vor.u32 %v5499_v8, %v4904_v6  ;;  %v6633_v15 = vor.u32 %v5495_v1, %v4906_v29  ;;  %v5487_v6 = vld [vmem:[#allocation5 + $0x1c] sm:$0xf]  ;;  %v6647_v1 = vor.u32 %v5551_v61, %v5130_v39 }
 0x150   :  { %8565 = vst [vmem:[#allocation147_spill] sm:$0xff] %v6609_v42  ;;  %v6635_v42 = vor.u32 %v5559_v62, %v5162_v38  ;;  %v4874_v8 = vld [vmem:[#allocation5 + $0x38] sm:$0xf0] }
 0x151   :  { %8566 = vst [vmem:[#allocation148_spill] sm:$0xff] %v6613_v48  ;;  %1742 = vmatpush.bf16.msrb.mxu0 %v6623_v54  ;;  %1755 = vmatpush.bf16.msrb.mxu1 %v6625_v26  ;;  %v6639_v48 = vor.u32 %v5491_v10, %v4872_v21  ;;  %v6645_v62 = vor.u32 %v5487_v6, %v4874_v8 }
 0x152   :  { %8567 = vst [vmem:[#allocation149_spill] sm:$0xff] %v6615_v24  ;;  %1768 = vmatpush.bf16.msrb.mxu2 %v6633_v15  ;;  %1781 = vmatpush.bf16.msrb.mxu3 %v6635_v42 }
 0x153   :  { %8568 = vst [vmem:[#allocation150_spill] sm:$0xff] %v6619_v17  ;;  %v5128_v17 = vld [vmem:[#allocation5 + $0x218] sm:$0xf]  ;;  %v6651_v29 = vpop.f32.mrf.mxu2  ;;  %v6653_v38 = vpop.f32.mrf.mxu3 }
 0x154   :  { %8569 = vst [vmem:[#allocation151_spill] sm:$0xff] %v6621_v50  ;;  %v5555_v50 = vld [vmem:[#allocation5 + $0x234] sm:$0xf0] }
 0x155   :  { %8570 = vst [vmem:[#allocation152_spill] sm:$0xff] %v6623_v54  ;;  %v6641_v24 = vor.u32 %v5555_v50, %v5128_v17  ;;  %1743 = vmatpush.bf16.msrb.mxu0 %v6639_v48  ;;  %v6657_v17 = vpop.f32.mrf.mxu0  ;;  %v6659_v50 = vpop.f32.mrf.mxu1 }
 0x156   :  { %8571 = vst [vmem:[#allocation153_spill] sm:$0xff] %v6625_v26  ;;  %1769 = vmatpush.bf16.msrb.mxu2 %v6645_v62  ;;  %1782 = vmatpush.bf16.msrb.mxu3 %v6647_v1 }
 0x157   :  { %8572 = vst [vmem:[#allocation154_spill] sm:$0xff] %v6629_v25  ;;  %1756 = vmatpush.bf16.msrb.mxu1 %v6641_v24 }
 0x158   :  { %8573 = vst [vmem:[#allocation155_spill] sm:$0xff] %v6631_v16  ;;  %1744 = vmatmul.bf16.vlgmr.msrb.gmra.mxu0 %v8497_v27 }
 0x159   :  { %8574 = vst [vmem:[#allocation156_spill] sm:$0xff] %v6633_v15  ;;  %1936 = vmatpush.bf16.msra.mxu0 %v6131_v30  ;;  %1770 = vmatmul.bf16.vlgmr.msrb.gmra.mxu2 %v8497_v27 }
 0x15a   :  { %8575 = vst [vmem:[#allocation157_spill] sm:$0xff] %v6635_v42  ;;  %1962 = vmatpush.bf16.msra.mxu2 %v6135_v36  ;;  %1757 = vmatmul.bf16.vlgmr.msrb.gmra.mxu1 %v8497_v27 }
 0x15b   :  { %8576 = vst [vmem:[#allocation158_spill] sm:$0xff] %v6639_v48  ;;  %1783 = vmatmul.bf16.vlgmr.msrb.gmra.mxu3 %v8497_v27  ;;  %1949 = vmatpush.bf16.msra.mxu1 %v6133_v35  ;;  %v6671_v21 = vpop.f32.mrf.mxu2  ;;  %v6673_v10 = vpop.f32.mrf.mxu3 }
 0x15c   :  { %8577 = vst [vmem:[#allocation159_spill] sm:$0xff] %v6641_v24  ;;  %1975 = vmatpush.bf16.msra.mxu3 %v6138_v40 }
 0x15d   :  { %8578 = vst [vmem:[#allocation160_spill] sm:$0xff] %v6645_v62  ;;  %1937 = vmatpush.bf16.msra.mxu0 %v6142_v45  ;;  %v6675_v6 = vpop.f32.mrf.mxu0  ;;  %v6677_v8 = vpop.f32.mrf.mxu1 }
 0x15e   :  { %8579 = vst [vmem:[#allocation161_spill] sm:$0xff] %v6647_v1  ;;  %1963 = vmatpush.bf16.msra.mxu2 %v6147_v52 }
 0x15f   :  { %8580 = vst [vmem:[#allocation162_spill] sm:$0xff] %v6651_v29  ;;  %1950 = vmatpush.bf16.msra.mxu1 %v6144_v47 }
 0x160   :  { %8581 = vst [vmem:[#allocation163_spill] sm:$0xff] %v6653_v38  ;;  %1976 = vmatpush.bf16.msra.mxu3 %v6149_v56 }
 0x161   :  { %8582 = vst [vmem:[#allocation164_spill] sm:$0xff] %v6657_v17  ;;  %1938 = vmatpush.bf16.msra.mxu0 %v6152_v60 }
 0x162   :  { %8583 = vst [vmem:[#allocation165_spill] sm:$0xff] %v6659_v50  ;;  %1964 = vmatpush.bf16.msra.mxu2 %v6158_v4 }
 0x163   :  { %8584 = vst [vmem:[#allocation166_spill] sm:$0xff] %v6671_v21  ;;  %1951 = vmatpush.bf16.msra.mxu1 %v6156_v3  ;;  %v6687_v27 = vpop.f32.mrf.mxu2  ;;  %v6689_v61 = vpop.f32.mrf.mxu3  ;;  %v8638_v3 = vld [vmem:[#allocation75_spill] sm:$0xff] }
 0x164   :  { %8585 = vst [vmem:[#allocation167_spill] sm:$0xff] %v6673_v10  ;;  %1977 = vmatpush.bf16.msra.mxu3 %v6161_v5 }
 0x165   :  { %8586 = vst [vmem:[#allocation168_spill] sm:$0xff] %v6675_v6  ;;  %1939 = vmatpush.bf16.msra.mxu0 %v6185_v9  ;;  %v6691_v39 = vpop.f32.mrf.mxu0  ;;  %v6693_v10 = vpop.f32.mrf.mxu1  ;;  %v8602_v6 = vld [vmem:[#allocation49_spill] sm:$0xff] }
 0x166   :  { %8587 = vst [vmem:[#allocation169_spill] sm:$0xff] %v6677_v8  ;;  %1965 = vmatpush.bf16.msra.mxu2 %v6189_v14  ;;  %v8601_v8 = vld [vmem:[#allocation47_spill] sm:$0xff] }
 0x167   :  { %8588 = vst [vmem:[#allocation170_spill] sm:$0xff] %v6687_v27  ;;  %1952 = vmatpush.bf16.msra.mxu1 %v6187_v13  ;;  %v8600_v27 = vld [vmem:[#allocation48_spill] sm:$0xff]  ;;  %v8637_v13 = vld [vmem:[#allocation74_spill] sm:$0xff] }
 0x168   :  { %8589 = vst [vmem:[#allocation171_spill] sm:$0xff] %v6689_v61  ;;  %1978 = vmatpush.bf16.msra.mxu3 %v6192_v18 }
 0x169   :  { %8590 = vst [vmem:[#allocation172_spill] sm:$0xff] %v6691_v39  ;;  %1940 = vmatpush.bf16.msra.mxu0 %v6196_v22 }
 0x16a   :  { %8591 = vst [vmem:[#allocation173_spill] sm:$0xff] %v6693_v10  ;;  %1966 = vmatpush.bf16.msra.mxu2 %v6201_v28 }
 0x16b   :  { %1953 = vmatpush.bf16.msra.mxu1 %v6198_v23  ;;  %v6703_v21 = vpop.f32.mrf.mxu2  ;;  %v6705_v50 = vpop.f32.mrf.mxu3 }
 0x16c   :  { %1979 = vmatpush.bf16.msra.mxu3 %v6203_v34  ;;  %8592 = vst [vmem:[#allocation174_spill] sm:$0xff] %v6703_v21  ;;  %v8604_v21 = vld [vmem:[#allocation52_spill] sm:$0xff] }
 0x16d   :  { %1941 = vmatpush.bf16.msra.mxu0 %v6206_v41  ;;  %8593 = vst [vmem:[#allocation175_spill] sm:$0xff] %v6705_v50  ;;  %v6707_v17 = vpop.f32.mrf.mxu0  ;;  %v6709_v38 = vpop.f32.mrf.mxu1  ;;  %v8603_v50 = vld [vmem:[#allocation50_spill] sm:$0xff] }
 0x16e   :  { %1967 = vmatpush.bf16.msra.mxu2 %v6212_v51  ;;  %8594 = vst [vmem:[#allocation176_spill] sm:$0xff] %v6707_v17  ;;  %v8610_v17 = vld [vmem:[#allocation53_spill] sm:$0xff] }
 0x16f   :  { %8595 = vst [vmem:[#allocation177_spill] sm:$0xff] %v6709_v38  ;;  %1954 = vmatpush.bf16.msra.mxu1 %v6210_v49  ;;  %v8609_v38 = vld [vmem:[#allocation51_spill] sm:$0xff]  ;;  %v8636_v49 = vld [vmem:[#allocation73_spill] sm:$0xff] }
 0x170   :  { %1980 = vmatpush.bf16.msra.mxu3 %v6215_v55  ;;  %v8633_v55 = vld [vmem:[#allocation70_spill] sm:$0xff] }
 0x171   :  { %1942 = vmatpush.bf16.msra.mxu0 %v6218_v58 }
 0x172   :  { %1968 = vmatpush.bf16.msra.mxu2 %v6225_v44 }
 0x173   :  { %1955 = vmatpush.bf16.msra.mxu1 %v6223_v2  ;;  %v6721_v29 = vpop.f32.mrf.mxu2  ;;  %v6723_v16 = vpop.f32.mrf.mxu3  ;;  %v8632_v2 = vld [vmem:[#allocation69_spill] sm:$0xff] }
 0x174   :  { %1981 = vmatpush.bf16.msra.mxu3 %v6228_v7  ;;  %8596 = vst [vmem:[#allocation178_spill] sm:$0xff] %v6721_v29  ;;  %v8627_v7 = vld [vmem:[#allocation66_spill] sm:$0xff] }
 0x175   :  { %1943 = vmatpush.bf16.msra.mxu0 %v6242_v12  ;;  %8597 = vst [vmem:[#allocation179_spill] sm:$0xff] %v6723_v16  ;;  %v6725_v25 = vpop.f32.mrf.mxu0  ;;  %v6727_v61 = vpop.f32.mrf.mxu1 }
 0x176   :  { %1969 = vmatpush.bf16.msra.mxu2 %v6248_v20  ;;  %8598 = vst [vmem:[#allocation180_spill] sm:$0xff] %v6725_v25  ;;  %v8612_v25 = vld [vmem:[#allocation56_spill] sm:$0xff] }
 0x177   :  { %8599 = vst [vmem:[#allocation181_spill] sm:$0xff] %v6727_v61  ;;  %1956 = vmatpush.bf16.msra.mxu1 %v6246_v19  ;;  %v8611_v61 = vld [vmem:[#allocation54_spill] sm:$0xff]  ;;  %v8626_v19 = vld [vmem:[#allocation65_spill] sm:$0xff] }
 0x178   :  { %1982 = vmatpush.bf16.msra.mxu3 %v6252_v46  ;;  %v8623_v46 = vld [vmem:[#allocation62_spill] sm:$0xff] }
 0x179   :  { %1988 = vmatpush.bf16.msrb.mxu0 %v6254_v32 }
 0x17a   :  { %2014 = vmatpush.bf16.msrb.mxu2 %v6258_v43 }
 0x17b   :  { %2001 = vmatpush.bf16.msrb.mxu1 %v6256_v37  ;;  %v6739_v10 = vpop.f32.mrf.mxu2  ;;  %v6741_v39 = vpop.f32.mrf.mxu3  ;;  %v8622_v37 = vld [vmem:[#allocation61_spill] sm:$0xff] }
 0x17c   :  { %2027 = vmatpush.bf16.msrb.mxu3 %v6262_v57  ;;  %8605 = vst [vmem:[#allocation182_spill] sm:$0xff] %v6739_v10  ;;  %v8615_v57 = vld [vmem:[#allocation58_spill] sm:$0xff]  ;;  %v8616_v10 = vld [vmem:[#allocation60_spill] sm:$0xff] }
 0x17d   :  { %1989 = vmatpush.bf16.msrb.mxu0 %v6266_v63  ;;  %8606 = vst [vmem:[#allocation183_spill] sm:$0xff] %v6741_v39  ;;  %v6743_v16 = vpop.f32.mrf.mxu0  ;;  %v6745_v29 = vpop.f32.mrf.mxu1 }
 0x17e   :  { %2015 = vmatpush.bf16.msrb.mxu2 %v8600_v27  ;;  %8607 = vst [vmem:[#allocation184_spill] sm:$0xff] %v6743_v16 }
 0x17f   :  { %2002 = vmatpush.bf16.msrb.mxu1 %v8601_v8  ;;  %8608 = vst [vmem:[#allocation185_spill] sm:$0xff] %v6745_v29  ;;  %v8614_v8 = vld [vmem:[#allocation57_spill] sm:$0xff] }
 0x180   :  { %2028 = vmatpush.bf16.msrb.mxu3 %v8602_v6  ;;  %v8613_v6 = vld [vmem:[#allocation55_spill] sm:$0xff] }
 0x181   :  { %1990 = vmatpush.bf16.msrb.mxu0 %v8603_v50 }
 0x182   :  { %2016 = vmatpush.bf16.msrb.mxu2 %v8604_v21 }
 0x183   :  { %2003 = vmatpush.bf16.msrb.mxu1 %v8609_v38  ;;  %v6755_v39 = vpop.f32.mrf.mxu2  ;;  %v6757_v16 = vpop.f32.mrf.mxu3 }
 0x184   :  { %2029 = vmatpush.bf16.msrb.mxu3 %v8610_v17  ;;  %8617 = vst [vmem:[#allocation186_spill] sm:$0xff] %v6755_v39  ;;  %v8621_v17 = vld [vmem:[#allocation59_spill] sm:$0xff]  ;;  %v8628_v39 = vld [vmem:[#allocation68_spill] sm:$0xff] }
 0x185   :  { %1991 = vmatpush.bf16.msrb.mxu0 %v8611_v61  ;;  %8618 = vst [vmem:[#allocation187_spill] sm:$0xff] %v6757_v16  ;;  %v6759_v29 = vpop.f32.mrf.mxu0  ;;  %v6761_v38 = vpop.f32.mrf.mxu1 }
 0x186   :  { %2017 = vmatpush.bf16.msrb.mxu2 %v8612_v25  ;;  %8619 = vst [vmem:[#allocation188_spill] sm:$0xff] %v6759_v29 }
 0x187   :  { %2004 = vmatpush.bf16.msrb.mxu1 %v8613_v6  ;;  %8620 = vst [vmem:[#allocation189_spill] sm:$0xff] %v6761_v38  ;;  %v8624_v6 = vld [vmem:[#allocation64_spill] sm:$0xff] }
 0x188   :  { %2030 = vmatpush.bf16.msrb.mxu3 %v8614_v8  ;;  %v8625_v8 = vld [vmem:[#allocation63_spill] sm:$0xff] }
 0x189   :  { %1992 = vmatpush.bf16.msrb.mxu0 %v8615_v57 }
 0x18a   :  { %2018 = vmatpush.bf16.msrb.mxu2 %v8616_v10 }
 0x18b   :  { %2005 = vmatpush.bf16.msrb.mxu1 %v8621_v17  ;;  %v6771_v16 = vpop.f32.mrf.mxu2  ;;  %v6773_v29 = vpop.f32.mrf.mxu3 }
 0x18c   :  { %2031 = vmatpush.bf16.msrb.mxu3 %v8622_v37  ;;  %8629 = vst [vmem:[#allocation190_spill] sm:$0xff] %v6771_v16  ;;  %v8631_v37 = vld [vmem:[#allocation67_spill] sm:$0xff] }
 0x18d   :  { %1993 = vmatpush.bf16.msrb.mxu0 %v8623_v46  ;;  %8630 = vst [vmem:[#allocation191_spill] sm:$0xff] %v6773_v29  ;;  %v6775_v38 = vpop.f32.mrf.mxu0  ;;  %v6777_v17 = vpop.f32.mrf.mxu1 }
 0x18e   :  { %2019 = vmatpush.bf16.msrb.mxu2 %v8624_v6 }
 0x18f   :  { %2006 = vmatpush.bf16.msrb.mxu1 %v8625_v8  ;;  %v8634_v8 = vld [vmem:[#allocation72_spill] sm:$0xff] }
 0x190   :  { %2032 = vmatpush.bf16.msrb.mxu3 %v8626_v19  ;;  %v8635_v19 = vld [vmem:[#allocation71_spill] sm:$0xff] }
 0x191   :  { %1994 = vmatpush.bf16.msrb.mxu0 %v8627_v7 }
 0x192   :  { %2020 = vmatpush.bf16.msrb.mxu2 %v8628_v39 }
 0x193   :  { %2007 = vmatpush.bf16.msrb.mxu1 %v8631_v37  ;;  %v6785_v34 = vpop.f32.mrf.mxu2  ;;  %v6787_v16 = vpop.f32.mrf.mxu3 }
 0x194   :  { %2033 = vmatpush.bf16.msrb.mxu3 %v8632_v2 }
 0x195   :  { %1995 = vmatpush.bf16.msrb.mxu0 %v8633_v55  ;;  %v1589_v29 = vpop.f32.mrf.mxu0  ;;  %v1602_v23 = vpop.f32.mrf.mxu1 }
 0x196   :  { %2021 = vmatpush.bf16.msrb.mxu2 %v8634_v8  ;;  %v1603_v18 = vadd.f32 %v1602_v23, %v1589_v29 }
 0x197   :  { %2008 = vmatpush.bf16.msrb.mxu1 %v8635_v19 }
 0x198   :  { %2034 = vmatpush.bf16.msrb.mxu3 %v8636_v49  ;;  %v1792_v39 = vadd.f32 %v1603_v18, %v8637_v13  ;;  %v8639_v13 = vld [vmem:[#allocation84_spill] sm:$0xff] }
 0x19a   :  { %v5358_v37 = vmul.f32 -1.442695, %v1792_v39 }
 0x19b   :  { %v1615_v2 = vpop.f32.mrf.mxu2  ;;  %v1628_v7 = vpop.f32.mrf.mxu3 }
 0x19c   :  { %5657 = vpow2.f32 %v5358_v37  ;;  %v1629_v55 = vadd.f32 %v1628_v7, %v1615_v2 }
 0x19d   :  { %v1591_v5 = vpop.f32.mrf.mxu0  ;;  %v1604_v8 = vpop.f32.mrf.mxu1 }
 0x19e   :  { %v1793_v19 = vadd.f32 %v1629_v55, %v8638_v3 }
 0x1a0   :  { %v5359_v6 = vmul.f32 -1.442695, %v1793_v19 }
 0x1a2   :  { %v5658_v49 = vpop.eup %5657  ;;  %5659 = vpow2.f32 %v5359_v6 }
 0x1a3   :  { %v1823_v46 = vadd.f32 1.0, %v5658_v49  ;;  %v1617_v56 = vpop.f32.mrf.mxu2  ;;  %v1630_v47 = vpop.f32.mrf.mxu3 }
 0x1a4   :  { %v8640_v47 = vld [vmem:[#allocation85_spill] sm:$0xff] }
 0x1a5   :  { %5661 = vrcp.f32 %v1823_v46  ;;  %v1641_v10 = vpop.f32.mrf.mxu0  ;;  %v1654_v23 = vpop.f32.mrf.mxu1  ;;  %vm1834_vm13 = vweird.f32 %v1823_v46 }
 0x1a6   :  { %v1655_v29 = vadd.f32 %v1654_v23, %v1641_v10 }
 0x1a8   :  { %v1794_v18 = vadd.f32 %v1655_v29, %v8639_v13  ;;  %v5660_v37 = vpop.eup %5659 }
 0x1a9   :  { %v1824_v39 = vadd.f32 1.0, %v5660_v37 }
 0x1aa   :  { %v5360_v57 = vmul.f32 -1.442695, %v1794_v18  ;;  %v1840_v18 = vand.u32 2147483648, %v1823_v46 }
 0x1ab   :  { %v5662_v2 = vpop.eup %5661  ;;  %5663 = vrcp.f32 %v1824_v39  ;;  %v1667_v7 = vpop.f32.mrf.mxu2  ;;  %vm1849_vm0 = vweird.f32 %v1824_v39 }
 0x1ac   :  { %v1830_v5 = vmul.f32 %v5662_v2, %v1823_v46  ;;  %v1680_v3 = vpop.f32.mrf.mxu3  ;;  %5665 = vpow2.f32 %v5360_v57  ;;  %vm1835_vm12 = vweird.f32 %v5662_v2  ;;  %v1838_v57 = vand.u32 2147483647, %v1823_v46 }
 0x1ad   :  { %v1681_v55 = vadd.f32 %v1680_v3, %v1667_v7  ;;  %v1643_v49 = vpop.f32.mrf.mxu0  ;;  %v1656_v19 = vpop.f32.mrf.mxu1  ;;  %v1855_v7 = vand.u32 2147483648, %v1824_v39  ;;  %vm1836_vm14 = vmor %vm1834_vm13, %vm1835_vm12 }
 0x1ae   :  { %v1831_v56 = vsub.f32 1.0, %v1830_v5  ;;  %vm1839_vm1 = vcmp.eq.f32.partialorder %v1838_v57, 8.507059e+37 }
 0x1af   :  { %v1795_v6 = vadd.f32 %v1681_v55, %v8640_v47  ;;  %v1853_v55 = vand.u32 2147483647, %v1824_v39 }
 0x1b0   :  { %v1832_v8 = vmul.f32 %v5662_v2, %v1831_v56  ;;  %v1841_v56 = vor.u32 1.1754944e-38, %v1840_v18 }
 0x1b1   :  { %v5664_v40 = vpop.eup %5663  ;;  %5667 = vtanh.f32 %v1795_v6  ;;  %vm1854_vm3 = vcmp.eq.f32.partialorder %v1853_v55, 8.507059e+37 }
 0x1b2   :  { %v5666_v10 = vpop.eup %5665  ;;  %v1845_v23 = vmul.f32 %v5664_v40, %v1824_v39  ;;  %v1833_v29 = vadd.f32 %v5662_v2, %v1832_v8  ;;  %vm1850_vm15 = vweird.f32 %v5664_v40 }
 0x1b3   :  { %v1825_v13 = vadd.f32 1.0, %v5666_v10  ;;  %v1669_v37 = vpop.f32.mrf.mxu2  ;;  %v1856_v10 = vor.u32 1.1754944e-38, %v1855_v7  ;;  %vm1851_vm2 = vmor %vm1849_vm0, %vm1850_vm15 }
 0x1b4   :  { %v1682_v35 = vpop.f32.mrf.mxu3  ;;  %v1846_v1 = vsub.f32 1.0, %v1845_v23  ;;  %v1837_v3 = vsel %vm1836_vm14, %v5662_v2, %v1833_v29 }
 0x1b5   :  { %5669 = vrcp.f32 %v1825_v13  ;;  %v1693_v49 = vpop.f32.mrf.mxu0  ;;  %v1706_v19 = vpop.f32.mrf.mxu1  ;;  %v1842_v35 = vsel %vm1839_vm1, %v1841_v56, %v1837_v3  ;;  %v1870_v56 = vand.u32 2147483648, %v1825_v13  ;;  %vm1864_vm5 = vweird.f32 %v1825_v13 }
 0x1b6   :  { %v1847_v5 = vmul.f32 %v5664_v40, %v1846_v1  ;;  %v1707_v47 = vadd.f32 %v1706_v19, %v1693_v49  ;;  %v1868_v19 = vand.u32 2147483647, %v1825_v13 }
 0x1b7   :  { %v5668_v6 = vpop.eup %5667 }
 0x1b8   :  { %v1848_v8 = vadd.f32 %v5664_v40, %v1847_v5  ;;  %v1801_v46 = vadd.f32 %v1707_v47, %v6775_v38  ;;  %v1923_v25 = vmul.f32 %v5668_v6, %v1842_v35  ;;  %v1871_v6 = vor.u32 1.1754944e-38, %v1870_v56 }
 0x1b9   :  { %vm1869_vm7 = vcmp.eq.f32.partialorder %v1868_v19, 8.507059e+37 }
 0x1ba   :  { %v1852_v23 = vsel %vm1851_vm2, %v5664_v40, %v1848_v8  ;;  %v5361_v2 = vmul.f32 -1.442695, %v1801_v46 }
 0x1bb   :  { %v5670_v37 = vpop.eup %5669  ;;  %v1857_v1 = vsel %vm1854_vm3, %v1856_v10, %v1852_v23  ;;  %v1719_v18 = vpop.f32.mrf.mxu2 }
 0x1bc   :  { %v1860_v29 = vmul.f32 %v5670_v37, %v1825_v13  ;;  %v1921_v24 = vmul.f32 0.0, %v1857_v1  ;;  %5671 = vpow2.f32 %v5361_v2  ;;  %v1732_v49 = vpop.f32.mrf.mxu3  ;;  %vm1865_vm4 = vweird.f32 %v5670_v37 }
 0x1bd   :  { %v1733_v5 = vadd.f32 %v1732_v49, %v1719_v18  ;;  %v1695_v7 = vpop.f32.mrf.mxu0  ;;  %v1708_v3 = vpop.f32.mrf.mxu1  ;;  %vm1866_vm6 = vmor %vm1864_vm5, %vm1865_vm4  ;;  %v8643_v49 = vld [vmem:[#allocation80_spill] sm:$0xff] }
 0x1be   :  { %v1861_v39 = vsub.f32 1.0, %v1860_v29  ;;  %v6794_v57 = vadd.f32 %v1923_v25, %v1921_v24  ;;  %v8642_v29 = vld [vmem:[#allocation78_spill] sm:$0xff] }
 0x1bf   :  { %v1802_v40 = vadd.f32 %v1733_v5, %v6777_v17 }
 0x1c0   :  { %v1862_v38 = vmul.f32 %v5670_v37, %v1861_v39  ;;  %5673 = vtanh.f32 %v6794_v57  ;;  %v8644_v39 = vld [vmem:[#allocation82_spill] sm:$0xff] }
 0x1c1   :  { %v5362_v47 = vmul.f32 -1.442695, %v1802_v40  ;;  %v8645_v40 = vld [vmem:[#allocation88_spill] sm:$0xff] }
 0x1c2   :  { %v1863_v55 = vadd.f32 %v5670_v37, %v1862_v38  ;;  %v5672_v8 = vpop.eup %5671 }
 0x1c3   :  { %5675 = vpow2.f32 %v5362_v47  ;;  %v6798_v25 = vadd.f32 1.0, %v5672_v8  ;;  %v1721_v35 = vpop.f32.mrf.mxu2 }
 0x1c4   :  { %v1867_v10 = vsel %vm1866_vm6, %v5670_v37, %v1863_v55  ;;  %v1734_v46 = vpop.f32.mrf.mxu3  ;;  %v8641_v37 = vld [vmem:[#allocation76_spill] sm:$0xff]  ;;  %v8646_v55 = vld [vmem:[#allocation90_spill] sm:$0xff] }
 0x1c5   :  { %v1872_v24 = vsel %vm1869_vm7, %v1871_v6, %v1867_v10  ;;  %5677 = vrcp.f32 %v6798_v25  ;;  %v8648_v35 = vld [vmem:[#allocation94_spill] sm:$0xff]  ;;  %vm1879_vm11 = vweird.f32 %v6798_v25 }
 0x1c6   :  { %v5674_v23 = vpop.eup %5673 }
 0x1c7   :  { %v1929_v1 = vmul.f32 %v5674_v23, %v1872_v24  ;;  %v8647_v24 = vld [vmem:[#allocation92_spill] sm:$0xff] }
 0x1c9   :  { %1931 = vst [vmem:[%s8158_s5] sm:$0xff] %v1929_v1  ;;  %v6803_v17 = vpack.c.bf16 %v1929_v1, %v1929_v1  ;;  %v5676_v13 = vpop.eup %5675 }
 0x1ca   :  { %v1827_v2 = vadd.f32 1.0, %v5676_v13 }
 0x1cb   :  { %1944 = vmatmul.bf16.vlgmr.msra.gmra.mxu0 %v6803_v17  ;;  %1970 = vmatmul.bf16.vlgmr.msra.gmra.mxu2 %v6803_v17  ;;  %v5678_v18 = vpop.eup %5677 }
 0x1cc   :  { %2040 = vmatpush.bf16.msra.mxu0 %v8641_v37  ;;  %2066 = vmatpush.bf16.msra.mxu2 %v8642_v29  ;;  %5679 = vrcp.f32 %v1827_v2  ;;  %v1875_v5 = vmul.f32 %v5678_v18, %v6798_v25  ;;  %vm1880_vm9 = vweird.f32 %v5678_v18  ;;  %vm1894_vm10 = vweird.f32 %v1827_v2 }
 0x1cd   :  { %vm1881_vm13 = vmor %vm1879_vm11, %vm1880_vm9 }
 0x1ce   :  { %v1876_v47 = vsub.f32 1.0, %v1875_v5  ;;  %v8649_v5 = vld [vmem:[#allocation100_spill] sm:$0xff] }
 0x1d0   :  { %2041 = vmatpush.bf16.msra.mxu0 %v8643_v49  ;;  %2067 = vmatpush.bf16.msra.mxu2 %v8644_v39  ;;  %v1877_v13 = vmul.f32 %v5678_v18, %v1876_v47  ;;  %v1885_v47 = vand.u32 2147483648, %v6798_v25 }
 0x1d2   :  { %v5680_v7 = vpop.eup %5679 }
 0x1d3   :  { %v1890_v56 = vmul.f32 %v5680_v7, %v1827_v2  ;;  %vm1895_vm8 = vweird.f32 %v5680_v7 }
 0x1d4   :  { %2042 = vmatpush.bf16.msra.mxu0 %v8645_v40  ;;  %2068 = vmatpush.bf16.msra.mxu2 %v8646_v55  ;;  %vm1896_vm12 = vmor %vm1894_vm10, %vm1895_vm8 }
 0x1d5   :  { %v1745_v3 = vpop.f32.mrf.mxu0  ;;  %v1891_v8 = vsub.f32 1.0, %v1890_v56 }
 0x1d7   :  { %v1758_v19 = vpop.f32.mrf.mxu1  ;;  %v1892_v46 = vmul.f32 %v5680_v7, %v1891_v8  ;;  %v1900_v8 = vand.u32 2147483648, %v1827_v2 }
 0x1d8   :  { %v1759_v38 = vadd.f32 %v1758_v19, %v1745_v3  ;;  %2043 = vmatpush.bf16.msra.mxu0 %v8647_v24  ;;  %2069 = vmatpush.bf16.msra.mxu2 %v8648_v35  ;;  %v8653_v35 = vld [vmem:[#allocation112_spill] sm:$0xff] }
 0x1da   :  { %v1803_v6 = vadd.f32 %v1759_v38, %v6785_v34  ;;  %v8650_v34 = vld [vmem:[#allocation102_spill] sm:$0xff]  ;;  %v1893_v38 = vadd.f32 %v5680_v7, %v1892_v46  ;;  %v1901_v46 = vor.u32 1.1754944e-38, %v1900_v8 }
 0x1db   :  { %1996 = vmatmul.bf16.vlgmr.msrb.gmra.mxu0 %v6803_v17  ;;  %2022 = vmatmul.bf16.vlgmr.msrb.gmra.mxu2 %v6803_v17  ;;  %v8656_v8 = vld [vmem:[#allocation126_spill] sm:$0xff] }
 0x1dc   :  { %v5363_v10 = vmul.f32 -1.442695, %v1803_v6  ;;  %v1771_v23 = vpop.f32.mrf.mxu2  ;;  %2044 = vmatpush.bf16.msra.mxu0 %v8649_v5  ;;  %2070 = vmatpush.bf16.msra.mxu2 %v8650_v34  ;;  %v1878_v6 = vadd.f32 %v5678_v18, %v1877_v13 }
 0x1dd   :  { %v1747_v3 = vpop.f32.mrf.mxu0 }
 0x1de   :  { %5681 = vpow2.f32 %v5363_v10  ;;  %v1784_v1 = vpop.f32.mrf.mxu3  ;;  %v1898_v10 = vand.u32 2147483647, %v1827_v2  ;;  %v8651_v3 = vld [vmem:[#allocation104_spill] sm:$0xff]  ;;  %v1882_v13 = vsel %vm1881_vm13, %v5678_v18, %v1878_v6  ;;  %v1886_v2 = vor.u32 1.1754944e-38, %v1885_v47 }
 0x1df   :  { %v1785_v39 = vadd.f32 %v1784_v1, %v1771_v23  ;;  %v1760_v19 = vpop.f32.mrf.mxu1  ;;  %v1883_v1 = vand.u32 2147483647, %v6798_v25  ;;  %v8654_v25 = vld [vmem:[#allocation114_spill] sm:$0xff] }
 0x1e0   :  { %2045 = vmatpush.bf16.msra.mxu0 %v8651_v3  ;;  %v8652_v19 = vld [vmem:[#allocation106_spill] sm:$0xff]  ;;  %vm1899_vm14 = vcmp.eq.f32.partialorder %v1898_v10, 8.507059e+37 }
 0x1e1   :  { %v1804_v56 = vadd.f32 %v1785_v39, %v6787_v16  ;;  %2071 = vmatpush.bf16.msra.mxu2 %v8652_v19  ;;  %v1897_v39 = vsel %vm1896_vm12, %v5680_v7, %v1893_v38  ;;  %vm1884_vm15 = vcmp.eq.f32.partialorder %v1883_v1, 8.507059e+37  ;;  %v8658_v1 = vld [vmem:[#allocation134_spill] sm:$0xff] }
 0x1e2   :  { %v1887_v3 = vsel %vm1884_vm15, %v1886_v2, %v1882_v13  ;;  %v8659_v13 = vld [vmem:[#allocation136_spill] sm:$0xff]  ;;  %v8660_v2 = vld [vmem:[#allocation138_spill] sm:$0xff] }
 0x1e3   :  { %5683 = vtanh.f32 %v1804_v56  ;;  %v1902_v56 = vsel %vm1899_vm14, %v1901_v46, %v1897_v39 }
 0x1e4   :  { %v5682_v23 = vpop.eup %5681  ;;  %v1773_v34 = vpop.f32.mrf.mxu2  ;;  %2046 = vmatpush.bf16.msra.mxu0 %v8653_v35  ;;  %v1922_v19 = vmul.f32 0.0, %v1902_v56  ;;  %v8661_v56 = vld [vmem:[#allocation77_spill] sm:$0xff] }
 0x1e5   :  { %v1828_v16 = vadd.f32 1.0, %v5682_v23  ;;  %2072 = vmatpush.bf16.msra.mxu2 %v8654_v25  ;;  %v8657_v23 = vld [vmem:[#allocation130_spill] sm:$0xff] }
 0x1e6   :  { %v1786_v5 = vpop.f32.mrf.mxu3 }
 0x1e7   :  { %5685 = vrcp.f32 %v1828_v16  ;;  %v1915_v38 = vand.u32 2147483648, %v1828_v16  ;;  %vm1909_vm1 = vweird.f32 %v1828_v16 }
 0x1e8   :  { %2047 = vmatpush.bf16.msra.mxu0 %v6507_v33 }
 0x1e9   :  { %v5684_v24 = vpop.eup %5683  ;;  %2073 = vmatpush.bf16.msra.mxu2 %v6513_v53  ;;  %v1916_v10 = vor.u32 1.1754944e-38, %v1915_v38  ;;  %v8665_v38 = vld [vmem:[#allocation83_spill] sm:$0xff] }
 0x1ea   :  { %v1924_v55 = vmul.f32 %v5684_v24, %v1887_v3  ;;  %v8655_v24 = vld [vmem:[#allocation124_spill] sm:$0xff] }
 0x1eb   :  { %2048 = vmatmul.bf16.vlgmr.msra.gmra.mxu0 %v6803_v17 }
 0x1ec   :  { %v6832_v7 = vadd.f32 %v1924_v55, %v1922_v19  ;;  %2092 = vmatpush.bf16.msrb.mxu0 %v6521_v31  ;;  %2074 = vmatmul.bf16.vlgmr.msra.gmra.mxu2 %v6803_v17  ;;  %v1913_v55 = vand.u32 2147483647, %v1828_v16 }
 0x1ed   :  { %v5686_v18 = vpop.eup %5685  ;;  %2118 = vmatpush.bf16.msrb.mxu2 %v6529_v59 }
 0x1ee   :  { %v1905_v5 = vmul.f32 %v5686_v18, %v1828_v16  ;;  %5687 = vtanh.f32 %v6832_v7  ;;  %vm1910_vm0 = vweird.f32 %v5686_v18  ;;  %vm1914_vm3 = vcmp.eq.f32.partialorder %v1913_v55, 8.507059e+37  ;;  %v8667_v55 = vld [vmem:[#allocation89_spill] sm:$0xff] }
 0x1ef   :  { %vm1911_vm2 = vmor %vm1909_vm1, %vm1910_vm0 }
 0x1f0   :  { %v1906_v34 = vsub.f32 1.0, %v1905_v5  ;;  %2093 = vmatpush.bf16.msrb.mxu0 %v8655_v24  ;;  %v8663_v5 = vld [vmem:[#allocation142_spill] sm:$0xff] }
 0x1f1   :  { %2119 = vmatpush.bf16.msrb.mxu2 %v8656_v8 }
 0x1f2   :  { %v1907_v6 = vmul.f32 %v5686_v18, %v1906_v34  ;;  %v8664_v34 = vld [vmem:[#allocation81_spill] sm:$0xff] }
 0x1f4   :  { %v1908_v47 = vadd.f32 %v5686_v18, %v1907_v6  ;;  %2094 = vmatpush.bf16.msrb.mxu0 %v8657_v23  ;;  %v5688_v19 = vpop.eup %5687  ;;  %v8666_v6 = vld [vmem:[#allocation148_spill] sm:$0xff] }
 0x1f5   :  { %2120 = vmatpush.bf16.msrb.mxu2 %v8658_v1 }
 0x1f6   :  { %v1912_v3 = vsel %vm1911_vm2, %v5686_v18, %v1908_v47  ;;  %v8662_v18 = vld [vmem:[#allocation79_spill] sm:$0xff] }
 0x1f7   :  { %v1917_v39 = vsel %vm1914_vm3, %v1916_v10, %v1912_v3  ;;  %v8668_v47 = vld [vmem:[#allocation91_spill] sm:$0xff]  ;;  %v8669_v10 = vld [vmem:[#allocation93_spill] sm:$0xff] }
 0x1f8   :  { %v1930_v46 = vmul.f32 %v5688_v19, %v1917_v39  ;;  %2095 = vmatpush.bf16.msrb.mxu0 %v8659_v13  ;;  %v8670_v3 = vld [vmem:[#allocation95_spill] sm:$0xff]  ;;  %v8671_v19 = vld [vmem:[#allocation101_spill] sm:$0xff] }
 0x1f9   :  { %2121 = vmatpush.bf16.msrb.mxu2 %v8660_v2  ;;  %v8672_v39 = vld [vmem:[#allocation103_spill] sm:$0xff] }
 0x1fa   :  { %5364 = vst [vmem:[%s8158_s5 + $0x78] sm:$0xff] %v1930_v46  ;;  %v6848_v16 = vpack.c.bf16 %v1930_v46, %v1930_v46  ;;  %v8673_v46 = vld [vmem:[#allocation105_spill] sm:$0xff] }
 0x1fc   :  { %1957 = vmatmul.bf16.vlgmr.msra.gmra.mxu1 %v6848_v16  ;;  %1983 = vmatmul.bf16.vlgmr.msra.gmra.mxu3 %v6848_v16 }
 0x1fd   :  { %2053 = vmatpush.bf16.msra.mxu1 %v8661_v56  ;;  %2079 = vmatpush.bf16.msra.mxu3 %v8662_v18 }
 0x1fe   :  { %2096 = vmatpush.bf16.msrb.mxu0 %v8663_v5  ;;  %2122 = vmatpush.bf16.msrb.mxu2 %v6601_v0 }
 0x201   :  { %2054 = vmatpush.bf16.msra.mxu1 %v8664_v34  ;;  %2080 = vmatpush.bf16.msra.mxu3 %v8665_v38 }
 0x202   :  { %2097 = vmatpush.bf16.msrb.mxu0 %v6607_v11  ;;  %2123 = vmatpush.bf16.msrb.mxu2 %v8666_v6 }
 0x205   :  { %2055 = vmatpush.bf16.msra.mxu1 %v8667_v55  ;;  %2081 = vmatpush.bf16.msra.mxu3 %v8668_v47 }
 0x206   :  { %2098 = vmatpush.bf16.msrb.mxu0 %v6623_v54  ;;  %2124 = vmatpush.bf16.msrb.mxu2 %v6633_v15 }
 0x209   :  { %2056 = vmatpush.bf16.msra.mxu1 %v8669_v10  ;;  %2082 = vmatpush.bf16.msra.mxu3 %v8670_v3 }
 0x20a   :  { %2099 = vmatpush.bf16.msrb.mxu0 %v6639_v48  ;;  %2125 = vmatpush.bf16.msrb.mxu2 %v6645_v62 }
 0x20c   :  { %2009 = vmatmul.bf16.vlgmr.msrb.gmra.mxu1 %v6848_v16  ;;  %2035 = vmatmul.bf16.vlgmr.msrb.gmra.mxu3 %v6848_v16 }
 0x20d   :  { %2057 = vmatpush.bf16.msra.mxu1 %v8671_v19  ;;  %2083 = vmatpush.bf16.msra.mxu3 %v8672_v39  ;;  %v8676_v19 = vld [vmem:[#allocation115_spill] sm:$0xff] }
 0x20e   :  { %2294 = vmatpush.bf16.msra.mxu0 %v6131_v30  ;;  %2320 = vmatpush.bf16.msra.mxu2 %v6135_v36  ;;  %v8674_v30 = vld [vmem:[#allocation107_spill] sm:$0xff]  ;;  %v8675_v36 = vld [vmem:[#allocation113_spill] sm:$0xff] }
 0x20f   :  { %2100 = vmatmul.bf16.vlgmr.msrb.gmra.mxu0 %v6803_v17  ;;  %2126 = vmatmul.bf16.vlgmr.msrb.gmra.mxu2 %v6803_v17  ;;  %v8677_v17 = vld [vmem:[#allocation116_spill] sm:$0xff] }
 0x211   :  { %2058 = vmatpush.bf16.msra.mxu1 %v8673_v46  ;;  %2084 = vmatpush.bf16.msra.mxu3 %v8674_v30  ;;  %v8680_v46 = vld [vmem:[#allocation123_spill] sm:$0xff] }
 0x212   :  { %2295 = vmatpush.bf16.msra.mxu0 %v6142_v45  ;;  %2321 = vmatpush.bf16.msra.mxu2 %v6147_v52  ;;  %v8678_v45 = vld [vmem:[#allocation117_spill] sm:$0xff]  ;;  %v8679_v52 = vld [vmem:[#allocation120_spill] sm:$0xff] }
 0x215   :  { %2059 = vmatpush.bf16.msra.mxu1 %v8675_v36  ;;  %2085 = vmatpush.bf16.msra.mxu3 %v8676_v19  ;;  %v8681_v19 = vld [vmem:[#allocation125_spill] sm:$0xff] }
 0x216   :  { %2296 = vmatpush.bf16.msra.mxu0 %v6152_v60  ;;  %2322 = vmatpush.bf16.msra.mxu2 %v6158_v4 }
 0x219   :  { %2060 = vmatpush.bf16.msra.mxu1 %v8677_v17  ;;  %2086 = vmatpush.bf16.msra.mxu3 %v8678_v45  ;;  %v8683_v45 = vld [vmem:[#allocation131_spill] sm:$0xff] }
 0x21a   :  { %2297 = vmatpush.bf16.msra.mxu0 %v6185_v9  ;;  %2323 = vmatpush.bf16.msra.mxu2 %v6189_v14  ;;  %v8682_v9 = vld [vmem:[#allocation127_spill] sm:$0xff] }
 0x21c   :  { %2061 = vmatmul.bf16.vlgmr.msra.gmra.mxu1 %v6848_v16  ;;  %2087 = vmatmul.bf16.vlgmr.msra.gmra.mxu3 %v6848_v16 }
 0x21d   :  { %2105 = vmatpush.bf16.msrb.mxu1 %v8679_v52  ;;  %2131 = vmatpush.bf16.msrb.mxu3 %v8680_v46  ;;  %v8684_v52 = vld [vmem:[#allocation135_spill] sm:$0xff] }
 0x21e   :  { %2298 = vmatpush.bf16.msra.mxu0 %v6196_v22  ;;  %2324 = vmatpush.bf16.msra.mxu2 %v6201_v28  ;;  %v8685_v28 = vld [vmem:[#allocation137_spill] sm:$0xff]  ;;  %v8686_v22 = vld [vmem:[#allocation139_spill] sm:$0xff] }
 0x221   :  { %2106 = vmatpush.bf16.msrb.mxu1 %v8681_v19  ;;  %2132 = vmatpush.bf16.msrb.mxu3 %v8682_v9 }
 0x222   :  { %2299 = vmatpush.bf16.msra.mxu0 %v6206_v41  ;;  %2325 = vmatpush.bf16.msra.mxu2 %v6212_v51  ;;  %v8687_v51 = vld [vmem:[#allocation143_spill] sm:$0xff] }
 0x225   :  { %2107 = vmatpush.bf16.msrb.mxu1 %v8683_v45  ;;  %2133 = vmatpush.bf16.msrb.mxu3 %v8684_v52  ;;  %v8688_v45 = vld [vmem:[#allocation146_spill] sm:$0xff] }
 0x226   :  { %2300 = vmatpush.bf16.msra.mxu0 %v6218_v58  ;;  %2326 = vmatpush.bf16.msra.mxu2 %v6225_v44  ;;  %v8689_v44 = vld [vmem:[#allocation147_spill] sm:$0xff] }
 0x229   :  { %2108 = vmatpush.bf16.msrb.mxu1 %v8685_v28  ;;  %2134 = vmatpush.bf16.msrb.mxu3 %v8686_v22  ;;  %v8690_v28 = vld [vmem:[#allocation149_spill] sm:$0xff] }
 0x22a   :  { %2301 = vmatpush.bf16.msra.mxu0 %v6242_v12  ;;  %2327 = vmatpush.bf16.msra.mxu2 %v6248_v20  ;;  %v8726_v20 = vld [vmem:[#allocation59_spill] sm:$0xff] }
 0x22d   :  { %2109 = vmatpush.bf16.msrb.mxu1 %v8687_v51  ;;  %2135 = vmatpush.bf16.msrb.mxu3 %v8688_v45  ;;  %v8691_v51 = vld [vmem:[#allocation56_spill] sm:$0xff]  ;;  %v8692_v45 = vld [vmem:[#allocation159_spill] sm:$0xff] }
 0x22e   :  { %2346 = vmatpush.bf16.msrb.mxu0 %v6254_v32  ;;  %2372 = vmatpush.bf16.msrb.mxu2 %v6258_v43  ;;  %v8722_v32 = vld [vmem:[#allocation51_spill] sm:$0xff] }
 0x231   :  { %2110 = vmatpush.bf16.msrb.mxu1 %v8689_v44  ;;  %2136 = vmatpush.bf16.msrb.mxu3 %v8690_v28  ;;  %v8695_v44 = vld [vmem:[#allocation13_spill] sm:$0xff]  ;;  %v8696_v28 = vld [vmem:[#allocation58_spill] sm:$0xff] }
 0x232   :  { %2347 = vmatpush.bf16.msrb.mxu0 %v6266_v63  ;;  %2373 = vmatpush.bf16.msrb.mxu2 %v8600_v27  ;;  %v8693_v63 = vld [vmem:[#allocation161_spill] sm:$0xff]  ;;  %v8694_v27 = vld [vmem:[#allocation11_spill] sm:$0xff] }
 0x235   :  { %2111 = vmatpush.bf16.msrb.mxu1 %v6625_v26  ;;  %2137 = vmatpush.bf16.msrb.mxu3 %v6635_v42  ;;  %v8698_v42 = vld [vmem:[#allocation15_spill] sm:$0xff]  ;;  %v8707_v26 = vld [vmem:[#allocation25_spill] sm:$0xff] }
 0x236   :  { %2348 = vmatpush.bf16.msrb.mxu0 %v8603_v50  ;;  %2374 = vmatpush.bf16.msrb.mxu2 %v8604_v21  ;;  %v8697_v50 = vld [vmem:[#allocation60_spill] sm:$0xff]  ;;  %v8716_v21 = vld [vmem:[#allocation39_spill] sm:$0xff] }
 0x239   :  { %2112 = vmatpush.bf16.msrb.mxu1 %v8692_v45  ;;  %2138 = vmatpush.bf16.msrb.mxu3 %v8693_v63  ;;  %v8701_v45 = vld [vmem:[#allocation64_spill] sm:$0xff]  ;;  %v8702_v63 = vld [vmem:[#allocation19_spill] sm:$0xff] }
 0x23a   :  { %2349 = vmatpush.bf16.msrb.mxu0 %v8611_v61  ;;  %2375 = vmatpush.bf16.msrb.mxu2 %v8691_v51  ;;  %v8699_v61 = vld [vmem:[#allocation17_spill] sm:$0xff]  ;;  %v8700_v51 = vld [vmem:[#allocation62_spill] sm:$0xff] }
 0x23c   :  { %2113 = vmatmul.bf16.vlgmr.msrb.gmra.mxu1 %v6848_v16  ;;  %2139 = vmatmul.bf16.vlgmr.msrb.gmra.mxu3 %v6848_v16  ;;  %v8708_v16 = vld [vmem:[#allocation70_spill] sm:$0xff] }
 0x23d   :  { %2307 = vmatpush.bf16.msra.mxu1 %v8694_v27  ;;  %2333 = vmatpush.bf16.msra.mxu3 %v8695_v44  ;;  %v8703_v27 = vld [vmem:[#allocation21_spill] sm:$0xff]  ;;  %v8704_v44 = vld [vmem:[#allocation66_spill] sm:$0xff] }
 0x23e   :  { %2350 = vmatpush.bf16.msrb.mxu0 %v8696_v28  ;;  %2376 = vmatpush.bf16.msrb.mxu2 %v8697_v50  ;;  %v8705_v28 = vld [vmem:[#allocation68_spill] sm:$0xff]  ;;  %v8706_v50 = vld [vmem:[#allocation23_spill] sm:$0xff] }
 0x241   :  { %2308 = vmatpush.bf16.msra.mxu1 %v8698_v42  ;;  %2334 = vmatpush.bf16.msra.mxu3 %v8699_v61  ;;  %v8709_v42 = vld [vmem:[#allocation72_spill] sm:$0xff]  ;;  %v8710_v61 = vld [vmem:[#allocation27_spill] sm:$0xff] }
 0x242   :  { %2351 = vmatpush.bf16.msrb.mxu0 %v8700_v51  ;;  %2377 = vmatpush.bf16.msrb.mxu2 %v8701_v45  ;;  %v8711_v51 = vld [vmem:[#allocation29_spill] sm:$0xff]  ;;  %v8712_v45 = vld [vmem:[#allocation31_spill] sm:$0xff] }
 0x245   :  { %2309 = vmatpush.bf16.msra.mxu1 %v8702_v63  ;;  %2335 = vmatpush.bf16.msra.mxu3 %v8703_v27  ;;  %v8713_v63 = vld [vmem:[#allocation33_spill] sm:$0xff] }
 0x246   :  { %2352 = vmatpush.bf16.msrb.mxu0 %v8704_v44  ;;  %2378 = vmatpush.bf16.msrb.mxu2 %v8705_v28  ;;  %v8714_v44 = vld [vmem:[#allocation35_spill] sm:$0xff]  ;;  %v8715_v28 = vld [vmem:[#allocation37_spill] sm:$0xff] }
 0x248   :  { %v1945_v27 = vpop.f32.mrf.mxu0 }
 0x249   :  { %2310 = vmatpush.bf16.msra.mxu1 %v8706_v50  ;;  %2336 = vmatpush.bf16.msra.mxu3 %v8707_v26  ;;  %v8717_v26 = vld [vmem:[#allocation41_spill] sm:$0xff] }
 0x24a   :  { %2353 = vmatpush.bf16.msrb.mxu0 %v8708_v16  ;;  %2379 = vmatpush.bf16.msrb.mxu2 %v8709_v42  ;;  %v8718_v42 = vld [vmem:[#allocation43_spill] sm:$0xff] }
 0x24d   :  { %2311 = vmatpush.bf16.msra.mxu1 %v8710_v61  ;;  %2337 = vmatpush.bf16.msra.mxu3 %v8711_v51  ;;  %v8719_v61 = vld [vmem:[#allocation45_spill] sm:$0xff]  ;;  %v8720_v51 = vld [vmem:[#allocation47_spill] sm:$0xff] }
 0x24e   :  { %v1971_v50 = vpop.f32.mrf.mxu2 }
 0x250   :  { %v1947_v16 = vpop.f32.mrf.mxu0 }
 0x251   :  { %2312 = vmatpush.bf16.msra.mxu1 %v8712_v45  ;;  %2338 = vmatpush.bf16.msra.mxu3 %v8713_v63  ;;  %v8721_v45 = vld [vmem:[#allocation49_spill] sm:$0xff] }
 0x255   :  { %2313 = vmatpush.bf16.msra.mxu1 %v8714_v44  ;;  %2339 = vmatpush.bf16.msra.mxu3 %v8715_v28  ;;  %v8723_v44 = vld [vmem:[#allocation53_spill] sm:$0xff]  ;;  %v8724_v28 = vld [vmem:[#allocation55_spill] sm:$0xff] }
 0x256   :  { %v1973_v63 = vpop.f32.mrf.mxu2 }
 0x258   :  { %v1997_v43 = vpop.f32.mrf.mxu0 }
 0x259   :  { %2314 = vmatpush.bf16.msra.mxu1 %v8716_v21  ;;  %2340 = vmatpush.bf16.msra.mxu3 %v8717_v26  ;;  %v8725_v21 = vld [vmem:[#allocation57_spill] sm:$0xff] }
 0x25d   :  { %2359 = vmatpush.bf16.msrb.mxu1 %v8718_v42  ;;  %2385 = vmatpush.bf16.msrb.mxu3 %v8719_v61  ;;  %v8727_v42 = vld [vmem:[#allocation61_spill] sm:$0xff]  ;;  %v8728_v61 = vld [vmem:[#allocation63_spill] sm:$0xff] }
 0x25e   :  { %v2023_v26 = vpop.f32.mrf.mxu2 }
 0x260   :  { %v1999_v16 = vpop.f32.mrf.mxu0 }
 0x261   :  { %2360 = vmatpush.bf16.msrb.mxu1 %v8720_v51  ;;  %2386 = vmatpush.bf16.msrb.mxu3 %v8721_v45  ;;  %v8729_v51 = vld [vmem:[#allocation65_spill] sm:$0xff] }
 0x265   :  { %2361 = vmatpush.bf16.msrb.mxu1 %v8722_v32  ;;  %2387 = vmatpush.bf16.msrb.mxu3 %v8723_v44  ;;  %v8730_v32 = vld [vmem:[#allocation67_spill] sm:$0xff]  ;;  %v8731_v44 = vld [vmem:[#allocation69_spill] sm:$0xff] }
 0x266   :  { %v2025_v63 = vpop.f32.mrf.mxu2 }
 0x268   :  { %v6960_v45 = vpop.f32.mrf.mxu0 }
 0x269   :  { %2362 = vmatpush.bf16.msrb.mxu1 %v8724_v28  ;;  %2388 = vmatpush.bf16.msrb.mxu3 %v8725_v21  ;;  %v8732_v28 = vld [vmem:[#allocation71_spill] sm:$0xff]  ;;  %v8733_v21 = vld [vmem:[#allocation73_spill] sm:$0xff] }
 0x26d   :  { %2363 = vmatpush.bf16.msrb.mxu1 %v8726_v20  ;;  %2389 = vmatpush.bf16.msrb.mxu3 %v8727_v42 }
 0x26f   :  { %v6966_v16 = vpop.f32.mrf.mxu2 }
 0x270   :  { %v2051_v20 = vpop.f32.mrf.mxu0 }
 0x271   :  { %2364 = vmatpush.bf16.msrb.mxu1 %v8728_v61  ;;  %2390 = vmatpush.bf16.msrb.mxu3 %v8729_v51  ;;  %v8734_v61 = vld [vmem:[#allocation86_spill] sm:$0xff] }
 0x275   :  { %2365 = vmatpush.bf16.msrb.mxu1 %v8730_v32  ;;  %2391 = vmatpush.bf16.msrb.mxu3 %v8731_v44  ;;  %v8735_v32 = vld [vmem:[#allocation87_spill] sm:$0xff] }
 0x277   :  { %v2077_v22 = vpop.f32.mrf.mxu2 }
 0x279   :  { %2366 = vmatpush.bf16.msrb.mxu1 %v8732_v28  ;;  %2392 = vmatpush.bf16.msrb.mxu3 %v8733_v21  ;;  %v1958_v12 = vpop.f32.mrf.mxu1 }
 0x27a   :  { %v1959_v42 = vadd.f32 %v1958_v12, %v1945_v27  ;;  %v8736_v12 = vld [vmem:[#allocation96_spill] sm:$0xff] }
 0x27c   :  { %v2149_v58 = vadd.f32 %v1959_v42, %v8734_v61 }
 0x27e   :  { %v5365_v51 = vmul.f32 -1.442695, %v2149_v58 }
 0x27f   :  { %v1984_v63 = vpop.f32.mrf.mxu3 }
 0x280   :  { %5689 = vpow2.f32 %v5365_v51  ;;  %v1985_v52 = vadd.f32 %v1984_v63, %v1971_v50 }
 0x281   :  { %v1960_v41 = vpop.f32.mrf.mxu1 }
 0x282   :  { %v2150_v9 = vadd.f32 %v1985_v52, %v8735_v32 }
 0x284   :  { %v5366_v44 = vmul.f32 -1.442695, %v2150_v9 }
 0x286   :  { %v5690_v19 = vpop.eup %5689  ;;  %5691 = vpow2.f32 %v5366_v44 }
 0x287   :  { %v2180_v28 = vadd.f32 1.0, %v5690_v19  ;;  %v1986_v21 = vpop.f32.mrf.mxu3 }
 0x288   :  { %v8737_v21 = vld [vmem:[#allocation97_spill] sm:$0xff] }
 0x289   :  { %5693 = vrcp.f32 %v2180_v28  ;;  %v2010_v46 = vpop.f32.mrf.mxu1  ;;  %vm2191_vm5 = vweird.f32 %v2180_v28 }
 0x28a   :  { %v2011_v20 = vadd.f32 %v2010_v46, %v1997_v43 }
 0x28c   :  { %v6970_v17 = vpop.f32.mrf.mxu0  ;;  %v5692_v22 = vpop.eup %5691  ;;  %v2151_v42 = vadd.f32 %v2011_v20, %v8736_v12  ;;  %v2197_v12 = vand.u32 2147483648, %v2180_v28 }
 0x28d   :  { %v2181_v58 = vadd.f32 1.0, %v5692_v22 }
 0x28e   :  { %v5367_v27 = vmul.f32 -1.442695, %v2151_v42 }
 0x28f   :  { %v5694_v51 = vpop.eup %5693  ;;  %5695 = vrcp.f32 %v2181_v58  ;;  %v2036_v41 = vpop.f32.mrf.mxu3  ;;  %vm2206_vm8 = vweird.f32 %v2181_v58 }
 0x290   :  { %v2187_v50 = vmul.f32 %v5694_v51, %v2180_v28  ;;  %5697 = vpow2.f32 %v5367_v27  ;;  %v2037_v52 = vadd.f32 %v2036_v41, %v2023_v26  ;;  %vm2192_vm4 = vweird.f32 %v5694_v51 }
 0x291   :  { %v2012_v44 = vpop.f32.mrf.mxu1  ;;  %v2195_v26 = vand.u32 2147483647, %v2180_v28  ;;  %v2212_v27 = vand.u32 2147483648, %v2181_v58  ;;  %vm6976_vm6 = vmor %vm2191_vm5, %vm2192_vm4  ;;  %v8740_v28 = vld [vmem:[#allocation188_spill] sm:$0xff] }
 0x292   :  { %v6973_v9 = vpop.f32.mrf.mxu2  ;;  %v2188_v32 = vsub.f32 1.0, %v2187_v50  ;;  %v2152_v61 = vadd.f32 %v2037_v52, %v8737_v21  ;;  %v2210_v50 = vand.u32 2147483647, %v2181_v58 }
 0x293   :  { %vm2196_vm9 = vcmp.eq.f32.partialorder %v2195_v26, 8.507059e+37 }
 0x294   :  { %v2103_v43 = vpop.f32.mrf.mxu0  ;;  %v2189_v19 = vmul.f32 %v5694_v51, %v2188_v32  ;;  %5699 = vtanh.f32 %v2152_v61  ;;  %vm2211_vm11 = vcmp.eq.f32.partialorder %v2210_v50, 8.507059e+37 }
 0x295   :  { %v5696_v46 = vpop.eup %5695  ;;  %v2198_v43 = vor.u32 1.1754944e-38, %v2197_v12 }
 0x296   :  { %v5698_v63 = vpop.eup %5697  ;;  %v2202_v14 = vmul.f32 %v5696_v46, %v2181_v58  ;;  %v2190_v20 = vadd.f32 %v5694_v51, %v2189_v19  ;;  %vm2207_vm7 = vweird.f32 %v5696_v46 }
 0x297   :  { %v2182_v22 = vadd.f32 1.0, %v5698_v63  ;;  %v2038_v42 = vpop.f32.mrf.mxu3  ;;  %vm2208_vm10 = vmor %vm2206_vm8, %vm2207_vm7 }
 0x298   :  { %v2203_v36 = vsub.f32 1.0, %v2202_v14  ;;  %v2194_v21 = vsel %vm6976_vm6, %v5694_v51, %v2190_v20  ;;  %v2213_v42 = vor.u32 1.1754944e-38, %v2212_v27  ;;  %v8741_v27 = vld [vmem:[#allocation189_spill] sm:$0xff] }
 0x299   :  { %5701 = vrcp.f32 %v2182_v22  ;;  %v2062_v44 = vpop.f32.mrf.mxu1  ;;  %v2199_v4 = vsel %vm2196_vm9, %v2198_v43, %v2194_v21  ;;  %v2225_v50 = vand.u32 2147483647, %v2182_v22  ;;  %vm2221_vm13 = vweird.f32 %v2182_v22 }
 0x29a   :  { %v2129_v52 = vpop.f32.mrf.mxu2  ;;  %v2204_v32 = vmul.f32 %v5696_v46, %v2203_v36  ;;  %v2063_v61 = vadd.f32 %v2062_v44, %v6960_v45  ;;  %v5700_v63 = vpop.eup %5699  ;;  %v2227_v44 = vand.u32 2147483648, %v2182_v22 }
 0x29b   :  { %v2280_v45 = vmul.f32 %v5700_v63, %v2199_v4  ;;  %vm2226_vm15 = vcmp.eq.f32.partialorder %v2225_v50, 8.507059e+37 }
 0x29c   :  { %v2205_v14 = vadd.f32 %v5696_v46, %v2204_v32  ;;  %v2158_v19 = vadd.f32 %v2063_v61, %v8740_v28 }
 0x29e   :  { %v2209_v60 = vsel %vm2208_vm10, %v5696_v46, %v2205_v14  ;;  %v5368_v52 = vmul.f32 -1.442695, %v2158_v19 }
 0x29f   :  { %v5702_v36 = vpop.eup %5701  ;;  %v2214_v30 = vsel %vm2211_vm11, %v2213_v42, %v2209_v60  ;;  %v2088_v39 = vpop.f32.mrf.mxu3 }
 0x2a0   :  { %v2217_v41 = vmul.f32 %v5702_v36, %v2182_v22  ;;  %v2278_v51 = vmul.f32 %v2214_v30, %v6794_v57  ;;  %5703 = vpow2.f32 %v5368_v52  ;;  %v2089_v58 = vadd.f32 %v2088_v39, %v6966_v16  ;;  %v8742_v52 = vld [vmem:[#allocation82_spill] sm:$0xff] }
 0x2a1   :  { %v2064_v20 = vpop.f32.mrf.mxu1  ;;  %vm2222_vm12 = vweird.f32 %v5702_v36  ;;  %v2228_v30 = vor.u32 1.1754944e-38, %v2227_v44  ;;  %v8744_v44 = vld [vmem:[#allocation190_spill] sm:$0xff] }
 0x2a2   :  { %v2218_v12 = vsub.f32 1.0, %v2217_v41  ;;  %v6986_v26 = vadd.f32 %v2280_v45, %v2278_v51  ;;  %v2159_v32 = vadd.f32 %v2089_v58, %v8741_v27  ;;  %vm2223_vm14 = vmor %vm2221_vm13, %vm2222_vm12  ;;  %v8743_v20 = vld [vmem:[#allocation90_spill] sm:$0xff] }
 0x2a4   :  { %v2219_v46 = vmul.f32 %v5702_v36, %v2218_v12  ;;  %5705 = vtanh.f32 %v6986_v26  ;;  %v5369_v60 = vmul.f32 -1.442695, %v2159_v32 }
 0x2a6   :  { %v5704_v21 = vpop.eup %5703  ;;  %v2220_v61 = vadd.f32 %v5702_v36, %v2219_v46  ;;  %5707 = vpow2.f32 %v5369_v60 }
 0x2a7   :  { %v6990_v4 = vadd.f32 1.0, %v5704_v21  ;;  %v2090_v57 = vpop.f32.mrf.mxu3  ;;  %v8745_v21 = vld [vmem:[#allocation92_spill] sm:$0xff] }
 0x2a8   :  { %v2224_v39 = vsel %vm2223_vm14, %v5702_v36, %v2220_v61  ;;  %v8746_v61 = vld [vmem:[#allocation94_spill] sm:$0xff]  ;;  %v8747_v57 = vld [vmem:[#allocation191_spill] sm:$0xff] }
 0x2a9   :  { %v2229_v16 = vsel %vm2226_vm15, %v2228_v30, %v2224_v39  ;;  %5709 = vrcp.f32 %v6990_v4  ;;  %vm2236_vm2 = vweird.f32 %v6990_v4 }
 0x2aa   :  { %v5706_v43 = vpop.eup %5705 }
 0x2ab   :  { %v2286_v14 = vmul.f32 %v5706_v43, %v2229_v16 }
 0x2ac   :  { %v5708_v28 = vpop.eup %5707 }
 0x2ad   :  { %5371 = vst [vmem:[%s8158_s5 + $0x10] sm:$0xff] %v2286_v14  ;;  %v6996_v19 = vpack.c.bf16 %v2286_v14, %v2286_v14  ;;  %v2184_v22 = vadd.f32 1.0, %v5708_v28  ;;  %v8748_v14 = vld [vmem:[#allocation100_spill] sm:$0xff]  ;;  %v8749_v28 = vld [vmem:[#allocation102_spill] sm:$0xff] }
 0x2af   :  { %2302 = vmatmul.bf16.vlgmr.msra.gmra.mxu0 %v6996_v19  ;;  %2328 = vmatmul.bf16.vlgmr.msra.gmra.mxu2 %v6996_v19  ;;  %5711 = vrcp.f32 %v2184_v22  ;;  %v5710_v63 = vpop.eup %5709  ;;  %vm2251_vm3 = vweird.f32 %v2184_v22 }
 0x2b0   :  { %2398 = vmatpush.bf16.msra.mxu0 %v8641_v37  ;;  %2424 = vmatpush.bf16.msra.mxu2 %v8642_v29  ;;  %v2232_v42 = vmul.f32 %v5710_v63, %v6990_v4  ;;  %vm2237_vm0 = vweird.f32 %v5710_v63 }
 0x2b1   :  { %vm7019_vm4 = vmor %vm2236_vm2, %vm2237_vm0 }
 0x2b2   :  { %v2233_v58 = vsub.f32 1.0, %v2232_v42  ;;  %v2257_v42 = vand.u32 2147483648, %v2184_v22 }
 0x2b4   :  { %2399 = vmatpush.bf16.msra.mxu0 %v8643_v49  ;;  %2425 = vmatpush.bf16.msra.mxu2 %v8742_v52  ;;  %v2234_v60 = vmul.f32 %v5710_v63, %v2233_v58 }
 0x2b5   :  { %v5712_v36 = vpop.eup %5711 }
 0x2b6   :  { %v2247_v51 = vmul.f32 %v5712_v36, %v2184_v22  ;;  %vm2252_vm1 = vweird.f32 %v5712_v36  ;;  %v2235_v16 = vadd.f32 %v5710_v63, %v2234_v60  ;;  %v2258_v60 = vor.u32 1.1754944e-38, %v2257_v42 }
 0x2b7   :  { %vm2253_vm5 = vmor %vm2251_vm3, %vm2252_vm1 }
 0x2b8   :  { %2400 = vmatpush.bf16.msra.mxu0 %v8645_v40  ;;  %2426 = vmatpush.bf16.msra.mxu2 %v8743_v20  ;;  %v2248_v12 = vsub.f32 1.0, %v2247_v51  ;;  %v2240_v51 = vand.u32 2147483647, %v6990_v4 }
 0x2b9   :  { %v2114_v41 = vpop.f32.mrf.mxu1 }
 0x2ba   :  { %v2115_v45 = vadd.f32 %v2114_v41, %v6970_v17  ;;  %v2249_v46 = vmul.f32 %v5712_v36, %v2248_v12  ;;  %vm2241_vm6 = vcmp.eq.f32.partialorder %v2240_v51, 8.507059e+37 }
 0x2bc   :  { %v2160_v27 = vadd.f32 %v2115_v45, %v8744_v44  ;;  %2401 = vmatpush.bf16.msra.mxu0 %v8745_v21  ;;  %2427 = vmatpush.bf16.msra.mxu2 %v8746_v61  ;;  %v2250_v43 = vadd.f32 %v5712_v36, %v2249_v46  ;;  %v2255_v45 = vand.u32 2147483647, %v2184_v22  ;;  %v2239_v44 = vsel %vm7019_vm4, %v5710_v63, %v2235_v16  ;;  %v8752_v46 = vld [vmem:[#allocation104_spill] sm:$0xff] }
 0x2be   :  { %v5370_v32 = vmul.f32 -1.442695, %v2160_v27  ;;  %v2254_v27 = vsel %vm2253_vm5, %v5712_v36, %v2250_v43  ;;  %vm2256_vm7 = vcmp.eq.f32.partialorder %v2255_v45, 8.507059e+37 }
 0x2bf   :  { %v2140_v50 = vpop.f32.mrf.mxu3  ;;  %2354 = vmatmul.bf16.vlgmr.msrb.gmra.mxu0 %v6996_v19  ;;  %2380 = vmatmul.bf16.vlgmr.msrb.gmra.mxu2 %v6996_v19  ;;  %v2259_v22 = vsel %vm2256_vm7, %v2258_v60, %v2254_v27  ;;  %v8755_v60 = vld [vmem:[#allocation12_spill] sm:$0xff] }
 0x2c0   :  { %5713 = vpow2.f32 %v5370_v32  ;;  %v2141_v30 = vadd.f32 %v2140_v50, %v6973_v9  ;;  %2402 = vmatpush.bf16.msra.mxu0 %v8748_v14  ;;  %2428 = vmatpush.bf16.msra.mxu2 %v8749_v28  ;;  %v2242_v9 = vand.u32 2147483648, %v6990_v4  ;;  %v8753_v50 = vld [vmem:[#allocation106_spill] sm:$0xff]  ;;  %v2279_v63 = vmul.f32 %v2259_v22, %v6832_v7  ;;  %v8759_v22 = vld [vmem:[#allocation16_spill] sm:$0xff] }
 0x2c1   :  { %v2116_v17 = vpop.f32.mrf.mxu1 }
 0x2c2   :  { %v2161_v39 = vadd.f32 %v2141_v30, %v8747_v57  ;;  %v2243_v30 = vor.u32 1.1754944e-38, %v2242_v9 }
 0x2c4   :  { %5715 = vtanh.f32 %v2161_v39  ;;  %2403 = vmatpush.bf16.msra.mxu0 %v8752_v46  ;;  %2429 = vmatpush.bf16.msra.mxu2 %v8753_v50  ;;  %v2244_v4 = vsel %vm2241_vm6, %v2243_v30, %v2239_v44  ;;  %v8756_v30 = vld [vmem:[#allocation101_spill] sm:$0xff] }
 0x2c6   :  { %v5714_v58 = vpop.eup %5713 }
 0x2c7   :  { %v2185_v12 = vadd.f32 1.0, %v5714_v58  ;;  %v2142_v32 = vpop.f32.mrf.mxu3 }
 0x2c8   :  { %2404 = vmatpush.bf16.msra.mxu0 %v8653_v35  ;;  %2430 = vmatpush.bf16.msra.mxu2 %v8654_v25 }
 0x2c9   :  { %5717 = vrcp.f32 %v2185_v12  ;;  %v2272_v42 = vand.u32 2147483648, %v2185_v12  ;;  %v2270_v9 = vand.u32 2147483647, %v2185_v12  ;;  %vm2266_vm9 = vweird.f32 %v2185_v12 }
 0x2ca   :  { %v5716_v17 = vpop.eup %5715 }
 0x2cb   :  { %v2281_v57 = vmul.f32 %v5716_v17, %v2244_v4  ;;  %v2273_v51 = vor.u32 1.1754944e-38, %v2272_v42  ;;  %vm2271_vm11 = vcmp.eq.f32.partialorder %v2270_v9, 8.507059e+37  ;;  %v8757_v17 = vld [vmem:[#allocation103_spill] sm:$0xff]  ;;  %v8758_v4 = vld [vmem:[#allocation14_spill] sm:$0xff]  ;;  %v8767_v9 = vld [vmem:[#allocation24_spill] sm:$0xff] }
 0x2cc   :  { %2405 = vmatpush.bf16.msra.mxu0 %v6507_v33  ;;  %2431 = vmatpush.bf16.msra.mxu2 %v6513_v53  ;;  %v8765_v42 = vld [vmem:[#allocation115_spill] sm:$0xff] }
 0x2cd   :  { %v7031_v39 = vadd.f32 %v2281_v57, %v2279_v63  ;;  %v8760_v57 = vld [vmem:[#allocation105_spill] sm:$0xff]  ;;  %v8761_v63 = vld [vmem:[#allocation107_spill] sm:$0xff] }
 0x2cf   :  { %v5718_v36 = vpop.eup %5717  ;;  %2406 = vmatmul.bf16.vlgmr.msra.gmra.mxu0 %v6996_v19  ;;  %2432 = vmatmul.bf16.vlgmr.msra.gmra.mxu2 %v6996_v19  ;;  %5719 = vtanh.f32 %v7031_v39 }
 0x2d0   :  { %v2262_v16 = vmul.f32 %v5718_v36, %v2185_v12  ;;  %2450 = vmatpush.bf16.msrb.mxu0 %v6521_v31  ;;  %2476 = vmatpush.bf16.msrb.mxu2 %v6529_v59  ;;  %vm2267_vm8 = vweird.f32 %v5718_v36  ;;  %v8754_v12 = vld [vmem:[#allocation10_spill] sm:$0xff] }
 0x2d1   :  { %vm2268_vm10 = vmor %vm2266_vm9, %vm2267_vm8 }
 0x2d2   :  { %v2263_v43 = vsub.f32 1.0, %v2262_v16  ;;  %v8763_v16 = vld [vmem:[#allocation20_spill] sm:$0xff] }
 0x2d4   :  { %v2264_v7 = vmul.f32 %v5718_v36, %v2263_v43  ;;  %2451 = vmatpush.bf16.msrb.mxu0 %v8655_v24  ;;  %2477 = vmatpush.bf16.msrb.mxu2 %v8656_v8  ;;  %v8764_v43 = vld [vmem:[#allocation113_spill] sm:$0xff] }
 0x2d5   :  { %v5720_v58 = vpop.eup %5719 }
 0x2d6   :  { %v2265_v41 = vadd.f32 %v5718_v36, %v2264_v7  ;;  %v8766_v7 = vld [vmem:[#allocation22_spill] sm:$0xff] }
 0x2d8   :  { %v2269_v45 = vsel %vm2268_vm10, %v5718_v36, %v2265_v41  ;;  %2452 = vmatpush.bf16.msrb.mxu0 %v8657_v23  ;;  %2478 = vmatpush.bf16.msrb.mxu2 %v8658_v1  ;;  %v8762_v36 = vld [vmem:[#allocation18_spill] sm:$0xff]  ;;  %v8769_v41 = vld [vmem:[#allocation117_spill] sm:$0xff] }
 0x2d9   :  { %v2274_v44 = vsel %vm2271_vm11, %v2273_v51, %v2269_v45  ;;  %v8770_v51 = vld [vmem:[#allocation120_spill] sm:$0xff]  ;;  %v8771_v45 = vld [vmem:[#allocation123_spill] sm:$0xff] }
 0x2da   :  { %v2287_v27 = vmul.f32 %v5720_v58, %v2274_v44  ;;  %v8772_v58 = vld [vmem:[#allocation26_spill] sm:$0xff]  ;;  %v8773_v44 = vld [vmem:[#allocation28_spill] sm:$0xff] }
 0x2dc   :  { %5372 = vst [vmem:[%s8158_s5 + $0x68] sm:$0xff] %v2287_v27  ;;  %v7047_v32 = vpack.c.bf16 %v2287_v27, %v2287_v27  ;;  %2453 = vmatpush.bf16.msrb.mxu0 %v8659_v13  ;;  %2479 = vmatpush.bf16.msrb.mxu2 %v8660_v2  ;;  %v8774_v27 = vld [vmem:[#allocation125_spill] sm:$0xff] }
 0x2de   :  { %2315 = vmatmul.bf16.vlgmr.msra.gmra.mxu1 %v7047_v32  ;;  %2341 = vmatmul.bf16.vlgmr.msra.gmra.mxu3 %v7047_v32 }
 0x2df   :  { %2411 = vmatpush.bf16.msra.mxu1 %v8661_v56  ;;  %2437 = vmatpush.bf16.msra.mxu3 %v8662_v18 }
 0x2e0   :  { %2454 = vmatpush.bf16.msrb.mxu0 %v8663_v5  ;;  %2480 = vmatpush.bf16.msrb.mxu2 %v6601_v0 }
 0x2e3   :  { %2412 = vmatpush.bf16.msra.mxu1 %v8664_v34  ;;  %2438 = vmatpush.bf16.msra.mxu3 %v8665_v38 }
 0x2e4   :  { %2455 = vmatpush.bf16.msrb.mxu0 %v6607_v11  ;;  %2481 = vmatpush.bf16.msrb.mxu2 %v8666_v6 }
 0x2e7   :  { %2413 = vmatpush.bf16.msra.mxu1 %v8667_v55  ;;  %2439 = vmatpush.bf16.msra.mxu3 %v8668_v47 }
 0x2e8   :  { %2456 = vmatpush.bf16.msrb.mxu0 %v6623_v54  ;;  %2482 = vmatpush.bf16.msrb.mxu2 %v6633_v15 }
 0x2eb   :  { %2414 = vmatpush.bf16.msra.mxu1 %v8669_v10  ;;  %2440 = vmatpush.bf16.msra.mxu3 %v8670_v3 }
 0x2ec   :  { %2457 = vmatpush.bf16.msrb.mxu0 %v6639_v48  ;;  %2483 = vmatpush.bf16.msrb.mxu2 %v6645_v62 }
 0x2ee   :  { %2367 = vmatmul.bf16.vlgmr.msrb.gmra.mxu1 %v7047_v32  ;;  %2393 = vmatmul.bf16.vlgmr.msrb.gmra.mxu3 %v7047_v32 }
 0x2ef   :  { %2415 = vmatpush.bf16.msra.mxu1 %v8756_v30  ;;  %2441 = vmatpush.bf16.msra.mxu3 %v8757_v17  ;;  %v8843_v30 = vld [vmem:[#allocation99_spill] sm:$0xff] }
 0x2f0   :  { %2652 = vmatpush.bf16.msra.mxu0 %v8754_v12  ;;  %2678 = vmatpush.bf16.msra.mxu2 %v8755_v60 }
 0x2f1   :  { %2458 = vmatmul.bf16.vlgmr.msrb.gmra.mxu0 %v6996_v19  ;;  %2484 = vmatmul.bf16.vlgmr.msrb.gmra.mxu2 %v6996_v19  ;;  %v8768_v19 = vld [vmem:[#allocation116_spill] sm:$0xff] }
 0x2f3   :  { %2416 = vmatpush.bf16.msra.mxu1 %v8760_v57  ;;  %2442 = vmatpush.bf16.msra.mxu3 %v8761_v63  ;;  %v8834_v63 = vld [vmem:[#allocation59_spill] sm:$0xff] }
 0x2f4   :  { %2653 = vmatpush.bf16.msra.mxu0 %v8758_v4  ;;  %2679 = vmatpush.bf16.msra.mxu2 %v8759_v22  ;;  %v8840_v57 = vld [vmem:[#allocation71_spill] sm:$0xff]  ;;  %v8842_v4 = vld [vmem:[#allocation98_spill] sm:$0xff] }
 0x2f7   :  { %2417 = vmatpush.bf16.msra.mxu1 %v8764_v43  ;;  %2443 = vmatpush.bf16.msra.mxu3 %v8765_v42  ;;  %v8783_v42 = vld [vmem:[#allocation139_spill] sm:$0xff]  ;;  %v8784_v43 = vld [vmem:[#allocation38_spill] sm:$0xff] }
 0x2f8   :  { %2654 = vmatpush.bf16.msra.mxu0 %v8762_v36  ;;  %2680 = vmatpush.bf16.msra.mxu2 %v8763_v16  ;;  %v8830_v16 = vld [vmem:[#allocation51_spill] sm:$0xff] }
 0x2f9   :  { %v8832_v36 = vld [vmem:[#allocation55_spill] sm:$0xff] }
 0x2fb   :  { %2418 = vmatpush.bf16.msra.mxu1 %v8768_v19  ;;  %2444 = vmatpush.bf16.msra.mxu3 %v8769_v41  ;;  %v8777_v19 = vld [vmem:[#allocation32_spill] sm:$0xff]  ;;  %v8778_v41 = vld [vmem:[#allocation131_spill] sm:$0xff] }
 0x2fc   :  { %2655 = vmatpush.bf16.msra.mxu0 %v8766_v7  ;;  %2681 = vmatpush.bf16.msra.mxu2 %v8767_v9  ;;  %v8775_v7 = vld [vmem:[#allocation127_spill] sm:$0xff]  ;;  %v8776_v9 = vld [vmem:[#allocation30_spill] sm:$0xff] }
 0x2fe   :  { %2419 = vmatmul.bf16.vlgmr.msra.gmra.mxu1 %v7047_v32  ;;  %2445 = vmatmul.bf16.vlgmr.msra.gmra.mxu3 %v7047_v32 }
 0x2ff   :  { %2463 = vmatpush.bf16.msrb.mxu1 %v8770_v51  ;;  %2489 = vmatpush.bf16.msrb.mxu3 %v8771_v45  ;;  %v8779_v51 = vld [vmem:[#allocation135_spill] sm:$0xff]  ;;  %v8780_v45 = vld [vmem:[#allocation34_spill] sm:$0xff] }
 0x300   :  { %2656 = vmatpush.bf16.msra.mxu0 %v8772_v58  ;;  %2682 = vmatpush.bf16.msra.mxu2 %v8773_v44  ;;  %v8781_v58 = vld [vmem:[#allocation36_spill] sm:$0xff]  ;;  %v8782_v44 = vld [vmem:[#allocation137_spill] sm:$0xff] }
 0x303   :  { %2464 = vmatpush.bf16.msrb.mxu1 %v8774_v27  ;;  %2490 = vmatpush.bf16.msrb.mxu3 %v8775_v7  ;;  %v8785_v27 = vld [vmem:[#allocation40_spill] sm:$0xff]  ;;  %v8786_v7 = vld [vmem:[#allocation42_spill] sm:$0xff] }
 0x304   :  { %2657 = vmatpush.bf16.msra.mxu0 %v8776_v9  ;;  %2683 = vmatpush.bf16.msra.mxu2 %v8777_v19  ;;  %v8787_v9 = vld [vmem:[#allocation44_spill] sm:$0xff]  ;;  %v8788_v19 = vld [vmem:[#allocation143_spill] sm:$0xff] }
 0x307   :  { %2465 = vmatpush.bf16.msrb.mxu1 %v8778_v41  ;;  %2491 = vmatpush.bf16.msrb.mxu3 %v8779_v51  ;;  %v8789_v41 = vld [vmem:[#allocation146_spill] sm:$0xff] }
 0x308   :  { %2658 = vmatpush.bf16.msra.mxu0 %v8780_v45  ;;  %2684 = vmatpush.bf16.msra.mxu2 %v8781_v58  ;;  %v8790_v51 = vld [vmem:[#allocation46_spill] sm:$0xff]  ;;  %v8791_v45 = vld [vmem:[#allocation48_spill] sm:$0xff]  ;;  %v8792_v58 = vld [vmem:[#allocation147_spill] sm:$0xff] }
 0x30b   :  { %2466 = vmatpush.bf16.msrb.mxu1 %v8782_v44  ;;  %2492 = vmatpush.bf16.msrb.mxu3 %v8783_v42  ;;  %v8793_v44 = vld [vmem:[#allocation149_spill] sm:$0xff]  ;;  %v8794_v42 = vld [vmem:[#allocation50_spill] sm:$0xff] }
 0x30c   :  { %2659 = vmatpush.bf16.msra.mxu0 %v8784_v43  ;;  %2685 = vmatpush.bf16.msra.mxu2 %v8785_v27  ;;  %v8795_v43 = vld [vmem:[#allocation52_spill] sm:$0xff]  ;;  %v8796_v27 = vld [vmem:[#allocation153_spill] sm:$0xff] }
 0x30f   :  { %2467 = vmatpush.bf16.msrb.mxu1 %v8788_v19  ;;  %2493 = vmatpush.bf16.msrb.mxu3 %v8789_v41  ;;  %v8799_v19 = vld [vmem:[#allocation56_spill] sm:$0xff]  ;;  %v8800_v41 = vld [vmem:[#allocation159_spill] sm:$0xff] }
 0x310   :  { %2704 = vmatpush.bf16.msrb.mxu0 %v8786_v7  ;;  %2730 = vmatpush.bf16.msrb.mxu2 %v8787_v9  ;;  %v8797_v7 = vld [vmem:[#allocation157_spill] sm:$0xff]  ;;  %v8798_v9 = vld [vmem:[#allocation54_spill] sm:$0xff] }
 0x313   :  { %2468 = vmatpush.bf16.msrb.mxu1 %v8792_v58  ;;  %2494 = vmatpush.bf16.msrb.mxu3 %v8793_v44  ;;  %v8803_v58 = vld [vmem:[#allocation13_spill] sm:$0xff]  ;;  %v8804_v44 = vld [vmem:[#allocation58_spill] sm:$0xff] }
 0x314   :  { %2705 = vmatpush.bf16.msrb.mxu0 %v8790_v51  ;;  %2731 = vmatpush.bf16.msrb.mxu2 %v8791_v45  ;;  %v8801_v51 = vld [vmem:[#allocation161_spill] sm:$0xff]  ;;  %v8802_v45 = vld [vmem:[#allocation11_spill] sm:$0xff] }
 0x317   :  { %2469 = vmatpush.bf16.msrb.mxu1 %v8796_v27  ;;  %2495 = vmatpush.bf16.msrb.mxu3 %v8797_v7  ;;  %v8806_v7 = vld [vmem:[#allocation15_spill] sm:$0xff]  ;;  %v8815_v27 = vld [vmem:[#allocation25_spill] sm:$0xff] }
 0x318   :  { %2706 = vmatpush.bf16.msrb.mxu0 %v8794_v42  ;;  %2732 = vmatpush.bf16.msrb.mxu2 %v8795_v43  ;;  %v8805_v42 = vld [vmem:[#allocation60_spill] sm:$0xff]  ;;  %v8824_v43 = vld [vmem:[#allocation39_spill] sm:$0xff] }
 0x31b   :  { %2470 = vmatpush.bf16.msrb.mxu1 %v8800_v41  ;;  %2496 = vmatpush.bf16.msrb.mxu3 %v8801_v51  ;;  %v8809_v41 = vld [vmem:[#allocation64_spill] sm:$0xff]  ;;  %v8810_v51 = vld [vmem:[#allocation19_spill] sm:$0xff] }
 0x31c   :  { %2707 = vmatpush.bf16.msrb.mxu0 %v8798_v9  ;;  %2733 = vmatpush.bf16.msrb.mxu2 %v8799_v19  ;;  %v8807_v9 = vld [vmem:[#allocation17_spill] sm:$0xff]  ;;  %v8808_v19 = vld [vmem:[#allocation62_spill] sm:$0xff] }
 0x31e   :  { %2471 = vmatmul.bf16.vlgmr.msrb.gmra.mxu1 %v7047_v32  ;;  %2497 = vmatmul.bf16.vlgmr.msrb.gmra.mxu3 %v7047_v32  ;;  %v8816_v32 = vld [vmem:[#allocation70_spill] sm:$0xff] }
 0x31f   :  { %2665 = vmatpush.bf16.msra.mxu1 %v8802_v45  ;;  %2691 = vmatpush.bf16.msra.mxu3 %v8803_v58  ;;  %v8811_v45 = vld [vmem:[#allocation21_spill] sm:$0xff]  ;;  %v8812_v58 = vld [vmem:[#allocation66_spill] sm:$0xff] }
 0x320   :  { %2708 = vmatpush.bf16.msrb.mxu0 %v8804_v44  ;;  %2734 = vmatpush.bf16.msrb.mxu2 %v8805_v42  ;;  %v8813_v44 = vld [vmem:[#allocation68_spill] sm:$0xff]  ;;  %v8814_v42 = vld [vmem:[#allocation23_spill] sm:$0xff] }
 0x323   :  { %2666 = vmatpush.bf16.msra.mxu1 %v8806_v7  ;;  %2692 = vmatpush.bf16.msra.mxu3 %v8807_v9  ;;  %v8817_v7 = vld [vmem:[#allocation72_spill] sm:$0xff]  ;;  %v8818_v9 = vld [vmem:[#allocation27_spill] sm:$0xff] }
 0x324   :  { %2709 = vmatpush.bf16.msrb.mxu0 %v8808_v19  ;;  %2735 = vmatpush.bf16.msrb.mxu2 %v8809_v41  ;;  %v8819_v19 = vld [vmem:[#allocation29_spill] sm:$0xff]  ;;  %v8820_v41 = vld [vmem:[#allocation31_spill] sm:$0xff] }
 0x327   :  { %2667 = vmatpush.bf16.msra.mxu1 %v8810_v51  ;;  %2693 = vmatpush.bf16.msra.mxu3 %v8811_v45  ;;  %v8821_v51 = vld [vmem:[#allocation33_spill] sm:$0xff] }
 0x328   :  { %2710 = vmatpush.bf16.msrb.mxu0 %v8812_v58  ;;  %2736 = vmatpush.bf16.msrb.mxu2 %v8813_v44  ;;  %v8822_v58 = vld [vmem:[#allocation35_spill] sm:$0xff]  ;;  %v8823_v44 = vld [vmem:[#allocation37_spill] sm:$0xff] }
 0x32b   :  { %2668 = vmatpush.bf16.msra.mxu1 %v8814_v42  ;;  %2694 = vmatpush.bf16.msra.mxu3 %v8815_v27  ;;  %v8825_v27 = vld [vmem:[#allocation41_spill] sm:$0xff] }
 0x32c   :  { %2711 = vmatpush.bf16.msrb.mxu0 %v8816_v32  ;;  %2737 = vmatpush.bf16.msrb.mxu2 %v8817_v7  ;;  %v2303_v45 = vpop.f32.mrf.mxu0  ;;  %v8826_v32 = vld [vmem:[#allocation43_spill] sm:$0xff]  ;;  %v8827_v7 = vld [vmem:[#allocation45_spill] sm:$0xff] }
 0x32f   :  { %2669 = vmatpush.bf16.msra.mxu1 %v8818_v9  ;;  %2695 = vmatpush.bf16.msra.mxu3 %v8819_v19  ;;  %v8828_v19 = vld [vmem:[#allocation47_spill] sm:$0xff] }
 0x332   :  { %v2329_v42 = vpop.f32.mrf.mxu2 }
 0x333   :  { %2670 = vmatpush.bf16.msra.mxu1 %v8820_v41  ;;  %2696 = vmatpush.bf16.msra.mxu3 %v8821_v51  ;;  %v8829_v41 = vld [vmem:[#allocation49_spill] sm:$0xff] }
 0x334   :  { %v2305_v9 = vpop.f32.mrf.mxu0 }
 0x337   :  { %2671 = vmatpush.bf16.msra.mxu1 %v8822_v58  ;;  %2697 = vmatpush.bf16.msra.mxu3 %v8823_v44  ;;  %v8831_v58 = vld [vmem:[#allocation53_spill] sm:$0xff] }
 0x33a   :  { %v2331_v51 = vpop.f32.mrf.mxu2 }
 0x33b   :  { %2672 = vmatpush.bf16.msra.mxu1 %v8824_v43  ;;  %2698 = vmatpush.bf16.msra.mxu3 %v8825_v27  ;;  %v8833_v43 = vld [vmem:[#allocation57_spill] sm:$0xff] }
 0x33c   :  { %v2355_v44 = vpop.f32.mrf.mxu0 }
 0x33f   :  { %2717 = vmatpush.bf16.msrb.mxu1 %v8826_v32  ;;  %2743 = vmatpush.bf16.msrb.mxu3 %v8827_v7  ;;  %v8835_v32 = vld [vmem:[#allocation61_spill] sm:$0xff]  ;;  %v8836_v7 = vld [vmem:[#allocation63_spill] sm:$0xff] }
 0x342   :  { %v2381_v27 = vpop.f32.mrf.mxu2 }
 0x343   :  { %2718 = vmatpush.bf16.msrb.mxu1 %v8828_v19  ;;  %2744 = vmatpush.bf16.msrb.mxu3 %v8829_v41  ;;  %v8837_v19 = vld [vmem:[#allocation65_spill] sm:$0xff]  ;;  %v8838_v41 = vld [vmem:[#allocation67_spill] sm:$0xff] }
 0x344   :  { %v2357_v9 = vpop.f32.mrf.mxu0 }
 0x347   :  { %2719 = vmatpush.bf16.msrb.mxu1 %v8830_v16  ;;  %2745 = vmatpush.bf16.msrb.mxu3 %v8831_v58  ;;  %v8839_v16 = vld [vmem:[#allocation69_spill] sm:$0xff] }
 0x34a   :  { %v2383_v51 = vpop.f32.mrf.mxu2 }
 0x34b   :  { %2720 = vmatpush.bf16.msrb.mxu1 %v8832_v36  ;;  %2746 = vmatpush.bf16.msrb.mxu3 %v8833_v43  ;;  %v8841_v36 = vld [vmem:[#allocation73_spill] sm:$0xff] }
 0x34c   :  { %v2407_v58 = vpop.f32.mrf.mxu0 }
 0x34f   :  { %2721 = vmatpush.bf16.msrb.mxu1 %v8834_v63  ;;  %2747 = vmatpush.bf16.msrb.mxu3 %v8835_v32 }
 0x352   :  { %v7165_v43 = vpop.f32.mrf.mxu2 }
 0x353   :  { %2722 = vmatpush.bf16.msrb.mxu1 %v8836_v7  ;;  %2748 = vmatpush.bf16.msrb.mxu3 %v8837_v19 }
 0x354   :  { %v2409_v63 = vpop.f32.mrf.mxu0 }
 0x357   :  { %2723 = vmatpush.bf16.msrb.mxu1 %v8838_v41  ;;  %2749 = vmatpush.bf16.msrb.mxu3 %v8839_v16 }
 0x35a   :  { %v2435_v9 = vpop.f32.mrf.mxu2 }
 0x35b   :  { %2724 = vmatpush.bf16.msrb.mxu1 %v8840_v57  ;;  %2750 = vmatpush.bf16.msrb.mxu3 %v8841_v36  ;;  %v2316_v22 = vpop.f32.mrf.mxu1 }
 0x35c   :  { %v2317_v32 = vadd.f32 %v2316_v22, %v2303_v45  ;;  %v8844_v45 = vld [vmem:[#allocation108_spill] sm:$0xff] }
 0x35e   :  { %v2507_v7 = vadd.f32 %v2317_v32, %v8842_v4 }
 0x360   :  { %v5373_v17 = vmul.f32 -1.442695, %v2507_v7 }
 0x361   :  { %v2342_v19 = vpop.f32.mrf.mxu3 }
 0x362   :  { %5721 = vpow2.f32 %v5373_v17  ;;  %v2343_v51 = vadd.f32 %v2342_v19, %v2329_v42 }
 0x363   :  { %v2318_v41 = vpop.f32.mrf.mxu1 }
 0x364   :  { %v2508_v16 = vadd.f32 %v2343_v51, %v8843_v30 }
 0x366   :  { %v5374_v60 = vmul.f32 -1.442695, %v2508_v16 }
 0x368   :  { %v5722_v12 = vpop.eup %5721  ;;  %5723 = vpow2.f32 %v5374_v60 }
 0x369   :  { %v2538_v57 = vadd.f32 1.0, %v5722_v12  ;;  %v2344_v36 = vpop.f32.mrf.mxu3 }
 0x36a   :  { %v8845_v36 = vld [vmem:[#allocation109_spill] sm:$0xff] }
 0x36b   :  { %5725 = vrcp.f32 %v2538_v57  ;;  %v2368_v62 = vpop.f32.mrf.mxu1  ;;  %vm2549_vm13 = vweird.f32 %v2538_v57 }
 0x36c   :  { %v2369_v63 = vadd.f32 %v2368_v62, %v2355_v44 }
 0x36e   :  { %v7169_v48 = vpop.f32.mrf.mxu0  ;;  %v5724_v22 = vpop.eup %5723  ;;  %v2509_v4 = vadd.f32 %v2369_v63, %v8844_v45  ;;  %v2555_v45 = vand.u32 2147483648, %v2538_v57 }
 0x36f   :  { %v2539_v7 = vadd.f32 1.0, %v5724_v22 }
 0x370   :  { %v5375_v32 = vmul.f32 -1.442695, %v2509_v4 }
 0x371   :  { %v5726_v17 = vpop.eup %5725  ;;  %5727 = vrcp.f32 %v2539_v7  ;;  %v2394_v42 = vpop.f32.mrf.mxu3  ;;  %vm2564_vm0 = vweird.f32 %v2539_v7 }
 0x372   :  { %v2545_v19 = vmul.f32 %v5726_v17, %v2538_v57  ;;  %5729 = vpow2.f32 %v5375_v32  ;;  %v2395_v30 = vadd.f32 %v2394_v42, %v2381_v27  ;;  %vm2550_vm12 = vweird.f32 %v5726_v17 }
 0x373   :  { %v2370_v12 = vpop.f32.mrf.mxu1  ;;  %v2553_v27 = vand.u32 2147483647, %v2538_v57  ;;  %v2570_v32 = vand.u32 2147483648, %v2539_v7  ;;  %vm7175_vm14 = vmor %vm2549_vm13, %vm2550_vm12  ;;  %v8848_v57 = vld [vmem:[#allocation184_spill] sm:$0xff] }
 0x374   :  { %v7172_v16 = vpop.f32.mrf.mxu2  ;;  %v2546_v60 = vsub.f32 1.0, %v2545_v19  ;;  %v2510_v41 = vadd.f32 %v2395_v30, %v8845_v36  ;;  %v2568_v19 = vand.u32 2147483647, %v2539_v7 }
 0x375   :  { %vm2554_vm1 = vcmp.eq.f32.partialorder %v2553_v27, 8.507059e+37 }
 0x376   :  { %v2461_v62 = vpop.f32.mrf.mxu0  ;;  %v2547_v44 = vmul.f32 %v5726_v17, %v2546_v60  ;;  %5731 = vtanh.f32 %v2510_v41  ;;  %v2556_v41 = vor.u32 1.1754944e-38, %v2555_v45  ;;  %vm2569_vm3 = vcmp.eq.f32.partialorder %v2568_v19, 8.507059e+37 }
 0x377   :  { %v5728_v9 = vpop.eup %5727 }
 0x378   :  { %v5730_v51 = vpop.eup %5729  ;;  %v2560_v3 = vmul.f32 %v5728_v9, %v2539_v7  ;;  %v2548_v63 = vadd.f32 %v5726_v17, %v2547_v44  ;;  %vm2565_vm15 = vweird.f32 %v5728_v9 }
 0x379   :  { %v2540_v22 = vadd.f32 1.0, %v5730_v51  ;;  %v2396_v4 = vpop.f32.mrf.mxu3  ;;  %vm2566_vm2 = vmor %vm2564_vm0, %vm2565_vm15 }
 0x37a   :  { %v2561_v10 = vsub.f32 1.0, %v2560_v3  ;;  %v2552_v36 = vsel %vm7175_vm14, %v5726_v17, %v2548_v63  ;;  %v2571_v4 = vor.u32 1.1754944e-38, %v2570_v32  ;;  %v8849_v32 = vld [vmem:[#allocation185_spill] sm:$0xff] }
 0x37b   :  { %5733 = vrcp.f32 %v2540_v22  ;;  %v2420_v12 = vpop.f32.mrf.mxu1  ;;  %v2557_v15 = vsel %vm2554_vm1, %v2556_v41, %v2552_v36  ;;  %v2585_v42 = vand.u32 2147483648, %v2540_v22  ;;  %v2583_v19 = vand.u32 2147483647, %v2540_v22 }
 0x37c   :  { %v2487_v30 = vpop.f32.mrf.mxu2  ;;  %v2562_v60 = vmul.f32 %v5728_v9, %v2561_v10  ;;  %v2421_v62 = vadd.f32 %v2420_v12, %v2407_v58  ;;  %v5732_v51 = vpop.eup %5731  ;;  %vm2579_vm5 = vweird.f32 %v2540_v22 }
 0x37d   :  { %v2638_v58 = vmul.f32 %v5732_v51, %v2557_v15  ;;  %v2586_v15 = vor.u32 1.1754944e-38, %v2585_v42  ;;  %vm2584_vm7 = vcmp.eq.f32.partialorder %v2583_v19, 8.507059e+37  ;;  %v8851_v19 = vld [vmem:[#allocation187_spill] sm:$0xff] }
 0x37e   :  { %v2563_v3 = vadd.f32 %v5728_v9, %v2562_v60  ;;  %v2516_v44 = vadd.f32 %v2421_v62, %v8848_v57 }
 0x380   :  { %v2567_v54 = vsel %vm2566_vm2, %v5728_v9, %v2563_v3  ;;  %v5376_v30 = vmul.f32 -1.442695, %v2516_v44 }
 0x381   :  { %v5734_v47 = vpop.eup %5733  ;;  %v2572_v10 = vsel %vm2569_vm3, %v2571_v4, %v2567_v54  ;;  %v2446_v55 = vpop.f32.mrf.mxu3 }
 0x382   :  { %v2575_v6 = vmul.f32 %v5734_v47, %v2540_v22  ;;  %v2636_v17 = vmul.f32 %v2572_v10, %v6986_v26  ;;  %5735 = vpow2.f32 %v5376_v30  ;;  %v2447_v7 = vadd.f32 %v2446_v55, %v7165_v43 }
 0x383   :  { %v2422_v63 = vpop.f32.mrf.mxu1  ;;  %vm2580_vm4 = vweird.f32 %v5734_v47 }
 0x384   :  { %v2576_v45 = vsub.f32 1.0, %v2575_v6  ;;  %v7184_v27 = vadd.f32 %v2638_v58, %v2636_v17  ;;  %v2517_v12 = vadd.f32 %v2447_v7, %v8849_v32  ;;  %vm2581_vm6 = vmor %vm2579_vm5, %vm2580_vm4  ;;  %v8850_v7 = vld [vmem:[#allocation186_spill] sm:$0xff] }
 0x386   :  { %v2577_v9 = vmul.f32 %v5734_v47, %v2576_v45  ;;  %5737 = vtanh.f32 %v7184_v27  ;;  %v5377_v54 = vmul.f32 -1.442695, %v2517_v12 }
 0x388   :  { %v5736_v60 = vpop.eup %5735  ;;  %v2578_v36 = vadd.f32 %v5734_v47, %v2577_v9  ;;  %5739 = vpow2.f32 %v5377_v54 }
 0x389   :  { %v7188_v26 = vadd.f32 1.0, %v5736_v60  ;;  %v2448_v6 = vpop.f32.mrf.mxu3 }
 0x38a   :  { %v2582_v55 = vsel %vm2581_vm6, %v5734_v47, %v2578_v36  ;;  %v8856_v6 = vld [vmem:[#allocation91_spill] sm:$0xff] }
 0x38b   :  { %v2587_v43 = vsel %vm2584_vm7, %v2586_v15, %v2582_v55  ;;  %5741 = vrcp.f32 %v7188_v26  ;;  %vm2594_vm10 = vweird.f32 %v7188_v26  ;;  %v2598_v55 = vand.u32 2147483647, %v7188_v26 }
 0x38c   :  { %v5738_v62 = vpop.eup %5737 }
 0x38d   :  { %v2644_v41 = vmul.f32 %v5738_v62, %v2587_v43  ;;  %vm2599_vm14 = vcmp.eq.f32.partialorder %v2598_v55, 8.507059e+37  ;;  %v8857_v55 = vld [vmem:[#allocation152_spill] sm:$0xff] }
 0x38e   :  { %v5740_v3 = vpop.eup %5739 }
 0x38f   :  { %5379 = vst [vmem:[%s8158_s5 + $0x20] sm:$0xff] %v2644_v41  ;;  %v7194_v57 = vpack.c.bf16 %v2644_v41, %v2644_v41  ;;  %v2542_v22 = vadd.f32 1.0, %v5740_v3 }
 0x391   :  { %2660 = vmatmul.bf16.vlgmr.msra.gmra.mxu0 %v7194_v57  ;;  %2686 = vmatmul.bf16.vlgmr.msra.gmra.mxu2 %v7194_v57  ;;  %5743 = vrcp.f32 %v2542_v22  ;;  %v5742_v47 = vpop.eup %5741  ;;  %v2615_v15 = vand.u32 2147483648, %v2542_v22  ;;  %vm2609_vm11 = vweird.f32 %v2542_v22  ;;  %v2613_v43 = vand.u32 2147483647, %v2542_v22 }
 0x392   :  { %2756 = vmatpush.bf16.msra.mxu0 %v8641_v37  ;;  %2782 = vmatpush.bf16.msra.mxu2 %v8642_v29  ;;  %v2590_v44 = vmul.f32 %v5742_v47, %v7188_v26  ;;  %vm2595_vm8 = vweird.f32 %v5742_v47 }
 0x393   :  { %vm7217_vm12 = vmor %vm2594_vm10, %vm2595_vm8  ;;  %vm2614_vm15 = vcmp.eq.f32.partialorder %v2613_v43, 8.507059e+37  ;;  %v8858_v43 = vld [vmem:[#allocation156_spill] sm:$0xff] }
 0x394   :  { %v2591_v17 = vsub.f32 1.0, %v2590_v44 }
 0x396   :  { %2757 = vmatpush.bf16.msra.mxu0 %v8643_v49  ;;  %2783 = vmatpush.bf16.msra.mxu2 %v8742_v52  ;;  %v2592_v12 = vmul.f32 %v5742_v47, %v2591_v17 }
 0x397   :  { %v5744_v51 = vpop.eup %5743 }
 0x398   :  { %v2605_v30 = vmul.f32 %v5744_v51, %v2542_v22  ;;  %vm2610_vm9 = vweird.f32 %v5744_v51  ;;  %v2593_v60 = vadd.f32 %v5742_v47, %v2592_v12 }
 0x399   :  { %vm2611_vm13 = vmor %vm2609_vm11, %vm2610_vm9 }
 0x39a   :  { %2758 = vmatpush.bf16.msra.mxu0 %v8645_v40  ;;  %2784 = vmatpush.bf16.msra.mxu2 %v8743_v20  ;;  %v2606_v58 = vsub.f32 1.0, %v2605_v30  ;;  %v2597_v3 = vsel %vm7217_vm12, %v5742_v47, %v2593_v60  ;;  %v2616_v30 = vor.u32 1.1754944e-38, %v2615_v15  ;;  %v8854_v15 = vld [vmem:[#allocation148_spill] sm:$0xff] }
 0x39b   :  { %v2472_v4 = vpop.f32.mrf.mxu1 }
 0x39c   :  { %v2473_v10 = vadd.f32 %v2472_v4, %v7169_v48  ;;  %v2607_v42 = vmul.f32 %v5744_v51, %v2606_v58 }
 0x39e   :  { %v2518_v63 = vadd.f32 %v2473_v10, %v8850_v7  ;;  %2759 = vmatpush.bf16.msra.mxu0 %v8745_v21  ;;  %2785 = vmatpush.bf16.msra.mxu2 %v8746_v61  ;;  %v2608_v36 = vadd.f32 %v5744_v51, %v2607_v42 }
 0x3a0   :  { %v5378_v45 = vmul.f32 -1.442695, %v2518_v63  ;;  %v2612_v44 = vsel %vm2611_vm13, %v5744_v51, %v2608_v36 }
 0x3a1   :  { %v2498_v32 = vpop.f32.mrf.mxu3  ;;  %2712 = vmatmul.bf16.vlgmr.msrb.gmra.mxu0 %v7194_v57  ;;  %2738 = vmatmul.bf16.vlgmr.msrb.gmra.mxu2 %v7194_v57  ;;  %v2617_v22 = vsel %vm2614_vm15, %v2616_v30, %v2612_v44  ;;  %v8862_v44 = vld [vmem:[#allocation160_spill] sm:$0xff] }
 0x3a2   :  { %5745 = vpow2.f32 %v5378_v45  ;;  %v2499_v9 = vadd.f32 %v2498_v32, %v7172_v16  ;;  %2760 = vmatpush.bf16.msra.mxu0 %v8748_v14  ;;  %2786 = vmatpush.bf16.msra.mxu2 %v8749_v28  ;;  %v2600_v16 = vand.u32 2147483648, %v7188_v26  ;;  %v2637_v47 = vmul.f32 %v2617_v22, %v7031_v39  ;;  %v8864_v30 = vld [vmem:[#allocation12_spill] sm:$0xff] }
 0x3a3   :  { %v2474_v48 = vpop.f32.mrf.mxu1  ;;  %v8868_v22 = vld [vmem:[#allocation16_spill] sm:$0xff] }
 0x3a4   :  { %v2519_v54 = vadd.f32 %v2499_v9, %v8851_v19  ;;  %v2601_v10 = vor.u32 1.1754944e-38, %v2600_v16  ;;  %v8855_v16 = vld [vmem:[#allocation89_spill] sm:$0xff] }
 0x3a6   :  { %5747 = vtanh.f32 %v2519_v54  ;;  %2761 = vmatpush.bf16.msra.mxu0 %v8752_v46  ;;  %2787 = vmatpush.bf16.msra.mxu2 %v8753_v50  ;;  %v2602_v26 = vsel %vm2599_vm14, %v2601_v10, %v2597_v3  ;;  %v8861_v3 = vld [vmem:[#allocation158_spill] sm:$0xff]  ;;  %v8865_v10 = vld [vmem:[#allocation101_spill] sm:$0xff] }
 0x3a8   :  { %v5746_v62 = vpop.eup %5745 }
 0x3a9   :  { %v2543_v41 = vadd.f32 1.0, %v5746_v62  ;;  %v2500_v4 = vpop.f32.mrf.mxu3  ;;  %v8859_v62 = vld [vmem:[#allocation93_spill] sm:$0xff] }
 0x3aa   :  { %2762 = vmatpush.bf16.msra.mxu0 %v8653_v35  ;;  %2788 = vmatpush.bf16.msra.mxu2 %v8654_v25  ;;  %v8863_v4 = vld [vmem:[#allocation10_spill] sm:$0xff] }
 0x3ab   :  { %5749 = vrcp.f32 %v2543_v41  ;;  %v2630_v42 = vand.u32 2147483648, %v2543_v41  ;;  %v2628_v32 = vand.u32 2147483647, %v2543_v41  ;;  %vm2624_vm1 = vweird.f32 %v2543_v41 }
 0x3ac   :  { %v5748_v17 = vpop.eup %5747 }
 0x3ad   :  { %v2639_v58 = vmul.f32 %v5748_v17, %v2602_v26  ;;  %v2631_v9 = vor.u32 1.1754944e-38, %v2630_v42  ;;  %vm2629_vm3 = vcmp.eq.f32.partialorder %v2628_v32, 8.507059e+37  ;;  %v8866_v17 = vld [vmem:[#allocation103_spill] sm:$0xff]  ;;  %v8867_v26 = vld [vmem:[#allocation14_spill] sm:$0xff]  ;;  %v8876_v32 = vld [vmem:[#allocation24_spill] sm:$0xff] }
 0x3ae   :  { %2763 = vmatpush.bf16.msra.mxu0 %v6507_v33  ;;  %2789 = vmatpush.bf16.msra.mxu2 %v6513_v53  ;;  %v8874_v42 = vld [vmem:[#allocation115_spill] sm:$0xff] }
 0x3af   :  { %v7229_v7 = vadd.f32 %v2639_v58, %v2637_v47  ;;  %v8869_v58 = vld [vmem:[#allocation105_spill] sm:$0xff]  ;;  %v8870_v47 = vld [vmem:[#allocation107_spill] sm:$0xff] }
 0x3b1   :  { %v5750_v51 = vpop.eup %5749  ;;  %2764 = vmatmul.bf16.vlgmr.msra.gmra.mxu0 %v7194_v57  ;;  %2790 = vmatmul.bf16.vlgmr.msra.gmra.mxu2 %v7194_v57  ;;  %5751 = vtanh.f32 %v7229_v7 }
 0x3b2   :  { %v2620_v63 = vmul.f32 %v5750_v51, %v2543_v41  ;;  %2808 = vmatpush.bf16.msrb.mxu0 %v6521_v31  ;;  %2834 = vmatpush.bf16.msrb.mxu2 %v6529_v59  ;;  %vm2625_vm0 = vweird.f32 %v5750_v51  ;;  %v8860_v41 = vld [vmem:[#allocation95_spill] sm:$0xff] }
 0x3b3   :  { %vm2626_vm2 = vmor %vm2624_vm1, %vm2625_vm0 }
 0x3b4   :  { %v2621_v45 = vsub.f32 1.0, %v2620_v63  ;;  %v8872_v63 = vld [vmem:[#allocation20_spill] sm:$0xff] }
 0x3b6   :  { %v2622_v39 = vmul.f32 %v5750_v51, %v2621_v45  ;;  %2809 = vmatpush.bf16.msrb.mxu0 %v8655_v24  ;;  %2835 = vmatpush.bf16.msrb.mxu2 %v8656_v8  ;;  %v8873_v45 = vld [vmem:[#allocation113_spill] sm:$0xff] }
 0x3b7   :  { %v5752_v19 = vpop.eup %5751 }
 0x3b8   :  { %v2623_v12 = vadd.f32 %v5750_v51, %v2622_v39  ;;  %v8875_v39 = vld [vmem:[#allocation22_spill] sm:$0xff] }
 0x3ba   :  { %v2627_v48 = vsel %vm2626_vm2, %v5750_v51, %v2623_v12  ;;  %2810 = vmatpush.bf16.msrb.mxu0 %v8657_v23  ;;  %2836 = vmatpush.bf16.msrb.mxu2 %v8658_v1  ;;  %v8871_v51 = vld [vmem:[#allocation18_spill] sm:$0xff]  ;;  %v8878_v12 = vld [vmem:[#allocation117_spill] sm:$0xff] }
 0x3bb   :  { %v2632_v54 = vsel %vm2629_vm3, %v2631_v9, %v2627_v48  ;;  %v8879_v9 = vld [vmem:[#allocation120_spill] sm:$0xff]  ;;  %v8880_v48 = vld [vmem:[#allocation123_spill] sm:$0xff] }
 0x3bc   :  { %v2645_v60 = vmul.f32 %v5752_v19, %v2632_v54  ;;  %v8881_v19 = vld [vmem:[#allocation26_spill] sm:$0xff]  ;;  %v8882_v54 = vld [vmem:[#allocation28_spill] sm:$0xff] }
 0x3be   :  { %5380 = vst [vmem:[%s8158_s5 + $0x58] sm:$0xff] %v2645_v60  ;;  %v7245_v36 = vpack.c.bf16 %v2645_v60, %v2645_v60  ;;  %2811 = vmatpush.bf16.msrb.mxu0 %v8659_v13  ;;  %2837 = vmatpush.bf16.msrb.mxu2 %v8660_v2  ;;  %v8883_v60 = vld [vmem:[#allocation125_spill] sm:$0xff] }
 0x3c0   :  { %2673 = vmatmul.bf16.vlgmr.msra.gmra.mxu1 %v7245_v36  ;;  %2699 = vmatmul.bf16.vlgmr.msra.gmra.mxu3 %v7245_v36 }
 0x3c1   :  { %2769 = vmatpush.bf16.msra.mxu1 %v8661_v56  ;;  %2795 = vmatpush.bf16.msra.mxu3 %v8662_v18 }
 0x3c2   :  { %2812 = vmatpush.bf16.msrb.mxu0 %v8663_v5  ;;  %2838 = vmatpush.bf16.msrb.mxu2 %v6601_v0 }
 0x3c5   :  { %2770 = vmatpush.bf16.msra.mxu1 %v8664_v34  ;;  %2796 = vmatpush.bf16.msra.mxu3 %v8665_v38 }
 0x3c6   :  { %2813 = vmatpush.bf16.msrb.mxu0 %v6607_v11  ;;  %2839 = vmatpush.bf16.msrb.mxu2 %v8854_v15 }
 0x3c9   :  { %2771 = vmatpush.bf16.msra.mxu1 %v8855_v16  ;;  %2797 = vmatpush.bf16.msra.mxu3 %v8856_v6 }
 0x3ca   :  { %2814 = vmatpush.bf16.msrb.mxu0 %v8857_v55  ;;  %2840 = vmatpush.bf16.msrb.mxu2 %v8858_v43 }
 0x3cd   :  { %2772 = vmatpush.bf16.msra.mxu1 %v8859_v62  ;;  %2798 = vmatpush.bf16.msra.mxu3 %v8860_v41 }
 0x3ce   :  { %2815 = vmatpush.bf16.msrb.mxu0 %v8861_v3  ;;  %2841 = vmatpush.bf16.msrb.mxu2 %v8862_v44 }
 0x3d0   :  { %2725 = vmatmul.bf16.vlgmr.msrb.gmra.mxu1 %v7245_v36  ;;  %2751 = vmatmul.bf16.vlgmr.msrb.gmra.mxu3 %v7245_v36 }
 0x3d1   :  { %2773 = vmatpush.bf16.msra.mxu1 %v8865_v10  ;;  %2799 = vmatpush.bf16.msra.mxu3 %v8866_v17  ;;  %v8952_v10 = vld [vmem:[#allocation111_spill] sm:$0xff] }
 0x3d2   :  { %3010 = vmatpush.bf16.msra.mxu0 %v8863_v4  ;;  %3036 = vmatpush.bf16.msra.mxu2 %v8864_v30 }
 0x3d3   :  { %2816 = vmatmul.bf16.vlgmr.msrb.gmra.mxu0 %v7194_v57  ;;  %2842 = vmatmul.bf16.vlgmr.msrb.gmra.mxu2 %v7194_v57  ;;  %v8877_v57 = vld [vmem:[#allocation116_spill] sm:$0xff] }
 0x3d5   :  { %2774 = vmatpush.bf16.msra.mxu1 %v8869_v58  ;;  %2800 = vmatpush.bf16.msra.mxu3 %v8870_v47  ;;  %v8943_v47 = vld [vmem:[#allocation59_spill] sm:$0xff] }
 0x3d6   :  { %3011 = vmatpush.bf16.msra.mxu0 %v8867_v26  ;;  %3037 = vmatpush.bf16.msra.mxu2 %v8868_v22  ;;  %v8949_v58 = vld [vmem:[#allocation71_spill] sm:$0xff]  ;;  %v8951_v26 = vld [vmem:[#allocation110_spill] sm:$0xff] }
 0x3d9   :  { %2775 = vmatpush.bf16.msra.mxu1 %v8873_v45  ;;  %2801 = vmatpush.bf16.msra.mxu3 %v8874_v42  ;;  %v8892_v42 = vld [vmem:[#allocation139_spill] sm:$0xff]  ;;  %v8893_v45 = vld [vmem:[#allocation38_spill] sm:$0xff] }
 0x3da   :  { %3012 = vmatpush.bf16.msra.mxu0 %v8871_v51  ;;  %3038 = vmatpush.bf16.msra.mxu2 %v8872_v63  ;;  %v8939_v63 = vld [vmem:[#allocation51_spill] sm:$0xff] }
 0x3db   :  { %v8941_v51 = vld [vmem:[#allocation55_spill] sm:$0xff] }
 0x3dd   :  { %2776 = vmatpush.bf16.msra.mxu1 %v8877_v57  ;;  %2802 = vmatpush.bf16.msra.mxu3 %v8878_v12  ;;  %v8886_v57 = vld [vmem:[#allocation32_spill] sm:$0xff]  ;;  %v8887_v12 = vld [vmem:[#allocation131_spill] sm:$0xff] }
 0x3de   :  { %3013 = vmatpush.bf16.msra.mxu0 %v8875_v39  ;;  %3039 = vmatpush.bf16.msra.mxu2 %v8876_v32  ;;  %v8884_v39 = vld [vmem:[#allocation127_spill] sm:$0xff]  ;;  %v8885_v32 = vld [vmem:[#allocation30_spill] sm:$0xff] }
 0x3e0   :  { %2777 = vmatmul.bf16.vlgmr.msra.gmra.mxu1 %v7245_v36  ;;  %2803 = vmatmul.bf16.vlgmr.msra.gmra.mxu3 %v7245_v36 }
 0x3e1   :  { %2821 = vmatpush.bf16.msrb.mxu1 %v8879_v9  ;;  %2847 = vmatpush.bf16.msrb.mxu3 %v8880_v48  ;;  %v8888_v9 = vld [vmem:[#allocation135_spill] sm:$0xff]  ;;  %v8889_v48 = vld [vmem:[#allocation34_spill] sm:$0xff] }
 0x3e2   :  { %3014 = vmatpush.bf16.msra.mxu0 %v8881_v19  ;;  %3040 = vmatpush.bf16.msra.mxu2 %v8882_v54  ;;  %v8890_v19 = vld [vmem:[#allocation36_spill] sm:$0xff]  ;;  %v8891_v54 = vld [vmem:[#allocation137_spill] sm:$0xff] }
 0x3e5   :  { %2822 = vmatpush.bf16.msrb.mxu1 %v8883_v60  ;;  %2848 = vmatpush.bf16.msrb.mxu3 %v8884_v39  ;;  %v8894_v60 = vld [vmem:[#allocation40_spill] sm:$0xff]  ;;  %v8895_v39 = vld [vmem:[#allocation42_spill] sm:$0xff] }
 0x3e6   :  { %3015 = vmatpush.bf16.msra.mxu0 %v8885_v32  ;;  %3041 = vmatpush.bf16.msra.mxu2 %v8886_v57  ;;  %v8896_v32 = vld [vmem:[#allocation44_spill] sm:$0xff]  ;;  %v8897_v57 = vld [vmem:[#allocation143_spill] sm:$0xff] }
 0x3e9   :  { %2823 = vmatpush.bf16.msrb.mxu1 %v8887_v12  ;;  %2849 = vmatpush.bf16.msrb.mxu3 %v8888_v9  ;;  %v8898_v12 = vld [vmem:[#allocation146_spill] sm:$0xff] }
 0x3ea   :  { %3016 = vmatpush.bf16.msra.mxu0 %v8889_v48  ;;  %3042 = vmatpush.bf16.msra.mxu2 %v8890_v19  ;;  %v8899_v9 = vld [vmem:[#allocation46_spill] sm:$0xff]  ;;  %v8900_v48 = vld [vmem:[#allocation48_spill] sm:$0xff]  ;;  %v8901_v19 = vld [vmem:[#allocation147_spill] sm:$0xff] }
 0x3ed   :  { %2824 = vmatpush.bf16.msrb.mxu1 %v8891_v54  ;;  %2850 = vmatpush.bf16.msrb.mxu3 %v8892_v42  ;;  %v8902_v54 = vld [vmem:[#allocation149_spill] sm:$0xff]  ;;  %v8903_v42 = vld [vmem:[#allocation50_spill] sm:$0xff] }
 0x3ee   :  { %3017 = vmatpush.bf16.msra.mxu0 %v8893_v45  ;;  %3043 = vmatpush.bf16.msra.mxu2 %v8894_v60  ;;  %v8904_v45 = vld [vmem:[#allocation52_spill] sm:$0xff]  ;;  %v8905_v60 = vld [vmem:[#allocation153_spill] sm:$0xff] }
 0x3f1   :  { %2825 = vmatpush.bf16.msrb.mxu1 %v8897_v57  ;;  %2851 = vmatpush.bf16.msrb.mxu3 %v8898_v12  ;;  %v8908_v57 = vld [vmem:[#allocation56_spill] sm:$0xff]  ;;  %v8909_v12 = vld [vmem:[#allocation159_spill] sm:$0xff] }
 0x3f2   :  { %3062 = vmatpush.bf16.msrb.mxu0 %v8895_v39  ;;  %3088 = vmatpush.bf16.msrb.mxu2 %v8896_v32  ;;  %v8906_v39 = vld [vmem:[#allocation157_spill] sm:$0xff]  ;;  %v8907_v32 = vld [vmem:[#allocation54_spill] sm:$0xff] }
 0x3f5   :  { %2826 = vmatpush.bf16.msrb.mxu1 %v8901_v19  ;;  %2852 = vmatpush.bf16.msrb.mxu3 %v8902_v54  ;;  %v8912_v19 = vld [vmem:[#allocation13_spill] sm:$0xff]  ;;  %v8913_v54 = vld [vmem:[#allocation58_spill] sm:$0xff] }
 0x3f6   :  { %3063 = vmatpush.bf16.msrb.mxu0 %v8899_v9  ;;  %3089 = vmatpush.bf16.msrb.mxu2 %v8900_v48  ;;  %v8910_v9 = vld [vmem:[#allocation161_spill] sm:$0xff]  ;;  %v8911_v48 = vld [vmem:[#allocation11_spill] sm:$0xff] }
 0x3f9   :  { %2827 = vmatpush.bf16.msrb.mxu1 %v8905_v60  ;;  %2853 = vmatpush.bf16.msrb.mxu3 %v8906_v39  ;;  %v8915_v39 = vld [vmem:[#allocation15_spill] sm:$0xff]  ;;  %v8924_v60 = vld [vmem:[#allocation25_spill] sm:$0xff] }
 0x3fa   :  { %3064 = vmatpush.bf16.msrb.mxu0 %v8903_v42  ;;  %3090 = vmatpush.bf16.msrb.mxu2 %v8904_v45  ;;  %v8914_v42 = vld [vmem:[#allocation60_spill] sm:$0xff]  ;;  %v8933_v45 = vld [vmem:[#allocation39_spill] sm:$0xff] }
 0x3fd   :  { %2828 = vmatpush.bf16.msrb.mxu1 %v8909_v12  ;;  %2854 = vmatpush.bf16.msrb.mxu3 %v8910_v9  ;;  %v8918_v12 = vld [vmem:[#allocation64_spill] sm:$0xff]  ;;  %v8919_v9 = vld [vmem:[#allocation19_spill] sm:$0xff] }
 0x3fe   :  { %3065 = vmatpush.bf16.msrb.mxu0 %v8907_v32  ;;  %3091 = vmatpush.bf16.msrb.mxu2 %v8908_v57  ;;  %v8916_v32 = vld [vmem:[#allocation17_spill] sm:$0xff]  ;;  %v8917_v57 = vld [vmem:[#allocation62_spill] sm:$0xff] }
 0x400   :  { %2829 = vmatmul.bf16.vlgmr.msrb.gmra.mxu1 %v7245_v36  ;;  %2855 = vmatmul.bf16.vlgmr.msrb.gmra.mxu3 %v7245_v36  ;;  %v8925_v36 = vld [vmem:[#allocation70_spill] sm:$0xff] }
 0x401   :  { %3023 = vmatpush.bf16.msra.mxu1 %v8911_v48  ;;  %3049 = vmatpush.bf16.msra.mxu3 %v8912_v19  ;;  %v8920_v48 = vld [vmem:[#allocation21_spill] sm:$0xff]  ;;  %v8921_v19 = vld [vmem:[#allocation66_spill] sm:$0xff] }
 0x402   :  { %3066 = vmatpush.bf16.msrb.mxu0 %v8913_v54  ;;  %3092 = vmatpush.bf16.msrb.mxu2 %v8914_v42  ;;  %v8922_v54 = vld [vmem:[#allocation68_spill] sm:$0xff]  ;;  %v8923_v42 = vld [vmem:[#allocation23_spill] sm:$0xff] }
 0x405   :  { %3024 = vmatpush.bf16.msra.mxu1 %v8915_v39  ;;  %3050 = vmatpush.bf16.msra.mxu3 %v8916_v32  ;;  %v8926_v39 = vld [vmem:[#allocation72_spill] sm:$0xff]  ;;  %v8927_v32 = vld [vmem:[#allocation27_spill] sm:$0xff] }
 0x406   :  { %3067 = vmatpush.bf16.msrb.mxu0 %v8917_v57  ;;  %3093 = vmatpush.bf16.msrb.mxu2 %v8918_v12  ;;  %v8928_v57 = vld [vmem:[#allocation29_spill] sm:$0xff]  ;;  %v8929_v12 = vld [vmem:[#allocation31_spill] sm:$0xff] }
 0x409   :  { %3025 = vmatpush.bf16.msra.mxu1 %v8919_v9  ;;  %3051 = vmatpush.bf16.msra.mxu3 %v8920_v48  ;;  %v8930_v9 = vld [vmem:[#allocation33_spill] sm:$0xff] }
 0x40a   :  { %3068 = vmatpush.bf16.msrb.mxu0 %v8921_v19  ;;  %3094 = vmatpush.bf16.msrb.mxu2 %v8922_v54  ;;  %v8931_v19 = vld [vmem:[#allocation35_spill] sm:$0xff]  ;;  %v8932_v54 = vld [vmem:[#allocation37_spill] sm:$0xff] }
 0x40d   :  { %3026 = vmatpush.bf16.msra.mxu1 %v8923_v42  ;;  %3052 = vmatpush.bf16.msra.mxu3 %v8924_v60  ;;  %v8934_v60 = vld [vmem:[#allocation41_spill] sm:$0xff] }
 0x40e   :  { %3069 = vmatpush.bf16.msrb.mxu0 %v8925_v36  ;;  %3095 = vmatpush.bf16.msrb.mxu2 %v8926_v39  ;;  %v2661_v48 = vpop.f32.mrf.mxu0  ;;  %v8935_v36 = vld [vmem:[#allocation43_spill] sm:$0xff]  ;;  %v8936_v39 = vld [vmem:[#allocation45_spill] sm:$0xff] }
 0x411   :  { %3027 = vmatpush.bf16.msra.mxu1 %v8927_v32  ;;  %3053 = vmatpush.bf16.msra.mxu3 %v8928_v57  ;;  %v8937_v57 = vld [vmem:[#allocation47_spill] sm:$0xff] }
 0x414   :  { %v2687_v42 = vpop.f32.mrf.mxu2 }
 0x415   :  { %3028 = vmatpush.bf16.msra.mxu1 %v8929_v12  ;;  %3054 = vmatpush.bf16.msra.mxu3 %v8930_v9  ;;  %v8938_v12 = vld [vmem:[#allocation49_spill] sm:$0xff] }
 0x416   :  { %v2663_v32 = vpop.f32.mrf.mxu0 }
 0x419   :  { %3029 = vmatpush.bf16.msra.mxu1 %v8931_v19  ;;  %3055 = vmatpush.bf16.msra.mxu3 %v8932_v54  ;;  %v8940_v19 = vld [vmem:[#allocation53_spill] sm:$0xff] }
 0x41c   :  { %v2689_v9 = vpop.f32.mrf.mxu2 }
 0x41d   :  { %3030 = vmatpush.bf16.msra.mxu1 %v8933_v45  ;;  %3056 = vmatpush.bf16.msra.mxu3 %v8934_v60  ;;  %v8942_v45 = vld [vmem:[#allocation57_spill] sm:$0xff] }
 0x41e   :  { %v2713_v54 = vpop.f32.mrf.mxu0 }
 0x421   :  { %3075 = vmatpush.bf16.msrb.mxu1 %v8935_v36  ;;  %3101 = vmatpush.bf16.msrb.mxu3 %v8936_v39  ;;  %v8944_v36 = vld [vmem:[#allocation61_spill] sm:$0xff]  ;;  %v8945_v39 = vld [vmem:[#allocation63_spill] sm:$0xff] }
 0x424   :  { %v2739_v60 = vpop.f32.mrf.mxu2 }
 0x425   :  { %3076 = vmatpush.bf16.msrb.mxu1 %v8937_v57  ;;  %3102 = vmatpush.bf16.msrb.mxu3 %v8938_v12  ;;  %v8946_v57 = vld [vmem:[#allocation65_spill] sm:$0xff]  ;;  %v8947_v12 = vld [vmem:[#allocation67_spill] sm:$0xff] }
 0x426   :  { %v2715_v32 = vpop.f32.mrf.mxu0 }
 0x429   :  { %3077 = vmatpush.bf16.msrb.mxu1 %v8939_v63  ;;  %3103 = vmatpush.bf16.msrb.mxu3 %v8940_v19  ;;  %v8948_v63 = vld [vmem:[#allocation69_spill] sm:$0xff] }
 0x42c   :  { %v2741_v9 = vpop.f32.mrf.mxu2 }
 0x42d   :  { %3078 = vmatpush.bf16.msrb.mxu1 %v8941_v51  ;;  %3104 = vmatpush.bf16.msrb.mxu3 %v8942_v45  ;;  %v8950_v51 = vld [vmem:[#allocation73_spill] sm:$0xff] }
 0x42e   :  { %v2765_v19 = vpop.f32.mrf.mxu0 }
 0x431   :  { %3079 = vmatpush.bf16.msrb.mxu1 %v8943_v47  ;;  %3105 = vmatpush.bf16.msrb.mxu3 %v8944_v36 }
 0x434   :  { %v7363_v45 = vpop.f32.mrf.mxu2 }
 0x435   :  { %3080 = vmatpush.bf16.msrb.mxu1 %v8945_v39  ;;  %3106 = vmatpush.bf16.msrb.mxu3 %v8946_v57 }
 0x436   :  { %v2767_v47 = vpop.f32.mrf.mxu0 }
 0x439   :  { %3081 = vmatpush.bf16.msrb.mxu1 %v8947_v12  ;;  %3107 = vmatpush.bf16.msrb.mxu3 %v8948_v63 }
 0x43c   :  { %v2793_v32 = vpop.f32.mrf.mxu2 }
 0x43d   :  { %3082 = vmatpush.bf16.msrb.mxu1 %v8949_v58  ;;  %3108 = vmatpush.bf16.msrb.mxu3 %v8950_v51  ;;  %v2674_v22 = vpop.f32.mrf.mxu1 }
 0x43e   :  { %v2675_v36 = vadd.f32 %v2674_v22, %v2661_v48  ;;  %v8953_v48 = vld [vmem:[#allocation118_spill] sm:$0xff] }
 0x440   :  { %v2865_v39 = vadd.f32 %v2675_v36, %v8951_v26 }
 0x442   :  { %v5381_v17 = vmul.f32 -1.442695, %v2865_v39 }
 0x443   :  { %v2700_v57 = vpop.f32.mrf.mxu3 }
 0x444   :  { %5753 = vpow2.f32 %v5381_v17  ;;  %v2701_v9 = vadd.f32 %v2700_v57, %v2687_v42 }
 0x445   :  { %v2676_v12 = vpop.f32.mrf.mxu1 }
 0x446   :  { %v2866_v63 = vadd.f32 %v2701_v9, %v8952_v10 }
 0x448   :  { %v5382_v30 = vmul.f32 -1.442695, %v2866_v63 }
 0x44a   :  { %v5754_v4 = vpop.eup %5753  ;;  %5755 = vpow2.f32 %v5382_v30 }
 0x44b   :  { %v2896_v58 = vadd.f32 1.0, %v5754_v4  ;;  %v2702_v51 = vpop.f32.mrf.mxu3 }
 0x44c   :  { %v8954_v51 = vld [vmem:[#allocation119_spill] sm:$0xff] }
 0x44d   :  { %5757 = vrcp.f32 %v2896_v58  ;;  %v2726_v44 = vpop.f32.mrf.mxu1  ;;  %vm2907_vm5 = vweird.f32 %v2896_v58 }
 0x44e   :  { %v2727_v47 = vadd.f32 %v2726_v44, %v2713_v54 }
 0x450   :  { %v7367_v3 = vpop.f32.mrf.mxu0  ;;  %v5756_v22 = vpop.eup %5755  ;;  %v2867_v26 = vadd.f32 %v2727_v47, %v8953_v48  ;;  %v2913_v48 = vand.u32 2147483648, %v2896_v58 }
 0x451   :  { %v2897_v39 = vadd.f32 1.0, %v5756_v22 }
 0x452   :  { %v5383_v36 = vmul.f32 -1.442695, %v2867_v26 }
 0x453   :  { %v5758_v17 = vpop.eup %5757  ;;  %5759 = vrcp.f32 %v2897_v39  ;;  %v2752_v42 = vpop.f32.mrf.mxu3  ;;  %vm2922_vm8 = vweird.f32 %v2897_v39 }
 0x454   :  { %v2903_v57 = vmul.f32 %v5758_v17, %v2896_v58  ;;  %5761 = vpow2.f32 %v5383_v36  ;;  %v2753_v10 = vadd.f32 %v2752_v42, %v2739_v60  ;;  %vm2908_vm4 = vweird.f32 %v5758_v17 }
 0x455   :  { %v2728_v4 = vpop.f32.mrf.mxu1  ;;  %v2911_v60 = vand.u32 2147483647, %v2896_v58  ;;  %v2928_v36 = vand.u32 2147483648, %v2897_v39  ;;  %vm7373_vm6 = vmor %vm2907_vm5, %vm2908_vm4  ;;  %v8957_v58 = vld [vmem:[#allocation180_spill] sm:$0xff] }
 0x456   :  { %v7370_v63 = vpop.f32.mrf.mxu2  ;;  %v2904_v30 = vsub.f32 1.0, %v2903_v57  ;;  %v2868_v12 = vadd.f32 %v2753_v10, %v8954_v51  ;;  %v2926_v57 = vand.u32 2147483647, %v2897_v39 }
 0x457   :  { %vm2912_vm9 = vcmp.eq.f32.partialorder %v2911_v60, 8.507059e+37 }
 0x458   :  { %v2819_v44 = vpop.f32.mrf.mxu0  ;;  %v2905_v54 = vmul.f32 %v5758_v17, %v2904_v30  ;;  %5763 = vtanh.f32 %v2868_v12  ;;  %v2914_v12 = vor.u32 1.1754944e-38, %v2913_v48  ;;  %vm2927_vm11 = vcmp.eq.f32.partialorder %v2926_v57, 8.507059e+37 }
 0x459   :  { %v5760_v32 = vpop.eup %5759 }
 0x45a   :  { %v5762_v9 = vpop.eup %5761  ;;  %v2918_v41 = vmul.f32 %v5760_v32, %v2897_v39  ;;  %v2906_v47 = vadd.f32 %v5758_v17, %v2905_v54  ;;  %vm2923_vm7 = vweird.f32 %v5760_v32 }
 0x45b   :  { %v2898_v22 = vadd.f32 1.0, %v5762_v9  ;;  %v2754_v26 = vpop.f32.mrf.mxu3  ;;  %vm2924_vm10 = vmor %vm2922_vm8, %vm2923_vm7 }
 0x45c   :  { %v2919_v62 = vsub.f32 1.0, %v2918_v41  ;;  %v2910_v51 = vsel %vm7373_vm6, %v5758_v17, %v2906_v47  ;;  %v2929_v26 = vor.u32 1.1754944e-38, %v2928_v36  ;;  %v8958_v36 = vld [vmem:[#allocation181_spill] sm:$0xff] }
 0x45d   :  { %5765 = vrcp.f32 %v2898_v22  ;;  %v2778_v4 = vpop.f32.mrf.mxu1  ;;  %v2915_v43 = vsel %vm2912_vm9, %v2914_v12, %v2910_v51  ;;  %v2943_v42 = vand.u32 2147483648, %v2898_v22  ;;  %v2941_v57 = vand.u32 2147483647, %v2898_v22 }
 0x45e   :  { %v2845_v10 = vpop.f32.mrf.mxu2  ;;  %v2920_v30 = vmul.f32 %v5760_v32, %v2919_v62  ;;  %v2779_v44 = vadd.f32 %v2778_v4, %v2765_v19  ;;  %v5764_v9 = vpop.eup %5763  ;;  %vm2937_vm13 = vweird.f32 %v2898_v22 }
 0x45f   :  { %v2996_v19 = vmul.f32 %v5764_v9, %v2915_v43  ;;  %vm2942_vm15 = vcmp.eq.f32.partialorder %v2941_v57, 8.507059e+37  ;;  %v8960_v57 = vld [vmem:[#allocation183_spill] sm:$0xff] }
 0x460   :  { %v2921_v41 = vadd.f32 %v5760_v32, %v2920_v30  ;;  %v2874_v54 = vadd.f32 %v2779_v44, %v8957_v58 }
 0x462   :  { %v2925_v55 = vsel %vm2924_vm10, %v5760_v32, %v2921_v41  ;;  %v5384_v10 = vmul.f32 -1.442695, %v2874_v54 }
 0x463   :  { %v5766_v6 = vpop.eup %5765  ;;  %v2930_v62 = vsel %vm2927_vm11, %v2929_v26, %v2925_v55  ;;  %v2804_v16 = vpop.f32.mrf.mxu3 }
 0x464   :  { %v2933_v15 = vmul.f32 %v5766_v6, %v2898_v22  ;;  %v2994_v17 = vmul.f32 %v2930_v62, %v7184_v27  ;;  %5767 = vpow2.f32 %v5384_v10  ;;  %v2805_v39 = vadd.f32 %v2804_v16, %v7363_v45 }
 0x465   :  { %v2780_v47 = vpop.f32.mrf.mxu1  ;;  %vm2938_vm12 = vweird.f32 %v5766_v6  ;;  %v2944_v27 = vor.u32 1.1754944e-38, %v2943_v42 }
 0x466   :  { %v2934_v48 = vsub.f32 1.0, %v2933_v15  ;;  %v7382_v60 = vadd.f32 %v2996_v19, %v2994_v17  ;;  %v2875_v4 = vadd.f32 %v2805_v39, %v8958_v36  ;;  %vm2939_vm14 = vmor %vm2937_vm13, %vm2938_vm12  ;;  %v8959_v39 = vld [vmem:[#allocation182_spill] sm:$0xff] }
 0x468   :  { %v2935_v32 = vmul.f32 %v5766_v6, %v2934_v48  ;;  %5769 = vtanh.f32 %v7382_v60  ;;  %v5385_v55 = vmul.f32 -1.442695, %v2875_v4 }
 0x46a   :  { %v5768_v30 = vpop.eup %5767  ;;  %v2936_v51 = vadd.f32 %v5766_v6, %v2935_v32  ;;  %5771 = vpow2.f32 %v5385_v55 }
 0x46b   :  { %v7386_v43 = vadd.f32 1.0, %v5768_v30  ;;  %v2806_v15 = vpop.f32.mrf.mxu3 }
 0x46c   :  { %v2940_v16 = vsel %vm2939_vm14, %v5766_v6, %v2936_v51  ;;  %v8965_v15 = vld [vmem:[#allocation91_spill] sm:$0xff] }
 0x46d   :  { %v2945_v45 = vsel %vm2942_vm15, %v2944_v27, %v2940_v16  ;;  %5773 = vrcp.f32 %v7386_v43  ;;  %vm2952_vm2 = vweird.f32 %v7386_v43  ;;  %v2956_v16 = vand.u32 2147483647, %v7386_v43 }
 0x46e   :  { %v5770_v44 = vpop.eup %5769 }
 0x46f   :  { %v3002_v12 = vmul.f32 %v5770_v44, %v2945_v45  ;;  %vm2957_vm6 = vcmp.eq.f32.partialorder %v2956_v16, 8.507059e+37  ;;  %v8966_v16 = vld [vmem:[#allocation152_spill] sm:$0xff] }
 0x470   :  { %v5772_v41 = vpop.eup %5771 }
 0x471   :  { %5387 = vst [vmem:[%s8158_s5 + $0x30] sm:$0xff] %v3002_v12  ;;  %v7392_v58 = vpack.c.bf16 %v3002_v12, %v3002_v12  ;;  %v2900_v22 = vadd.f32 1.0, %v5772_v41 }
 0x473   :  { %3018 = vmatmul.bf16.vlgmr.msra.gmra.mxu0 %v7392_v58  ;;  %3044 = vmatmul.bf16.vlgmr.msra.gmra.mxu2 %v7392_v58  ;;  %5775 = vrcp.f32 %v2900_v22  ;;  %v5774_v6 = vpop.eup %5773  ;;  %v2973_v27 = vand.u32 2147483648, %v2900_v22  ;;  %vm2967_vm3 = vweird.f32 %v2900_v22  ;;  %v2971_v45 = vand.u32 2147483647, %v2900_v22 }
 0x474   :  { %3114 = vmatpush.bf16.msra.mxu0 %v8641_v37  ;;  %3140 = vmatpush.bf16.msra.mxu2 %v8642_v29  ;;  %v2948_v54 = vmul.f32 %v5774_v6, %v7386_v43  ;;  %vm2953_vm0 = vweird.f32 %v5774_v6 }
 0x475   :  { %vm7415_vm4 = vmor %vm2952_vm2, %vm2953_vm0  ;;  %vm2972_vm7 = vcmp.eq.f32.partialorder %v2971_v45, 8.507059e+37  ;;  %v8967_v45 = vld [vmem:[#allocation156_spill] sm:$0xff] }
 0x476   :  { %v2949_v17 = vsub.f32 1.0, %v2948_v54 }
 0x478   :  { %3115 = vmatpush.bf16.msra.mxu0 %v8643_v49  ;;  %3141 = vmatpush.bf16.msra.mxu2 %v8742_v52  ;;  %v2950_v4 = vmul.f32 %v5774_v6, %v2949_v17 }
 0x479   :  { %v5776_v9 = vpop.eup %5775 }
 0x47a   :  { %v2963_v10 = vmul.f32 %v5776_v9, %v2900_v22  ;;  %vm2968_vm1 = vweird.f32 %v5776_v9  ;;  %v2951_v30 = vadd.f32 %v5774_v6, %v2950_v4 }
 0x47b   :  { %vm2969_vm5 = vmor %vm2967_vm3, %vm2968_vm1 }
 0x47c   :  { %3116 = vmatpush.bf16.msra.mxu0 %v8645_v40  ;;  %3142 = vmatpush.bf16.msra.mxu2 %v8743_v20  ;;  %v2964_v19 = vsub.f32 1.0, %v2963_v10  ;;  %v2955_v41 = vsel %vm7415_vm4, %v5774_v6, %v2951_v30  ;;  %v2974_v10 = vor.u32 1.1754944e-38, %v2973_v27  ;;  %v8963_v27 = vld [vmem:[#allocation148_spill] sm:$0xff] }
 0x47d   :  { %v2830_v26 = vpop.f32.mrf.mxu1 }
 0x47e   :  { %v2831_v62 = vadd.f32 %v2830_v26, %v7367_v3  ;;  %v2965_v42 = vmul.f32 %v5776_v9, %v2964_v19 }
 0x480   :  { %v2876_v47 = vadd.f32 %v2831_v62, %v8959_v39  ;;  %3117 = vmatpush.bf16.msra.mxu0 %v8745_v21  ;;  %3143 = vmatpush.bf16.msra.mxu2 %v8746_v61  ;;  %v2966_v51 = vadd.f32 %v5776_v9, %v2965_v42 }
 0x482   :  { %v5386_v48 = vmul.f32 -1.442695, %v2876_v47  ;;  %v2970_v54 = vsel %vm2969_vm5, %v5776_v9, %v2966_v51 }
 0x483   :  { %v2856_v36 = vpop.f32.mrf.mxu3  ;;  %3070 = vmatmul.bf16.vlgmr.msrb.gmra.mxu0 %v7392_v58  ;;  %3096 = vmatmul.bf16.vlgmr.msrb.gmra.mxu2 %v7392_v58  ;;  %v2975_v22 = vsel %vm2972_vm7, %v2974_v10, %v2970_v54  ;;  %v8971_v54 = vld [vmem:[#allocation160_spill] sm:$0xff] }
 0x484   :  { %5777 = vpow2.f32 %v5386_v48  ;;  %v2857_v32 = vadd.f32 %v2856_v36, %v7370_v63  ;;  %3118 = vmatpush.bf16.msra.mxu0 %v8748_v14  ;;  %3144 = vmatpush.bf16.msra.mxu2 %v8749_v28  ;;  %v2958_v63 = vand.u32 2147483648, %v7386_v43  ;;  %v2995_v6 = vmul.f32 %v2975_v22, %v7229_v7  ;;  %v8973_v10 = vld [vmem:[#allocation12_spill] sm:$0xff] }
 0x485   :  { %v2832_v3 = vpop.f32.mrf.mxu1  ;;  %v8977_v22 = vld [vmem:[#allocation16_spill] sm:$0xff] }
 0x486   :  { %v2877_v55 = vadd.f32 %v2857_v32, %v8960_v57  ;;  %v2959_v62 = vor.u32 1.1754944e-38, %v2958_v63  ;;  %v8964_v63 = vld [vmem:[#allocation89_spill] sm:$0xff] }
 0x488   :  { %5779 = vtanh.f32 %v2877_v55  ;;  %3119 = vmatpush.bf16.msra.mxu0 %v8752_v46  ;;  %3145 = vmatpush.bf16.msra.mxu2 %v8753_v50  ;;  %v2960_v43 = vsel %vm2957_vm6, %v2959_v62, %v2955_v41  ;;  %v8970_v41 = vld [vmem:[#allocation158_spill] sm:$0xff]  ;;  %v8974_v62 = vld [vmem:[#allocation101_spill] sm:$0xff] }
 0x48a   :  { %v5778_v44 = vpop.eup %5777 }
 0x48b   :  { %v2901_v12 = vadd.f32 1.0, %v5778_v44  ;;  %v2858_v26 = vpop.f32.mrf.mxu3  ;;  %v8968_v44 = vld [vmem:[#allocation93_spill] sm:$0xff] }
 0x48c   :  { %3120 = vmatpush.bf16.msra.mxu0 %v8653_v35  ;;  %3146 = vmatpush.bf16.msra.mxu2 %v8654_v25  ;;  %v8972_v26 = vld [vmem:[#allocation10_spill] sm:$0xff] }
 0x48d   :  { %5781 = vrcp.f32 %v2901_v12  ;;  %v2988_v42 = vand.u32 2147483648, %v2901_v12  ;;  %v2986_v36 = vand.u32 2147483647, %v2901_v12  ;;  %vm2982_vm9 = vweird.f32 %v2901_v12 }
 0x48e   :  { %v5780_v17 = vpop.eup %5779 }
 0x48f   :  { %v2997_v19 = vmul.f32 %v5780_v17, %v2960_v43  ;;  %v2989_v32 = vor.u32 1.1754944e-38, %v2988_v42  ;;  %vm2987_vm11 = vcmp.eq.f32.partialorder %v2986_v36, 8.507059e+37  ;;  %v8975_v17 = vld [vmem:[#allocation103_spill] sm:$0xff]  ;;  %v8976_v43 = vld [vmem:[#allocation14_spill] sm:$0xff]  ;;  %v8985_v36 = vld [vmem:[#allocation24_spill] sm:$0xff] }
 0x490   :  { %3121 = vmatpush.bf16.msra.mxu0 %v6507_v33  ;;  %3147 = vmatpush.bf16.msra.mxu2 %v6513_v53  ;;  %v8983_v42 = vld [vmem:[#allocation115_spill] sm:$0xff] }
 0x491   :  { %v7427_v39 = vadd.f32 %v2997_v19, %v2995_v6  ;;  %v8978_v19 = vld [vmem:[#allocation105_spill] sm:$0xff]  ;;  %v8979_v6 = vld [vmem:[#allocation107_spill] sm:$0xff] }
 0x493   :  { %v5782_v9 = vpop.eup %5781  ;;  %3122 = vmatmul.bf16.vlgmr.msra.gmra.mxu0 %v7392_v58  ;;  %3148 = vmatmul.bf16.vlgmr.msra.gmra.mxu2 %v7392_v58  ;;  %5783 = vtanh.f32 %v7427_v39 }
 0x494   :  { %v2978_v47 = vmul.f32 %v5782_v9, %v2901_v12  ;;  %3166 = vmatpush.bf16.msrb.mxu0 %v6521_v31  ;;  %3192 = vmatpush.bf16.msrb.mxu2 %v6529_v59  ;;  %vm2983_vm8 = vweird.f32 %v5782_v9  ;;  %v8969_v12 = vld [vmem:[#allocation95_spill] sm:$0xff] }
 0x495   :  { %vm2984_vm10 = vmor %vm2982_vm9, %vm2983_vm8 }
 0x496   :  { %v2979_v48 = vsub.f32 1.0, %v2978_v47  ;;  %v8981_v47 = vld [vmem:[#allocation20_spill] sm:$0xff] }
 0x498   :  { %v2980_v7 = vmul.f32 %v5782_v9, %v2979_v48  ;;  %3167 = vmatpush.bf16.msrb.mxu0 %v8655_v24  ;;  %3193 = vmatpush.bf16.msrb.mxu2 %v8656_v8  ;;  %v8982_v48 = vld [vmem:[#allocation113_spill] sm:$0xff] }
 0x499   :  { %v5784_v57 = vpop.eup %5783 }
 0x49a   :  { %v2981_v4 = vadd.f32 %v5782_v9, %v2980_v7  ;;  %v8984_v7 = vld [vmem:[#allocation22_spill] sm:$0xff] }
 0x49c   :  { %v2985_v3 = vsel %vm2984_vm10, %v5782_v9, %v2981_v4  ;;  %3168 = vmatpush.bf16.msrb.mxu0 %v8657_v23  ;;  %3194 = vmatpush.bf16.msrb.mxu2 %v8658_v1  ;;  %v8980_v9 = vld [vmem:[#allocation18_spill] sm:$0xff]  ;;  %v8987_v4 = vld [vmem:[#allocation117_spill] sm:$0xff] }
 0x49d   :  { %v2990_v55 = vsel %vm2987_vm11, %v2989_v32, %v2985_v3  ;;  %v8988_v32 = vld [vmem:[#allocation120_spill] sm:$0xff]  ;;  %v8989_v3 = vld [vmem:[#allocation123_spill] sm:$0xff] }
 0x49e   :  { %v3003_v30 = vmul.f32 %v5784_v57, %v2990_v55  ;;  %v8990_v57 = vld [vmem:[#allocation26_spill] sm:$0xff]  ;;  %v8991_v55 = vld [vmem:[#allocation28_spill] sm:$0xff] }
 0x4a0   :  { %5388 = vst [vmem:[%s8158_s5 + $0x48] sm:$0xff] %v3003_v30  ;;  %v7443_v51 = vpack.c.bf16 %v3003_v30, %v3003_v30  ;;  %3169 = vmatpush.bf16.msrb.mxu0 %v8659_v13  ;;  %3195 = vmatpush.bf16.msrb.mxu2 %v8660_v2  ;;  %v8992_v30 = vld [vmem:[#allocation125_spill] sm:$0xff] }
 0x4a2   :  { %3031 = vmatmul.bf16.vlgmr.msra.gmra.mxu1 %v7443_v51  ;;  %3057 = vmatmul.bf16.vlgmr.msra.gmra.mxu3 %v7443_v51 }
 0x4a3   :  { %3127 = vmatpush.bf16.msra.mxu1 %v8661_v56  ;;  %3153 = vmatpush.bf16.msra.mxu3 %v8662_v18 }
 0x4a4   :  { %3170 = vmatpush.bf16.msrb.mxu0 %v8663_v5  ;;  %3196 = vmatpush.bf16.msrb.mxu2 %v6601_v0 }
 0x4a7   :  { %3128 = vmatpush.bf16.msra.mxu1 %v8664_v34  ;;  %3154 = vmatpush.bf16.msra.mxu3 %v8665_v38 }
 0x4a8   :  { %3171 = vmatpush.bf16.msrb.mxu0 %v6607_v11  ;;  %3197 = vmatpush.bf16.msrb.mxu2 %v8963_v27 }
 0x4ab   :  { %3129 = vmatpush.bf16.msra.mxu1 %v8964_v63  ;;  %3155 = vmatpush.bf16.msra.mxu3 %v8965_v15 }
 0x4ac   :  { %3172 = vmatpush.bf16.msrb.mxu0 %v8966_v16  ;;  %3198 = vmatpush.bf16.msrb.mxu2 %v8967_v45 }
 0x4af   :  { %3130 = vmatpush.bf16.msra.mxu1 %v8968_v44  ;;  %3156 = vmatpush.bf16.msra.mxu3 %v8969_v12 }
 0x4b0   :  { %3173 = vmatpush.bf16.msrb.mxu0 %v8970_v41  ;;  %3199 = vmatpush.bf16.msrb.mxu2 %v8971_v54 }
 0x4b2   :  { %3083 = vmatmul.bf16.vlgmr.msrb.gmra.mxu1 %v7443_v51  ;;  %3109 = vmatmul.bf16.vlgmr.msrb.gmra.mxu3 %v7443_v51 }
 0x4b3   :  { %3131 = vmatpush.bf16.msra.mxu1 %v8974_v62  ;;  %3157 = vmatpush.bf16.msra.mxu3 %v8975_v17  ;;  %v9061_v62 = vld [vmem:[#allocation122_spill] sm:$0xff] }
 0x4b4   :  { %3364 = vmatpush.bf16.msra.mxu0 %v8972_v26  ;;  %3390 = vmatpush.bf16.msra.mxu2 %v8973_v10 }
 0x4b5   :  { %3174 = vmatmul.bf16.vlgmr.msrb.gmra.mxu0 %v7392_v58  ;;  %3200 = vmatmul.bf16.vlgmr.msrb.gmra.mxu2 %v7392_v58  ;;  %v8986_v58 = vld [vmem:[#allocation116_spill] sm:$0xff] }
 0x4b7   :  { %3132 = vmatpush.bf16.msra.mxu1 %v8978_v19  ;;  %3158 = vmatpush.bf16.msra.mxu3 %v8979_v6  ;;  %v9052_v6 = vld [vmem:[#allocation59_spill] sm:$0xff] }
 0x4b8   :  { %3365 = vmatpush.bf16.msra.mxu0 %v8976_v43  ;;  %3391 = vmatpush.bf16.msra.mxu2 %v8977_v22  ;;  %v9058_v19 = vld [vmem:[#allocation71_spill] sm:$0xff]  ;;  %v9060_v43 = vld [vmem:[#allocation121_spill] sm:$0xff] }
 0x4bb   :  { %3133 = vmatpush.bf16.msra.mxu1 %v8982_v48  ;;  %3159 = vmatpush.bf16.msra.mxu3 %v8983_v42  ;;  %v9001_v42 = vld [vmem:[#allocation139_spill] sm:$0xff]  ;;  %v9002_v48 = vld [vmem:[#allocation38_spill] sm:$0xff] }
 0x4bc   :  { %3366 = vmatpush.bf16.msra.mxu0 %v8980_v9  ;;  %3392 = vmatpush.bf16.msra.mxu2 %v8981_v47  ;;  %v9048_v47 = vld [vmem:[#allocation51_spill] sm:$0xff] }
 0x4bd   :  { %v9050_v9 = vld [vmem:[#allocation55_spill] sm:$0xff] }
 0x4bf   :  { %3134 = vmatpush.bf16.msra.mxu1 %v8986_v58  ;;  %3160 = vmatpush.bf16.msra.mxu3 %v8987_v4  ;;  %v8995_v58 = vld [vmem:[#allocation32_spill] sm:$0xff]  ;;  %v8996_v4 = vld [vmem:[#allocation131_spill] sm:$0xff] }
 0x4c0   :  { %3367 = vmatpush.bf16.msra.mxu0 %v8984_v7  ;;  %3393 = vmatpush.bf16.msra.mxu2 %v8985_v36  ;;  %v8993_v7 = vld [vmem:[#allocation127_spill] sm:$0xff]  ;;  %v8994_v36 = vld [vmem:[#allocation30_spill] sm:$0xff] }
 0x4c2   :  { %3135 = vmatmul.bf16.vlgmr.msra.gmra.mxu1 %v7443_v51  ;;  %3161 = vmatmul.bf16.vlgmr.msra.gmra.mxu3 %v7443_v51 }
 0x4c3   :  { %3179 = vmatpush.bf16.msrb.mxu1 %v8988_v32  ;;  %3205 = vmatpush.bf16.msrb.mxu3 %v8989_v3  ;;  %v8997_v32 = vld [vmem:[#allocation135_spill] sm:$0xff]  ;;  %v8998_v3 = vld [vmem:[#allocation34_spill] sm:$0xff] }
 0x4c4   :  { %3368 = vmatpush.bf16.msra.mxu0 %v8990_v57  ;;  %3394 = vmatpush.bf16.msra.mxu2 %v8991_v55  ;;  %v8999_v57 = vld [vmem:[#allocation36_spill] sm:$0xff]  ;;  %v9000_v55 = vld [vmem:[#allocation137_spill] sm:$0xff] }
 0x4c7   :  { %3180 = vmatpush.bf16.msrb.mxu1 %v8992_v30  ;;  %3206 = vmatpush.bf16.msrb.mxu3 %v8993_v7  ;;  %v9003_v30 = vld [vmem:[#allocation40_spill] sm:$0xff]  ;;  %v9004_v7 = vld [vmem:[#allocation42_spill] sm:$0xff] }
 0x4c8   :  { %3369 = vmatpush.bf16.msra.mxu0 %v8994_v36  ;;  %3395 = vmatpush.bf16.msra.mxu2 %v8995_v58  ;;  %v9005_v36 = vld [vmem:[#allocation44_spill] sm:$0xff]  ;;  %v9006_v58 = vld [vmem:[#allocation143_spill] sm:$0xff] }
 0x4cb   :  { %3181 = vmatpush.bf16.msrb.mxu1 %v8996_v4  ;;  %3207 = vmatpush.bf16.msrb.mxu3 %v8997_v32  ;;  %v9007_v4 = vld [vmem:[#allocation146_spill] sm:$0xff] }
 0x4cc   :  { %3370 = vmatpush.bf16.msra.mxu0 %v8998_v3  ;;  %3396 = vmatpush.bf16.msra.mxu2 %v8999_v57  ;;  %v9008_v32 = vld [vmem:[#allocation46_spill] sm:$0xff]  ;;  %v9009_v3 = vld [vmem:[#allocation48_spill] sm:$0xff]  ;;  %v9010_v57 = vld [vmem:[#allocation147_spill] sm:$0xff] }
 0x4cf   :  { %3182 = vmatpush.bf16.msrb.mxu1 %v9000_v55  ;;  %3208 = vmatpush.bf16.msrb.mxu3 %v9001_v42  ;;  %v9011_v55 = vld [vmem:[#allocation149_spill] sm:$0xff]  ;;  %v9012_v42 = vld [vmem:[#allocation50_spill] sm:$0xff] }
 0x4d0   :  { %3371 = vmatpush.bf16.msra.mxu0 %v9002_v48  ;;  %3397 = vmatpush.bf16.msra.mxu2 %v9003_v30  ;;  %v9013_v48 = vld [vmem:[#allocation52_spill] sm:$0xff]  ;;  %v9014_v30 = vld [vmem:[#allocation153_spill] sm:$0xff] }
 0x4d3   :  { %3183 = vmatpush.bf16.msrb.mxu1 %v9006_v58  ;;  %3209 = vmatpush.bf16.msrb.mxu3 %v9007_v4  ;;  %v9017_v58 = vld [vmem:[#allocation56_spill] sm:$0xff]  ;;  %v9018_v4 = vld [vmem:[#allocation159_spill] sm:$0xff] }
 0x4d4   :  { %3416 = vmatpush.bf16.msrb.mxu0 %v9004_v7  ;;  %3442 = vmatpush.bf16.msrb.mxu2 %v9005_v36  ;;  %v9015_v7 = vld [vmem:[#allocation157_spill] sm:$0xff]  ;;  %v9016_v36 = vld [vmem:[#allocation54_spill] sm:$0xff] }
 0x4d7   :  { %3184 = vmatpush.bf16.msrb.mxu1 %v9010_v57  ;;  %3210 = vmatpush.bf16.msrb.mxu3 %v9011_v55  ;;  %v9021_v57 = vld [vmem:[#allocation13_spill] sm:$0xff]  ;;  %v9022_v55 = vld [vmem:[#allocation58_spill] sm:$0xff] }
 0x4d8   :  { %3417 = vmatpush.bf16.msrb.mxu0 %v9008_v32  ;;  %3443 = vmatpush.bf16.msrb.mxu2 %v9009_v3  ;;  %v9019_v32 = vld [vmem:[#allocation161_spill] sm:$0xff]  ;;  %v9020_v3 = vld [vmem:[#allocation11_spill] sm:$0xff] }
 0x4db   :  { %3185 = vmatpush.bf16.msrb.mxu1 %v9014_v30  ;;  %3211 = vmatpush.bf16.msrb.mxu3 %v9015_v7  ;;  %v9024_v7 = vld [vmem:[#allocation15_spill] sm:$0xff]  ;;  %v9033_v30 = vld [vmem:[#allocation25_spill] sm:$0xff] }
 0x4dc   :  { %3418 = vmatpush.bf16.msrb.mxu0 %v9012_v42  ;;  %3444 = vmatpush.bf16.msrb.mxu2 %v9013_v48  ;;  %v9023_v42 = vld [vmem:[#allocation60_spill] sm:$0xff]  ;;  %v9042_v48 = vld [vmem:[#allocation39_spill] sm:$0xff] }
 0x4df   :  { %3186 = vmatpush.bf16.msrb.mxu1 %v9018_v4  ;;  %3212 = vmatpush.bf16.msrb.mxu3 %v9019_v32  ;;  %v9027_v4 = vld [vmem:[#allocation64_spill] sm:$0xff]  ;;  %v9028_v32 = vld [vmem:[#allocation19_spill] sm:$0xff] }
 0x4e0   :  { %3419 = vmatpush.bf16.msrb.mxu0 %v9016_v36  ;;  %3445 = vmatpush.bf16.msrb.mxu2 %v9017_v58  ;;  %v9025_v36 = vld [vmem:[#allocation17_spill] sm:$0xff]  ;;  %v9026_v58 = vld [vmem:[#allocation62_spill] sm:$0xff] }
 0x4e2   :  { %3187 = vmatmul.bf16.vlgmr.msrb.gmra.mxu1 %v7443_v51  ;;  %3213 = vmatmul.bf16.vlgmr.msrb.gmra.mxu3 %v7443_v51  ;;  %v9034_v51 = vld [vmem:[#allocation70_spill] sm:$0xff] }
 0x4e3   :  { %3377 = vmatpush.bf16.msra.mxu1 %v9020_v3  ;;  %3403 = vmatpush.bf16.msra.mxu3 %v9021_v57  ;;  %v9029_v3 = vld [vmem:[#allocation21_spill] sm:$0xff]  ;;  %v9030_v57 = vld [vmem:[#allocation66_spill] sm:$0xff] }
 0x4e4   :  { %3420 = vmatpush.bf16.msrb.mxu0 %v9022_v55  ;;  %3446 = vmatpush.bf16.msrb.mxu2 %v9023_v42  ;;  %v9031_v55 = vld [vmem:[#allocation68_spill] sm:$0xff]  ;;  %v9032_v42 = vld [vmem:[#allocation23_spill] sm:$0xff] }
 0x4e7   :  { %3378 = vmatpush.bf16.msra.mxu1 %v9024_v7  ;;  %3404 = vmatpush.bf16.msra.mxu3 %v9025_v36  ;;  %v9035_v7 = vld [vmem:[#allocation72_spill] sm:$0xff]  ;;  %v9036_v36 = vld [vmem:[#allocation27_spill] sm:$0xff] }
 0x4e8   :  { %3421 = vmatpush.bf16.msrb.mxu0 %v9026_v58  ;;  %3447 = vmatpush.bf16.msrb.mxu2 %v9027_v4  ;;  %v9037_v58 = vld [vmem:[#allocation29_spill] sm:$0xff]  ;;  %v9038_v4 = vld [vmem:[#allocation31_spill] sm:$0xff] }
 0x4eb   :  { %3379 = vmatpush.bf16.msra.mxu1 %v9028_v32  ;;  %3405 = vmatpush.bf16.msra.mxu3 %v9029_v3  ;;  %v9039_v32 = vld [vmem:[#allocation33_spill] sm:$0xff] }
 0x4ec   :  { %3422 = vmatpush.bf16.msrb.mxu0 %v9030_v57  ;;  %3448 = vmatpush.bf16.msrb.mxu2 %v9031_v55  ;;  %v9040_v57 = vld [vmem:[#allocation35_spill] sm:$0xff]  ;;  %v9041_v55 = vld [vmem:[#allocation37_spill] sm:$0xff] }
 0x4ef   :  { %3380 = vmatpush.bf16.msra.mxu1 %v9032_v42  ;;  %3406 = vmatpush.bf16.msra.mxu3 %v9033_v30  ;;  %v9043_v30 = vld [vmem:[#allocation41_spill] sm:$0xff] }
 0x4f0   :  { %3423 = vmatpush.bf16.msrb.mxu0 %v9034_v51  ;;  %3449 = vmatpush.bf16.msrb.mxu2 %v9035_v7  ;;  %v3019_v3 = vpop.f32.mrf.mxu0  ;;  %v9044_v51 = vld [vmem:[#allocation43_spill] sm:$0xff]  ;;  %v9045_v7 = vld [vmem:[#allocation45_spill] sm:$0xff] }
 0x4f3   :  { %3381 = vmatpush.bf16.msra.mxu1 %v9036_v36  ;;  %3407 = vmatpush.bf16.msra.mxu3 %v9037_v58  ;;  %v9046_v58 = vld [vmem:[#allocation47_spill] sm:$0xff] }
 0x4f6   :  { %v3045_v42 = vpop.f32.mrf.mxu2 }
 0x4f7   :  { %3382 = vmatpush.bf16.msra.mxu1 %v9038_v4  ;;  %3408 = vmatpush.bf16.msra.mxu3 %v9039_v32  ;;  %v9047_v4 = vld [vmem:[#allocation49_spill] sm:$0xff] }
 0x4f8   :  { %v3021_v36 = vpop.f32.mrf.mxu0 }
 0x4fb   :  { %3383 = vmatpush.bf16.msra.mxu1 %v9040_v57  ;;  %3409 = vmatpush.bf16.msra.mxu3 %v9041_v55  ;;  %v9049_v57 = vld [vmem:[#allocation53_spill] sm:$0xff] }
 0x4fe   :  { %v3047_v32 = vpop.f32.mrf.mxu2 }
 0x4ff   :  { %3384 = vmatpush.bf16.msra.mxu1 %v9042_v48  ;;  %3410 = vmatpush.bf16.msra.mxu3 %v9043_v30  ;;  %v9051_v48 = vld [vmem:[#allocation57_spill] sm:$0xff] }
 0x500   :  { %v3071_v55 = vpop.f32.mrf.mxu0 }
 0x503   :  { %3429 = vmatpush.bf16.msrb.mxu1 %v9044_v51  ;;  %3455 = vmatpush.bf16.msrb.mxu3 %v9045_v7  ;;  %v9053_v51 = vld [vmem:[#allocation61_spill] sm:$0xff]  ;;  %v9054_v7 = vld [vmem:[#allocation63_spill] sm:$0xff] }
 0x506   :  { %v3097_v30 = vpop.f32.mrf.mxu2 }
 0x507   :  { %3430 = vmatpush.bf16.msrb.mxu1 %v9046_v58  ;;  %3456 = vmatpush.bf16.msrb.mxu3 %v9047_v4  ;;  %v9055_v58 = vld [vmem:[#allocation65_spill] sm:$0xff]  ;;  %v9056_v4 = vld [vmem:[#allocation67_spill] sm:$0xff] }
 0x508   :  { %v3073_v36 = vpop.f32.mrf.mxu0 }
 0x50b   :  { %3431 = vmatpush.bf16.msrb.mxu1 %v9048_v47  ;;  %3457 = vmatpush.bf16.msrb.mxu3 %v9049_v57  ;;  %v9057_v47 = vld [vmem:[#allocation69_spill] sm:$0xff] }
 0x50e   :  { %v3099_v32 = vpop.f32.mrf.mxu2 }
 0x50f   :  { %3432 = vmatpush.bf16.msrb.mxu1 %v9050_v9  ;;  %3458 = vmatpush.bf16.msrb.mxu3 %v9051_v48  ;;  %v9059_v9 = vld [vmem:[#allocation73_spill] sm:$0xff] }
 0x510   :  { %v3123_v57 = vpop.f32.mrf.mxu0 }
 0x513   :  { %3433 = vmatpush.bf16.msrb.mxu1 %v9052_v6  ;;  %3459 = vmatpush.bf16.msrb.mxu3 %v9053_v51 }
 0x516   :  { %v7561_v48 = vpop.f32.mrf.mxu2 }
 0x517   :  { %3434 = vmatpush.bf16.msrb.mxu1 %v9054_v7  ;;  %3460 = vmatpush.bf16.msrb.mxu3 %v9055_v58 }
 0x518   :  { %v3125_v6 = vpop.f32.mrf.mxu0 }
 0x51b   :  { %3435 = vmatpush.bf16.msrb.mxu1 %v9056_v4  ;;  %3461 = vmatpush.bf16.msrb.mxu3 %v9057_v47 }
 0x51e   :  { %v3151_v36 = vpop.f32.mrf.mxu2 }
 0x51f   :  { %3436 = vmatpush.bf16.msrb.mxu1 %v9058_v19  ;;  %3462 = vmatpush.bf16.msrb.mxu3 %v9059_v9  ;;  %v3032_v22 = vpop.f32.mrf.mxu1 }
 0x520   :  { %v3033_v51 = vadd.f32 %v3032_v22, %v3019_v3  ;;  %v9062_v3 = vld [vmem:[#allocation128_spill] sm:$0xff] }
 0x522   :  { %v3222_v7 = vadd.f32 %v3033_v51, %v9060_v43 }
 0x524   :  { %v5389_v17 = vmul.f32 -1.442695, %v3222_v7 }
 0x525   :  { %v3058_v58 = vpop.f32.mrf.mxu3 }
 0x526   :  { %5785 = vpow2.f32 %v5389_v17  ;;  %v3059_v32 = vadd.f32 %v3058_v58, %v3045_v42 }
 0x527   :  { %v3034_v4 = vpop.f32.mrf.mxu1 }
 0x528   :  { %v3223_v47 = vadd.f32 %v3059_v32, %v9061_v62 }
 0x52a   :  { %v5390_v10 = vmul.f32 -1.442695, %v3223_v47 }
 0x52c   :  { %v5786_v26 = vpop.eup %5785  ;;  %5787 = vpow2.f32 %v5390_v10 }
 0x52d   :  { %v3252_v19 = vadd.f32 1.0, %v5786_v26  ;;  %v3060_v9 = vpop.f32.mrf.mxu3 }
 0x52e   :  { %v9063_v9 = vld [vmem:[#allocation129_spill] sm:$0xff] }
 0x52f   :  { %5789 = vrcp.f32 %v3252_v19  ;;  %v3084_v54 = vpop.f32.mrf.mxu1  ;;  %vm3263_vm13 = vweird.f32 %v3252_v19 }
 0x530   :  { %v3085_v6 = vadd.f32 %v3084_v54, %v3071_v55 }
 0x532   :  { %v7565_v41 = vpop.f32.mrf.mxu0  ;;  %v5788_v22 = vpop.eup %5787  ;;  %v3224_v43 = vadd.f32 %v3085_v6, %v9062_v3  ;;  %v3269_v3 = vand.u32 2147483648, %v3252_v19 }
 0x533   :  { %v3253_v7 = vadd.f32 1.0, %v5788_v22 }
 0x534   :  { %v5391_v51 = vmul.f32 -1.442695, %v3224_v43 }
 0x535   :  { %v5790_v17 = vpop.eup %5789  ;;  %5791 = vrcp.f32 %v3253_v7  ;;  %v3110_v42 = vpop.f32.mrf.mxu3  ;;  %vm3278_vm0 = vweird.f32 %v3253_v7 }
 0x536   :  { %v3259_v58 = vmul.f32 %v5790_v17, %v3252_v19  ;;  %5793 = vpow2.f32 %v5391_v51  ;;  %v3111_v62 = vadd.f32 %v3110_v42, %v3097_v30  ;;  %vm3264_vm12 = vweird.f32 %v5790_v17 }
 0x537   :  { %v3086_v26 = vpop.f32.mrf.mxu1  ;;  %v3267_v30 = vand.u32 2147483647, %v3252_v19  ;;  %v3284_v51 = vand.u32 2147483648, %v3253_v7  ;;  %vm7571_vm14 = vmor %vm3263_vm13, %vm3264_vm12  ;;  %v9066_v19 = vld [vmem:[#allocation176_spill] sm:$0xff] }
 0x538   :  { %v7568_v47 = vpop.f32.mrf.mxu2  ;;  %v3260_v10 = vsub.f32 1.0, %v3259_v58  ;;  %v3225_v4 = vadd.f32 %v3111_v62, %v9063_v9  ;;  %v3282_v58 = vand.u32 2147483647, %v3253_v7 }
 0x539   :  { %vm3268_vm1 = vcmp.eq.f32.partialorder %v3267_v30, 8.507059e+37 }
 0x53a   :  { %v3177_v54 = vpop.f32.mrf.mxu0  ;;  %v3261_v55 = vmul.f32 %v5790_v17, %v3260_v10  ;;  %5795 = vtanh.f32 %v3225_v4  ;;  %v3270_v4 = vor.u32 1.1754944e-38, %v3269_v3  ;;  %vm3283_vm3 = vcmp.eq.f32.partialorder %v3282_v58, 8.507059e+37 }
 0x53b   :  { %v5792_v36 = vpop.eup %5791 }
 0x53c   :  { %v5794_v32 = vpop.eup %5793  ;;  %v3274_v12 = vmul.f32 %v5792_v36, %v3253_v7  ;;  %v3262_v6 = vadd.f32 %v5790_v17, %v3261_v55  ;;  %vm3279_vm15 = vweird.f32 %v5792_v36 }
 0x53d   :  { %v3254_v22 = vadd.f32 1.0, %v5794_v32  ;;  %v3112_v43 = vpop.f32.mrf.mxu3  ;;  %vm3280_vm2 = vmor %vm3278_vm0, %vm3279_vm15 }
 0x53e   :  { %v3275_v44 = vsub.f32 1.0, %v3274_v12  ;;  %v3266_v9 = vsel %vm7571_vm14, %v5790_v17, %v3262_v6  ;;  %v3285_v43 = vor.u32 1.1754944e-38, %v3284_v51  ;;  %v9067_v51 = vld [vmem:[#allocation177_spill] sm:$0xff] }
 0x53f   :  { %5797 = vrcp.f32 %v3254_v22  ;;  %v3136_v26 = vpop.f32.mrf.mxu1  ;;  %v3271_v45 = vsel %vm3268_vm1, %v3270_v4, %v3266_v9  ;;  %v3299_v42 = vand.u32 2147483648, %v3254_v22  ;;  %v3297_v58 = vand.u32 2147483647, %v3254_v22 }
 0x540   :  { %v3203_v62 = vpop.f32.mrf.mxu2  ;;  %v3276_v10 = vmul.f32 %v5792_v36, %v3275_v44  ;;  %v3137_v54 = vadd.f32 %v3136_v26, %v3123_v57  ;;  %v5796_v32 = vpop.eup %5795  ;;  %vm3293_vm5 = vweird.f32 %v3254_v22 }
 0x541   :  { %v3352_v57 = vmul.f32 %v5796_v32, %v3271_v45  ;;  %vm3298_vm7 = vcmp.eq.f32.partialorder %v3297_v58, 8.507059e+37  ;;  %v9069_v58 = vld [vmem:[#allocation179_spill] sm:$0xff] }
 0x542   :  { %v3277_v12 = vadd.f32 %v5792_v36, %v3276_v10  ;;  %v3230_v55 = vadd.f32 %v3137_v54, %v9066_v19 }
 0x544   :  { %v3281_v16 = vsel %vm3280_vm2, %v5792_v36, %v3277_v12  ;;  %v5392_v62 = vmul.f32 -1.442695, %v3230_v55 }
 0x545   :  { %v5798_v15 = vpop.eup %5797  ;;  %v3286_v44 = vsel %vm3283_vm3, %v3285_v43, %v3281_v16  ;;  %v3162_v63 = vpop.f32.mrf.mxu3 }
 0x546   :  { %v3289_v27 = vmul.f32 %v5798_v15, %v3254_v22  ;;  %v3350_v17 = vmul.f32 %v3286_v44, %v7382_v60  ;;  %5799 = vpow2.f32 %v5392_v62  ;;  %v3163_v7 = vadd.f32 %v3162_v63, %v7561_v48 }
 0x547   :  { %v3138_v6 = vpop.f32.mrf.mxu1  ;;  %vm3294_vm4 = vweird.f32 %v5798_v15  ;;  %v3300_v60 = vor.u32 1.1754944e-38, %v3299_v42 }
 0x548   :  { %v3290_v3 = vsub.f32 1.0, %v3289_v27  ;;  %v7580_v30 = vadd.f32 %v3352_v57, %v3350_v17  ;;  %v3231_v26 = vadd.f32 %v3163_v7, %v9067_v51  ;;  %vm3295_vm6 = vmor %vm3293_vm5, %vm3294_vm4  ;;  %v9068_v7 = vld [vmem:[#allocation178_spill] sm:$0xff] }
 0x54a   :  { %v3291_v36 = vmul.f32 %v5798_v15, %v3290_v3  ;;  %5801 = vtanh.f32 %v7580_v30  ;;  %v5393_v16 = vmul.f32 -1.442695, %v3231_v26 }
 0x54c   :  { %v5800_v10 = vpop.eup %5799  ;;  %v3292_v9 = vadd.f32 %v5798_v15, %v3291_v36  ;;  %5803 = vpow2.f32 %v5393_v16 }
 0x54d   :  { %v7584_v45 = vadd.f32 1.0, %v5800_v10  ;;  %v3164_v27 = vpop.f32.mrf.mxu3 }
 0x54e   :  { %v3296_v63 = vsel %vm3295_vm6, %v5798_v15, %v3292_v9  ;;  %v9074_v27 = vld [vmem:[#allocation91_spill] sm:$0xff] }
 0x54f   :  { %v3301_v48 = vsel %vm3298_vm7, %v3300_v60, %v3296_v63  ;;  %5805 = vrcp.f32 %v7584_v45  ;;  %vm3308_vm10 = vweird.f32 %v7584_v45  ;;  %v3312_v63 = vand.u32 2147483647, %v7584_v45 }
 0x550   :  { %v5802_v54 = vpop.eup %5801 }
 0x551   :  { %v3358_v4 = vmul.f32 %v5802_v54, %v3301_v48  ;;  %vm3313_vm14 = vcmp.eq.f32.partialorder %v3312_v63, 8.507059e+37  ;;  %v9075_v63 = vld [vmem:[#allocation152_spill] sm:$0xff] }
 0x552   :  { %v5804_v12 = vpop.eup %5803 }
 0x553   :  { %5395 = vst [vmem:[%s8158_s5 + $0x40] sm:$0xff] %v3358_v4  ;;  %v7590_v19 = vpack.c.bf16 %v3358_v4, %v3358_v4  ;;  %v3256_v22 = vadd.f32 1.0, %v5804_v12 }
 0x555   :  { %3372 = vmatmul.bf16.vlgmr.msra.gmra.mxu0 %v7590_v19  ;;  %3398 = vmatmul.bf16.vlgmr.msra.gmra.mxu2 %v7590_v19  ;;  %5807 = vrcp.f32 %v3256_v22  ;;  %v5806_v15 = vpop.eup %5805  ;;  %v3329_v60 = vand.u32 2147483648, %v3256_v22  ;;  %vm3323_vm11 = vweird.f32 %v3256_v22  ;;  %v3327_v48 = vand.u32 2147483647, %v3256_v22 }
 0x556   :  { %3468 = vmatpush.bf16.msra.mxu0 %v8641_v37  ;;  %3494 = vmatpush.bf16.msra.mxu2 %v8642_v29  ;;  %v3304_v55 = vmul.f32 %v5806_v15, %v7584_v45  ;;  %vm3309_vm8 = vweird.f32 %v5806_v15 }
 0x557   :  { %vm7613_vm12 = vmor %vm3308_vm10, %vm3309_vm8  ;;  %vm3328_vm15 = vcmp.eq.f32.partialorder %v3327_v48, 8.507059e+37  ;;  %v9076_v48 = vld [vmem:[#allocation156_spill] sm:$0xff] }
 0x558   :  { %v3305_v17 = vsub.f32 1.0, %v3304_v55 }
 0x55a   :  { %3469 = vmatpush.bf16.msra.mxu0 %v8643_v49  ;;  %3495 = vmatpush.bf16.msra.mxu2 %v8742_v52  ;;  %v3306_v26 = vmul.f32 %v5806_v15, %v3305_v17 }
 0x55b   :  { %v5808_v32 = vpop.eup %5807 }
 0x55c   :  { %v3319_v62 = vmul.f32 %v5808_v32, %v3256_v22  ;;  %vm3324_vm9 = vweird.f32 %v5808_v32  ;;  %v3307_v10 = vadd.f32 %v5806_v15, %v3306_v26 }
 0x55d   :  { %vm3325_vm13 = vmor %vm3323_vm11, %vm3324_vm9 }
 0x55e   :  { %3470 = vmatpush.bf16.msra.mxu0 %v8645_v40  ;;  %3496 = vmatpush.bf16.msra.mxu2 %v8743_v20  ;;  %v3320_v57 = vsub.f32 1.0, %v3319_v62  ;;  %v3311_v12 = vsel %vm7613_vm12, %v5806_v15, %v3307_v10  ;;  %v3330_v62 = vor.u32 1.1754944e-38, %v3329_v60  ;;  %v9072_v60 = vld [vmem:[#allocation148_spill] sm:$0xff] }
 0x55f   :  { %v3188_v43 = vpop.f32.mrf.mxu1 }
 0x560   :  { %v3189_v44 = vadd.f32 %v3188_v43, %v7565_v41  ;;  %v3321_v42 = vmul.f32 %v5808_v32, %v3320_v57 }
 0x562   :  { %v3232_v6 = vadd.f32 %v3189_v44, %v9068_v7  ;;  %3471 = vmatpush.bf16.msra.mxu0 %v8745_v21  ;;  %3497 = vmatpush.bf16.msra.mxu2 %v8746_v61  ;;  %v3322_v9 = vadd.f32 %v5808_v32, %v3321_v42 }
 0x564   :  { %v5394_v3 = vmul.f32 -1.442695, %v3232_v6  ;;  %v3326_v55 = vsel %vm3325_vm13, %v5808_v32, %v3322_v9 }
 0x565   :  { %v3214_v51 = vpop.f32.mrf.mxu3  ;;  %3424 = vmatmul.bf16.vlgmr.msrb.gmra.mxu0 %v7590_v19  ;;  %3450 = vmatmul.bf16.vlgmr.msrb.gmra.mxu2 %v7590_v19  ;;  %v3331_v22 = vsel %vm3328_vm15, %v3330_v62, %v3326_v55  ;;  %v9080_v55 = vld [vmem:[#allocation160_spill] sm:$0xff] }
 0x566   :  { %5809 = vpow2.f32 %v5394_v3  ;;  %v3215_v36 = vadd.f32 %v3214_v51, %v7568_v47  ;;  %3472 = vmatpush.bf16.msra.mxu0 %v8748_v14  ;;  %3498 = vmatpush.bf16.msra.mxu2 %v8749_v28  ;;  %v3314_v47 = vand.u32 2147483648, %v7584_v45  ;;  %v3351_v15 = vmul.f32 %v3331_v22, %v7427_v39  ;;  %v9082_v62 = vld [vmem:[#allocation12_spill] sm:$0xff] }
 0x567   :  { %v3190_v41 = vpop.f32.mrf.mxu1  ;;  %v9086_v22 = vld [vmem:[#allocation16_spill] sm:$0xff] }
 0x568   :  { %v3233_v16 = vadd.f32 %v3215_v36, %v9069_v58  ;;  %v3315_v44 = vor.u32 1.1754944e-38, %v3314_v47  ;;  %v9073_v47 = vld [vmem:[#allocation89_spill] sm:$0xff] }
 0x56a   :  { %5811 = vtanh.f32 %v3233_v16  ;;  %3473 = vmatpush.bf16.msra.mxu0 %v8752_v46  ;;  %3499 = vmatpush.bf16.msra.mxu2 %v8753_v50  ;;  %v3316_v45 = vsel %vm3313_vm14, %v3315_v44, %v3311_v12  ;;  %v9079_v12 = vld [vmem:[#allocation158_spill] sm:$0xff]  ;;  %v9083_v44 = vld [vmem:[#allocation101_spill] sm:$0xff] }
 0x56c   :  { %v5810_v54 = vpop.eup %5809 }
 0x56d   :  { %v3257_v4 = vadd.f32 1.0, %v5810_v54  ;;  %v3216_v43 = vpop.f32.mrf.mxu3  ;;  %v9077_v54 = vld [vmem:[#allocation93_spill] sm:$0xff] }
 0x56e   :  { %3474 = vmatpush.bf16.msra.mxu0 %v8653_v35  ;;  %3500 = vmatpush.bf16.msra.mxu2 %v8654_v25  ;;  %v9081_v43 = vld [vmem:[#allocation10_spill] sm:$0xff] }
 0x56f   :  { %5813 = vrcp.f32 %v3257_v4  ;;  %v3344_v42 = vand.u32 2147483648, %v3257_v4  ;;  %v3342_v51 = vand.u32 2147483647, %v3257_v4  ;;  %vm3338_vm1 = vweird.f32 %v3257_v4 }
 0x570   :  { %v5812_v17 = vpop.eup %5811 }
 0x571   :  { %v3353_v57 = vmul.f32 %v5812_v17, %v3316_v45  ;;  %v3345_v36 = vor.u32 1.1754944e-38, %v3344_v42  ;;  %vm3343_vm3 = vcmp.eq.f32.partialorder %v3342_v51, 8.507059e+37  ;;  %v9084_v17 = vld [vmem:[#allocation103_spill] sm:$0xff]  ;;  %v9085_v45 = vld [vmem:[#allocation14_spill] sm:$0xff]  ;;  %v9094_v51 = vld [vmem:[#allocation24_spill] sm:$0xff] }
 0x572   :  { %3475 = vmatpush.bf16.msra.mxu0 %v6507_v33  ;;  %3501 = vmatpush.bf16.msra.mxu2 %v6513_v53  ;;  %v9092_v42 = vld [vmem:[#allocation115_spill] sm:$0xff] }
 0x573   :  { %v7625_v7 = vadd.f32 %v3353_v57, %v3351_v15  ;;  %v9087_v57 = vld [vmem:[#allocation105_spill] sm:$0xff]  ;;  %v9088_v15 = vld [vmem:[#allocation107_spill] sm:$0xff] }
 0x575   :  { %v5814_v32 = vpop.eup %5813  ;;  %3476 = vmatmul.bf16.vlgmr.msra.gmra.mxu0 %v7590_v19  ;;  %3502 = vmatmul.bf16.vlgmr.msra.gmra.mxu2 %v7590_v19  ;;  %5815 = vtanh.f32 %v7625_v7 }
 0x576   :  { %v3334_v6 = vmul.f32 %v5814_v32, %v3257_v4  ;;  %3520 = vmatpush.bf16.msrb.mxu0 %v6521_v31  ;;  %3546 = vmatpush.bf16.msrb.mxu2 %v6529_v59  ;;  %vm3339_vm0 = vweird.f32 %v5814_v32  ;;  %v9078_v4 = vld [vmem:[#allocation95_spill] sm:$0xff] }
 0x577   :  { %vm3340_vm2 = vmor %vm3338_vm1, %vm3339_vm0 }
 0x578   :  { %v3335_v3 = vsub.f32 1.0, %v3334_v6  ;;  %v9090_v6 = vld [vmem:[#allocation20_spill] sm:$0xff] }
 0x57a   :  { %v3336_v39 = vmul.f32 %v5814_v32, %v3335_v3  ;;  %3521 = vmatpush.bf16.msrb.mxu0 %v8655_v24  ;;  %3547 = vmatpush.bf16.msrb.mxu2 %v8656_v8  ;;  %v9091_v3 = vld [vmem:[#allocation113_spill] sm:$0xff] }
 0x57b   :  { %v5816_v58 = vpop.eup %5815 }
 0x57c   :  { %v3337_v26 = vadd.f32 %v5814_v32, %v3336_v39  ;;  %v9093_v39 = vld [vmem:[#allocation22_spill] sm:$0xff] }
 0x57e   :  { %v3341_v41 = vsel %vm3340_vm2, %v5814_v32, %v3337_v26  ;;  %3522 = vmatpush.bf16.msrb.mxu0 %v8657_v23  ;;  %3548 = vmatpush.bf16.msrb.mxu2 %v8658_v1  ;;  %v9089_v32 = vld [vmem:[#allocation18_spill] sm:$0xff]  ;;  %v9096_v26 = vld [vmem:[#allocation117_spill] sm:$0xff] }
 0x57f   :  { %v3346_v16 = vsel %vm3343_vm3, %v3345_v36, %v3341_v41  ;;  %v9097_v36 = vld [vmem:[#allocation120_spill] sm:$0xff]  ;;  %v9098_v41 = vld [vmem:[#allocation123_spill] sm:$0xff] }
 0x580   :  { %v3359_v10 = vmul.f32 %v5816_v58, %v3346_v16  ;;  %v9099_v58 = vld [vmem:[#allocation26_spill] sm:$0xff]  ;;  %v9100_v16 = vld [vmem:[#allocation28_spill] sm:$0xff] }
 0x582   :  { %5396 = vst [vmem:[%s8158_s5 + $0x38] sm:$0xff] %v3359_v10  ;;  %v7641_v9 = vpack.c.bf16 %v3359_v10, %v3359_v10  ;;  %3523 = vmatpush.bf16.msrb.mxu0 %v8659_v13  ;;  %3549 = vmatpush.bf16.msrb.mxu2 %v8660_v2  ;;  %v9101_v10 = vld [vmem:[#allocation125_spill] sm:$0xff] }
 0x584   :  { %3385 = vmatmul.bf16.vlgmr.msra.gmra.mxu1 %v7641_v9  ;;  %3411 = vmatmul.bf16.vlgmr.msra.gmra.mxu3 %v7641_v9 }
 0x585   :  { %3481 = vmatpush.bf16.msra.mxu1 %v8661_v56  ;;  %3507 = vmatpush.bf16.msra.mxu3 %v8662_v18 }
 0x586   :  { %3524 = vmatpush.bf16.msrb.mxu0 %v8663_v5  ;;  %3550 = vmatpush.bf16.msrb.mxu2 %v6601_v0 }
 0x589   :  { %3482 = vmatpush.bf16.msra.mxu1 %v8664_v34  ;;  %3508 = vmatpush.bf16.msra.mxu3 %v8665_v38 }
 0x58a   :  { %3525 = vmatpush.bf16.msrb.mxu0 %v6607_v11  ;;  %3551 = vmatpush.bf16.msrb.mxu2 %v9072_v60 }
 0x58d   :  { %3483 = vmatpush.bf16.msra.mxu1 %v9073_v47  ;;  %3509 = vmatpush.bf16.msra.mxu3 %v9074_v27 }
 0x58e   :  { %3526 = vmatpush.bf16.msrb.mxu0 %v9075_v63  ;;  %3552 = vmatpush.bf16.msrb.mxu2 %v9076_v48 }
 0x591   :  { %3484 = vmatpush.bf16.msra.mxu1 %v9077_v54  ;;  %3510 = vmatpush.bf16.msra.mxu3 %v9078_v4 }
 0x592   :  { %3527 = vmatpush.bf16.msrb.mxu0 %v9079_v12  ;;  %3553 = vmatpush.bf16.msrb.mxu2 %v9080_v55 }
 0x594   :  { %3437 = vmatmul.bf16.vlgmr.msrb.gmra.mxu1 %v7641_v9  ;;  %3463 = vmatmul.bf16.vlgmr.msrb.gmra.mxu3 %v7641_v9 }
 0x595   :  { %3485 = vmatpush.bf16.msra.mxu1 %v9083_v44  ;;  %3511 = vmatpush.bf16.msra.mxu3 %v9084_v17  ;;  %v9170_v44 = vld [vmem:[#allocation133_spill] sm:$0xff] }
 0x596   :  { %3718 = vmatpush.bf16.msra.mxu0 %v9081_v43  ;;  %3744 = vmatpush.bf16.msra.mxu2 %v9082_v62 }
 0x597   :  { %3528 = vmatmul.bf16.vlgmr.msrb.gmra.mxu0 %v7590_v19  ;;  %3554 = vmatmul.bf16.vlgmr.msrb.gmra.mxu2 %v7590_v19  ;;  %v9095_v19 = vld [vmem:[#allocation116_spill] sm:$0xff] }
 0x599   :  { %3486 = vmatpush.bf16.msra.mxu1 %v9087_v57  ;;  %3512 = vmatpush.bf16.msra.mxu3 %v9088_v15  ;;  %v9161_v15 = vld [vmem:[#allocation59_spill] sm:$0xff] }
 0x59a   :  { %3719 = vmatpush.bf16.msra.mxu0 %v9085_v45  ;;  %3745 = vmatpush.bf16.msra.mxu2 %v9086_v22  ;;  %v9167_v57 = vld [vmem:[#allocation71_spill] sm:$0xff]  ;;  %v9169_v45 = vld [vmem:[#allocation132_spill] sm:$0xff] }
 0x59d   :  { %3487 = vmatpush.bf16.msra.mxu1 %v9091_v3  ;;  %3513 = vmatpush.bf16.msra.mxu3 %v9092_v42  ;;  %v9110_v42 = vld [vmem:[#allocation139_spill] sm:$0xff]  ;;  %v9111_v3 = vld [vmem:[#allocation38_spill] sm:$0xff] }
 0x59e   :  { %3720 = vmatpush.bf16.msra.mxu0 %v9089_v32  ;;  %3746 = vmatpush.bf16.msra.mxu2 %v9090_v6  ;;  %v9157_v6 = vld [vmem:[#allocation51_spill] sm:$0xff] }
 0x59f   :  { %v9159_v32 = vld [vmem:[#allocation55_spill] sm:$0xff] }
 0x5a1   :  { %3488 = vmatpush.bf16.msra.mxu1 %v9095_v19  ;;  %3514 = vmatpush.bf16.msra.mxu3 %v9096_v26  ;;  %v9104_v19 = vld [vmem:[#allocation32_spill] sm:$0xff]  ;;  %v9105_v26 = vld [vmem:[#allocation131_spill] sm:$0xff] }
 0x5a2   :  { %3721 = vmatpush.bf16.msra.mxu0 %v9093_v39  ;;  %3747 = vmatpush.bf16.msra.mxu2 %v9094_v51  ;;  %v9102_v39 = vld [vmem:[#allocation127_spill] sm:$0xff]  ;;  %v9103_v51 = vld [vmem:[#allocation30_spill] sm:$0xff] }
 0x5a4   :  { %3489 = vmatmul.bf16.vlgmr.msra.gmra.mxu1 %v7641_v9  ;;  %3515 = vmatmul.bf16.vlgmr.msra.gmra.mxu3 %v7641_v9 }
 0x5a5   :  { %3533 = vmatpush.bf16.msrb.mxu1 %v9097_v36  ;;  %3559 = vmatpush.bf16.msrb.mxu3 %v9098_v41  ;;  %v9106_v36 = vld [vmem:[#allocation135_spill] sm:$0xff]  ;;  %v9107_v41 = vld [vmem:[#allocation34_spill] sm:$0xff] }
 0x5a6   :  { %3722 = vmatpush.bf16.msra.mxu0 %v9099_v58  ;;  %3748 = vmatpush.bf16.msra.mxu2 %v9100_v16  ;;  %v9108_v58 = vld [vmem:[#allocation36_spill] sm:$0xff]  ;;  %v9109_v16 = vld [vmem:[#allocation137_spill] sm:$0xff] }
 0x5a9   :  { %3534 = vmatpush.bf16.msrb.mxu1 %v9101_v10  ;;  %3560 = vmatpush.bf16.msrb.mxu3 %v9102_v39  ;;  %v9112_v10 = vld [vmem:[#allocation40_spill] sm:$0xff]  ;;  %v9113_v39 = vld [vmem:[#allocation42_spill] sm:$0xff] }
 0x5aa   :  { %3723 = vmatpush.bf16.msra.mxu0 %v9103_v51  ;;  %3749 = vmatpush.bf16.msra.mxu2 %v9104_v19  ;;  %v9114_v51 = vld [vmem:[#allocation44_spill] sm:$0xff]  ;;  %v9115_v19 = vld [vmem:[#allocation143_spill] sm:$0xff] }
 0x5ad   :  { %3535 = vmatpush.bf16.msrb.mxu1 %v9105_v26  ;;  %3561 = vmatpush.bf16.msrb.mxu3 %v9106_v36  ;;  %v9116_v26 = vld [vmem:[#allocation146_spill] sm:$0xff] }
 0x5ae   :  { %3724 = vmatpush.bf16.msra.mxu0 %v9107_v41  ;;  %3750 = vmatpush.bf16.msra.mxu2 %v9108_v58  ;;  %v9117_v36 = vld [vmem:[#allocation46_spill] sm:$0xff]  ;;  %v9118_v41 = vld [vmem:[#allocation48_spill] sm:$0xff]  ;;  %v9119_v58 = vld [vmem:[#allocation147_spill] sm:$0xff] }
 0x5b1   :  { %3536 = vmatpush.bf16.msrb.mxu1 %v9109_v16  ;;  %3562 = vmatpush.bf16.msrb.mxu3 %v9110_v42  ;;  %v9120_v16 = vld [vmem:[#allocation149_spill] sm:$0xff]  ;;  %v9121_v42 = vld [vmem:[#allocation50_spill] sm:$0xff] }
 0x5b2   :  { %3725 = vmatpush.bf16.msra.mxu0 %v9111_v3  ;;  %3751 = vmatpush.bf16.msra.mxu2 %v9112_v10  ;;  %v9122_v3 = vld [vmem:[#allocation52_spill] sm:$0xff]  ;;  %v9123_v10 = vld [vmem:[#allocation153_spill] sm:$0xff] }
 0x5b5   :  { %3537 = vmatpush.bf16.msrb.mxu1 %v9115_v19  ;;  %3563 = vmatpush.bf16.msrb.mxu3 %v9116_v26  ;;  %v9126_v19 = vld [vmem:[#allocation56_spill] sm:$0xff]  ;;  %v9127_v26 = vld [vmem:[#allocation159_spill] sm:$0xff] }
 0x5b6   :  { %3770 = vmatpush.bf16.msrb.mxu0 %v9113_v39  ;;  %3796 = vmatpush.bf16.msrb.mxu2 %v9114_v51  ;;  %v9124_v39 = vld [vmem:[#allocation157_spill] sm:$0xff]  ;;  %v9125_v51 = vld [vmem:[#allocation54_spill] sm:$0xff] }
 0x5b9   :  { %3538 = vmatpush.bf16.msrb.mxu1 %v9119_v58  ;;  %3564 = vmatpush.bf16.msrb.mxu3 %v9120_v16  ;;  %v9130_v58 = vld [vmem:[#allocation13_spill] sm:$0xff]  ;;  %v9131_v16 = vld [vmem:[#allocation58_spill] sm:$0xff] }
 0x5ba   :  { %3771 = vmatpush.bf16.msrb.mxu0 %v9117_v36  ;;  %3797 = vmatpush.bf16.msrb.mxu2 %v9118_v41  ;;  %v9128_v36 = vld [vmem:[#allocation161_spill] sm:$0xff]  ;;  %v9129_v41 = vld [vmem:[#allocation11_spill] sm:$0xff] }
 0x5bd   :  { %3539 = vmatpush.bf16.msrb.mxu1 %v9123_v10  ;;  %3565 = vmatpush.bf16.msrb.mxu3 %v9124_v39  ;;  %v9133_v39 = vld [vmem:[#allocation15_spill] sm:$0xff]  ;;  %v9142_v10 = vld [vmem:[#allocation25_spill] sm:$0xff] }
 0x5be   :  { %3772 = vmatpush.bf16.msrb.mxu0 %v9121_v42  ;;  %3798 = vmatpush.bf16.msrb.mxu2 %v9122_v3  ;;  %v9132_v42 = vld [vmem:[#allocation60_spill] sm:$0xff]  ;;  %v9151_v3 = vld [vmem:[#allocation39_spill] sm:$0xff] }
 0x5c1   :  { %3540 = vmatpush.bf16.msrb.mxu1 %v9127_v26  ;;  %3566 = vmatpush.bf16.msrb.mxu3 %v9128_v36  ;;  %v9136_v26 = vld [vmem:[#allocation64_spill] sm:$0xff]  ;;  %v9137_v36 = vld [vmem:[#allocation19_spill] sm:$0xff] }
 0x5c2   :  { %3773 = vmatpush.bf16.msrb.mxu0 %v9125_v51  ;;  %3799 = vmatpush.bf16.msrb.mxu2 %v9126_v19  ;;  %v9134_v51 = vld [vmem:[#allocation17_spill] sm:$0xff]  ;;  %v9135_v19 = vld [vmem:[#allocation62_spill] sm:$0xff] }
 0x5c4   :  { %3541 = vmatmul.bf16.vlgmr.msrb.gmra.mxu1 %v7641_v9  ;;  %3567 = vmatmul.bf16.vlgmr.msrb.gmra.mxu3 %v7641_v9  ;;  %v9143_v9 = vld [vmem:[#allocation70_spill] sm:$0xff] }
 0x5c5   :  { %3731 = vmatpush.bf16.msra.mxu1 %v9129_v41  ;;  %3757 = vmatpush.bf16.msra.mxu3 %v9130_v58  ;;  %v9138_v41 = vld [vmem:[#allocation21_spill] sm:$0xff]  ;;  %v9139_v58 = vld [vmem:[#allocation66_spill] sm:$0xff] }
 0x5c6   :  { %3774 = vmatpush.bf16.msrb.mxu0 %v9131_v16  ;;  %3800 = vmatpush.bf16.msrb.mxu2 %v9132_v42  ;;  %v9140_v16 = vld [vmem:[#allocation68_spill] sm:$0xff]  ;;  %v9141_v42 = vld [vmem:[#allocation23_spill] sm:$0xff] }
 0x5c9   :  { %3732 = vmatpush.bf16.msra.mxu1 %v9133_v39  ;;  %3758 = vmatpush.bf16.msra.mxu3 %v9134_v51  ;;  %v9144_v39 = vld [vmem:[#allocation72_spill] sm:$0xff]  ;;  %v9145_v51 = vld [vmem:[#allocation27_spill] sm:$0xff] }
 0x5ca   :  { %3775 = vmatpush.bf16.msrb.mxu0 %v9135_v19  ;;  %3801 = vmatpush.bf16.msrb.mxu2 %v9136_v26  ;;  %v9146_v19 = vld [vmem:[#allocation29_spill] sm:$0xff]  ;;  %v9147_v26 = vld [vmem:[#allocation31_spill] sm:$0xff] }
 0x5cd   :  { %3733 = vmatpush.bf16.msra.mxu1 %v9137_v36  ;;  %3759 = vmatpush.bf16.msra.mxu3 %v9138_v41  ;;  %v9148_v36 = vld [vmem:[#allocation33_spill] sm:$0xff] }
 0x5ce   :  { %3776 = vmatpush.bf16.msrb.mxu0 %v9139_v58  ;;  %3802 = vmatpush.bf16.msrb.mxu2 %v9140_v16  ;;  %v9149_v58 = vld [vmem:[#allocation35_spill] sm:$0xff]  ;;  %v9150_v16 = vld [vmem:[#allocation37_spill] sm:$0xff] }
 0x5d1   :  { %3734 = vmatpush.bf16.msra.mxu1 %v9141_v42  ;;  %3760 = vmatpush.bf16.msra.mxu3 %v9142_v10  ;;  %v9152_v10 = vld [vmem:[#allocation41_spill] sm:$0xff] }
 0x5d2   :  { %3777 = vmatpush.bf16.msrb.mxu0 %v9143_v9  ;;  %3803 = vmatpush.bf16.msrb.mxu2 %v9144_v39  ;;  %v3373_v41 = vpop.f32.mrf.mxu0  ;;  %v9153_v9 = vld [vmem:[#allocation43_spill] sm:$0xff]  ;;  %v9154_v39 = vld [vmem:[#allocation45_spill] sm:$0xff] }
 0x5d5   :  { %3735 = vmatpush.bf16.msra.mxu1 %v9145_v51  ;;  %3761 = vmatpush.bf16.msra.mxu3 %v9146_v19  ;;  %v9155_v19 = vld [vmem:[#allocation47_spill] sm:$0xff] }
 0x5d8   :  { %v3399_v42 = vpop.f32.mrf.mxu2 }
 0x5d9   :  { %3736 = vmatpush.bf16.msra.mxu1 %v9147_v26  ;;  %3762 = vmatpush.bf16.msra.mxu3 %v9148_v36  ;;  %v9156_v26 = vld [vmem:[#allocation49_spill] sm:$0xff] }
 0x5da   :  { %v3375_v51 = vpop.f32.mrf.mxu0 }
 0x5dd   :  { %3737 = vmatpush.bf16.msra.mxu1 %v9149_v58  ;;  %3763 = vmatpush.bf16.msra.mxu3 %v9150_v16  ;;  %v9158_v58 = vld [vmem:[#allocation53_spill] sm:$0xff] }
 0x5e0   :  { %v3401_v36 = vpop.f32.mrf.mxu2 }
 0x5e1   :  { %3738 = vmatpush.bf16.msra.mxu1 %v9151_v3  ;;  %3764 = vmatpush.bf16.msra.mxu3 %v9152_v10  ;;  %v9160_v3 = vld [vmem:[#allocation57_spill] sm:$0xff] }
 0x5e2   :  { %v3425_v16 = vpop.f32.mrf.mxu0 }
 0x5e5   :  { %3783 = vmatpush.bf16.msrb.mxu1 %v9153_v9  ;;  %3809 = vmatpush.bf16.msrb.mxu3 %v9154_v39  ;;  %v9162_v9 = vld [vmem:[#allocation61_spill] sm:$0xff]  ;;  %v9163_v39 = vld [vmem:[#allocation63_spill] sm:$0xff] }
 0x5e8   :  { %v3451_v10 = vpop.f32.mrf.mxu2 }
 0x5e9   :  { %3784 = vmatpush.bf16.msrb.mxu1 %v9155_v19  ;;  %3810 = vmatpush.bf16.msrb.mxu3 %v9156_v26  ;;  %v9164_v19 = vld [vmem:[#allocation65_spill] sm:$0xff]  ;;  %v9165_v26 = vld [vmem:[#allocation67_spill] sm:$0xff] }
 0x5ea   :  { %v3427_v51 = vpop.f32.mrf.mxu0 }
 0x5ed   :  { %3785 = vmatpush.bf16.msrb.mxu1 %v9157_v6  ;;  %3811 = vmatpush.bf16.msrb.mxu3 %v9158_v58  ;;  %v9166_v6 = vld [vmem:[#allocation69_spill] sm:$0xff] }
 0x5f0   :  { %v3453_v36 = vpop.f32.mrf.mxu2 }
 0x5f1   :  { %3786 = vmatpush.bf16.msrb.mxu1 %v9159_v32  ;;  %3812 = vmatpush.bf16.msrb.mxu3 %v9160_v3  ;;  %v9168_v32 = vld [vmem:[#allocation73_spill] sm:$0xff] }
 0x5f2   :  { %v3477_v58 = vpop.f32.mrf.mxu0 }
 0x5f5   :  { %3787 = vmatpush.bf16.msrb.mxu1 %v9161_v15  ;;  %3813 = vmatpush.bf16.msrb.mxu3 %v9162_v9 }
 0x5f8   :  { %v7759_v3 = vpop.f32.mrf.mxu2 }
 0x5f9   :  { %3788 = vmatpush.bf16.msrb.mxu1 %v9163_v39  ;;  %3814 = vmatpush.bf16.msrb.mxu3 %v9164_v19 }
 0x5fa   :  { %v3479_v15 = vpop.f32.mrf.mxu0 }
 0x5fd   :  { %3789 = vmatpush.bf16.msrb.mxu1 %v9165_v26  ;;  %3815 = vmatpush.bf16.msrb.mxu3 %v9166_v6 }
 0x600   :  { %v3505_v51 = vpop.f32.mrf.mxu2 }
 0x601   :  { %3790 = vmatpush.bf16.msrb.mxu1 %v9167_v57  ;;  %3816 = vmatpush.bf16.msrb.mxu3 %v9168_v32  ;;  %v3386_v22 = vpop.f32.mrf.mxu1 }
 0x602   :  { %v3387_v9 = vadd.f32 %v3386_v22, %v3373_v41  ;;  %v9171_v41 = vld [vmem:[#allocation140_spill] sm:$0xff] }
 0x604   :  { %v3576_v39 = vadd.f32 %v3387_v9, %v9169_v45 }
 0x606   :  { %v5397_v17 = vmul.f32 -1.442695, %v3576_v39 }
 0x607   :  { %v3412_v19 = vpop.f32.mrf.mxu3 }
 0x608   :  { %5817 = vpow2.f32 %v5397_v17  ;;  %v3413_v36 = vadd.f32 %v3412_v19, %v3399_v42 }
 0x609   :  { %v3388_v26 = vpop.f32.mrf.mxu1 }
 0x60a   :  { %v3577_v6 = vadd.f32 %v3413_v36, %v9170_v44 }
 0x60c   :  { %v5398_v62 = vmul.f32 -1.442695, %v3577_v6 }
 0x60e   :  { %v5818_v43 = vpop.eup %5817  ;;  %5819 = vpow2.f32 %v5398_v62 }
 0x60f   :  { %v3606_v57 = vadd.f32 1.0, %v5818_v43  ;;  %v3414_v32 = vpop.f32.mrf.mxu3 }
 0x610   :  { %v9172_v32 = vld [vmem:[#allocation141_spill] sm:$0xff] }
 0x611   :  { %5821 = vrcp.f32 %v3606_v57  ;;  %v3438_v55 = vpop.f32.mrf.mxu1  ;;  %vm3617_vm5 = vweird.f32 %v3606_v57 }
 0x612   :  { %v3439_v15 = vadd.f32 %v3438_v55, %v3425_v16 }
 0x614   :  { %v7763_v12 = vpop.f32.mrf.mxu0  ;;  %v5820_v22 = vpop.eup %5819  ;;  %v3578_v45 = vadd.f32 %v3439_v15, %v9171_v41  ;;  %v3623_v41 = vand.u32 2147483648, %v3606_v57 }
 0x615   :  { %v3607_v39 = vadd.f32 1.0, %v5820_v22 }
 0x616   :  { %v5399_v9 = vmul.f32 -1.442695, %v3578_v45 }
 0x617   :  { %v5822_v17 = vpop.eup %5821  ;;  %5823 = vrcp.f32 %v3607_v39  ;;  %v3464_v42 = vpop.f32.mrf.mxu3  ;;  %vm3632_vm8 = vweird.f32 %v3607_v39 }
 0x618   :  { %v3613_v19 = vmul.f32 %v5822_v17, %v3606_v57  ;;  %5825 = vpow2.f32 %v5399_v9  ;;  %v3465_v44 = vadd.f32 %v3464_v42, %v3451_v10  ;;  %vm3618_vm4 = vweird.f32 %v5822_v17 }
 0x619   :  { %v3440_v43 = vpop.f32.mrf.mxu1  ;;  %v3621_v10 = vand.u32 2147483647, %v3606_v57  ;;  %v3638_v9 = vand.u32 2147483648, %v3607_v39  ;;  %vm3619_vm6 = vmor %vm3617_vm5, %vm3618_vm4  ;;  %v3636_v42 = vand.u32 2147483647, %v3607_v39 }
 0x61a   :  { %v7766_v6 = vpop.f32.mrf.mxu2  ;;  %v3614_v62 = vsub.f32 1.0, %v3613_v19  ;;  %v3579_v26 = vadd.f32 %v3465_v44, %v9172_v32 }
 0x61b   :  { %vm3622_vm9 = vcmp.eq.f32.partialorder %v3621_v10, 8.507059e+37  ;;  %v3639_v57 = vor.u32 1.1754944e-38, %v3638_v9  ;;  %vm3637_vm11 = vcmp.eq.f32.partialorder %v3636_v42, 8.507059e+37 }
 0x61c   :  { %v3531_v55 = vpop.f32.mrf.mxu0  ;;  %v3615_v16 = vmul.f32 %v5822_v17, %v3614_v62  ;;  %5827 = vtanh.f32 %v3579_v26 }
 0x61d   :  { %v5824_v51 = vpop.eup %5823  ;;  %v3624_v55 = vor.u32 1.1754944e-38, %v3623_v41 }
 0x61e   :  { %v5826_v36 = vpop.eup %5825  ;;  %v3628_v4 = vmul.f32 %v5824_v51, %v3607_v39  ;;  %v3616_v15 = vadd.f32 %v5822_v17, %v3615_v16  ;;  %vm3633_vm7 = vweird.f32 %v5824_v51 }
 0x61f   :  { %v3608_v22 = vadd.f32 1.0, %v5826_v36  ;;  %v3466_v45 = vpop.f32.mrf.mxu3  ;;  %v9173_v36 = vld [vmem:[#allocation172_spill] sm:$0xff]  ;;  %vm3634_vm10 = vmor %vm3632_vm8, %vm3633_vm7 }
 0x620   :  { %v3629_v54 = vsub.f32 1.0, %v3628_v4  ;;  %v3620_v62 = vsel %vm3619_vm6, %v5822_v17, %v3616_v15 }
 0x621   :  { %5829 = vrcp.f32 %v3608_v22  ;;  %v3490_v44 = vpop.f32.mrf.mxu1  ;;  %v3625_v4 = vsel %vm3622_vm9, %v3624_v55, %v3620_v62  ;;  %v3651_v42 = vand.u32 2147483647, %v3608_v22  ;;  %vm3647_vm13 = vweird.f32 %v3608_v22 }
 0x622   :  { %v3557_v19 = vpop.f32.mrf.mxu2  ;;  %v3630_v43 = vmul.f32 %v5824_v51, %v3629_v54  ;;  %v3491_v32 = vadd.f32 %v3490_v44, %v3477_v58  ;;  %v5828_v45 = vpop.eup %5827  ;;  %v3653_v44 = vand.u32 2147483648, %v3608_v22 }
 0x623   :  { %v3706_v58 = vmul.f32 %v5828_v45, %v3625_v4  ;;  %vm3652_vm15 = vcmp.eq.f32.partialorder %v3651_v42, 8.507059e+37 }
 0x624   :  { %v3631_v16 = vadd.f32 %v5824_v51, %v3630_v43  ;;  %v3584_v26 = vadd.f32 %v3491_v32, %v9173_v36  ;;  %v9174_v43 = vld [vmem:[#allocation173_spill] sm:$0xff] }
 0x626   :  { %v3635_v48 = vsel %vm3634_vm10, %v5824_v51, %v3631_v16  ;;  %v5400_v63 = vmul.f32 -1.442695, %v3584_v26 }
 0x627   :  { %v5830_v27 = vpop.eup %5829  ;;  %v3640_v19 = vsel %vm3637_vm11, %v3639_v57, %v3635_v48  ;;  %v3516_v47 = vpop.f32.mrf.mxu3 }
 0x628   :  { %v3643_v54 = vmul.f32 %v5830_v27, %v3608_v22  ;;  %v3704_v17 = vmul.f32 %v3640_v19, %v7580_v30  ;;  %5831 = vpow2.f32 %v5400_v63  ;;  %v3517_v39 = vadd.f32 %v3516_v47, %v7759_v3 }
 0x629   :  { %v3492_v15 = vpop.f32.mrf.mxu1  ;;  %vm3648_vm12 = vweird.f32 %v5830_v27  ;;  %v3654_v30 = vor.u32 1.1754944e-38, %v3653_v44 }
 0x62a   :  { %v3644_v41 = vsub.f32 1.0, %v3643_v54  ;;  %v7772_v10 = vadd.f32 %v3706_v58, %v3704_v17  ;;  %v3585_v9 = vadd.f32 %v3517_v39, %v9174_v43  ;;  %vm3649_vm14 = vmor %vm3647_vm13, %vm3648_vm12  ;;  %v9175_v15 = vld [vmem:[#allocation174_spill] sm:$0xff] }
 0x62c   :  { %v3645_v51 = vmul.f32 %v5830_v27, %v3644_v41  ;;  %5833 = vtanh.f32 %v7772_v10  ;;  %v5401_v48 = vmul.f32 -1.442695, %v3585_v9 }
 0x62e   :  { %v5832_v62 = vpop.eup %5831  ;;  %v3646_v32 = vadd.f32 %v5830_v27, %v3645_v51  ;;  %5835 = vpow2.f32 %v5401_v48  ;;  %v9176_v48 = vld [vmem:[#allocation175_spill] sm:$0xff] }
 0x62f   :  { %v7776_v63 = vadd.f32 1.0, %v5832_v62  ;;  %v3518_v47 = vpop.f32.mrf.mxu3 }
 0x630   :  { %v3650_v3 = vsel %vm3649_vm14, %v5830_v27, %v3646_v32 }
 0x631   :  { %v3655_v55 = vsel %vm3652_vm15, %v3654_v30, %v3650_v3  ;;  %5837 = vrcp.f32 %v7776_v63  ;;  %vm3662_vm2 = vweird.f32 %v7776_v63  ;;  %v9180_v3 = vld [vmem:[#allocation91_spill] sm:$0xff] }
 0x632   :  { %v5834_v16 = vpop.eup %5833 }
 0x633   :  { %v3712_v36 = vmul.f32 %v5834_v16, %v3655_v55  ;;  %v3666_v55 = vand.u32 2147483647, %v7776_v63 }
 0x634   :  { %v5836_v26 = vpop.eup %5835 }
 0x635   :  { %5403 = vst [vmem:[%s8158_s5 + $0x50] sm:$0xff] %v3712_v36  ;;  %v7782_v45 = vpack.c.bf16 %v3712_v36, %v3712_v36  ;;  %v3610_v22 = vadd.f32 1.0, %v5836_v26  ;;  %vm3667_vm6 = vcmp.eq.f32.partialorder %v3666_v55, 8.507059e+37  ;;  %v9181_v55 = vld [vmem:[#allocation152_spill] sm:$0xff] }
 0x637   :  { %3726 = vmatmul.bf16.vlgmr.msra.gmra.mxu0 %v7782_v45  ;;  %3752 = vmatmul.bf16.vlgmr.msra.gmra.mxu2 %v7782_v45  ;;  %5839 = vrcp.f32 %v3610_v22  ;;  %v5838_v27 = vpop.eup %5837  ;;  %v3683_v47 = vand.u32 2147483648, %v3610_v22  ;;  %vm3677_vm3 = vweird.f32 %v3610_v22  ;;  %v3681_v16 = vand.u32 2147483647, %v3610_v22 }
 0x638   :  { %3822 = vmatpush.bf16.msra.mxu0 %v8641_v37  ;;  %3848 = vmatpush.bf16.msra.mxu2 %v8642_v29  ;;  %v3658_v4 = vmul.f32 %v5838_v27, %v7776_v63  ;;  %vm3663_vm0 = vweird.f32 %v5838_v27 }
 0x639   :  { %vm7805_vm4 = vmor %vm3662_vm2, %vm3663_vm0  ;;  %vm3682_vm7 = vcmp.eq.f32.partialorder %v3681_v16, 8.507059e+37  ;;  %v9182_v16 = vld [vmem:[#allocation156_spill] sm:$0xff] }
 0x63a   :  { %v3659_v58 = vsub.f32 1.0, %v3658_v4 }
 0x63c   :  { %3823 = vmatpush.bf16.msra.mxu0 %v8643_v49  ;;  %3849 = vmatpush.bf16.msra.mxu2 %v8742_v52  ;;  %v3660_v51 = vmul.f32 %v5838_v27, %v3659_v58 }
 0x63d   :  { %v5840_v57 = vpop.eup %5839 }
 0x63e   :  { %v3673_v54 = vmul.f32 %v5840_v57, %v3610_v22  ;;  %vm3678_vm1 = vweird.f32 %v5840_v57  ;;  %v3661_v32 = vadd.f32 %v5838_v27, %v3660_v51 }
 0x63f   :  { %vm3679_vm5 = vmor %vm3677_vm3, %vm3678_vm1 }
 0x640   :  { %3824 = vmatpush.bf16.msra.mxu0 %v8645_v40  ;;  %3850 = vmatpush.bf16.msra.mxu2 %v8743_v20  ;;  %v3674_v39 = vsub.f32 1.0, %v3673_v54  ;;  %v3665_v4 = vsel %vm7805_vm4, %v5838_v27, %v3661_v32 }
 0x641   :  { %v3542_v19 = vpop.f32.mrf.mxu1 }
 0x642   :  { %v3543_v17 = vadd.f32 %v3542_v19, %v7763_v12  ;;  %v3675_v43 = vmul.f32 %v5840_v57, %v3674_v39 }
 0x644   :  { %v3586_v41 = vadd.f32 %v3543_v17, %v9175_v15  ;;  %3825 = vmatpush.bf16.msra.mxu0 %v8745_v21  ;;  %3851 = vmatpush.bf16.msra.mxu2 %v8746_v61  ;;  %v3676_v30 = vadd.f32 %v5840_v57, %v3675_v43  ;;  %v3684_v17 = vor.u32 1.1754944e-38, %v3683_v47 }
 0x646   :  { %v5402_v44 = vmul.f32 -1.442695, %v3586_v41  ;;  %v3680_v19 = vsel %vm3679_vm5, %v5840_v57, %v3676_v30 }
 0x647   :  { %v3568_v9 = vpop.f32.mrf.mxu3  ;;  %3778 = vmatmul.bf16.vlgmr.msrb.gmra.mxu0 %v7782_v45  ;;  %3804 = vmatmul.bf16.vlgmr.msrb.gmra.mxu2 %v7782_v45  ;;  %v3685_v22 = vsel %vm3682_vm7, %v3684_v17, %v3680_v19  ;;  %v9186_v19 = vld [vmem:[#allocation160_spill] sm:$0xff] }
 0x648   :  { %5841 = vpow2.f32 %v5402_v44  ;;  %v3569_v42 = vadd.f32 %v3568_v9, %v7766_v6  ;;  %3826 = vmatpush.bf16.msra.mxu0 %v8748_v14  ;;  %3852 = vmatpush.bf16.msra.mxu2 %v8749_v28  ;;  %v3668_v6 = vand.u32 2147483648, %v7776_v63  ;;  %v3705_v27 = vmul.f32 %v3685_v22, %v7625_v7  ;;  %v9188_v17 = vld [vmem:[#allocation12_spill] sm:$0xff] }
 0x649   :  { %v3544_v12 = vpop.f32.mrf.mxu1  ;;  %v9192_v22 = vld [vmem:[#allocation16_spill] sm:$0xff] }
 0x64a   :  { %v3587_v62 = vadd.f32 %v3569_v42, %v9176_v48  ;;  %v3669_v58 = vor.u32 1.1754944e-38, %v3668_v6  ;;  %v9179_v6 = vld [vmem:[#allocation89_spill] sm:$0xff] }
 0x64c   :  { %5843 = vtanh.f32 %v3587_v62  ;;  %3827 = vmatpush.bf16.msra.mxu0 %v8752_v46  ;;  %3853 = vmatpush.bf16.msra.mxu2 %v8753_v50  ;;  %v3670_v63 = vsel %vm3667_vm6, %v3669_v58, %v3665_v4  ;;  %v9185_v4 = vld [vmem:[#allocation158_spill] sm:$0xff]  ;;  %v9189_v58 = vld [vmem:[#allocation101_spill] sm:$0xff] }
 0x64e   :  { %v5842_v36 = vpop.eup %5841 }
 0x64f   :  { %v3611_v26 = vadd.f32 1.0, %v5842_v36  ;;  %v3570_v54 = vpop.f32.mrf.mxu3  ;;  %v9183_v36 = vld [vmem:[#allocation93_spill] sm:$0xff] }
 0x650   :  { %3828 = vmatpush.bf16.msra.mxu0 %v8653_v35  ;;  %3854 = vmatpush.bf16.msra.mxu2 %v8654_v25  ;;  %v9187_v54 = vld [vmem:[#allocation10_spill] sm:$0xff] }
 0x651   :  { %5845 = vrcp.f32 %v3611_v26  ;;  %v3698_v9 = vand.u32 2147483648, %v3611_v26  ;;  %v3696_v51 = vand.u32 2147483647, %v3611_v26  ;;  %vm3692_vm9 = vweird.f32 %v3611_v26 }
 0x652   :  { %v5844_v39 = vpop.eup %5843 }
 0x653   :  { %v3707_v15 = vmul.f32 %v5844_v39, %v3670_v63  ;;  %v3699_v12 = vor.u32 1.1754944e-38, %v3698_v9  ;;  %vm3697_vm11 = vcmp.eq.f32.partialorder %v3696_v51, 8.507059e+37  ;;  %v9190_v39 = vld [vmem:[#allocation103_spill] sm:$0xff]  ;;  %v9191_v63 = vld [vmem:[#allocation14_spill] sm:$0xff]  ;;  %v9200_v51 = vld [vmem:[#allocation24_spill] sm:$0xff] }
 0x654   :  { %3829 = vmatpush.bf16.msra.mxu0 %v6507_v33  ;;  %3855 = vmatpush.bf16.msra.mxu2 %v6513_v53  ;;  %v9198_v9 = vld [vmem:[#allocation115_spill] sm:$0xff] }
 0x655   :  { %v7817_v41 = vadd.f32 %v3707_v15, %v3705_v27  ;;  %v9193_v15 = vld [vmem:[#allocation105_spill] sm:$0xff]  ;;  %v9194_v27 = vld [vmem:[#allocation107_spill] sm:$0xff] }
 0x657   :  { %v5846_v57 = vpop.eup %5845  ;;  %3830 = vmatmul.bf16.vlgmr.msra.gmra.mxu0 %v7782_v45  ;;  %3856 = vmatmul.bf16.vlgmr.msra.gmra.mxu2 %v7782_v45  ;;  %5847 = vtanh.f32 %v7817_v41 }
 0x658   :  { %v3688_v44 = vmul.f32 %v5846_v57, %v3611_v26  ;;  %3874 = vmatpush.bf16.msrb.mxu0 %v6521_v31  ;;  %3900 = vmatpush.bf16.msrb.mxu2 %v6529_v59  ;;  %vm3693_vm8 = vweird.f32 %v5846_v57  ;;  %v9184_v26 = vld [vmem:[#allocation95_spill] sm:$0xff] }
 0x659   :  { %vm3694_vm10 = vmor %vm3692_vm9, %vm3693_vm8 }
 0x65a   :  { %v3689_v43 = vsub.f32 1.0, %v3688_v44  ;;  %v9196_v44 = vld [vmem:[#allocation20_spill] sm:$0xff] }
 0x65c   :  { %v3690_v7 = vmul.f32 %v5846_v57, %v3689_v43  ;;  %3875 = vmatpush.bf16.msrb.mxu0 %v8655_v24  ;;  %3901 = vmatpush.bf16.msrb.mxu2 %v8656_v8  ;;  %v9197_v43 = vld [vmem:[#allocation113_spill] sm:$0xff] }
 0x65d   :  { %v5848_v62 = vpop.eup %5847 }
 0x65e   :  { %v3691_v42 = vadd.f32 %v5846_v57, %v3690_v7  ;;  %v9199_v7 = vld [vmem:[#allocation22_spill] sm:$0xff] }
 0x660   :  { %v3695_v48 = vsel %vm3694_vm10, %v5846_v57, %v3691_v42  ;;  %3876 = vmatpush.bf16.msrb.mxu0 %v8657_v23  ;;  %3902 = vmatpush.bf16.msrb.mxu2 %v8658_v1  ;;  %v9195_v57 = vld [vmem:[#allocation18_spill] sm:$0xff]  ;;  %v9202_v42 = vld [vmem:[#allocation117_spill] sm:$0xff] }
 0x661   :  { %v3700_v32 = vsel %vm3697_vm11, %v3699_v12, %v3695_v48  ;;  %v9203_v12 = vld [vmem:[#allocation120_spill] sm:$0xff]  ;;  %v9204_v48 = vld [vmem:[#allocation123_spill] sm:$0xff] }
 0x662   :  { %v3713_v30 = vmul.f32 %v5848_v62, %v3700_v32  ;;  %v9205_v62 = vld [vmem:[#allocation26_spill] sm:$0xff]  ;;  %v9206_v32 = vld [vmem:[#allocation28_spill] sm:$0xff] }
 0x664   :  { %5404 = vst [vmem:[%s8158_s5 + $0x28] sm:$0xff] %v3713_v30  ;;  %v7833_v47 = vpack.c.bf16 %v3713_v30, %v3713_v30  ;;  %3877 = vmatpush.bf16.msrb.mxu0 %v8659_v13  ;;  %3903 = vmatpush.bf16.msrb.mxu2 %v8660_v2  ;;  %v9207_v30 = vld [vmem:[#allocation125_spill] sm:$0xff] }
 0x666   :  { %3739 = vmatmul.bf16.vlgmr.msra.gmra.mxu1 %v7833_v47  ;;  %3765 = vmatmul.bf16.vlgmr.msra.gmra.mxu3 %v7833_v47 }
 0x667   :  { %3835 = vmatpush.bf16.msra.mxu1 %v8661_v56  ;;  %3861 = vmatpush.bf16.msra.mxu3 %v8662_v18 }
 0x668   :  { %3878 = vmatpush.bf16.msrb.mxu0 %v8663_v5  ;;  %3904 = vmatpush.bf16.msrb.mxu2 %v6601_v0 }
 0x66b   :  { %3836 = vmatpush.bf16.msra.mxu1 %v8664_v34  ;;  %3862 = vmatpush.bf16.msra.mxu3 %v8665_v38 }
 0x66c   :  { %3879 = vmatpush.bf16.msrb.mxu0 %v6607_v11  ;;  %3905 = vmatpush.bf16.msrb.mxu2 %v9072_v60 }
 0x66f   :  { %3837 = vmatpush.bf16.msra.mxu1 %v9179_v6  ;;  %3863 = vmatpush.bf16.msra.mxu3 %v9180_v3 }
 0x670   :  { %3880 = vmatpush.bf16.msrb.mxu0 %v9181_v55  ;;  %3906 = vmatpush.bf16.msrb.mxu2 %v9182_v16 }
 0x673   :  { %3838 = vmatpush.bf16.msra.mxu1 %v9183_v36  ;;  %3864 = vmatpush.bf16.msra.mxu3 %v9184_v26 }
 0x674   :  { %3881 = vmatpush.bf16.msrb.mxu0 %v9185_v4  ;;  %3907 = vmatpush.bf16.msrb.mxu2 %v9186_v19 }
 0x676   :  { %3791 = vmatmul.bf16.vlgmr.msrb.gmra.mxu1 %v7833_v47  ;;  %3817 = vmatmul.bf16.vlgmr.msrb.gmra.mxu3 %v7833_v47 }
 0x677   :  { %3839 = vmatpush.bf16.msra.mxu1 %v9189_v58  ;;  %3865 = vmatpush.bf16.msra.mxu3 %v9190_v39 }
 0x678   :  { %4072 = vmatpush.bf16.msra.mxu0 %v9187_v54  ;;  %4098 = vmatpush.bf16.msra.mxu2 %v9188_v17  ;;  %v9208_v54 = vld [vmem:[#allocation127_spill] sm:$0xff]  ;;  %v9209_v17 = vld [vmem:[#allocation30_spill] sm:$0xff] }
 0x679   :  { %3882 = vmatmul.bf16.vlgmr.msrb.gmra.mxu0 %v7782_v45  ;;  %3908 = vmatmul.bf16.vlgmr.msrb.gmra.mxu2 %v7782_v45  ;;  %v9201_v45 = vld [vmem:[#allocation116_spill] sm:$0xff] }
 0x67b   :  { %3840 = vmatpush.bf16.msra.mxu1 %v9193_v15  ;;  %3866 = vmatpush.bf16.msra.mxu3 %v9194_v27  ;;  %v9276_v15 = vld [vmem:[#allocation145_spill] sm:$0xff] }
 0x67c   :  { %4073 = vmatpush.bf16.msra.mxu0 %v9191_v63  ;;  %4099 = vmatpush.bf16.msra.mxu2 %v9192_v22  ;;  %v9210_v63 = vld [vmem:[#allocation32_spill] sm:$0xff]  ;;  %v9211_v22 = vld [vmem:[#allocation131_spill] sm:$0xff] }
 0x67f   :  { %3841 = vmatpush.bf16.msra.mxu1 %v9197_v43  ;;  %3867 = vmatpush.bf16.msra.mxu3 %v9198_v9  ;;  %v9275_v43 = vld [vmem:[#allocation144_spill] sm:$0xff] }
 0x680   :  { %4074 = vmatpush.bf16.msra.mxu0 %v9195_v57  ;;  %4100 = vmatpush.bf16.msra.mxu2 %v9196_v44  ;;  %v9212_v57 = vld [vmem:[#allocation135_spill] sm:$0xff]  ;;  %v9213_v44 = vld [vmem:[#allocation34_spill] sm:$0xff] }
 0x683   :  { %3842 = vmatpush.bf16.msra.mxu1 %v9201_v45  ;;  %3868 = vmatpush.bf16.msra.mxu3 %v9202_v42  ;;  %v9267_v42 = vld [vmem:[#allocation59_spill] sm:$0xff] }
 0x684   :  { %4075 = vmatpush.bf16.msra.mxu0 %v9199_v7  ;;  %4101 = vmatpush.bf16.msra.mxu2 %v9200_v51  ;;  %v9214_v7 = vld [vmem:[#allocation36_spill] sm:$0xff]  ;;  %v9215_v51 = vld [vmem:[#allocation137_spill] sm:$0xff]  ;;  %v9273_v45 = vld [vmem:[#allocation71_spill] sm:$0xff] }
 0x686   :  { %3843 = vmatmul.bf16.vlgmr.msra.gmra.mxu1 %v7833_v47  ;;  %3869 = vmatmul.bf16.vlgmr.msra.gmra.mxu3 %v7833_v47 }
 0x687   :  { %3887 = vmatpush.bf16.msrb.mxu1 %v9203_v12  ;;  %3913 = vmatpush.bf16.msrb.mxu3 %v9204_v48  ;;  %v9263_v48 = vld [vmem:[#allocation51_spill] sm:$0xff] }
 0x688   :  { %4076 = vmatpush.bf16.msra.mxu0 %v9205_v62  ;;  %4102 = vmatpush.bf16.msra.mxu2 %v9206_v32  ;;  %v9216_v62 = vld [vmem:[#allocation139_spill] sm:$0xff]  ;;  %v9217_v32 = vld [vmem:[#allocation38_spill] sm:$0xff] }
 0x689   :  { %v9265_v12 = vld [vmem:[#allocation55_spill] sm:$0xff] }
 0x68b   :  { %3888 = vmatpush.bf16.msrb.mxu1 %v9207_v30  ;;  %3914 = vmatpush.bf16.msrb.mxu3 %v9208_v54  ;;  %v9218_v30 = vld [vmem:[#allocation40_spill] sm:$0xff]  ;;  %v9219_v54 = vld [vmem:[#allocation42_spill] sm:$0xff] }
 0x68c   :  { %4077 = vmatpush.bf16.msra.mxu0 %v9209_v17  ;;  %4103 = vmatpush.bf16.msra.mxu2 %v9210_v63  ;;  %v9220_v17 = vld [vmem:[#allocation44_spill] sm:$0xff]  ;;  %v9221_v63 = vld [vmem:[#allocation143_spill] sm:$0xff] }
 0x68f   :  { %3889 = vmatpush.bf16.msrb.mxu1 %v9211_v22  ;;  %3915 = vmatpush.bf16.msrb.mxu3 %v9212_v57  ;;  %v9222_v22 = vld [vmem:[#allocation146_spill] sm:$0xff] }
 0x690   :  { %4078 = vmatpush.bf16.msra.mxu0 %v9213_v44  ;;  %4104 = vmatpush.bf16.msra.mxu2 %v9214_v7  ;;  %v9223_v57 = vld [vmem:[#allocation46_spill] sm:$0xff]  ;;  %v9224_v44 = vld [vmem:[#allocation48_spill] sm:$0xff]  ;;  %v9225_v7 = vld [vmem:[#allocation147_spill] sm:$0xff] }
 0x693   :  { %3890 = vmatpush.bf16.msrb.mxu1 %v9215_v51  ;;  %3916 = vmatpush.bf16.msrb.mxu3 %v9216_v62  ;;  %v9226_v51 = vld [vmem:[#allocation149_spill] sm:$0xff]  ;;  %v9227_v62 = vld [vmem:[#allocation50_spill] sm:$0xff] }
 0x694   :  { %4079 = vmatpush.bf16.msra.mxu0 %v9217_v32  ;;  %4105 = vmatpush.bf16.msra.mxu2 %v9218_v30  ;;  %v9228_v32 = vld [vmem:[#allocation52_spill] sm:$0xff]  ;;  %v9229_v30 = vld [vmem:[#allocation153_spill] sm:$0xff] }
 0x697   :  { %3891 = vmatpush.bf16.msrb.mxu1 %v9221_v63  ;;  %3917 = vmatpush.bf16.msrb.mxu3 %v9222_v22  ;;  %v9232_v63 = vld [vmem:[#allocation56_spill] sm:$0xff]  ;;  %v9233_v22 = vld [vmem:[#allocation159_spill] sm:$0xff] }
 0x698   :  { %4124 = vmatpush.bf16.msrb.mxu0 %v9219_v54  ;;  %4150 = vmatpush.bf16.msrb.mxu2 %v9220_v17  ;;  %v9230_v54 = vld [vmem:[#allocation157_spill] sm:$0xff]  ;;  %v9231_v17 = vld [vmem:[#allocation54_spill] sm:$0xff] }
 0x69b   :  { %3892 = vmatpush.bf16.msrb.mxu1 %v9225_v7  ;;  %3918 = vmatpush.bf16.msrb.mxu3 %v9226_v51  ;;  %v9236_v7 = vld [vmem:[#allocation13_spill] sm:$0xff]  ;;  %v9237_v51 = vld [vmem:[#allocation58_spill] sm:$0xff] }
 0x69c   :  { %4125 = vmatpush.bf16.msrb.mxu0 %v9223_v57  ;;  %4151 = vmatpush.bf16.msrb.mxu2 %v9224_v44  ;;  %v9234_v57 = vld [vmem:[#allocation161_spill] sm:$0xff]  ;;  %v9235_v44 = vld [vmem:[#allocation11_spill] sm:$0xff] }
 0x69f   :  { %3893 = vmatpush.bf16.msrb.mxu1 %v9229_v30  ;;  %3919 = vmatpush.bf16.msrb.mxu3 %v9230_v54  ;;  %v9248_v54 = vld [vmem:[#allocation25_spill] sm:$0xff]  ;;  %v9257_v30 = vld [vmem:[#allocation39_spill] sm:$0xff] }
 0x6a0   :  { %4126 = vmatpush.bf16.msrb.mxu0 %v9227_v62  ;;  %4152 = vmatpush.bf16.msrb.mxu2 %v9228_v32  ;;  %v9238_v62 = vld [vmem:[#allocation60_spill] sm:$0xff]  ;;  %v9239_v32 = vld [vmem:[#allocation15_spill] sm:$0xff] }
 0x6a3   :  { %3894 = vmatpush.bf16.msrb.mxu1 %v9233_v22  ;;  %3920 = vmatpush.bf16.msrb.mxu3 %v9234_v57  ;;  %v9242_v22 = vld [vmem:[#allocation64_spill] sm:$0xff]  ;;  %v9243_v57 = vld [vmem:[#allocation19_spill] sm:$0xff] }
 0x6a4   :  { %4127 = vmatpush.bf16.msrb.mxu0 %v9231_v17  ;;  %4153 = vmatpush.bf16.msrb.mxu2 %v9232_v63  ;;  %v9240_v17 = vld [vmem:[#allocation17_spill] sm:$0xff]  ;;  %v9241_v63 = vld [vmem:[#allocation62_spill] sm:$0xff] }
 0x6a6   :  { %3895 = vmatmul.bf16.vlgmr.msrb.gmra.mxu1 %v7833_v47  ;;  %3921 = vmatmul.bf16.vlgmr.msrb.gmra.mxu3 %v7833_v47  ;;  %v9249_v47 = vld [vmem:[#allocation70_spill] sm:$0xff] }
 0x6a7   :  { %4085 = vmatpush.bf16.msra.mxu1 %v9235_v44  ;;  %4111 = vmatpush.bf16.msra.mxu3 %v9236_v7  ;;  %v9244_v44 = vld [vmem:[#allocation21_spill] sm:$0xff]  ;;  %v9245_v7 = vld [vmem:[#allocation66_spill] sm:$0xff] }
 0x6a8   :  { %4128 = vmatpush.bf16.msrb.mxu0 %v9237_v51  ;;  %4154 = vmatpush.bf16.msrb.mxu2 %v9238_v62  ;;  %v9246_v51 = vld [vmem:[#allocation68_spill] sm:$0xff]  ;;  %v9247_v62 = vld [vmem:[#allocation23_spill] sm:$0xff] }
 0x6ab   :  { %4086 = vmatpush.bf16.msra.mxu1 %v9239_v32  ;;  %4112 = vmatpush.bf16.msra.mxu3 %v9240_v17  ;;  %v9250_v32 = vld [vmem:[#allocation72_spill] sm:$0xff]  ;;  %v9251_v17 = vld [vmem:[#allocation27_spill] sm:$0xff] }
 0x6ac   :  { %4129 = vmatpush.bf16.msrb.mxu0 %v9241_v63  ;;  %4155 = vmatpush.bf16.msrb.mxu2 %v9242_v22  ;;  %v9252_v63 = vld [vmem:[#allocation29_spill] sm:$0xff]  ;;  %v9253_v22 = vld [vmem:[#allocation31_spill] sm:$0xff] }
 0x6af   :  { %4087 = vmatpush.bf16.msra.mxu1 %v9243_v57  ;;  %4113 = vmatpush.bf16.msra.mxu3 %v9244_v44  ;;  %v9254_v57 = vld [vmem:[#allocation33_spill] sm:$0xff] }
 0x6b0   :  { %4130 = vmatpush.bf16.msrb.mxu0 %v9245_v7  ;;  %4156 = vmatpush.bf16.msrb.mxu2 %v9246_v51  ;;  %v9255_v7 = vld [vmem:[#allocation35_spill] sm:$0xff]  ;;  %v9256_v51 = vld [vmem:[#allocation37_spill] sm:$0xff] }
 0x6b3   :  { %4088 = vmatpush.bf16.msra.mxu1 %v9247_v62  ;;  %4114 = vmatpush.bf16.msra.mxu3 %v9248_v54  ;;  %v9258_v54 = vld [vmem:[#allocation41_spill] sm:$0xff] }
 0x6b4   :  { %4131 = vmatpush.bf16.msrb.mxu0 %v9249_v47  ;;  %4157 = vmatpush.bf16.msrb.mxu2 %v9250_v32  ;;  %v3727_v44 = vpop.f32.mrf.mxu0  ;;  %v9259_v47 = vld [vmem:[#allocation43_spill] sm:$0xff]  ;;  %v9260_v32 = vld [vmem:[#allocation45_spill] sm:$0xff] }
 0x6b7   :  { %4089 = vmatpush.bf16.msra.mxu1 %v9251_v17  ;;  %4115 = vmatpush.bf16.msra.mxu3 %v9252_v63  ;;  %v9261_v63 = vld [vmem:[#allocation47_spill] sm:$0xff] }
 0x6ba   :  { %v3753_v62 = vpop.f32.mrf.mxu2 }
 0x6bb   :  { %4090 = vmatpush.bf16.msra.mxu1 %v9253_v22  ;;  %4116 = vmatpush.bf16.msra.mxu3 %v9254_v57  ;;  %v9262_v22 = vld [vmem:[#allocation49_spill] sm:$0xff] }
 0x6bc   :  { %v3729_v17 = vpop.f32.mrf.mxu0 }
 0x6bd   :  { %v9269_v17 = vld [vmem:[#allocation63_spill] sm:$0xff] }
 0x6bf   :  { %4091 = vmatpush.bf16.msra.mxu1 %v9255_v7  ;;  %4117 = vmatpush.bf16.msra.mxu3 %v9256_v51  ;;  %v9264_v7 = vld [vmem:[#allocation53_spill] sm:$0xff] }
 0x6c2   :  { %v3755_v57 = vpop.f32.mrf.mxu2 }
 0x6c3   :  { %4092 = vmatpush.bf16.msra.mxu1 %v9257_v30  ;;  %4118 = vmatpush.bf16.msra.mxu3 %v9258_v54  ;;  %v9266_v30 = vld [vmem:[#allocation57_spill] sm:$0xff]  ;;  %v9271_v57 = vld [vmem:[#allocation67_spill] sm:$0xff] }
 0x6c4   :  { %v3779_v51 = vpop.f32.mrf.mxu0 }
 0x6c7   :  { %4137 = vmatpush.bf16.msrb.mxu1 %v9259_v47  ;;  %4163 = vmatpush.bf16.msrb.mxu3 %v9260_v32  ;;  %v9268_v47 = vld [vmem:[#allocation61_spill] sm:$0xff] }
 0x6ca   :  { %v3805_v54 = vpop.f32.mrf.mxu2 }
 0x6cb   :  { %4138 = vmatpush.bf16.msrb.mxu1 %v9261_v63  ;;  %4164 = vmatpush.bf16.msrb.mxu3 %v9262_v22  ;;  %v9270_v63 = vld [vmem:[#allocation65_spill] sm:$0xff] }
 0x6cc   :  { %v3781_v32 = vpop.f32.mrf.mxu0 }
 0x6cf   :  { %4139 = vmatpush.bf16.msrb.mxu1 %v9263_v48  ;;  %4165 = vmatpush.bf16.msrb.mxu3 %v9264_v7  ;;  %v9272_v48 = vld [vmem:[#allocation69_spill] sm:$0xff] }
 0x6d2   :  { %v3807_v22 = vpop.f32.mrf.mxu2 }
 0x6d3   :  { %4140 = vmatpush.bf16.msrb.mxu1 %v9265_v12  ;;  %4166 = vmatpush.bf16.msrb.mxu3 %v9266_v30  ;;  %v9274_v12 = vld [vmem:[#allocation73_spill] sm:$0xff] }
 0x6d4   :  { %v3831_v7 = vpop.f32.mrf.mxu0 }
 0x6d7   :  { %4141 = vmatpush.bf16.msrb.mxu1 %v9267_v42  ;;  %4167 = vmatpush.bf16.msrb.mxu3 %v9268_v47 }
 0x6da   :  { %v7951_v30 = vpop.f32.mrf.mxu2 }
 0x6db   :  { %4142 = vmatpush.bf16.msrb.mxu1 %v9269_v17  ;;  %4168 = vmatpush.bf16.msrb.mxu3 %v9270_v63 }
 0x6dc   :  { %v3833_v42 = vpop.f32.mrf.mxu0 }
 0x6df   :  { %4143 = vmatpush.bf16.msrb.mxu1 %v9271_v57  ;;  %4169 = vmatpush.bf16.msrb.mxu3 %v9272_v48 }
 0x6e2   :  { %v3859_v32 = vpop.f32.mrf.mxu2 }
 0x6e3   :  { %4144 = vmatpush.bf16.msrb.mxu1 %v9273_v45  ;;  %4170 = vmatpush.bf16.msrb.mxu3 %v9274_v12  ;;  %v3740_v9 = vpop.f32.mrf.mxu1 }
 0x6e4   :  { %v3741_v47 = vadd.f32 %v3740_v9, %v3727_v44  ;;  %v9277_v44 = vld [vmem:[#allocation150_spill] sm:$0xff] }
 0x6e6   :  { %v3930_v17 = vadd.f32 %v3741_v47, %v9275_v43 }
 0x6e8   :  { %v5405_v27 = vmul.f32 -1.442695, %v3930_v17 }
 0x6e9   :  { %v3766_v63 = vpop.f32.mrf.mxu3 }
 0x6ea   :  { %5849 = vpow2.f32 %v5405_v27  ;;  %v3767_v22 = vadd.f32 %v3766_v63, %v3753_v62 }
 0x6eb   :  { %v3742_v57 = vpop.f32.mrf.mxu1 }
 0x6ec   :  { %v3931_v48 = vadd.f32 %v3767_v22, %v9276_v15  ;;  %v9278_v22 = vld [vmem:[#allocation151_spill] sm:$0xff] }
 0x6ee   :  { %v5406_v39 = vmul.f32 -1.442695, %v3931_v48 }
 0x6f0   :  { %v5850_v58 = vpop.eup %5849  ;;  %5851 = vpow2.f32 %v5406_v39 }
 0x6f1   :  { %v3960_v45 = vadd.f32 1.0, %v5850_v58  ;;  %v3768_v12 = vpop.f32.mrf.mxu3 }
 0x6f3   :  { %5853 = vrcp.f32 %v3960_v45  ;;  %v3792_v19 = vpop.f32.mrf.mxu1  ;;  %vm3971_vm13 = vweird.f32 %v3960_v45 }
 0x6f4   :  { %v3793_v42 = vadd.f32 %v3792_v19, %v3779_v51 }
 0x6f6   :  { %v7955_v4 = vpop.f32.mrf.mxu0  ;;  %v5852_v9 = vpop.eup %5851  ;;  %v3932_v43 = vadd.f32 %v3793_v42, %v9277_v44  ;;  %v3977_v44 = vand.u32 2147483648, %v3960_v45 }
 0x6f7   :  { %v3961_v47 = vadd.f32 1.0, %v5852_v9 }
 0x6f8   :  { %v5407_v32 = vmul.f32 -1.442695, %v3932_v43 }
 0x6f9   :  { %v5854_v27 = vpop.eup %5853  ;;  %5855 = vrcp.f32 %v3961_v47  ;;  %v3818_v62 = vpop.f32.mrf.mxu3  ;;  %vm3986_vm0 = vweird.f32 %v3961_v47 }
 0x6fa   :  { %v3967_v17 = vmul.f32 %v5854_v27, %v3960_v45  ;;  %5857 = vpow2.f32 %v5407_v32  ;;  %v3819_v15 = vadd.f32 %v3818_v62, %v3805_v54  ;;  %vm3972_vm12 = vweird.f32 %v5854_v27 }
 0x6fb   :  { %v3794_v58 = vpop.f32.mrf.mxu1  ;;  %v3975_v54 = vand.u32 2147483647, %v3960_v45  ;;  %v3992_v32 = vand.u32 2147483648, %v3961_v47  ;;  %vm7961_vm14 = vmor %vm3971_vm13, %vm3972_vm12  ;;  %v9281_v45 = vld [vmem:[#allocation168_spill] sm:$0xff] }
 0x6fc   :  { %v7958_v63 = vpop.f32.mrf.mxu2  ;;  %v3968_v39 = vsub.f32 1.0, %v3967_v17  ;;  %v3933_v57 = vadd.f32 %v3819_v15, %v9278_v22  ;;  %v3990_v17 = vand.u32 2147483647, %v3961_v47 }
 0x6fd   :  { %vm3976_vm1 = vcmp.eq.f32.partialorder %v3975_v54, 8.507059e+37 }
 0x6fe   :  { %v3885_v19 = vpop.f32.mrf.mxu0  ;;  %v3969_v51 = vmul.f32 %v5854_v27, %v3968_v39  ;;  %5859 = vtanh.f32 %v3933_v57  ;;  %v3978_v57 = vor.u32 1.1754944e-38, %v3977_v44  ;;  %vm3991_vm3 = vcmp.eq.f32.partialorder %v3990_v17, 8.507059e+37 }
 0x6ff   :  { %v5856_v48 = vpop.eup %5855 }
 0x700   :  { %v5858_v12 = vpop.eup %5857  ;;  %v3982_v26 = vmul.f32 %v5856_v48, %v3961_v47  ;;  %v3970_v42 = vadd.f32 %v5854_v27, %v3969_v51  ;;  %vm3987_vm15 = vweird.f32 %v5856_v48 }
 0x701   :  { %v3962_v9 = vadd.f32 1.0, %v5858_v12  ;;  %v3820_v43 = vpop.f32.mrf.mxu3  ;;  %vm3988_vm2 = vmor %vm3986_vm0, %vm3987_vm15 }
 0x702   :  { %v3983_v36 = vsub.f32 1.0, %v3982_v26  ;;  %v3974_v22 = vsel %vm7961_vm14, %v5854_v27, %v3970_v42  ;;  %v3993_v43 = vor.u32 1.1754944e-38, %v3992_v32  ;;  %v9282_v32 = vld [vmem:[#allocation169_spill] sm:$0xff] }
 0x703   :  { %5861 = vrcp.f32 %v3962_v9  ;;  %v3844_v58 = vpop.f32.mrf.mxu1  ;;  %v3979_v16 = vsel %vm3976_vm1, %v3978_v57, %v3974_v22  ;;  %v4007_v62 = vand.u32 2147483648, %v3962_v9  ;;  %v4005_v17 = vand.u32 2147483647, %v3962_v9 }
 0x704   :  { %v3911_v15 = vpop.f32.mrf.mxu2  ;;  %v3984_v39 = vmul.f32 %v5856_v48, %v3983_v36  ;;  %v3845_v19 = vadd.f32 %v3844_v58, %v3831_v7  ;;  %v5860_v12 = vpop.eup %5859  ;;  %vm4001_vm5 = vweird.f32 %v3962_v9 }
 0x705   :  { %v4060_v7 = vmul.f32 %v5860_v12, %v3979_v16  ;;  %vm4006_vm7 = vcmp.eq.f32.partialorder %v4005_v17, 8.507059e+37 }
 0x706   :  { %v3985_v26 = vadd.f32 %v5856_v48, %v3984_v39  ;;  %v3938_v51 = vadd.f32 %v3845_v19, %v9281_v45 }
 0x708   :  { %v3989_v55 = vsel %vm3988_vm2, %v5856_v48, %v3985_v26  ;;  %v5408_v15 = vmul.f32 -1.442695, %v3938_v51 }
 0x709   :  { %v5862_v3 = vpop.eup %5861  ;;  %v3994_v36 = vsel %vm3991_vm3, %v3993_v43, %v3989_v55  ;;  %v3870_v6 = vpop.f32.mrf.mxu3 }
 0x70a   :  { %v3997_v60 = vmul.f32 %v5862_v3, %v3962_v9  ;;  %v4058_v27 = vmul.f32 %v3994_v36, %v7772_v10  ;;  %5863 = vpow2.f32 %v5408_v15  ;;  %v3871_v47 = vadd.f32 %v3870_v6, %v7951_v30 }
 0x70b   :  { %v3846_v42 = vpop.f32.mrf.mxu1  ;;  %vm4002_vm4 = vweird.f32 %v5862_v3  ;;  %v4008_v10 = vor.u32 1.1754944e-38, %v4007_v62 }
 0x70c   :  { %v3998_v44 = vsub.f32 1.0, %v3997_v60  ;;  %v7970_v54 = vadd.f32 %v4060_v7, %v4058_v27  ;;  %v3939_v58 = vadd.f32 %v3871_v47, %v9282_v32  ;;  %vm4003_vm6 = vmor %vm4001_vm5, %vm4002_vm4  ;;  %v9283_v7 = vld [vmem:[#allocation170_spill] sm:$0xff] }
 0x70e   :  { %v3999_v48 = vmul.f32 %v5862_v3, %v3998_v44  ;;  %5865 = vtanh.f32 %v7970_v54  ;;  %v5409_v55 = vmul.f32 -1.442695, %v3939_v58 }
 0x710   :  { %v5864_v39 = vpop.eup %5863  ;;  %v4000_v22 = vadd.f32 %v5862_v3, %v3999_v48  ;;  %5867 = vpow2.f32 %v5409_v55 }
 0x711   :  { %v7974_v16 = vadd.f32 1.0, %v5864_v39  ;;  %v3872_v60 = vpop.f32.mrf.mxu3 }
 0x712   :  { %v4004_v6 = vsel %vm4003_vm6, %v5862_v3, %v4000_v22 }
 0x713   :  { %v4009_v30 = vsel %vm4006_vm7, %v4008_v10, %v4004_v6  ;;  %5869 = vrcp.f32 %v7974_v16  ;;  %vm4016_vm10 = vweird.f32 %v7974_v16  ;;  %v4020_v58 = vand.u32 2147483647, %v7974_v16 }
 0x714   :  { %v5866_v19 = vpop.eup %5865 }
 0x715   :  { %v4066_v57 = vmul.f32 %v5866_v19, %v4009_v30  ;;  %vm4021_vm14 = vcmp.eq.f32.partialorder %v4020_v58, 8.507059e+37 }
 0x716   :  { %v5868_v26 = vpop.eup %5867 }
 0x717   :  { %5411 = vst [vmem:[%s8158_s5 + $0x60] sm:$0xff] %v4066_v57  ;;  %v7980_v45 = vpack.c.bf16 %v4066_v57, %v4066_v57  ;;  %v3964_v9 = vadd.f32 1.0, %v5868_v26 }
 0x719   :  { %4080 = vmatmul.bf16.vlgmr.msra.gmra.mxu0 %v7980_v45  ;;  %4106 = vmatmul.bf16.vlgmr.msra.gmra.mxu2 %v7980_v45  ;;  %5871 = vrcp.f32 %v3964_v9  ;;  %v5870_v3 = vpop.eup %5869  ;;  %vm4031_vm11 = vweird.f32 %v3964_v9  ;;  %v4035_v48 = vand.u32 2147483647, %v3964_v9 }
 0x71a   :  { %4176 = vmatpush.bf16.msra.mxu0 %v8641_v37  ;;  %4202 = vmatpush.bf16.msra.mxu2 %v8642_v29  ;;  %v4012_v51 = vmul.f32 %v5870_v3, %v7974_v16  ;;  %vm4017_vm8 = vweird.f32 %v5870_v3 }
 0x71b   :  { %vm8003_vm12 = vmor %vm4016_vm10, %vm4017_vm8  ;;  %vm4036_vm15 = vcmp.eq.f32.partialorder %v4035_v48, 8.507059e+37 }
 0x71c   :  { %v4013_v27 = vsub.f32 1.0, %v4012_v51  ;;  %v9299_v51 = vld [vmem:[#allocation107_spill] sm:$0xff] }
 0x71e   :  { %4177 = vmatpush.bf16.msra.mxu0 %v8643_v49  ;;  %4203 = vmatpush.bf16.msra.mxu2 %v8742_v52  ;;  %v4014_v62 = vmul.f32 %v5870_v3, %v4013_v27  ;;  %v9304_v27 = vld [vmem:[#allocation120_spill] sm:$0xff] }
 0x71f   :  { %v5872_v12 = vpop.eup %5871 }
 0x720   :  { %v4027_v15 = vmul.f32 %v5872_v12, %v3964_v9  ;;  %vm4032_vm9 = vweird.f32 %v5872_v12 }
 0x721   :  { %vm4033_vm13 = vmor %vm4031_vm11, %vm4032_vm9 }
 0x722   :  { %4178 = vmatpush.bf16.msra.mxu0 %v8645_v40  ;;  %4204 = vmatpush.bf16.msra.mxu2 %v8743_v20  ;;  %v4028_v37 = vsub.f32 1.0, %v4027_v15  ;;  %v4015_v40 = vadd.f32 %v5870_v3, %v4014_v62  ;;  %v9302_v15 = vld [vmem:[#allocation116_spill] sm:$0xff]  ;;  %v9312_v62 = vld [vmem:[#allocation143_spill] sm:$0xff] }
 0x723   :  { %v3896_v43 = vpop.f32.mrf.mxu1 }
 0x724   :  { %v3897_v36 = vadd.f32 %v3896_v43, %v7955_v4  ;;  %v4029_v42 = vmul.f32 %v5872_v12, %v4028_v37  ;;  %v9284_v4 = vld [vmem:[#allocation171_spill] sm:$0xff] }
 0x725   :  { %v9301_v43 = vld [vmem:[#allocation115_spill] sm:$0xff] }
 0x726   :  { %v3940_v29 = vadd.f32 %v3897_v36, %v9283_v7  ;;  %4179 = vmatpush.bf16.msra.mxu0 %v8745_v21  ;;  %4205 = vmatpush.bf16.msra.mxu2 %v8746_v61  ;;  %v4030_v20 = vadd.f32 %v5872_v12, %v4029_v42  ;;  %v4037_v21 = vand.u32 2147483648, %v3964_v9  ;;  %v4022_v61 = vand.u32 2147483648, %v7974_v16  ;;  %v9303_v36 = vld [vmem:[#allocation117_spill] sm:$0xff]  ;;  %v9305_v37 = vld [vmem:[#allocation123_spill] sm:$0xff] }
 0x727   :  { %v9306_v7 = vld [vmem:[#allocation125_spill] sm:$0xff] }
 0x728   :  { %v5410_v47 = vmul.f32 -1.442695, %v3940_v29  ;;  %v4038_v22 = vor.u32 1.1754944e-38, %v4037_v21  ;;  %v4023_v10 = vor.u32 1.1754944e-38, %v4022_v61  ;;  %v9308_v29 = vld [vmem:[#allocation131_spill] sm:$0xff]  ;;  %v9310_v42 = vld [vmem:[#allocation137_spill] sm:$0xff] }
 0x729   :  { %v3922_v44 = vpop.f32.mrf.mxu3  ;;  %4132 = vmatmul.bf16.vlgmr.msrb.gmra.mxu0 %v7980_v45  ;;  %4158 = vmatmul.bf16.vlgmr.msrb.gmra.mxu2 %v7980_v45  ;;  %v9319_v21 = vld [vmem:[#allocation161_spill] sm:$0xff] }
 0x72a   :  { %5873 = vpow2.f32 %v5410_v47  ;;  %v3923_v49 = vadd.f32 %v3922_v44, %v7958_v63  ;;  %4180 = vmatpush.bf16.msra.mxu0 %v8748_v14  ;;  %4206 = vmatpush.bf16.msra.mxu2 %v8749_v28  ;;  %v4019_v14 = vsel %vm8003_vm12, %v5870_v3, %v4015_v40  ;;  %v4034_v28 = vsel %vm4033_vm13, %v5872_v12, %v4030_v20  ;;  %v9300_v12 = vld [vmem:[#allocation113_spill] sm:$0xff]  ;;  %v9309_v47 = vld [vmem:[#allocation135_spill] sm:$0xff] }
 0x72b   :  { %v3898_v52 = vpop.f32.mrf.mxu1  ;;  %v4024_v16 = vsel %vm4021_vm14, %v4023_v10, %v4019_v14  ;;  %v4039_v6 = vsel %vm4036_vm15, %v4038_v22, %v4034_v28  ;;  %v9311_v44 = vld [vmem:[#allocation139_spill] sm:$0xff]  ;;  %v9317_v40 = vld [vmem:[#allocation157_spill] sm:$0xff] }
 0x72c   :  { %v3941_v32 = vadd.f32 %v3923_v49, %v9284_v4  ;;  %v4059_v19 = vmul.f32 %v4039_v6, %v7817_v41  ;;  %v9313_v49 = vld [vmem:[#allocation146_spill] sm:$0xff]  ;;  %v9314_v52 = vld [vmem:[#allocation147_spill] sm:$0xff]  ;;  %v9315_v4 = vld [vmem:[#allocation149_spill] sm:$0xff] }
 0x72d   :  { %v9318_v20 = vld [vmem:[#allocation159_spill] sm:$0xff]  ;;  %v4439_v28 = vld [vmem:[#allocation7 + $0x78] sm:$0xff] }
 0x72e   :  { %5875 = vtanh.f32 %v3941_v32  ;;  %4181 = vmatpush.bf16.msra.mxu0 %v8752_v46  ;;  %4207 = vmatpush.bf16.msra.mxu2 %v8753_v50  ;;  %v9316_v32 = vld [vmem:[#allocation153_spill] sm:$0xff]  ;;  %v4437_v22 = vld [vmem:[#allocation7 + $0x68] sm:$0xff] }
 0x72f   :  { %v4435_v6 = vld [vmem:[#allocation7 + $0x58] sm:$0xff] }
 0x730   :  { %v5874_v17 = vpop.eup %5873 }
 0x731   :  { %v3965_v55 = vadd.f32 1.0, %v5874_v17  ;;  %v3924_v39 = vpop.f32.mrf.mxu3 }
 0x732   :  { %4182 = vmatpush.bf16.msra.mxu0 %v8653_v35  ;;  %4208 = vmatpush.bf16.msra.mxu2 %v8654_v25  ;;  %v4438_v39 = vld [vmem:[#allocation7 + $0x70] sm:$0xff] }
 0x733   :  { %5877 = vrcp.f32 %v3965_v55  ;;  %v4052_v35 = vand.u32 2147483648, %v3965_v55  ;;  %v4050_v41 = vand.u32 2147483647, %v3965_v55  ;;  %vm4046_vm1 = vweird.f32 %v3965_v55 }
 0x734   :  { %v5876_v60 = vpop.eup %5875 }
 0x735   :  { %v4061_v30 = vmul.f32 %v5876_v60, %v4024_v16  ;;  %vm4051_vm3 = vcmp.eq.f32.partialorder %v4050_v41, 8.507059e+37  ;;  %v4436_v60 = vld [vmem:[#allocation7 + $0x60] sm:$0xff] }
 0x736   :  { %4183 = vmatpush.bf16.msra.mxu0 %v6507_v33  ;;  %4209 = vmatpush.bf16.msra.mxu2 %v6513_v53 }
 0x737   :  { %v8015_v26 = vadd.f32 %v4061_v30, %v4059_v19  ;;  %v4434_v30 = vld [vmem:[#allocation7 + $0x50] sm:$0xff]  ;;  %v4433_v19 = vld [vmem:[#allocation7 + $0x48] sm:$0xff] }
 0x739   :  { %v5878_v57 = vpop.eup %5877  ;;  %4184 = vmatmul.bf16.vlgmr.msra.gmra.mxu0 %v7980_v45  ;;  %4210 = vmatmul.bf16.vlgmr.msra.gmra.mxu2 %v7980_v45  ;;  %5879 = vtanh.f32 %v8015_v26 }
 0x73a   :  { %v4042_v46 = vmul.f32 %v5878_v57, %v3965_v55  ;;  %4228 = vmatpush.bf16.msrb.mxu0 %v6521_v31  ;;  %4254 = vmatpush.bf16.msrb.mxu2 %v6529_v59  ;;  %vm4047_vm0 = vweird.f32 %v5878_v57  ;;  %v4053_v31 = vor.u32 1.1754944e-38, %v4052_v35  ;;  %v4431_v35 = vld [vmem:[#allocation7 + $0x38] sm:$0xff] }
 0x73b   :  { %vm4048_vm2 = vmor %vm4046_vm1, %vm4047_vm0 }
 0x73c   :  { %v4043_v50 = vsub.f32 1.0, %v4042_v46  ;;  %v4432_v46 = vld [vmem:[#allocation7 + $0x40] sm:$0xff] }
 0x73e   :  { %v4044_v25 = vmul.f32 %v5878_v57, %v4043_v50  ;;  %4229 = vmatpush.bf16.msrb.mxu0 %v8655_v24  ;;  %4255 = vmatpush.bf16.msrb.mxu2 %v8656_v8  ;;  %v9287_v8 = vld [vmem:[#allocation148_spill] sm:$0xff] }
 0x73f   :  { %v5880_v53 = vpop.eup %5879 }
 0x740   :  { %v4045_v33 = vadd.f32 %v5878_v57, %v4044_v25  ;;  %v4430_v25 = vld [vmem:[#allocation7 + $0x30] sm:$0xff] }
 0x742   :  { %v4049_v59 = vsel %vm4048_vm2, %v5878_v57, %v4045_v33  ;;  %4230 = vmatpush.bf16.msrb.mxu0 %v8657_v23  ;;  %4256 = vmatpush.bf16.msrb.mxu2 %v8658_v1  ;;  %v9288_v23 = vld [vmem:[#allocation89_spill] sm:$0xff]  ;;  %v9289_v1 = vld [vmem:[#allocation91_spill] sm:$0xff] }
 0x743   :  { %v4054_v9 = vsel %vm4051_vm3, %v4053_v31, %v4049_v59  ;;  %v4429_v33 = vld [vmem:[#allocation7 + $0x28] sm:$0xff] }
 0x744   :  { %v4067_v3 = vmul.f32 %v5880_v53, %v4054_v9  ;;  %v4428_v53 = vld [vmem:[#allocation7 + $0x20] sm:$0xff] }
 0x745   :  { %v9320_v9 = vld [vmem:[#allocation154_spill] sm:$0xff] }
 0x746   :  { %5412 = vst [vmem:[%s8158_s5 + $0x18] sm:$0xff] %v4067_v3  ;;  %v4071_v24 = vpack.c.bf16 %v4067_v3, %v4067_v3  ;;  %4231 = vmatpush.bf16.msrb.mxu0 %v8659_v13  ;;  %4257 = vmatpush.bf16.msrb.mxu2 %v8660_v2  ;;  %v9290_v13 = vld [vmem:[#allocation152_spill] sm:$0xff] }
 0x747   :  { %v9291_v2 = vld [vmem:[#allocation156_spill] sm:$0xff] }
 0x748   :  { %4093 = vmatmul.bf16.vlgmr.msra.gmra.mxu1 %v4071_v24  ;;  %4119 = vmatmul.bf16.vlgmr.msra.gmra.mxu3 %v4071_v24 }
 0x749   :  { %4189 = vmatpush.bf16.msra.mxu1 %v8661_v56  ;;  %4215 = vmatpush.bf16.msra.mxu3 %v8662_v18  ;;  %v9292_v56 = vld [vmem:[#allocation93_spill] sm:$0xff]  ;;  %v9293_v18 = vld [vmem:[#allocation95_spill] sm:$0xff] }
 0x74a   :  { %4232 = vmatpush.bf16.msrb.mxu0 %v8663_v5  ;;  %4258 = vmatpush.bf16.msrb.mxu2 %v6601_v0  ;;  %v9294_v0 = vld [vmem:[#allocation158_spill] sm:$0xff]  ;;  %v9295_v5 = vld [vmem:[#allocation160_spill] sm:$0xff] }
 0x74d   :  { %4190 = vmatpush.bf16.msra.mxu1 %v8664_v34  ;;  %4216 = vmatpush.bf16.msra.mxu3 %v8665_v38  ;;  %v9297_v34 = vld [vmem:[#allocation103_spill] sm:$0xff]  ;;  %v9298_v38 = vld [vmem:[#allocation105_spill] sm:$0xff] }
 0x74e   :  { %4233 = vmatpush.bf16.msrb.mxu0 %v6607_v11  ;;  %4259 = vmatpush.bf16.msrb.mxu2 %v9287_v8  ;;  %v9296_v11 = vld [vmem:[#allocation101_spill] sm:$0xff] }
 0x751   :  { %4191 = vmatpush.bf16.msra.mxu1 %v9288_v23  ;;  %4217 = vmatpush.bf16.msra.mxu3 %v9289_v1  ;;  %v4426_v1 = vld [vmem:[#allocation7 + $0x10] sm:$0xff] }
 0x752   :  { %4234 = vmatpush.bf16.msrb.mxu0 %v9290_v13  ;;  %4260 = vmatpush.bf16.msrb.mxu2 %v9291_v2 }
 0x755   :  { %4192 = vmatpush.bf16.msra.mxu1 %v9292_v56  ;;  %4218 = vmatpush.bf16.msra.mxu3 %v9293_v18  ;;  %v4425_v56 = vld [vmem:[#allocation7 + $0x8] sm:$0xff] }
 0x756   :  { %4235 = vmatpush.bf16.msrb.mxu0 %v9294_v0  ;;  %4261 = vmatpush.bf16.msrb.mxu2 %v9295_v5  ;;  %v9321_v18 = vld [vmem:[#allocation155_spill] sm:$0xff]  ;;  %v4424_v5 = vld [vmem:[#allocation7] sm:$0xff] }
 0x758   :  { %4145 = vmatmul.bf16.vlgmr.msrb.gmra.mxu1 %v4071_v24  ;;  %4171 = vmatmul.bf16.vlgmr.msrb.gmra.mxu3 %v4071_v24 }
 0x759   :  { %4193 = vmatpush.bf16.msra.mxu1 %v9296_v11  ;;  %4219 = vmatpush.bf16.msra.mxu3 %v9297_v34 }
 0x75a   :  { %4236 = vmatmul.bf16.vlgmr.msrb.gmra.mxu0 %v7980_v45  ;;  %4262 = vmatmul.bf16.vlgmr.msrb.gmra.mxu2 %v7980_v45  ;;  %v9307_v45 = vld [vmem:[#allocation127_spill] sm:$0xff] }
 0x75b   :  { %5612 = vmatpush.msra.mxu2 %v4439_v28  ;;  %4460 = vmatpush.msra.mxu0 %v4439_v28 }
 0x75d   :  { %4194 = vmatpush.bf16.msra.mxu1 %v9298_v38  ;;  %4220 = vmatpush.bf16.msra.mxu3 %v9299_v51 }
 0x75e   :  { %5613 = vmatpush.msra.mxu2 %v4438_v39  ;;  %4461 = vmatpush.msra.mxu0 %v4438_v39 }
 0x760   :  { %5614 = vmatpush.msra.mxu2 %v4437_v22  ;;  %4462 = vmatpush.msra.mxu0 %v4437_v22  ;;  %v4450_v22 = vld [vmem:[#allocation7 + $0xd0] sm:$0xff] }
 0x761   :  { %4195 = vmatpush.bf16.msra.mxu1 %v9300_v12  ;;  %4221 = vmatpush.bf16.msra.mxu3 %v9301_v43 }
 0x762   :  { %5615 = vmatpush.msra.mxu2 %v4436_v60  ;;  %4463 = vmatpush.msra.mxu0 %v4436_v60 }
 0x764   :  { %5616 = vmatpush.msra.mxu2 %v4435_v6  ;;  %4464 = vmatpush.msra.mxu0 %v4435_v6 }
 0x765   :  { %4196 = vmatpush.bf16.msra.mxu1 %v9302_v15  ;;  %4222 = vmatpush.bf16.msra.mxu3 %v9303_v36 }
 0x766   :  { %5617 = vmatpush.msra.mxu2 %v4434_v30  ;;  %4465 = vmatpush.msra.mxu0 %v4434_v30 }
 0x768   :  { %4197 = vmatmul.bf16.vlgmr.msra.gmra.mxu1 %v4071_v24  ;;  %4223 = vmatmul.bf16.vlgmr.msra.gmra.mxu3 %v4071_v24 }
 0x769   :  { %4241 = vmatpush.bf16.msrb.mxu1 %v9304_v27  ;;  %4267 = vmatpush.bf16.msrb.mxu3 %v9305_v37  ;;  %v9322_v27 = vld [vmem:[#allocation162_spill] sm:$0xff] }
 0x76a   :  { %5618 = vmatpush.msra.mxu2 %v4433_v19  ;;  %4466 = vmatpush.msra.mxu0 %v4433_v19 }
 0x76c   :  { %5619 = vmatpush.msra.mxu2 %v4432_v46  ;;  %4467 = vmatpush.msra.mxu0 %v4432_v46  ;;  %v4449_v46 = vld [vmem:[#allocation7 + $0xc8] sm:$0xff] }
 0x76d   :  { %4242 = vmatpush.bf16.msrb.mxu1 %v9306_v7  ;;  %4268 = vmatpush.bf16.msrb.mxu3 %v9307_v45  ;;  %v4455_v7 = vld [vmem:[#allocation7 + $0xf8] sm:$0xff] }
 0x76e   :  { %5620 = vmatpush.msra.mxu2 %v4431_v35  ;;  %4468 = vmatpush.msra.mxu0 %v4431_v35 }
 0x770   :  { %5621 = vmatpush.msra.mxu2 %v4430_v25  ;;  %4469 = vmatpush.msra.mxu0 %v4430_v25 }
 0x771   :  { %4243 = vmatpush.bf16.msrb.mxu1 %v9308_v29  ;;  %4269 = vmatpush.bf16.msrb.mxu3 %v9309_v47  ;;  %v4454_v47 = vld [vmem:[#allocation7 + $0xf0] sm:$0xff] }
 0x772   :  { %5622 = vmatpush.msra.mxu2 %v4429_v33  ;;  %4470 = vmatpush.msra.mxu0 %v4429_v33 }
 0x774   :  { %5623 = vmatpush.msra.mxu2 %v4428_v53  ;;  %4471 = vmatpush.msra.mxu0 %v4428_v53 }
 0x775   :  { %4244 = vmatpush.bf16.msrb.mxu1 %v9310_v42  ;;  %4270 = vmatpush.bf16.msrb.mxu3 %v9311_v44 }
 0x779   :  { %4245 = vmatpush.bf16.msrb.mxu1 %v9312_v62  ;;  %4271 = vmatpush.bf16.msrb.mxu3 %v9313_v49 }
 0x77d   :  { %4246 = vmatpush.bf16.msrb.mxu1 %v9314_v52  ;;  %4272 = vmatpush.bf16.msrb.mxu3 %v9315_v4  ;;  %v4453_v52 = vld [vmem:[#allocation7 + $0xe8] sm:$0xff] }
 0x781   :  { %4247 = vmatpush.bf16.msrb.mxu1 %v9316_v32  ;;  %4273 = vmatpush.bf16.msrb.mxu3 %v9317_v40 }
 0x785   :  { %4248 = vmatpush.bf16.msrb.mxu1 %v9318_v20  ;;  %4274 = vmatpush.bf16.msrb.mxu3 %v9319_v21  ;;  %v9323_v20 = vld [vmem:[#allocation163_spill] sm:$0xff] }
 0x788   :  { %4249 = vmatmul.bf16.vlgmr.msrb.gmra.mxu1 %v4071_v24  ;;  %4275 = vmatmul.bf16.vlgmr.msrb.gmra.mxu3 %v4071_v24  ;;  %v4427_v24 = vld [vmem:[#allocation7 + $0x18] sm:$0xff] }
 0x789   :  { %5624 = vmatpush.msra.mxu2 %v4427_v24  ;;  %4472 = vmatpush.msra.mxu0 %v4427_v24 }
 0x78a   :  { %5628 = vmatpush.msra.mxu3 %v4455_v7  ;;  %4483 = vmatpush.msra.mxu1 %v4455_v7 }
 0x78b   :  { %5625 = vmatpush.msra.mxu2 %v4426_v1  ;;  %4473 = vmatpush.msra.mxu0 %v4426_v1 }
 0x78c   :  { %5629 = vmatpush.msra.mxu3 %v4454_v47  ;;  %4484 = vmatpush.msra.mxu1 %v4454_v47 }
 0x78d   :  { %5626 = vmatpush.msra.mxu2 %v4425_v56  ;;  %4474 = vmatpush.msra.mxu0 %v4425_v56 }
 0x78e   :  { %5630 = vmatpush.msra.mxu3 %v4453_v52  ;;  %4485 = vmatpush.msra.mxu1 %v4453_v52  ;;  %v4442_v52 = vld [vmem:[#allocation7 + $0x90] sm:$0xff] }
 0x78f   :  { %5627 = vmatpush.msra.mxu2 %v4424_v5  ;;  %4475 = vmatpush.msra.mxu0 %v4424_v5 }
 0x796   :  { %v4081_v61 = vpop.f32.mrf.mxu0 }
 0x79c   :  { %v4107_v63 = vpop.f32.mrf.mxu2 }
 0x79e   :  { %v4083_v58 = vpop.f32.mrf.mxu0 }
 0x7a4   :  { %v4109_v48 = vpop.f32.mrf.mxu2 }
 0x7a5   :  { %v4451_v48 = vld [vmem:[#allocation7 + $0xd8] sm:$0xff] }
 0x7a6   :  { %v8075_v17 = vpop.f32.mrf.mxu0 }
 0x7ac   :  { %v8077_v55 = vpop.f32.mrf.mxu2 }
 0x7ae   :  { %v4135_v14 = vpop.f32.mrf.mxu0 }
 0x7b4   :  { %v4161_v10 = vpop.f32.mrf.mxu2 }
 0x7b6   :  { %v8079_v16 = vpop.f32.mrf.mxu0 }
 0x7bc   :  { %v8081_v57 = vpop.f32.mrf.mxu2 }
 0x7be   :  { %v4187_v50 = vpop.f32.mrf.mxu0 }
 0x7c4   :  { %v4213_v59 = vpop.f32.mrf.mxu2 }
 0x7c5   :  { %v4094_v41 = vpop.f32.mrf.mxu1 }
 0x7c6   :  { %v4095_v31 = vadd.f32 %v4094_v41, %v4081_v61  ;;  %v4452_v61 = vld [vmem:[#allocation7 + $0xe0] sm:$0xff] }
 0x7c7   :  { %5631 = vmatpush.msra.mxu3 %v4452_v61  ;;  %4486 = vmatpush.msra.mxu1 %v4452_v61  ;;  %v4441_v61 = vld [vmem:[#allocation7 + $0x88] sm:$0xff] }
 0x7c8   :  { %v4284_v3 = vadd.f32 %v4095_v31, %v9320_v9  ;;  %v4448_v9 = vld [vmem:[#allocation7 + $0xc0] sm:$0xff] }
 0x7c9   :  { %5632 = vmatpush.msra.mxu3 %v4451_v48  ;;  %4487 = vmatpush.msra.mxu1 %v4451_v48  ;;  %v4440_v48 = vld [vmem:[#allocation7 + $0x80] sm:$0xff] }
 0x7ca   :  { %v5413_v8 = vmul.f32 -1.442695, %v4284_v3 }
 0x7cb   :  { %v4120_v23 = vpop.f32.mrf.mxu3  ;;  %5633 = vmatpush.msra.mxu3 %v4450_v22  ;;  %4488 = vmatpush.msra.mxu1 %v4450_v22 }
 0x7cc   :  { %5881 = vpow2.f32 %v5413_v8  ;;  %v4121_v13 = vadd.f32 %v4120_v23, %v4107_v63  ;;  %v9326_v8 = vld [vmem:[#allocation164_spill] sm:$0xff] }
 0x7cd   :  { %v4096_v2 = vpop.f32.mrf.mxu1  ;;  %5634 = vmatpush.msra.mxu3 %v4449_v46  ;;  %4489 = vmatpush.msra.mxu1 %v4449_v46  ;;  %v9328_v46 = vld [vmem:[#allocation166_spill] sm:$0xff] }
 0x7ce   :  { %v4285_v0 = vadd.f32 %v4121_v13, %v9321_v18  ;;  %v4447_v13 = vld [vmem:[#allocation7 + $0xb8] sm:$0xff]  ;;  %v4446_v18 = vld [vmem:[#allocation7 + $0xb0] sm:$0xff] }
 0x7cf   :  { %5635 = vmatpush.msra.mxu3 %v4448_v9  ;;  %4490 = vmatpush.msra.mxu1 %v4448_v9 }
 0x7d0   :  { %v5414_v11 = vmul.f32 -1.442695, %v4285_v0 }
 0x7d1   :  { %5636 = vmatpush.msra.mxu3 %v4447_v13  ;;  %4491 = vmatpush.msra.mxu1 %v4447_v13 }
 0x7d2   :  { %v5882_v34 = vpop.eup %5881  ;;  %5883 = vpow2.f32 %v5414_v11 }
 0x7d3   :  { %v8085_v38 = vadd.f32 1.0, %v5882_v34  ;;  %v4122_v51 = vpop.f32.mrf.mxu3  ;;  %5637 = vmatpush.msra.mxu3 %v4446_v18  ;;  %4492 = vmatpush.msra.mxu1 %v4446_v18 }
 0x7d5   :  { %5885 = vrcp.f32 %v8085_v38  ;;  %v4146_v12 = vpop.f32.mrf.mxu1  ;;  %v4331_v14 = vand.u32 2147483648, %v8085_v38  ;;  %vm4325_vm5 = vweird.f32 %v8085_v38  ;;  %v4329_v60 = vand.u32 2147483647, %v8085_v38 }
 0x7d6   :  { %v4147_v43 = vadd.f32 %v4146_v12, %v8075_v17 }
 0x7d7   :  { %v8089_v15 = vpop.f32.mrf.mxu0  ;;  %v4332_v25 = vor.u32 1.1754944e-38, %v4331_v14  ;;  %vm4330_vm8 = vcmp.eq.f32.partialorder %v4329_v60, 8.507059e+37 }
 0x7d8   :  { %v5884_v36 = vpop.eup %5883  ;;  %v4286_v37 = vadd.f32 %v4147_v43, %v9322_v27  ;;  %v4445_v43 = vld [vmem:[#allocation7 + $0xa8] sm:$0xff] }
 0x7d9   :  { %v8092_v45 = vadd.f32 1.0, %v5884_v36  ;;  %5638 = vmatpush.msra.mxu3 %v4445_v43  ;;  %4493 = vmatpush.msra.mxu1 %v4445_v43 }
 0x7da   :  { %v5415_v29 = vmul.f32 -1.442695, %v4286_v37  ;;  %v9327_v37 = vld [vmem:[#allocation165_spill] sm:$0xff] }
 0x7db   :  { %v5886_v42 = vpop.eup %5885  ;;  %5887 = vrcp.f32 %v8092_v45  ;;  %v4172_v44 = vpop.f32.mrf.mxu3  ;;  %v4346_v50 = vand.u32 2147483648, %v8092_v45  ;;  %v4344_v53 = vand.u32 2147483647, %v8092_v45  ;;  %vm4340_vm9 = vweird.f32 %v8092_v45 }
 0x7dc   :  { %v4321_v62 = vmul.f32 %v5886_v42, %v8085_v38  ;;  %5889 = vpow2.f32 %v5415_v29  ;;  %v4173_v49 = vadd.f32 %v4172_v44, %v8077_v55  ;;  %vm4326_vm4 = vweird.f32 %v5886_v42  ;;  %v4444_v29 = vld [vmem:[#allocation7 + $0xa0] sm:$0xff] }
 0x7dd   :  { %v8097_v4 = vpop.f32.mrf.mxu2  ;;  %v4148_v32 = vpop.f32.mrf.mxu1  ;;  %vm8107_vm6 = vmor %vm4325_vm5, %vm4326_vm4  ;;  %v4347_v2 = vor.u32 1.1754944e-38, %v4346_v50  ;;  %vm4345_vm11 = vcmp.eq.f32.partialorder %v4344_v53, 8.507059e+37  ;;  %5639 = vmatpush.msra.mxu3 %v4444_v29  ;;  %4494 = vmatpush.msra.mxu1 %v4444_v29 }
 0x7de   :  { %v4322_v40 = vsub.f32 1.0, %v4321_v62  ;;  %v4287_v21 = vadd.f32 %v4173_v49, %v9323_v20 }
 0x7df   :  { %v4239_v63 = vpop.f32.mrf.mxu0 }
 0x7e0   :  { %v4323_v58 = vmul.f32 %v5886_v42, %v4322_v40  ;;  %5891 = vtanh.f32 %v4287_v21 }
 0x7e1   :  { %v5888_v17 = vpop.eup %5887 }
 0x7e2   :  { %v5890_v55 = vpop.eup %5889  ;;  %v4336_v28 = vmul.f32 %v5888_v17, %v8092_v45  ;;  %v4324_v39 = vadd.f32 %v5886_v42, %v4323_v58  ;;  %vm4341_vm7 = vweird.f32 %v5888_v17 }
 0x7e3   :  { %v8102_v10 = vadd.f32 1.0, %v5890_v55  ;;  %v4174_v6 = vpop.f32.mrf.mxu3  ;;  %vm4342_vm10 = vmor %vm4340_vm9, %vm4341_vm7 }
 0x7e4   :  { %v4337_v30 = vsub.f32 1.0, %v4336_v28  ;;  %v4328_v35 = vsel %vm8107_vm6, %v5886_v42, %v4324_v39 }
 0x7e5   :  { %5893 = vrcp.f32 %v8102_v10  ;;  %v4265_v41 = vpop.f32.mrf.mxu2  ;;  %v4198_v33 = vpop.f32.mrf.mxu1  ;;  %v4333_v24 = vsel %vm4330_vm8, %v4332_v25, %v4328_v35  ;;  %v4361_v47 = vand.u32 2147483648, %v8102_v10  ;;  %v4359_v42 = vand.u32 2147483647, %v8102_v10 }
 0x7e6   :  { %v4338_v31 = vmul.f32 %v5888_v17, %v4337_v30  ;;  %v4199_v59 = vadd.f32 %v4198_v33, %v8079_v16  ;;  %v5892_v3 = vpop.eup %5891  ;;  %vm4355_vm13 = vweird.f32 %v8102_v10 }
 0x7e7   :  { %v4414_v5 = vmul.f32 %v5892_v3, %v4333_v24  ;;  %v4362_v20 = vor.u32 1.1754944e-38, %v4361_v47  ;;  %vm4360_vm15 = vcmp.eq.f32.partialorder %v4359_v42, 8.507059e+37  ;;  %v9329_v3 = vld [vmem:[#allocation167_spill] sm:$0xff] }
 0x7e8   :  { %v4292_v23 = vadd.f32 %v4199_v59, %v9326_v8  ;;  %v4339_v1 = vadd.f32 %v5888_v17, %v4338_v31 }
 0x7ea   :  { %v5416_v56 = vmul.f32 -1.442695, %v4292_v23  ;;  %v4343_v16 = vsel %vm4342_vm10, %v5888_v17, %v4339_v1 }
 0x7eb   :  { %v5894_v0 = vpop.eup %5893  ;;  %v4224_v11 = vpop.f32.mrf.mxu3  ;;  %v4348_v34 = vsel %vm4345_vm11, %v4347_v2, %v4343_v16 }
 0x7ec   :  { %v4351_v38 = vmul.f32 %v5894_v0, %v8102_v10  ;;  %5895 = vpow2.f32 %v5416_v56  ;;  %v4225_v51 = vadd.f32 %v4224_v11, %v8081_v57  ;;  %v4412_v12 = vmul.f32 %v4348_v34, %v7970_v54  ;;  %v4443_v54 = vld [vmem:[#allocation7 + $0x98] sm:$0xff] }
 0x7ed   :  { %v4200_v36 = vpop.f32.mrf.mxu1  ;;  %vm4356_vm12 = vweird.f32 %v5894_v0  ;;  %5640 = vmatpush.msra.mxu3 %v4443_v54  ;;  %4495 = vmatpush.msra.mxu1 %v4443_v54 }
 0x7ee   :  { %v4352_v27 = vsub.f32 1.0, %v4351_v38  ;;  %v4293_v7 = vadd.f32 %v4225_v51, %v9327_v37  ;;  %v4416_v45 = vadd.f32 %v4414_v5, %v4412_v12  ;;  %vm4357_vm14 = vmor %vm4355_vm13, %vm4356_vm12 }
 0x7ef   :  { %5641 = vmatpush.msra.mxu3 %v4442_v52  ;;  %4496 = vmatpush.msra.mxu1 %v4442_v52 }
 0x7f0   :  { %v4353_v44 = vmul.f32 %v5894_v0, %v4352_v27  ;;  %v5417_v62 = vmul.f32 -1.442695, %v4293_v7  ;;  %5897 = vtanh.f32 %v4416_v45  ;;  %4479 = vmatmul.f32.vlgmr.msra.gmra.mxu2 %v4416_v45 }
 0x7f1   :  { %5642 = vmatpush.msra.mxu3 %v4441_v61  ;;  %4497 = vmatpush.msra.mxu1 %v4441_v61 }
 0x7f2   :  { %v5896_v57 = vpop.eup %5895  ;;  %5899 = vpow2.f32 %v5417_v62  ;;  %v4354_v49 = vadd.f32 %v5894_v0, %v4353_v44 }
 0x7f3   :  { %v8126_v32 = vadd.f32 1.0, %v5896_v57  ;;  %v4226_v40 = vpop.f32.mrf.mxu3  ;;  %5643 = vmatpush.msra.mxu3 %v4440_v48  ;;  %4498 = vmatpush.msra.mxu1 %v4440_v48 }
 0x7f4   :  { %v4358_v21 = vsel %vm4357_vm14, %v5894_v0, %v4354_v49 }
 0x7f5   :  { %v4363_v63 = vsel %vm4360_vm15, %v4362_v20, %v4358_v21  ;;  %5901 = vrcp.f32 %v8126_v32  ;;  %v4376_v23 = vand.u32 2147483648, %v8126_v32  ;;  %vm4370_vm4 = vweird.f32 %v8126_v32 }
 0x7f6   :  { %v5898_v58 = vpop.eup %5897  ;;  %v4374_v1 = vand.u32 2147483647, %v8126_v32 }
 0x7f7   :  { %v4420_v17 = vmul.f32 %v5898_v58, %v4363_v63  ;;  %v4377_v0 = vor.u32 1.1754944e-38, %v4376_v23 }
 0x7f8   :  { %v5900_v14 = vpop.eup %5899  ;;  %vm4375_vm7 = vcmp.eq.f32.partialorder %v4374_v1, 8.507059e+37 }
 0x7f9   :  { %v4318_v55 = vadd.f32 1.0, %v5900_v14  ;;  %5419 = vst [vmem:[%s8158_s5 + $0x70] sm:$0xff] %v4420_v17  ;;  %4476 = vmatmul.f32.vlgmr.msra.gmra.mxu0 %v4420_v17 }
 0x7fb   :  { %5903 = vrcp.f32 %v4318_v55  ;;  %v5902_v28 = vpop.eup %5901  ;;  %v4391_v9 = vand.u32 2147483648, %v4318_v55  ;;  %vm4385_vm1 = vweird.f32 %v4318_v55 }
 0x7fc   :  { %v4366_v39 = vmul.f32 %v5902_v28, %v8126_v32  ;;  %vm4371_vm2 = vweird.f32 %v5902_v28 }
 0x7fd   :  { %v4392_v2 = vor.u32 1.1754944e-38, %v4391_v9  ;;  %vm4372_vm5 = vmor %vm4370_vm4, %vm4371_vm2 }
 0x7fe   :  { %v4367_v30 = vsub.f32 1.0, %v4366_v39 }
 0x800   :  { %v4368_v33 = vmul.f32 %v5902_v28, %v4367_v30 }
 0x801   :  { %v5904_v22 = vpop.eup %5903 }
 0x802   :  { %v4381_v10 = vmul.f32 %v5904_v22, %v4318_v55  ;;  %vm4386_vm0 = vweird.f32 %v5904_v22  ;;  %v4369_v8 = vadd.f32 %v5902_v28, %v4368_v33 }
 0x803   :  { %vm4387_vm3 = vmor %vm4385_vm1, %vm4386_vm0 }
 0x804   :  { %v4382_v19 = vsub.f32 1.0, %v4381_v10  ;;  %v4373_v16 = vsel %vm4372_vm5, %v5902_v28, %v4369_v8 }
 0x805   :  { %v4250_v60 = vpop.f32.mrf.mxu1  ;;  %v4378_v34 = vsel %vm4375_vm7, %v4377_v0, %v4373_v16 }
 0x806   :  { %v4251_v6 = vadd.f32 %v4250_v60, %v8089_v15  ;;  %v4383_v35 = vmul.f32 %v5904_v22, %v4382_v19  ;;  %v4389_v15 = vand.u32 2147483647, %v4318_v55 }
 0x808   :  { %v4294_v50 = vadd.f32 %v4251_v6, %v9328_v46  ;;  %v4384_v53 = vadd.f32 %v5904_v22, %v4383_v35  ;;  %vm4390_vm6 = vcmp.eq.f32.partialorder %v4389_v15, 8.507059e+37 }
 0x80a   :  { %v5418_v25 = vmul.f32 -1.442695, %v4294_v50  ;;  %v4388_v13 = vsel %vm4387_vm3, %v5904_v22, %v4384_v53 }
 0x80b   :  { %v4276_v41 = vpop.f32.mrf.mxu3  ;;  %v4393_v5 = vsel %vm4390_vm6, %v4392_v2, %v4388_v13 }
 0x80c   :  { %5905 = vpow2.f32 %v5418_v25  ;;  %v4277_v31 = vadd.f32 %v4276_v41, %v8097_v4  ;;  %v4413_v51 = vmul.f32 %v4393_v5, %v8015_v26  ;;  %v5656_v26 = vld [vmem:[%s8157_s4] ss:$0 sm:$0xff] }
 0x80d   :  { %v4252_v59 = vpop.f32.mrf.mxu1 }
 0x80e   :  { %v4295_v24 = vadd.f32 %v4277_v31, %v9329_v3 }
 0x810   :  { %5907 = vtanh.f32 %v4295_v24 }
 0x812   :  { %v5906_v4 = vpop.eup %5905 }
 0x813   :  { %v4319_v56 = vadd.f32 1.0, %v5906_v4  ;;  %v4278_v18 = vpop.f32.mrf.mxu3 }
 0x815   :  { %5909 = vrcp.f32 %v4319_v56  ;;  %v4406_v37 = vand.u32 2147483648, %v4319_v56  ;;  %v4404_v45 = vand.u32 2147483647, %v4319_v56  ;;  %vm4400_vm9 = vweird.f32 %v4319_v56 }
 0x816   :  { %v5908_v11 = vpop.eup %5907 }
 0x817   :  { %v4415_v38 = vmul.f32 %v5908_v11, %v4378_v34  ;;  %v4407_v47 = vor.u32 1.1754944e-38, %v4406_v37  ;;  %vm4405_vm11 = vcmp.eq.f32.partialorder %v4404_v45, 8.507059e+37 }
 0x819   :  { %v4417_v12 = vadd.f32 %v4415_v38, %v4413_v51 }
 0x81b   :  { %v5910_v43 = vpop.eup %5909  ;;  %4502 = vmatmul.f32.vlgmr.msra.gmra.mxu3 %v4417_v12  ;;  %5911 = vtanh.f32 %v4417_v12 }
 0x81c   :  { %v4396_v36 = vmul.f32 %v5910_v43, %v4319_v56  ;;  %vm4401_vm8 = vweird.f32 %v5910_v43 }
 0x81d   :  { %vm4402_vm10 = vmor %vm4400_vm9, %vm4401_vm8 }
 0x81e   :  { %v4397_v27 = vsub.f32 1.0, %v4396_v36 }
 0x820   :  { %v4398_v7 = vmul.f32 %v5910_v43, %v4397_v27 }
 0x821   :  { %v5912_v44 = vpop.eup %5911 }
 0x822   :  { %v4399_v29 = vadd.f32 %v5910_v43, %v4398_v7 }
 0x824   :  { %v4403_v42 = vsel %vm4402_vm10, %v5910_v43, %v4399_v29 }
 0x825   :  { %v4408_v62 = vsel %vm4405_vm11, %v4407_v47, %v4403_v42 }
 0x826   :  { %v4421_v54 = vmul.f32 %v5912_v44, %v4408_v62 }
 0x828   :  { %4423 = vst [vmem:[%s8158_s5 + $0x8] sm:$0xff] %v4421_v54  ;;  %4499 = vmatmul.f32.vlgmr.msra.gmra.mxu1 %v4421_v54 }
 0x873   :  { %v4480_v57 = vpop.f32.mrf.mxu2 }
 0x874   :  { %v4481_v49 = vadd.f32 %v5656_v26, %v4480_v57 }
 0x876   :  { %v4477_v40 = vpop.f32.mrf.mxu0 }
 0x877   :  { %v4478_v20 = vadd.f32 %v5656_v26, %v4477_v40 }
 0x89e   :  { %v4503_v52 = vpop.f32.mrf.mxu3 }
 0x89f   :  { %v4504_v32 = vadd.f32 %v4503_v52, %v4481_v49 }
 0x8a1   :  { %4507 = vst [vmem:[%s8159_s6 + $0x8] sm:$0xff] %v4504_v32 }
 0x8a5   :  { %v4500_v21 = vpop.f32.mrf.mxu1 }
 0x8a6   :  { %v4501_v61 = vadd.f32 %v4500_v21, %v4478_v20 }
 0x8a8   :  { %4506 = vst [vmem:[%s8159_s6] sm:$0xff] %v4501_v61 }
 0x8a9   :  { %4516 = vsyncpa [#allocation4], 1 }
 0x8aa   :  { %4517 = vsyncpa [#allocation6], 1 }

</bundles_post_ra>
